<compile_context>
chip_gen: v5e
topology: v5e:2x2
jax: 0.10.0
libtpu: 0.0.40
codegen_flags: <defaults>
</compile_context>

<pallas_src>
import functools

import jax
import jax.numpy as jnp
from jax.experimental import pallas as pl
from jax.experimental.pallas import tpu as pltpu


def _vmem_cap_bytes():
    """Physical per-core VMEM, conservatively 64 MiB if it cannot be queried."""
    default = 64 * 1024 * 1024
    get_info = getattr(pltpu, "get_tpu_info", None)
    if get_info is None:
        return default
    try:
        cap = getattr(get_info(), "vmem_capacity_bytes", None)
        return int(cap) if cap else default
    except Exception:
        return default


def _gen_conv_block_kernel(x_ref, w_ref, o_ref, xp_ref, patch_ref, sum_ref,
                           ssq_ref, *, C_in, C_in_pad, H, W, K, TH, eps,
                           use_activ):
    # x_ref:     (1, C_in, H, W)             bf16 input (this batch element)
    # w_ref:     (C_out, K*K*C_in_pad)       bf16 folded weights (all of C_out)
    # o_ref:     (1, C_out, H*W)             lane-dense output slab
    # xp_ref:    (C_in_pad, H+2p, W+2p)      bf16 scratch, reflect-padded input
    # patch_ref: (K*K*C_in_pad, TH*W)        bf16 scratch, im2col row tile
    # sum_ref, ssq_ref: (C_out, 1)           f32 scratch, per-channel stats
    pad = (K - 1) // 2
    HW = H * W
    THW = TH * W
    n_rb = H // TH
    Hp = H + 2 * pad
    Wp = W + 2 * pad

    # ---- Reflect padding, built ONCE per batch element (all C_out) ----------
    if C_in_pad > C_in:  # zero the alignment-padding channels once
        xp_ref[C_in:, :, :] = jnp.zeros((C_in_pad - C_in, Hp, Wp),
                                        dtype=xp_ref.dtype)
    xp_ref[:C_in, pad:pad + H, pad:pad + W] = x_ref[0]
    for i in range(pad):  # top / bottom mirrored rows
        xp_ref[:C_in, i:i + 1, pad:pad + W] = x_ref[0, :, pad - i:pad - i + 1, :]
        xp_ref[:C_in, pad + H + i:pad + H + i + 1, pad:pad + W] = (
            x_ref[0, :, H - 2 - i:H - 1 - i, :])
    for i in range(pad):  # left / right mirrored columns (corners included)
        xp_ref[:C_in, :, i:i + 1] = xp_ref[:C_in, :, 2 * pad - i:2 * pad - i + 1]
        xp_ref[:C_in, :, pad + W + i:pad + W + i + 1] = (
            xp_ref[:C_in, :, pad + W - 2 - i:pad + W - 1 - i])

    sum_ref[...] = jnp.zeros_like(sum_ref)
    ssq_ref[...] = jnp.zeros_like(ssq_ref)

    # ---- Conv: im2col per row tile + one MXU matmul (M = C_out) per tile ----
    def do_row_tile(rb):
        r0 = rb * TH
        off = rb * THW
        if not isinstance(rb, int):  # dynamic row tile: alignment hints
            r0 = pl.multiple_of(r0, TH)
            off = pl.multiple_of(off, THW)
        for dy in range(K):          # K*K tap loop stays unrolled
            for dx in range(K):
                tap = dy * K + dx
                blk = xp_ref[:, pl.ds(r0 + dy, TH), dx:dx + W]  # (C_in_pad,TH,W)
                # Aligned sublane store (tap*C_in_pad is a multiple of 16).
                patch_ref[tap * C_in_pad:(tap + 1) * C_in_pad, :] = (
                    blk.reshape(C_in_pad, THW))
        # (C_out, K*K*C_in_pad) @ (K*K*C_in_pad, TH*W) -> f32 (C_out, TH*W)
        res = jnp.dot(w_ref[...], patch_ref[...],
                      preferred_element_type=jnp.float32)
        sum_ref[...] += jnp.sum(res, axis=-1, keepdims=True)
        ssq_ref[...] += jnp.sum(res * res, axis=-1, keepdims=True)
        o_ref[0, :, pl.ds(off, THW)] = res.astype(o_ref.dtype)

    if n_rb == 1:
        do_row_tile(0)               # fully static fast path
    else:
        def body(rb, carry):
            do_row_tile(rb)
            return carry
        jax.lax.fori_loop(0, n_rb, body, 0)

    # ---- InstanceNorm (one-pass biased stats, f32) + ReLU --------------------
    inv_n = 1.0 / float(HW)
    mean = sum_ref[...] * inv_n                                   # (C_out, 1)
    var = jnp.maximum(ssq_ref[...] * inv_n - mean * mean, 0.0)    # clamp >= 0
    scale = jax.lax.rsqrt(var + eps)
    y = (o_ref[0, :, :].astype(jnp.float32) - mean) * scale
    if use_activ:
        y = jnp.maximum(y, 0.0)
    o_ref[0, :, :] = y.astype(o_ref.dtype)


def generator_conv_block(x, w, *, eps=1e-5, mxu_dtype=jnp.bfloat16,
                         out_dtype=jnp.float32, use_activ=True,
                         max_patch_cols=2048):
    """x: (N, C_in, H, W) f32/bf16, w: (C_out, C_in, K, K) -> (N, C_out, H, W)."""
    N, C_in, H, W = x.shape
    C_out, C_in_w, K, K_w = w.shape
    assert C_in_w == C_in and K_w == K and K % 2 == 1
    pad = (K - 1) // 2
    assert pad < H and pad < W, "reflect padding requires pad < spatial dims"

    # Row tile: largest divisor of H with TH*W <= max_patch_cols, preferring
    # 128-lane-aligned TH*W so per-tile output stores need no lane repacking.
    cand = [d for d in range(1, H + 1) if H % d == 0 and d * W <= max_patch_cols]
    if not cand:
        cand = [1]
    aligned = [d for d in cand if (d * W) % 128 == 0]
    TH = max(aligned) if aligned else max(cand)
    THW = TH * W

    # Pad C_in to the bf16 sublane pack so every im2col tap write is aligned.
    sub_pack = 16 if mxu_dtype == jnp.bfloat16 else 8
    C_in_pad = ((C_in + sub_pack - 1) // sub_pack) * sub_pack
    Kp = K * K * C_in_pad

    # Fold weights: (C_out, C_in, K, K) -> (C_out, K*K*C_in_pad) in MXU dtype.
    # Column index = (dy*K + dx)*C_in_pad + ci, matching the patch row layout;
    # padding columns are zero.
    w_t = jnp.transpose(w, (0, 2, 3, 1))                     # (C_out, K, K, C_in)
    if C_in_pad != C_in:
        w_t = jnp.pad(w_t, ((0, 0), (0, 0), (0, 0), (0, C_in_pad - C_in)))
    w_f = w_t.reshape(C_out, Kp).astype(mxu_dtype)

    # bf16 activation path: halves the input HBM stream and the halo scratch.
    x_in = x.astype(mxu_dtype)

    # Generation-aware VMEM budget (double-buffered blocks + scratch).
    Hp, Wp = H + 2 * pad, W + 2 * pad
    in_b = jnp.dtype(mxu_dtype).itemsize
    out_b = jnp.dtype(out_dtype).itemsize
    req = (2 * C_in * H * W * in_b          # x blocks
           + 2 * C_out * Kp * in_b          # weight blocks
           + 2 * C_out * H * W * out_b      # output blocks
           + C_in_pad * Hp * Wp * in_b      # padded-input scratch
           + Kp * THW * in_b                # im2col patch scratch
           + 2 * C_out * 4)                 # stats scratch
    vmem_limit = int(min(max(req * 3 // 2 + (2 << 20), 32 << 20),
                         _vmem_cap_bytes()))

    kernel = functools.partial(
        _gen_conv_block_kernel,
        C_in=C_in, C_in_pad=C_in_pad, H=H, W=W, K=K, TH=TH, eps=eps,
        use_activ=use_activ)

    out_flat = pl.pallas_call(
        kernel,
        out_shape=jax.ShapeDtypeStruct((N, C_out, H * W), out_dtype),
        grid_spec=pltpu.PrefetchScalarGridSpec(
            num_scalar_prefetch=0,
            grid=(N,),
            in_specs=[
                pl.BlockSpec((1, C_in, H, W), lambda b: (b, 0, 0, 0)),
                pl.BlockSpec((C_out, Kp), lambda b: (0, 0)),
            ],
            out_specs=pl.BlockSpec((1, C_out, H * W), lambda b: (b, 0, 0)),
            scratch_shapes=[
                pltpu.VMEM((C_in_pad, Hp, Wp), mxu_dtype),
                pltpu.VMEM((Kp, THW), mxu_dtype),
                pltpu.VMEM((C_out, 1), jnp.float32),
                pltpu.VMEM((C_out, 1), jnp.float32),
            ],
        ),
        compiler_params=pltpu.CompilerParams(
            dimension_semantics=("parallel",),
            vmem_limit_bytes=vmem_limit,
        ),
    )(x_in, w_f)

    return out_flat.reshape(N, C_out, H, W)


def _reference(x, w, eps=1e-5, mxu_dtype=jnp.bfloat16, use_activ=True):
    """Pure-JAX reference with the same bf16-at-MXU / f32-accumulate contract."""
    K = w.shape[-1]
    pad = (K - 1) // 2
    x_pad = jnp.pad(x, ((0, 0), (0, 0), (pad, pad), (pad, pad)), mode="reflect")
    y = jax.lax.conv_general_dilated(
        x_pad.astype(mxu_dtype), w.astype(mxu_dtype),
        window_strides=(1, 1), padding="VALID",
        dimension_numbers=("NCHW", "OIHW", "NCHW"),
        preferred_element_type=jnp.float32)
    mean = jnp.mean(y, axis=(2, 3), keepdims=True)
    var = jnp.mean((y - mean) ** 2, axis=(2, 3), keepdims=True)
    y = (y - mean) * jax.lax.rsqrt(var + eps)
    return jnp.maximum(y, 0.0) if use_activ else y


if __name__ == "__main__":
    key = jax.random.PRNGKey(0)
    kx, kw = jax.random.split(key)

    N, C_in, C_out, H, W, K = 2, 4, 16, 16, 16, 3
    x = jax.random.normal(kx, (N, C_in, H, W), dtype=jnp.float32)
    fan_in = C_in * K * K
    bound = 1.0 / (fan_in ** 0.5)
    w = jax.random.uniform(kw, (C_out, C_in, K, K), jnp.float32, -bound, bound)

    ref = _reference(x, w)

    # Default tiling: single row tile (fully static path).
    out = generator_conv_block(x, w)
    out = jax.block_until_ready(out)
    assert out.shape == (N, C_out, H, W)
    assert jnp.allclose(out, ref, atol=1e-3, rtol=1e-3), "mismatch (default)"

    # Multi-row-tile path (fori_loop + 128-aligned dynamic lane offsets).
    out2 = generator_conv_block(x, w, max_patch_cols=128)
    out2 = jax.block_until_ready(out2)
    assert jnp.allclose(out2, ref, atol=1e-3, rtol=1e-3), "mismatch (tiled)"

    print("KERNEL_OK")
</pallas_src>

<mosaic_0001>
module attributes {stable_mosaic.version = 11 : i64} {
  func.func @_gen_conv_block_kernel(%arg0: i32, %arg1: memref<1x4x16x16xbf16, #tpu.memory_space<vmem>>, %arg2: memref<16x144xbf16, #tpu.memory_space<vmem>>, %arg3: memref<1x16x256xf32, #tpu.memory_space<vmem>>, %arg4: memref<16x18x18xbf16, #tpu.memory_space<vmem>>, %arg5: memref<144x256xbf16, #tpu.memory_space<vmem>>, %arg6: memref<16x1xf32, #tpu.memory_space<vmem>>, %arg7: memref<16x1xf32, #tpu.memory_space<vmem>>) attributes {dimension_semantics = [#tpu.dimension_semantics<parallel>], iteration_bounds = array<i64: 2>, scalar_prefetch = 0 : i64, scratch_operands = 4 : i64, tpu.core_type = #tpu.core_type<tc>, window_params = [{transform_indices = @transform_0, window_bounds = array<i64: 1, 4, 16, 16>}, {pipeline_mode = #tpu.pipeline_mode<synchronous>, transform_indices = @transform_1, window_bounds = array<i64: 16, 144>}, {transform_indices = @transform_2, window_bounds = array<i64: 1, 16, 256>}]} {
    %cst = arith.constant 0.000000e+00 : bf16
    %0 = vector.broadcast %cst : bf16 to vector<12x18x18xbf16>
    %c4 = arith.constant 4 : index
    %c0 = arith.constant 0 : index
    %c0_0 = arith.constant 0 : index
    %1 = vector.load %arg4[%c4, %c0, %c0_0] : memref<16x18x18xbf16, #tpu.memory_space<vmem>>, vector<12x18x18xbf16>
    tpu.vector_store %arg4[%c4, %c0, %c0_0], %0 {strides = array<i32>} : memref<16x18x18xbf16, #tpu.memory_space<vmem>>, vector<12x18x18xbf16>,
    %c0_1 = arith.constant 0 : index
    %c0_2 = arith.constant 0 : index
    %c0_3 = arith.constant 0 : index
    %c0_4 = arith.constant 0 : index
    %2 = vector.load %arg1[%c0_1, %c0_2, %c0_3, %c0_4] : memref<1x4x16x16xbf16, #tpu.memory_space<vmem>>, vector<1x4x16x16xbf16>
    %3 = vector.shape_cast %2 : vector<1x4x16x16xbf16> to vector<4x16x16xbf16>
    %c0_5 = arith.constant 0 : index
    %c1 = arith.constant 1 : index
    %c1_6 = arith.constant 1 : index
    %4 = vector.load %arg4[%c0_5, %c1, %c1_6] : memref<16x18x18xbf16, #tpu.memory_space<vmem>>, vector<4x16x16xbf16>
    tpu.vector_store %arg4[%c0_5, %c1, %c1_6], %3 {strides = array<i32>} : memref<16x18x18xbf16, #tpu.memory_space<vmem>>, vector<4x16x16xbf16>,
    %c0_7 = arith.constant 0 : index
    %c0_8 = arith.constant 0 : index
    %c1_9 = arith.constant 1 : index
    %c0_10 = arith.constant 0 : index
    %5 = vector.load %arg1[%c0_7, %c0_8, %c1_9, %c0_10] : memref<1x4x16x16xbf16, #tpu.memory_space<vmem>>, vector<1x4x1x16xbf16>
    %6 = vector.shape_cast %5 : vector<1x4x1x16xbf16> to vector<4x1x16xbf16>
    %c0_11 = arith.constant 0 : index
    %c0_12 = arith.constant 0 : index
    %c1_13 = arith.constant 1 : index
    %7 = vector.load %arg4[%c0_11, %c0_12, %c1_13] : memref<16x18x18xbf16, #tpu.memory_space<vmem>>, vector<4x1x16xbf16>
    tpu.vector_store %arg4[%c0_11, %c0_12, %c1_13], %6 {strides = array<i32>} : memref<16x18x18xbf16, #tpu.memory_space<vmem>>, vector<4x1x16xbf16>,
    %c0_14 = arith.constant 0 : index
    %c0_15 = arith.constant 0 : index
    %c14 = arith.constant 14 : index
    %c0_16 = arith.constant 0 : index
    %8 = vector.load %arg1[%c0_14, %c0_15, %c14, %c0_16] : memref<1x4x16x16xbf16, #tpu.memory_space<vmem>>, vector<1x4x1x16xbf16>
    %9 = vector.shape_cast %8 : vector<1x4x1x16xbf16> to vector<4x1x16xbf16>
    %c0_17 = arith.constant 0 : index
    %c17 = arith.constant 17 : index
    %c1_18 = arith.constant 1 : index
    %10 = vector.load %arg4[%c0_17, %c17, %c1_18] : memref<16x18x18xbf16, #tpu.memory_space<vmem>>, vector<4x1x16xbf16>
    tpu.vector_store %arg4[%c0_17, %c17, %c1_18], %9 {strides = array<i32>} : memref<16x18x18xbf16, #tpu.memory_space<vmem>>, vector<4x1x16xbf16>,
    %c0_19 = arith.constant 0 : index
    %c0_20 = arith.constant 0 : index
    %c2 = arith.constant 2 : index
    %11 = vector.load %arg4[%c0_19, %c0_20, %c2] : memref<16x18x18xbf16, #tpu.memory_space<vmem>>, vector<4x18x1xbf16>
    %c0_21 = arith.constant 0 : index
    %c0_22 = arith.constant 0 : index
    %c0_23 = arith.constant 0 : index
    %12 = vector.load %arg4[%c0_21, %c0_22, %c0_23] : memref<16x18x18xbf16, #tpu.memory_space<vmem>>, vector<4x18x1xbf16>
    tpu.vector_store %arg4[%c0_21, %c0_22, %c0_23], %11 {strides = array<i32>} : memref<16x18x18xbf16, #tpu.memory_space<vmem>>, vector<4x18x1xbf16>,
    %c0_24 = arith.constant 0 : index
    %c0_25 = arith.constant 0 : index
    %c15 = arith.constant 15 : index
    %13 = vector.load %arg4[%c0_24, %c0_25, %c15] : memref<16x18x18xbf16, #tpu.memory_space<vmem>>, vector<4x18x1xbf16>
    %c0_26 = arith.constant 0 : index
    %c0_27 = arith.constant 0 : index
    %c17_28 = arith.constant 17 : index
    %14 = vector.load %arg4[%c0_26, %c0_27, %c17_28] : memref<16x18x18xbf16, #tpu.memory_space<vmem>>, vector<4x18x1xbf16>
    tpu.vector_store %arg4[%c0_26, %c0_27, %c17_28], %13 {strides = array<i32>} : memref<16x18x18xbf16, #tpu.memory_space<vmem>>, vector<4x18x1xbf16>,
    %cst_29 = arith.constant 0.000000e+00 : f32
    %15 = vector.broadcast %cst_29 : f32 to vector<16x1xf32>
    %c0_30 = arith.constant 0 : index
    %c0_31 = arith.constant 0 : index
    %16 = vector.load %arg6[%c0_30, %c0_31] : memref<16x1xf32, #tpu.memory_space<vmem>>, vector<16x1xf32>
    tpu.vector_store %arg6[%c0_30, %c0_31], %15 {strides = array<i32>} : memref<16x1xf32, #tpu.memory_space<vmem>>, vector<16x1xf32>,
    %cst_32 = arith.constant 0.000000e+00 : f32
    %17 = vector.broadcast %cst_32 : f32 to vector<16x1xf32>
    %c0_33 = arith.constant 0 : index
    %c0_34 = arith.constant 0 : index
    %18 = vector.load %arg7[%c0_33, %c0_34] : memref<16x1xf32, #tpu.memory_space<vmem>>, vector<16x1xf32>
    tpu.vector_store %arg7[%c0_33, %c0_34], %17 {strides = array<i32>} : memref<16x1xf32, #tpu.memory_space<vmem>>, vector<16x1xf32>,
    %c0_35 = arith.constant 0 : index
    %c0_36 = arith.constant 0 : index
    %c0_37 = arith.constant 0 : index
    %19 = vector.load %arg4[%c0_35, %c0_36, %c0_37] : memref<16x18x18xbf16, #tpu.memory_space<vmem>>, vector<16x16x16xbf16>
    %20 = vector.shape_cast %19 : vector<16x16x16xbf16> to vector<16x256xbf16>
    %c0_38 = arith.constant 0 : index
    %c0_39 = arith.constant 0 : index
    %21 = vector.load %arg5[%c0_38, %c0_39] : memref<144x256xbf16, #tpu.memory_space<vmem>>, vector<16x256xbf16>
    tpu.vector_store %arg5[%c0_38, %c0_39], %20 {strides = array<i32>} : memref<144x256xbf16, #tpu.memory_space<vmem>>, vector<16x256xbf16>,
    %c0_40 = arith.constant 0 : index
    %c0_41 = arith.constant 0 : index
    %c1_42 = arith.constant 1 : index
    %22 = vector.load %arg4[%c0_40, %c0_41, %c1_42] : memref<16x18x18xbf16, #tpu.memory_space<vmem>>, vector<16x16x16xbf16>
    %23 = vector.shape_cast %22 : vector<16x16x16xbf16> to vector<16x256xbf16>
    %c16 = arith.constant 16 : index
    %c0_43 = arith.constant 0 : index
    %24 = vector.load %arg5[%c16, %c0_43] : memref<144x256xbf16, #tpu.memory_space<vmem>>, vector<16x256xbf16>
    tpu.vector_store %arg5[%c16, %c0_43], %23 {strides = array<i32>} : memref<144x256xbf16, #tpu.memory_space<vmem>>, vector<16x256xbf16>,
    %c0_44 = arith.constant 0 : index
    %c0_45 = arith.constant 0 : index
    %c2_46 = arith.constant 2 : index
    %25 = vector.load %arg4[%c0_44, %c0_45, %c2_46] : memref<16x18x18xbf16, #tpu.memory_space<vmem>>, vector<16x16x16xbf16>
    %26 = vector.shape_cast %25 : vector<16x16x16xbf16> to vector<16x256xbf16>
    %c32 = arith.constant 32 : index
    %c0_47 = arith.constant 0 : index
    %27 = vector.load %arg5[%c32, %c0_47] : memref<144x256xbf16, #tpu.memory_space<vmem>>, vector<16x256xbf16>
    tpu.vector_store %arg5[%c32, %c0_47], %26 {strides = array<i32>} : memref<144x256xbf16, #tpu.memory_space<vmem>>, vector<16x256xbf16>,
    %c0_48 = arith.constant 0 : index
    %c1_49 = arith.constant 1 : index
    %c0_50 = arith.constant 0 : index
    %28 = vector.load %arg4[%c0_48, %c1_49, %c0_50] : memref<16x18x18xbf16, #tpu.memory_space<vmem>>, vector<16x16x16xbf16>
    %29 = vector.shape_cast %28 : vector<16x16x16xbf16> to vector<16x256xbf16>
    %c48 = arith.constant 48 : index
    %c0_51 = arith.constant 0 : index
    %30 = vector.load %arg5[%c48, %c0_51] : memref<144x256xbf16, #tpu.memory_space<vmem>>, vector<16x256xbf16>
    tpu.vector_store %arg5[%c48, %c0_51], %29 {strides = array<i32>} : memref<144x256xbf16, #tpu.memory_space<vmem>>, vector<16x256xbf16>,
    %c0_52 = arith.constant 0 : index
    %c1_53 = arith.constant 1 : index
    %c1_54 = arith.constant 1 : index
    %31 = vector.load %arg4[%c0_52, %c1_53, %c1_54] : memref<16x18x18xbf16, #tpu.memory_space<vmem>>, vector<16x16x16xbf16>
    %32 = vector.shape_cast %31 : vector<16x16x16xbf16> to vector<16x256xbf16>
    %c64 = arith.constant 64 : index
    %c0_55 = arith.constant 0 : index
    %33 = vector.load %arg5[%c64, %c0_55] : memref<144x256xbf16, #tpu.memory_space<vmem>>, vector<16x256xbf16>
    tpu.vector_store %arg5[%c64, %c0_55], %32 {strides = array<i32>} : memref<144x256xbf16, #tpu.memory_space<vmem>>, vector<16x256xbf16>,
    %c0_56 = arith.constant 0 : index
    %c1_57 = arith.constant 1 : index
    %c2_58 = arith.constant 2 : index
    %34 = vector.load %arg4[%c0_56, %c1_57, %c2_58] : memref<16x18x18xbf16, #tpu.memory_space<vmem>>, vector<16x16x16xbf16>
    %35 = vector.shape_cast %34 : vector<16x16x16xbf16> to vector<16x256xbf16>
    %c80 = arith.constant 80 : index
    %c0_59 = arith.constant 0 : index
    %36 = vector.load %arg5[%c80, %c0_59] : memref<144x256xbf16, #tpu.memory_space<vmem>>, vector<16x256xbf16>
    tpu.vector_store %arg5[%c80, %c0_59], %35 {strides = array<i32>} : memref<144x256xbf16, #tpu.memory_space<vmem>>, vector<16x256xbf16>,
    %c0_60 = arith.constant 0 : index
    %c2_61 = arith.constant 2 : index
    %c0_62 = arith.constant 0 : index
    %37 = vector.load %arg4[%c0_60, %c2_61, %c0_62] : memref<16x18x18xbf16, #tpu.memory_space<vmem>>, vector<16x16x16xbf16>
    %38 = vector.shape_cast %37 : vector<16x16x16xbf16> to vector<16x256xbf16>
    %c96 = arith.constant 96 : index
    %c0_63 = arith.constant 0 : index
    %39 = vector.load %arg5[%c96, %c0_63] : memref<144x256xbf16, #tpu.memory_space<vmem>>, vector<16x256xbf16>
    tpu.vector_store %arg5[%c96, %c0_63], %38 {strides = array<i32>} : memref<144x256xbf16, #tpu.memory_space<vmem>>, vector<16x256xbf16>,
    %c0_64 = arith.constant 0 : index
    %c2_65 = arith.constant 2 : index
    %c1_66 = arith.constant 1 : index
    %40 = vector.load %arg4[%c0_64, %c2_65, %c1_66] : memref<16x18x18xbf16, #tpu.memory_space<vmem>>, vector<16x16x16xbf16>
    %41 = vector.shape_cast %40 : vector<16x16x16xbf16> to vector<16x256xbf16>
    %c112 = arith.constant 112 : index
    %c0_67 = arith.constant 0 : index
    %42 = vector.load %arg5[%c112, %c0_67] : memref<144x256xbf16, #tpu.memory_space<vmem>>, vector<16x256xbf16>
    tpu.vector_store %arg5[%c112, %c0_67], %41 {strides = array<i32>} : memref<144x256xbf16, #tpu.memory_space<vmem>>, vector<16x256xbf16>,
    %c0_68 = arith.constant 0 : index
    %c2_69 = arith.constant 2 : index
    %c2_70 = arith.constant 2 : index
    %43 = vector.load %arg4[%c0_68, %c2_69, %c2_70] : memref<16x18x18xbf16, #tpu.memory_space<vmem>>, vector<16x16x16xbf16>
    %44 = vector.shape_cast %43 : vector<16x16x16xbf16> to vector<16x256xbf16>
    %c128 = arith.constant 128 : index
    %c0_71 = arith.constant 0 : index
    %45 = vector.load %arg5[%c128, %c0_71] : memref<144x256xbf16, #tpu.memory_space<vmem>>, vector<16x256xbf16>
    tpu.vector_store %arg5[%c128, %c0_71], %44 {strides = array<i32>} : memref<144x256xbf16, #tpu.memory_space<vmem>>, vector<16x256xbf16>,
    %c0_72 = arith.constant 0 : index
    %c0_73 = arith.constant 0 : index
    %46 = vector.load %arg2[%c0_72, %c0_73] : memref<16x144xbf16, #tpu.memory_space<vmem>>, vector<16x144xbf16>
    %c0_74 = arith.constant 0 : index
    %c0_75 = arith.constant 0 : index
    %47 = vector.load %arg5[%c0_74, %c0_75] : memref<144x256xbf16, #tpu.memory_space<vmem>>, vector<144x256xbf16>
    %cst_76 = arith.constant dense<0.000000e+00> : vector<16x256xf32>
    %48 = tpu.matmul %46, %47, %cst_76 {dimension_numbers = #tpu.dot_dimension_numbers<[1], [0], [0], [1], [0, 0, 1, 1], [], []>} : vector<16x144xbf16>, vector<144x256xbf16>, vector<16x256xf32> -> vector<16x256xf32>
    %c0_77 = arith.constant 0 : index
    %c0_78 = arith.constant 0 : index
    %49 = vector.load %arg6[%c0_77, %c0_78] : memref<16x1xf32, #tpu.memory_space<vmem>>, vector<16x1xf32>
    %cst_79 = arith.constant dense<0.000000e+00> : vector<16xf32>
    %50 = vector.multi_reduction <add>, %48, %cst_79 [1] : vector<16x256xf32> to vector<16xf32>
    %51 = vector.shape_cast %50 : vector<16xf32> to vector<16x1xf32>
    %52 = arith.addf %49, %51 : vector<16x1xf32>
    %c0_80 = arith.constant 0 : index
    %c0_81 = arith.constant 0 : index
    %53 = vector.load %arg6[%c0_80, %c0_81] : memref<16x1xf32, #tpu.memory_space<vmem>>, vector<16x1xf32>
    tpu.vector_store %arg6[%c0_80, %c0_81], %52 {strides = array<i32>} : memref<16x1xf32, #tpu.memory_space<vmem>>, vector<16x1xf32>,
    %c0_82 = arith.constant 0 : index
    %c0_83 = arith.constant 0 : index
    %54 = vector.load %arg7[%c0_82, %c0_83] : memref<16x1xf32, #tpu.memory_space<vmem>>, vector<16x1xf32>
    %55 = arith.mulf %48, %48 : vector<16x256xf32>
    %cst_84 = arith.constant dense<0.000000e+00> : vector<16xf32>
    %56 = vector.multi_reduction <add>, %55, %cst_84 [1] : vector<16x256xf32> to vector<16xf32>
    %57 = vector.shape_cast %56 : vector<16xf32> to vector<16x1xf32>
    %58 = arith.addf %54, %57 : vector<16x1xf32>
    %c0_85 = arith.constant 0 : index
    %c0_86 = arith.constant 0 : index
    %59 = vector.load %arg7[%c0_85, %c0_86] : memref<16x1xf32, #tpu.memory_space<vmem>>, vector<16x1xf32>
    tpu.vector_store %arg7[%c0_85, %c0_86], %58 {strides = array<i32>} : memref<16x1xf32, #tpu.memory_space<vmem>>, vector<16x1xf32>,
    %c0_87 = arith.constant 0 : index
    %c0_88 = arith.constant 0 : index
    %c0_89 = arith.constant 0 : index
    %60 = vector.load %arg3[%c0_87, %c0_88, %c0_89] : memref<1x16x256xf32, #tpu.memory_space<vmem>>, vector<1x16x256xf32>
    %61 = vector.shape_cast %60 : vector<1x16x256xf32> to vector<16x256xf32>
    %62 = vector.shape_cast %48 : vector<16x256xf32> to vector<1x16x256xf32>
    tpu.vector_store %arg3[%c0_87, %c0_88, %c0_89], %62 {strides = array<i32>} : memref<1x16x256xf32, #tpu.memory_space<vmem>>, vector<1x16x256xf32>,
    %c0_90 = arith.constant 0 : index
    %c0_91 = arith.constant 0 : index
    %63 = vector.load %arg6[%c0_90, %c0_91] : memref<16x1xf32, #tpu.memory_space<vmem>>, vector<16x1xf32>
    %cst_92 = arith.constant 3.906250e-03 : f32
    %64 = vector.broadcast %cst_92 : f32 to vector<16x1xf32>
    %65 = arith.mulf %63, %64 : vector<16x1xf32>
    %c0_93 = arith.constant 0 : index
    %c0_94 = arith.constant 0 : index
    %66 = vector.load %arg7[%c0_93, %c0_94] : memref<16x1xf32, #tpu.memory_space<vmem>>, vector<16x1xf32>
    %cst_95 = arith.constant 3.906250e-03 : f32
    %67 = vector.broadcast %cst_95 : f32 to vector<16x1xf32>
    %68 = arith.mulf %66, %67 : vector<16x1xf32>
    %69 = arith.mulf %65, %65 : vector<16x1xf32>
    %70 = arith.subf %68, %69 : vector<16x1xf32>
    %cst_96 = arith.constant 0.000000e+00 : f32
    %71 = vector.broadcast %cst_96 : f32 to vector<16x1xf32>
    %72 = arith.maximumf %70, %71 : vector<16x1xf32>
    %cst_97 = arith.constant 9.99999974E-6 : f32
    %73 = vector.broadcast %cst_97 : f32 to vector<16x1xf32>
    %74 = arith.addf %72, %73 : vector<16x1xf32>
    %75 = math.rsqrt %74 : vector<16x1xf32>
    %c0_98 = arith.constant 0 : index
    %c0_99 = arith.constant 0 : index
    %c0_100 = arith.constant 0 : index
    %76 = vector.load %arg3[%c0_98, %c0_99, %c0_100] : memref<1x16x256xf32, #tpu.memory_space<vmem>>, vector<1x16x256xf32>
    %77 = vector.shape_cast %76 : vector<1x16x256xf32> to vector<16x256xf32>
    %78 = vector.broadcast %65 : vector<16x1xf32> to vector<16x256xf32>
    %79 = arith.subf %77, %78 : vector<16x256xf32>
    %80 = vector.broadcast %75 : vector<16x1xf32> to vector<16x256xf32>
    %81 = arith.mulf %79, %80 : vector<16x256xf32>
    %cst_101 = arith.constant 0.000000e+00 : f32
    %82 = vector.broadcast %cst_101 : f32 to vector<16x256xf32>
    %83 = arith.maximumf %81, %82 : vector<16x256xf32>
    %c0_102 = arith.constant 0 : index
    %c0_103 = arith.constant 0 : index
    %c0_104 = arith.constant 0 : index
    %84 = vector.load %arg3[%c0_102, %c0_103, %c0_104] : memref<1x16x256xf32, #tpu.memory_space<vmem>>, vector<1x16x256xf32>
    %85 = vector.shape_cast %84 : vector<1x16x256xf32> to vector<16x256xf32>
    %86 = vector.shape_cast %83 : vector<16x256xf32> to vector<1x16x256xf32>
    tpu.vector_store %arg3[%c0_102, %c0_103, %c0_104], %86 {strides = array<i32>} : memref<1x16x256xf32, #tpu.memory_space<vmem>>, vector<1x16x256xf32>,
    return
  }
  func.func @transform_0(%arg0: i32) -> (i32, i32, i32, i32) {
    %c0_i32 = arith.constant 0 : i32
    %c0_i32_0 = arith.constant 0 : i32
    %c0_i32_1 = arith.constant 0 : i32
    %c0_i32_2 = arith.constant 0 : i32
    return %arg0, %c0_i32, %c0_i32_0, %c0_i32_1 : i32, i32, i32, i32
  }
  func.func @transform_1(%arg0: i32) -> (i32, i32) {
    %c0_i32 = arith.constant 0 : i32
    %c0_i32_0 = arith.constant 0 : i32
    %c0_i32_1 = arith.constant 0 : i32
    return %c0_i32, %c0_i32_0 : i32, i32
  }
  func.func @transform_2(%arg0: i32) -> (i32, i32, i32) {
    %c0_i32 = arith.constant 0 : i32
    %c0_i32_0 = arith.constant 0 : i32
    %c0_i32_1 = arith.constant 0 : i32
    return %arg0, %c0_i32, %c0_i32_0 : i32, i32, i32
  }
}

</mosaic_0001>

<bundles_post_ra>
// kernel: tpu_custom_call.1
= control target key start
LH: loop header
LB: loop body
LE: loop exit
PB: predicated region body
PF: predicated region fallthrough
CT: control target
= control target key end

     0   :  { %7 = vsyncpa [#allocation7], 0  ;;  %s13081_s0 = inlined_call_operand.hbm [shape: bf16[2,4,16,16], index: 0, kind: input, shape index: {}]   ;;  %s13082_s1 = inlined_call_operand.hbm [shape: bf16[16,144], index: 1, kind: input, shape index: {}]   ;;  %s13083_s2 = inlined_call_operand.hbm [shape: f32[2,16,256], index: 2, kind: output, shape index: {}]  }
   0x1   :  { %9 = vsyncpa [#allocation7 + $0x1], 0 }
   0x2   :  { %10 = vsyncpa [#allocation10], 0 }
   0x3   :  { %11 = vsyncpa [#allocation8], 0 }
   0x4   :  { %13 = vsyncpa [#allocation8 + $0x1], 0  ;;  %s8119_s9 = smov 0   ;;  %s8121_s10 = smov 0  }
   0x5   :  { %s8123_s11 = smov 0   ;;  %s8125_s12 = smov 0  }
   0x6 LB: > { %s8140_s13 = sadd.s32 4294967295, %s8081_s12   ;;  %s7681_s14 = sadd.s32 4294967294, %s8081_s12   ;;  %s8081_s12 = sphi %s8125_s12, %s13703_s12   ;;  %s8077_s11 = sphi %s8123_s11, %s13702_s11   ;;  %s8073_s10 = sphi %s8121_s10, %s13701_s10   ;;  %s8069_s9 = sphi %s8119_s9, %s13700_s9  }
   0x7   : > { %p39_p0 = scmp.ne.s32.totalorder %s8073_s10, %s8069_s9  ;;  %p40_p1 = scmp.eq.s32.totalorder %s8140_s13, 0 }
   0x8   : > { %p84_p2 = scmp.eq.s32.totalorder %s8140_s13, 1  ;;  %p90_p3 = scmp.eq.s32.totalorder %s7681_s14, 1 }
   0x9   : > { %p8149_p4 = por %p40_p1, %p39_p0  ;;  %p7682_p5 = scmp.ge.s32.totalorder %s8081_s12, 1 }
   0xa   : > { %p8154_p6 = por %p90_p3, %p39_p0  ;;  %p97_p7 = scmp.lt.s32.totalorder %s8081_s12, 3 }
   0xb   : > { %s108_s19 = sshll.u32 %s13082_s1, 4  ;;  %s8083_s21 = smov [#allocation9]   ;;  %s109_s19 = int_to_ptr.hbm [resolvable:$true] %s108_s19 }
   0xc   : > { %p8162_p8 = pnand %p7682_p5, %p97_p7  ;;  %s110_s22 = sshll.u32 %s8083_s21, 4  ;;  %s111_s22 = int_to_ptr.vmem [resolvable:$true] %s110_s22 }
   0xd   : > { %s8172_s23 = sadd.s32 1, %s8081_s12   ;;  %s8084_s24 = smov 128  }
   0xe   : > { %p7865_p9 = pneg %p8162_p8  ;;  %s8085_s25 = smov 8  }
   0xf   : > { %s23_s26 = ssub.s32 %s8081_s12, %s8172_s23  ;;  %s26_s27 = sadd.s32 1, %s8077_s11 }
  0x10   : > { %p7866_p10 = pnand %p7865_p9, %p40_p1  ;;  %p24_p12 = scmp.eq.s32.totalorder %s23_s26, 0 }
  0x11   : > { %p33_p13 = scmp.ne.s32.totalorder %s8077_s11, %s8073_s10  ;;  %p34_p0 = scmp.eq.s32.totalorder %s8081_s12, 0 }
  0x12   : > { %7868 = dma.hbm_to_vmem [thread:$0]  (!%p7866_p10), %s109_s19, 256, %s111_s22, [#allocation10], %s8084_s24, %s8084_s24, %s8085_s25  }
  0x13   : > { %p7878_p3 = scmp.lt.s32.totalorder %s8081_s12, 2  ;;  %p35_p5 = por %p34_p0, %p33_p13 }
  0x14   : > { %s8182_s28 = scalar_select %p24_p12, %s8077_s11, %s26_s27  }
  0x15   : > { %p8186_p7 = por %p84_p2, %p33_p13  ;;  %s124_s30 = sand.u32 1, %s8077_s11  }
  0x16   : > { %s7835_s3 = sshll.u32 %s8081_s12, 5  ;;  %s7685_s4 = sshll.u32 %s124_s30, 5 }
  0x17   : > { %s133_s7 = scalar_lea.hbm %s13081_s0, %s7835_s3  ;;  %s128_s14 = scalar_lea.vmem [#allocation6], %s7685_s4 }
  0x18   : > { %s134_s8 = sshll.u32 %s133_s7, 4  ;;  %s136_s17 = sshll.u32 %s128_s14, 4  ;;  %s135_s8 = int_to_ptr.hbm [resolvable:$true] %s134_s8  ;;  %s137_s17 = int_to_ptr.vmem [resolvable:$true] %s136_s17 }
  0x19   : > { %p8197_p9 = pnand %p7878_p3, %p35_p5  ;;  %s125_s19 = scalar_lea.sflag [#allocation7], %s124_s30 }
  0x1a   : > { %s7981_s21 = sshra.s32 %s135_s8, 4  ;;  %s7988_s26 = scalar_lea.hbm %s13081_s0, 64  ;;  %s7982_s21 = int_to_ptr.hbm [resolvable:$true] %s7981_s21 }
  0x1b   : > { %s7983_s22 = scalar_lea.hbm %s7982_s21, 32  ;;  %p7985_p10 = pneg %p8197_p9 }
  0x1c   : > { %p7984_p2 = scmp.ne.s32.totalorder %s7982_s21, %s7983_s22  ;;  %p7989_p0 = scmp.lt.s32.totalorder %s7982_s21, %s13081_s0 }
  0x1d   : > { %p7990_p3 = scmp.lt.s32.totalorder %s7988_s26, %s7983_s22 }
  0x1e   : > { %p7986_p12 = pnand %p7985_p10, %p7984_p2 }
  0x1f   : > { %p7991_p5 = por %p7990_p3, %p7989_p0 }
  0x20   : > { %p7987_p13 = pneg %p7986_p12 }
  0x22   : > { %p7992_p11 = pnand %p7991_p5, %p7987_p13 }
  0x24   : > { %7995 = shalt.err (!%p7992_p11)
}
  0x25   : > { %s8086_s30 = smov 64   ;;  %s8087_s4 = smov 4  }
  0x26   : > { %7872 = dma.hbm_to_vmem [thread:$0]  (!%p8197_p9), %s135_s8, 512, %s137_s17, %s125_s19, %s8086_s30, %s8086_s30, %s8087_s4  }
  0x27   : > { %148 = sbr.rel (%p8162_p8) target bundleno = 1846 (0x736), region = 28 }
  0x2c   : > { %s8214_s5 = sand.u32 1, %s8073_s10  }
  0x2d   : > { %s7689_s6 = sshll.u32 %s8214_s5, 5  ;;  %s151_s7 = scalar_lea.sflag [#allocation7], %s8214_s5 }
  0x2e   : > { %s8220_s14 = scalar_lea.vmem [#allocation6], %s7689_s6 }
  0x2f   : > { %8056 = dma.done.wait (%p8149_p4), %s151_s7, 512  }
  0x30   : > { %8058 = vsyncadd (%p8149_p4), %s151_s7, 4294966784 }
  0x31   : > { %8060 = dma.done.wait (%p40_p1), [#allocation10], 256  }
  0x32   : > { %8062 = vsyncadd (%p40_p1), [#allocation10], 4294967040  ;;  %v222_v0 = vld [vmem:[%s8220_s14 + $0x4] sm:$0xf]  ;;  %v221_v1 = vld [vmem:[%s8220_s14] sm:$0xf] }
  0x33   : > { %v223_v2 = vld [vmem:[%s8220_s14 + $0x8] sm:$0xf]  ;;  %v241_v3 = vshrl.u32 %v222_v0, 16  ;;  %v233_v4 = vshrl.u32 %v221_v1, 16  ;;  %v236_v5 = vshll.u32 %v221_v1, 16  ;;  %v244_v11 = vshll.u32 %v222_v0, 16 }
  0x34   : > { %v224_v6 = vld [vmem:[%s8220_s14 + $0xc] sm:$0xf]  ;;  %v250_v10 = vshrl.u32 %v223_v2, 16  ;;  %v225_v16 = vld [vmem:[%s8220_s14 + $0x10] sm:$0xf]  ;;  %s8088_s15 = smov 1  }
  0x35   : > { %v258_v7 = vshrl.u32 %v224_v6, 16  ;;  %v243_v8 = vrot.slane %v241_v3, 7  ;;  %v235_v9 = vrot.slane %v233_v4, 7  ;;  %v261_v15 = vshll.u32 %v224_v6, 16  ;;  %v226_v17 = vld [vmem:[%s8220_s14 + $0x14] sm:$0xf] }
  0x36   : > { %vm229_vm0 = vsmask.f32 256  ;;  %vm230_vm1 = vsmask.f32 4368  ;;  %v252_v19 = vrot.slane %v250_v10, 7  ;;  %v253_v20 = vshll.u32 %v223_v2, 16 }
  0x37   : > { %v260_v12 = vrot.slane %v258_v7, 7  ;;  %v248_v13 = vrot.slane %v243_v8, 4  ;;  %v238_v14 = vor.u32 %v236_v5, %v235_v9  ;;  %v246_v21 = vor.u32 %v244_v11, %v243_v8  ;;  %vm8240_vm2 = vmor %vm229_vm0, %vm230_vm1  ;;  %v227_v34 = vld [vmem:[%s8220_s14 + $0x18] sm:$0xf]  ;;  %v228_v35 = vld [vmem:[%s8220_s14 + $0x1c] sm:$0xf] }
  0x38   : > { %v239_v22 = vrot.slane %v235_v9, 4  ;;  %v267_v23 = vshrl.u32 %v225_v16, 16  ;;  %v275_v24 = vshrl.u32 %v226_v17, 16  ;;  %v256_v27 = vrot.slane %v252_v19, 4  ;;  %v371_v54 = vld [vmem:[%s8220_s14 + $0x8] sm:$0x1] }
  0x39   : > { %v265_v18 = vrot.slane %v260_v12, 4  ;;  %304 = vrot.lane.b32.xlu1 %v248_v13, %s8088_s15  ;;  %300 = vrot.lane.b32.xlu0 %v238_v14, %s8088_s15  ;;  %v263_v26 = vor.u32 %v261_v15, %v260_v12  ;;  %v255_v28 = vor.u32 %v253_v20, %v252_v19  ;;  %v278_v32 = vshll.u32 %v226_v17, 16  ;;  %v370_v55 = vld [vmem:[%s8220_s14] sm:$0x1]  ;;  %v418_v56 = vld [vmem:[%s8220_s14 + $0x4] sm:$0x8] }
  0x3a   : > { %v247_v29 = vsel %vm8240_vm2, %v239_v22, %v246_v21  ;;  %v269_v30 = vrot.slane %v267_v23, 7  ;;  %v277_v31 = vrot.slane %v275_v24, 7  ;;  %vm183_vm3 = vcmask 142336   ;;  %v419_v57 = vld [vmem:[%s8220_s14 + $0xc] sm:$0x8]  ;;  %s8090_s20 = smov 127  }
  0x3b   : > { %310 = vrot.lane.b32.xlu2 %v265_v18, %s8088_s15  ;;  %v264_v33 = vsel %vm8240_vm2, %v256_v27, %v263_v26  ;;  %v270_v36 = vshll.u32 %v225_v16, 16  ;;  %v8089_v37 = vmov 0   ;;  %v284_v40 = vshrl.u32 %v227_v34, 16  ;;  %v372_v58 = vld [vmem:[%s8220_s14 + $0x10] sm:$0x1]  ;;  %s8091_s8 = smov 126  }
  0x3c   : > { %188 = vst.msk [vmem:[#allocation2 + $0x3c] sm:$0xf] %vm183_vm3, %v8089_v37  ;;  %v273_v38 = vrot.slane %v269_v30, 4  ;;  %v280_v39 = vor.u32 %v278_v32, %v277_v31  ;;  %v292_v41 = vshrl.u32 %v228_v35, 16  ;;  %7944 = vset.pattern.permute.xlu0 %v8089_v37  ;;  %7945 = vset.pattern.permute.xlu1 %v8089_v37  ;;  %v295_v43 = vshll.u32 %v228_v35, 16  ;;  %s8092_s17 = smov 2  }
  0x3d   : > { %184 = vst.msk [vmem:[#allocation2 + $0x30] sm:$0xf] %vm183_vm3, %v8089_v37  ;;  %7946 = vset.pattern.permute.xlu2 %v8089_v37  ;;  %v272_v42 = vor.u32 %v270_v36, %v269_v30  ;;  %v286_v45 = vrot.slane %v284_v40, 7  ;;  %v282_v47 = vrot.slane %v277_v31, 4  ;;  %v287_v48 = vshll.u32 %v227_v34, 16  ;;  %s8095_s18 = smov 64  }
  0x3e   : > { %185 = vst.msk [vmem:[#allocation2 + $0x34] sm:$0xf] %vm183_vm3, %v8089_v37  ;;  %v281_v44 = vsel %vm8240_vm2, %v273_v38, %v280_v39  ;;  %v294_v46 = vrot.slane %v292_v41, 7  ;;  %v420_v59 = vld [vmem:[%s8220_s14 + $0x14] sm:$0x8]  ;;  %v380_v61 = vshrl.u32 %v371_v54, 16 }
  0x3f   : > { %189 = vst.msk [vmem:[#allocation2 + $0x40] sm:$0xf] %vm183_vm3, %v8089_v37  ;;  %v290_v49 = vrot.slane %v286_v45, 4  ;;  %v289_v51 = vor.u32 %v287_v48, %v286_v45  ;;  %v421_v60 = vld [vmem:[%s8220_s14 + $0x1c] sm:$0x8]  ;;  %v375_v62 = vshrl.u32 %v370_v55, 16 }
  0x40   : > { %191 = vst.msk [vmem:[#allocation2 + $0x48] sm:$0xf] %vm183_vm3, %v8089_v37  ;;  %v297_v50 = vor.u32 %v295_v43, %v294_v46  ;;  %v299_v53 = vrot.slane %v294_v46, 4  ;;  %v423_v63 = vshll.u32 %v418_v56, 16  ;;  %v428_v0 = vshll.u32 %v419_v57, 16  ;;  %s8096_s19 = smov 80  }
  0x41   : > { %306 = vrot.lane.b32.xlu1 %v255_v28, %s8088_s15  ;;  %302 = vrot.lane.b32.xlu0 %v247_v29, %s8088_s15  ;;  %192 = vst.msk [vmem:[#allocation2 + $0x4c] sm:$0xf] %vm183_vm3, %v8089_v37  ;;  %v385_v1 = vshrl.u32 %v372_v58, 16  ;;  %v433_v2 = vshll.u32 %v420_v59, 16  ;;  %v438_v3 = vshll.u32 %v421_v60, 16  ;;  %vm344_vm4 = vcmask 131080  }
  0x42   : > { %194 = vst.msk [vmem:[#allocation2 + $0x54] sm:$0xf] %vm183_vm3, %v8089_v37  ;;  %v298_v52 = vsel %vm8240_vm2, %v290_v49, %v297_v50  ;;  %v7696_v4 = vrot.slane %v423_v63, 11  ;;  %v7697_v5 = vrot.slane %v428_v0, 11  ;;  %v373_v6 = vld [vmem:[%s8220_s14 + $0x18] sm:$0x1]  ;;  %vm8347_vm5 = vmand %vm344_vm4, %vm229_vm0 }
  0x43   : > { %308 = vrot.lane.b32.xlu2 %v264_v33, %s8088_s15  ;;  %195 = vst.msk [vmem:[#allocation2 + $0x58] sm:$0xf] %vm183_vm3, %v8089_v37  ;;  %v7698_v7 = vrot.slane %v433_v2, 11  ;;  %v7699_v8 = vrot.slane %v438_v3, 11  ;;  %v390_v10 = vshrl.u32 %v373_v6, 16  ;;  %vm336_vm6 = vcmask 134152  }
  0x44   : > { %197 = vst.msk [vmem:[#allocation2 + $0x60] sm:$0xf] %vm183_vm3, %v8089_v37  ;;  %v7934_v9 = vpack.i.bf16 %v7697_v5, %v7696_v4  ;;  %v1108_v12 = vld [vmem:[#allocation2 + $0x3c] sm:$0xf]  ;;  %v1106_v13 = vld [vmem:[#allocation2 + $0x30] sm:$0xf] }
  0x45   : > { %198 = vst.msk [vmem:[#allocation2 + $0x64] sm:$0xf] %vm183_vm3, %v8089_v37  ;;  %v7939_v11 = vpack.i.bf16 %v7699_v8, %v7698_v7  ;;  %v1107_v14 = vld [vmem:[#allocation2 + $0x34] sm:$0xf]  ;;  %vm337_vm7 = vsmask.f32 7938 }
  0x46   : > { %200 = vst.msk [vmem:[#allocation2 + $0x6c] sm:$0xf] %vm183_vm3, %v8089_v37  ;;  %v1109_v16 = vld [vmem:[#allocation2 + $0x40] sm:$0xf]  ;;  %v353_v31 = vld [vmem:[#allocation2 + $0x14] sm:$0x1]  ;;  %vm8365_vm8 = vmand %vm336_vm6, %vm337_vm7 }
  0x47   : > { %201 = vst.msk [vmem:[#allocation2 + $0x70] sm:$0xf] %vm183_vm3, %v8089_v37  ;;  %v1110_v17 = vld [vmem:[#allocation2 + $0x48] sm:$0xf]  ;;  %v367_v48 = vld [vmem:[#allocation2 + $0x2c] sm:$0x1]  ;;  %vm8382_vm9 = vmand %vm344_vm4, %vm337_vm7 }
  0x48   : > { %203 = vst.msk [vmem:[#allocation2 + $0x78] sm:$0xf] %vm183_vm3, %v8089_v37  ;;  %v1111_v15 = vld [vmem:[#allocation2 + $0x4c] sm:$0xf]  ;;  %v346_v45 = vld [vmem:[#allocation2 + $0x8] sm:$0x1] }
  0x49   : > { %314 = vrot.lane.b32.xlu1 %v281_v44, %s8088_s15  ;;  %312 = vrot.lane.b32.xlu0 %v272_v42, %s8088_s15  ;;  %204 = vst.msk [vmem:[#allocation2 + $0x7c] sm:$0xf] %vm183_vm3, %v8089_v37  ;;  %v1112_v19 = vld [vmem:[#allocation2 + $0x54] sm:$0xf]  ;;  %v360_v42 = vld [vmem:[#allocation2 + $0x20] sm:$0x1] }
  0x4a   : > { %206 = vst.msk [vmem:[#allocation2 + $0x84] sm:$0xf] %vm183_vm3, %v8089_v37  ;;  %v1113_v20 = vld [vmem:[#allocation2 + $0x58] sm:$0xf]  ;;  %v1705_v55 = vld [vmem:[#allocation2 + $0x34] sm:$0xf] }
  0x4b   : > { %316 = vrot.lane.b32.xlu2 %v282_v47, %s8088_s15  ;;  %207 = vst.msk [vmem:[#allocation2 + $0x88] sm:$0xf] %vm183_vm3, %v8089_v37  ;;  %v1114_v18 = vld [vmem:[#allocation2 + $0x60] sm:$0xf]  ;;  %v349_v56 = vld [vmem:[#allocation2 + $0xc] sm:$0xf] }
  0x4c   : > { %209 = vst.msk [vmem:[#allocation2 + $0x90] sm:$0xf] %vm183_vm3, %v8089_v37  ;;  %v1115_v22 = vld [vmem:[#allocation2 + $0x64] sm:$0xf]  ;;  %v339_v47 = vld [vmem:[#allocation2] sm:$0xf] }
  0x4d   : > { %210 = vst.msk [vmem:[#allocation2 + $0x94] sm:$0xf] %vm183_vm3, %v8089_v37  ;;  %v1116_v23 = vld [vmem:[#allocation2 + $0x6c] sm:$0xf]  ;;  %v1712_v46 = vld [vmem:[#allocation2 + $0x60] sm:$0xf] }
  0x4e   : > { %212 = vst.msk [vmem:[#allocation2 + $0x9c] sm:$0xf] %vm183_vm3, %v8089_v37  ;;  %v1117_v21 = vld [vmem:[#allocation2 + $0x70] sm:$0xf]  ;;  %vm186_vm10 = vcmask 139264   ;;  %vm527_vm14 = vcmask 3072  }
  0x4f   : > { %213 = vst.msk [vmem:[#allocation2 + $0xa0] sm:$0xf] %vm183_vm3, %v8089_v37  ;;  %v1118_v25 = vld [vmem:[#allocation2 + $0x78] sm:$0xf]  ;;  %v1710_v2 = vld [vmem:[#allocation2 + $0x54] sm:$0xf] }
  0x50   : > { %215 = vst.msk [vmem:[#allocation2 + $0xa8] sm:$0xf] %vm183_vm3, %v8089_v37  ;;  %v1119_v26 = vld [vmem:[#allocation2 + $0x7c] sm:$0xf]  ;;  %vm2342_vm11 = vsmask.f32 3328 }
  0x51   : > { %320 = vrot.lane.b32.xlu1 %v298_v52, %s8088_s15  ;;  %318 = vrot.lane.b32.xlu0 %v289_v51, %s8088_s15  ;;  %216 = vst.msk [vmem:[#allocation2 + $0xac] sm:$0xf] %vm183_vm3, %v8089_v37  ;;  %v1120_v24 = vld [vmem:[#allocation2 + $0x84] sm:$0xf]  ;;  %vm2343_vm12 = vsmask.f32 7440 }
  0x52   : > { %218 = vst.msk [vmem:[#allocation2 + $0xb4] sm:$0xf] %vm183_vm3, %v8089_v37  ;;  %v1121_v28 = vld [vmem:[#allocation2 + $0x88] sm:$0xf]  ;;  %vm8496_vm13 = vmor %vm2342_vm11, %vm2343_vm12  ;;  %vm530_vm15 = vcmask 0   ;;  %vm653_vm0 = vcmask 1047556  }
  0x53   : > { %322 = vrot.lane.b32.xlu2 %v299_v53, %s8088_s15  ;;  %219 = vst.msk [vmem:[#allocation2 + $0xb8] sm:$0xf] %vm183_vm3, %v8089_v37  ;;  %v1122_v29 = vld [vmem:[#allocation2 + $0x90] sm:$0xf]  ;;  %vm601_vm1 = vcmask 142472   ;;  %vm604_vm2 = vcmask 139400  }
  0x54   : > { %v1123_v27 = vld [vmem:[#allocation2 + $0x94] sm:$0xf]  ;;  %193 = vst.msk [vmem:[#allocation2 + $0x50] sm:$0x1] %vm186_vm10, %v8089_v37  ;;  %s8097_s21 = smov 96   ;;  %s8098_s22 = smov 16  }
  0x55   : > { %v1124_v35 = vld [vmem:[#allocation2 + $0x9c] sm:$0xf]  ;;  %187 = vst.msk [vmem:[#allocation2 + $0x38] sm:$0x1] %vm186_vm10, %v8089_v37  ;;  %s8099_s24 = smov 32   ;;  %s8100_s25 = smov 112  }
  0x56   : > { %v1125_v36 = vld [vmem:[#allocation2 + $0xa0] sm:$0xf]  ;;  %190 = vst.msk [vmem:[#allocation2 + $0x44] sm:$0x1] %vm186_vm10, %v8089_v37  ;;  %s8101_s26 = smov 48   ;;  %vm1049_vm3 = vcmask 130048  }
  0x57   : > { %v1126_v34 = vld [vmem:[#allocation2 + $0xa8] sm:$0xf]  ;;  %196 = vst.msk [vmem:[#allocation2 + $0x5c] sm:$0x1] %vm186_vm10, %v8089_v37  ;;  %vm1053_vm4 = vcmask 261120   ;;  %vm1062_vm7 = vcmask 654336  }
  0x58   : > { %v1127_v40 = vld [vmem:[#allocation2 + $0xac] sm:$0xf]  ;;  %199 = vst.msk [vmem:[#allocation2 + $0x68] sm:$0x1] %vm186_vm10, %v8089_v37  ;;  %vm5228_vm11 = vcmask 1046532   ;;  %s180_s27 = scalar_lea.vmem [#allocation11], %s7689_s6 }
  0x59   : > { %396 = vrot.lane.b32.xlu1 %v380_v61, %s8088_s15  ;;  %394 = vrot.lane.b32.xlu0 %v375_v62, %s8088_s15  ;;  %v1128_v41 = vld [vmem:[#allocation2 + $0xb4] sm:$0xf]  ;;  %v1704_v61 = vld [vmem:[#allocation2 + $0x30] sm:$0xf]  ;;  %v356_v62 = vld [vmem:[#allocation2 + $0x18] sm:$0xf] }
  0x5a   : > { %v1129_v39 = vld [vmem:[#allocation2 + $0xb8] sm:$0xf]  ;;  %202 = vst.msk [vmem:[#allocation2 + $0x74] sm:$0x1] %vm186_vm10, %v8089_v37  ;;  %s7856_s3 = sshll.u32 %s8140_s13, 5  ;;  %s7595_s14 = sshll.u32 %s180_s27, 4  ;;  %s7596_s14 = int_to_ptr.vmem [resolvable:$true] %s7595_s14 }
  0x5b   : > { %398 = vrot.lane.b32.xlu2 %v385_v1, %s8088_s15  ;;  %205 = vst.msk [vmem:[#allocation2 + $0x80] sm:$0x1] %vm186_vm10, %v8089_v37  ;;  %s7594_s7 = scalar_lea.hbm %s13083_s2, %s7856_s3  ;;  %s7583_s13 = scalar_lea.sflag [#allocation8], %s8214_s5 }
  0x5c   : > { %208 = vst.msk [vmem:[#allocation2 + $0x8c] sm:$0x1] %vm186_vm10, %v8089_v37 }
  0x5d   : > { %211 = vst.msk [vmem:[#allocation2 + $0x98] sm:$0x1] %vm186_vm10, %v8089_v37 }
  0x5e   : > { %214 = vst.msk [vmem:[#allocation2 + $0xa4] sm:$0x1] %vm186_vm10, %v8089_v37 }
  0x5f   : > { %217 = vst.msk [vmem:[#allocation2 + $0xb0] sm:$0x1] %vm186_vm10, %v8089_v37 }
  0x60   : > { %220 = vst.msk [vmem:[#allocation2 + $0xbc] sm:$0x1] %vm186_vm10, %v8089_v37  ;;  %vm5227_vm10 = vcmask 1042432  }
  0x61   : > { %7935 = vrot.lane.b32.xlu1 %v7934_v9, %s8088_s15  ;;  %400 = vrot.lane.b32.xlu0 %v390_v10, %s8088_s15  ;;  %vm10948_vm12 = vmor %vm5227_vm10, %vm5228_vm11 }
  0x63   : > { %7940 = vrot.lane.b32.xlu2 %v7939_v11, %s8088_s15  ;;  %v363_v11 = vld [vmem:[#allocation2 + $0x24] sm:$0xf]  ;;  %s7597_s15 = sshll.u32 %s7594_s7, 4  ;;  %s7598_s15 = int_to_ptr.hbm [resolvable:$true] %s7597_s15 }
  0x64   : > { %s8025_s6 = sshra.s32 %s7598_s15, 4  ;;  %s8026_s6 = int_to_ptr.hbm [resolvable:$true] %s8025_s6 }
  0x65   : > { %p8032_p11 = scmp.lt.s32.totalorder %s8026_s6, %s13083_s2 }
  0x69   : > { %1182 = vrot.lane.b32.xlu0 %v1108_v12, %s8090_s20  ;;  %1178 = vrot.lane.b32.xlu1 %v1106_v13, %s8090_s20 }
  0x6b   : > { %1180 = vrot.lane.b32.xlu2 %v1107_v14, %s8090_s20 }
  0x71   : > { %1188 = vrot.lane.b32.xlu0 %v1111_v15, %s8090_s20  ;;  %1184 = vrot.lane.b32.xlu1 %v1109_v16, %s8090_s20 }
  0x73   : > { %1186 = vrot.lane.b32.xlu2 %v1110_v17, %s8090_s20 }
  0x79   : > { %1194 = vrot.lane.b32.xlu0 %v1114_v18, %s8090_s20  ;;  %1190 = vrot.lane.b32.xlu1 %v1112_v19, %s8090_s20 }
  0x7b   : > { %1192 = vrot.lane.b32.xlu2 %v1113_v20, %s8090_s20 }
  0x81   : > { %1200 = vrot.lane.b32.xlu0 %v1117_v21, %s8090_s20  ;;  %1196 = vrot.lane.b32.xlu1 %v1115_v22, %s8090_s20 }
  0x83   : > { %1198 = vrot.lane.b32.xlu2 %v1116_v23, %s8090_s20 }
  0x89   : > { %1206 = vrot.lane.b32.xlu0 %v1120_v24, %s8090_s20  ;;  %1202 = vrot.lane.b32.xlu1 %v1118_v25, %s8090_s20 }
  0x8b   : > { %1204 = vrot.lane.b32.xlu2 %v1119_v26, %s8090_s20 }
  0x91   : > { %1212 = vrot.lane.b32.xlu0 %v1123_v27, %s8090_s20  ;;  %1208 = vrot.lane.b32.xlu1 %v1121_v28, %s8090_s20 }
  0x93   : > { %1210 = vrot.lane.b32.xlu2 %v1122_v29, %s8090_s20 }
  0x95   : > { %v311_v32 = vpop.permute.xlu2 %310 }
  0x96   : > { %v354_v33 = vsel %vm8347_vm5, %v311_v32, %v353_v31 }
  0x97   : > { %355 = vst [vmem:[#allocation2 + $0x14] sm:$0x1] %v354_v33 }
  0x99   : > { %1218 = vrot.lane.b32.xlu0 %v1126_v34, %s8090_s20  ;;  %1214 = vrot.lane.b32.xlu1 %v1124_v35, %s8090_s20 }
  0x9b   : > { %1216 = vrot.lane.b32.xlu2 %v1125_v36, %s8090_s20 }
  0x9d   : > { %v309_v38 = vpop.permute.xlu2 %308 }
  0x9e   : > { %352 = vst.msk [vmem:[#allocation2 + $0x10] sm:$0xf] %vm336_vm6, %v309_v38  ;;  %v458_v29 = vld [vmem:[#allocation2 + $0x14] sm:$0x1] }
  0xa1   : > { %1224 = vrot.lane.b32.xlu0 %v1129_v39, %s8090_s20  ;;  %1220 = vrot.lane.b32.xlu1 %v1127_v40, %s8090_s20  ;;  %v1706_v39 = vld [vmem:[#allocation2 + $0x3c] sm:$0xf] }
  0xa3   : > { %1222 = vrot.lane.b32.xlu2 %v1128_v41, %s8090_s20 }
  0xa5   : > { %v317_v43 = vpop.permute.xlu2 %316  ;;  %v471_v12 = vld [vmem:[#allocation2 + $0x10] sm:$0xf] }
  0xa6   : > { %v361_v44 = vsel %vm8347_vm5, %v317_v43, %v360_v42  ;;  %v1709_v42 = vld [vmem:[#allocation2 + $0x4c] sm:$0xf] }
  0xa7   : > { %362 = vst [vmem:[#allocation2 + $0x20] sm:$0x1] %v361_v44 }
  0xa9   : > { %1778 = vrot.lane.b32.xlu0 %v1705_v55, %s8091_s8 }
  0xab   : > { %v305_v49 = vpop.permute.xlu1 %304  ;;  %v301_v50 = vpop.permute.xlu0 %300  ;;  %1776 = vrot.lane.b32.xlu2 %v1704_v61, %s8091_s8 }
  0xac   : > { %v347_v51 = vsel %vm8347_vm5, %v305_v49, %v346_v45  ;;  %v340_v52 = vsel %vm8365_vm8, %v301_v50, %v339_v47 }
  0xad   : > { %v323_v53 = vpop.permute.xlu2 %322  ;;  %348 = vst [vmem:[#allocation2 + $0x8] sm:$0x1] %v347_v51 }
  0xae   : > { %v368_v54 = vsel %vm8347_vm5, %v323_v53, %v367_v48  ;;  %341 = vst [vmem:[#allocation2] sm:$0xf] %v340_v52  ;;  %v461_v4 = vld [vmem:[#allocation2 + $0x20] sm:$0x1]  ;;  %v1715_v52 = vld [vmem:[#allocation2 + $0x70] sm:$0xf] }
  0xaf   : > { %369 = vst [vmem:[#allocation2 + $0x2c] sm:$0x1] %v368_v54  ;;  %v1708_v53 = vld [vmem:[#allocation2 + $0x48] sm:$0xf] }
  0xb3   : > { %v307_v57 = vpop.permute.xlu1 %306  ;;  %v303_v58 = vpop.permute.xlu0 %302 }
  0xb4   : > { %v350_v59 = vsel %vm8365_vm8, %v307_v57, %v349_v56  ;;  %343 = vst.msk [vmem:[#allocation2 + $0x4] sm:$0xf] %vm336_vm6, %v303_v58  ;;  %v455_v34 = vld [vmem:[#allocation2 + $0x8] sm:$0x1]  ;;  %v1718_v57 = vld [vmem:[#allocation2 + $0x84] sm:$0xf] }
  0xb5   : > { %v399_v60 = vpop.permute.xlu2 %398  ;;  %351 = vst [vmem:[#allocation2 + $0xc] sm:$0xf] %v350_v59  ;;  %v406_v21 = vld [vmem:[#allocation2] sm:$0x1]  ;;  %v1711_v59 = vld [vmem:[#allocation2 + $0x58] sm:$0xf] }
  0xb6   : > { %v464_v5 = vld [vmem:[#allocation2 + $0x2c] sm:$0x1] }
  0xbb   : > { %v315_v63 = vpop.permute.xlu1 %314  ;;  %v313_v0 = vpop.permute.xlu0 %312  ;;  %v468_v1 = vld [vmem:[#allocation2 + $0x4] sm:$0xf] }
  0xbc   : > { %359 = vst.msk [vmem:[#allocation2 + $0x1c] sm:$0xf] %vm336_vm6, %v315_v63  ;;  %v357_v3 = vsel %vm8365_vm8, %v313_v0, %v356_v62  ;;  %493 = vrot.lane.b32.xlu1 %v468_v1, %s8091_s8  ;;  %v409_v19 = vld [vmem:[#allocation2 + $0xc] sm:$0x1]  ;;  %v1721_v63 = vld [vmem:[#allocation2 + $0x94] sm:$0xf] }
  0xbd   : > { %v7941_v6 = vpop.permute.xlu2 %7940  ;;  %358 = vst [vmem:[#allocation2 + $0x18] sm:$0xf] %v357_v3  ;;  %v1714_v0 = vld [vmem:[#allocation2 + $0x6c] sm:$0xf]  ;;  %v3214_v3 = vld [vmem:[#allocation2 + $0x3c] sm:$0xf] }
  0xbe   : > { %v7943_v7 = vunpack.i.h.bf16 %v7941_v6  ;;  %v7942_v8 = vunpack.i.l.bf16 %v7941_v6  ;;  %v3371_v6 = vshll.u32 %v3214_v3, 16 }
  0xc0   : > { %v465_v9 = vsel %vm8382_vm9, %v7943_v7, %v464_v5  ;;  %v462_v10 = vsel %vm8382_vm9, %v7942_v8, %v461_v4  ;;  %v3368_v5 = vshrl.u32 %v3214_v3, 16  ;;  %v1724_v7 = vld [vmem:[#allocation2 + $0xa8] sm:$0xf] }
  0xc1   : > { %466 = vst [vmem:[#allocation2 + $0x2c] sm:$0x1] %v465_v9  ;;  %v1717_v9 = vld [vmem:[#allocation2 + $0x7c] sm:$0xf] }
  0xc2   : > { %463 = vst [vmem:[#allocation2 + $0x20] sm:$0x1] %v462_v10  ;;  %v3370_v10 = vrot.slane %v3368_v5, 4  ;;  %v3211_v5 = vld [vmem:[#allocation2 + $0x30] sm:$0xf] }
  0xc3   : > { %v321_v13 = vpop.permute.xlu1 %320  ;;  %v319_v14 = vpop.permute.xlu0 %318  ;;  %v474_v18 = vld [vmem:[#allocation2 + $0x1c] sm:$0xf] }
  0xc4   : > { %v412_v15 = vld [vmem:[#allocation2 + $0x18] sm:$0x1]  ;;  %366 = vst.msk [vmem:[#allocation2 + $0x28] sm:$0xf] %vm336_vm6, %v321_v13  ;;  %v364_v16 = vsel %vm8365_vm8, %v319_v14, %v363_v11  ;;  %499 = vrot.lane.b32.xlu1 %v471_v12, %s8091_s8  ;;  %v3373_v11 = vrot.slane %v3371_v6, 5  ;;  %vm1059_vm6 = vcmask 523264  }
  0xc5   : > { %v413_v17 = vsel %vm8347_vm5, %v399_v60, %v412_v15  ;;  %365 = vst [vmem:[#allocation2 + $0x24] sm:$0xf] %v364_v16  ;;  %v8418_v43 = vpop.permute.xlu2 %1180  ;;  %v1707_v60 = vld [vmem:[#allocation2 + $0x40] sm:$0xf]  ;;  %v1713_v12 = vld [vmem:[#allocation2 + $0x64] sm:$0xf] }
  0xc6   : > { %414 = vst [vmem:[#allocation2 + $0x18] sm:$0x1] %v413_v17  ;;  %v8482_v13 = vld [vmem:[#allocation2 + $0x40] sm:$0xf]  ;;  %v3218_v15 = vld [vmem:[#allocation2 + $0x4c] sm:$0xf]  ;;  %v3374_v16 = vor.u32 %v3373_v11, %v3370_v10 }
  0xc7   : > { %13224 = vst [vmem:[#allocation16_spill] sm:$0xff] %v8418_v43  ;;  %v3377_v37 = vshll.u32 %v8482_v13, 16  ;;  %v1727_v17 = vld [vmem:[#allocation2 + $0xb8] sm:$0xf]  ;;  %vm1065_vm8 = vcmask 785408  }
  0xc8   : > { %v478_v56 = vld [vmem:[#allocation2 + $0x2c] sm:$0x1] }
  0xc9   : > { %v475_v50 = vld [vmem:[#allocation2 + $0x20] sm:$0x1] }
  0xcb   : > { %v397_v20 = vpop.permute.xlu1 %396  ;;  %v395_v22 = vpop.permute.xlu0 %394  ;;  %v477_v25 = vld [vmem:[#allocation2 + $0x28] sm:$0xf] }
  0xcc   : > { %v410_v23 = vsel %vm8347_vm5, %v397_v20, %v409_v19  ;;  %v407_v24 = vsel %vm8347_vm5, %v395_v22, %v406_v21  ;;  %505 = vrot.lane.b32.xlu1 %v474_v18, %s8091_s8  ;;  %v415_v27 = vld [vmem:[#allocation2 + $0x24] sm:$0x1]  ;;  %v3401_v18 = vshll.u32 %v3218_v15, 16  ;;  %v3405_v19 = vshrl.u32 %v3218_v15, 16  ;;  %v1720_v21 = vld [vmem:[#allocation2 + $0x90] sm:$0xf] }
  0xcd   : > { %411 = vst [vmem:[#allocation2 + $0xc] sm:$0x1] %v410_v23  ;;  %v473_v44 = vld [vmem:[#allocation2 + $0x18] sm:$0xf]  ;;  %v8425_v48 = vpop.permute.xlu2 %1186  ;;  %v3375_v23 = vrot.slane %v3374_v16, 4  ;;  %v3344_v15 = vshrl.u32 %v3211_v5, 16 }
  0xce   : > { %408 = vst [vmem:[#allocation2] sm:$0x1] %v407_v24  ;;  %v8494_v24 = vrot.slane %v3377_v37, 5  ;;  %v3347_v16 = vshll.u32 %v3211_v5, 16  ;;  %v1722_v37 = vld [vmem:[#allocation2 + $0x9c] sm:$0xf] }
  0xcf   : > { %13226 = vst [vmem:[#allocation18_spill] sm:$0xff] %v8425_v48  ;;  %v3216_v5 = vld [vmem:[#allocation2 + $0x44] sm:$0x1] }
  0xd3   : > { %v7936_v26 = vpop.permute.xlu1 %7935  ;;  %v401_v28 = vpop.permute.xlu0 %400 }
  0xd4   : > { %v7938_v31 = vunpack.i.h.bf16 %v7936_v26  ;;  %v7937_v32 = vunpack.i.l.bf16 %v7936_v26  ;;  %v416_v33 = vsel %vm8347_vm5, %v401_v28, %v415_v27  ;;  %511 = vrot.lane.b32.xlu1 %v477_v25, %s8091_s8  ;;  %v470_v30 = vld [vmem:[#allocation2 + $0xc] sm:$0xf]  ;;  %v1716_v25 = vld [vmem:[#allocation2 + $0x78] sm:$0xf]  ;;  %v13231_v26 = vmov 0 }
  0xd5   : > { %417 = vst [vmem:[#allocation2 + $0x24] sm:$0x1] %v416_v33  ;;  %v467_v35 = vld [vmem:[#allocation2] sm:$0xf]  ;;  %v8435_v55 = vpop.permute.xlu2 %1192  ;;  %v13232_v26 = vsel %vm8496_vm13, 4294967295, %v13231_v26  ;;  %v8500_v27 = vrot.slane %v3401_v18, 5  ;;  %v3380_v33 = vsel %vm8496_vm13, %v3375_v23, %v8494_v24 }
  0xd6   : > { %v459_v36 = vsel %vm8382_vm9, %v7938_v31, %v458_v29  ;;  %v456_v38 = vsel %vm8382_vm9, %v7937_v32, %v455_v34  ;;  %491 = vrot.lane.b32.xlu0 %v467_v35, %s8091_s8  ;;  %13229 = vst [vmem:[#allocation21_spill] sm:$0xff] %v8435_v55  ;;  %v3407_v28 = vrot.slane %v3405_v19, 4  ;;  %v3219_v29 = vld [vmem:[#allocation2 + $0x50] sm:$0x1]  ;;  %v3223_v31 = vld [vmem:[#allocation2 + $0x60] sm:$0xf] }
  0xd7   : > { %460 = vst [vmem:[#allocation2 + $0x14] sm:$0x1] %v459_v36  ;;  %v3212_v34 = vld [vmem:[#allocation2 + $0x34] sm:$0xf]  ;;  %v3411_v36 = vshll.u32 %v3219_v29, 16  ;;  %vm1056_vm5 = vcmask 392192  }
  0xd8   : > { %457 = vst [vmem:[#allocation2 + $0x8] sm:$0x1] %v456_v38  ;;  %v3408_v35 = vor.u32 %v3407_v28, %v8500_v27  ;;  %v3440_v38 = vshrl.u32 %v3223_v31, 16  ;;  %vm1068_vm9 = vcmask 916480  }
  0xd9   : > { %13233 = vst [vmem:[#allocation23_spill] sm:$0xff] %v13232_v26 }
  0xdb   : > { %v8415_v41 = vpop.permute.xlu1 %1178  ;;  %v8429_v51 = vpop.permute.xlu0 %1182 }
  0xdc   : > { %1780 = vrot.lane.b32.xlu1 %v1706_v39, %s8091_s8  ;;  %13223 = vst [vmem:[#allocation15_spill] sm:$0xff] %v8415_v41  ;;  %v476_v49 = vld [vmem:[#allocation2 + $0x24] sm:$0xf]  ;;  %v3443_v39 = vshll.u32 %v3223_v31, 16  ;;  %v3346_v31 = vrot.slane %v3344_v15, 4 }
  0xdd   : > { %13227 = vst [vmem:[#allocation19_spill] sm:$0xff] %v8429_v51  ;;  %v8451_v62 = vpop.permute.xlu2 %1198 }
  0xde   : > { %497 = vrot.lane.b32.xlu0 %v470_v30, %s8091_s8  ;;  %v472_v45 = vld [vmem:[#allocation2 + $0x14] sm:$0x1]  ;;  %v1723_v30 = vld [vmem:[#allocation2 + $0xa0] sm:$0xf] }
  0xdf   : > { %v469_v40 = vld [vmem:[#allocation2 + $0x8] sm:$0x1] }
  0xe0   : > { %495 = vrot.lane.b32.xlu2 %v469_v40, %s8091_s8  ;;  %v3353_v40 = vshll.u32 %v3212_v34, 16 }
  0xe3   : > { %v8423_v47 = vpop.permute.xlu1 %1184  ;;  %v8439_v58 = vpop.permute.xlu0 %1188 }
  0xe4   : > { %1786 = vrot.lane.b32.xlu1 %v1709_v42, %s8091_s8  ;;  %13225 = vst [vmem:[#allocation17_spill] sm:$0xff] %v8423_v47  ;;  %v3357_v42 = vshrl.u32 %v3212_v34, 16  ;;  %v3221_v34 = vld [vmem:[#allocation2 + $0x58] sm:$0xf] }
  0xe5   : > { %13230 = vst [vmem:[#allocation22_spill] sm:$0xff] %v8439_v58  ;;  %v8479_v8 = vpop.permute.xlu2 %1204 }
  0xe6   : > { %503 = vrot.lane.b32.xlu0 %v473_v44, %s8091_s8 }
  0xe8   : > { %501 = vrot.lane.b32.xlu2 %v472_v45, %s8091_s8  ;;  %v1719_v45 = vld [vmem:[#allocation2 + $0x88] sm:$0xf] }
  0xeb   : > { %v8432_v54 = vpop.permute.xlu1 %1190  ;;  %v8462_v1 = vpop.permute.xlu0 %1194 }
  0xec   : > { %1792 = vrot.lane.b32.xlu1 %v1712_v46, %s8091_s8  ;;  %13228 = vst [vmem:[#allocation20_spill] sm:$0xff] %v8432_v54  ;;  %v3409_v46 = vrot.slane %v3408_v35, 4 }
  0xed   : > { %v8491_v22 = vpop.permute.xlu2 %1210 }
  0xee   : > { %509 = vrot.lane.b32.xlu0 %v476_v49, %s8091_s8  ;;  %v3413_v49 = vrot.slane %v3411_v36, 5 }
  0xf0   : > { %507 = vrot.lane.b32.xlu2 %v475_v50, %s8091_s8  ;;  %v3442_v50 = vrot.slane %v3440_v38, 4 }
  0xf3   : > { %v8446_v61 = vpop.permute.xlu1 %1196  ;;  %v8484_v14 = vpop.permute.xlu0 %1200 }
  0xf4   : > { %1798 = vrot.lane.b32.xlu1 %v1715_v52, %s8091_s8  ;;  %v3445_v52 = vrot.slane %v3443_v39, 5  ;;  %v3425_v39 = vshll.u32 %v3221_v34, 16 }
  0xf6   : > { %1784 = vrot.lane.b32.xlu0 %v1708_v53, %s8091_s8  ;;  %v8513_v53 = vpop.permute.xlu2 %1216 }
  0xf8   : > { %513 = vrot.lane.b32.xlu2 %v478_v56, %s8091_s8  ;;  %v8516_v56 = vld [vmem:[#allocation2 + $0x64] sm:$0xf] }
  0xf9   : > { %v3449_v3 = vshll.u32 %v8516_v56, 16 }
  0xfb   : > { %v8474_v4 = vpop.permute.xlu1 %1202  ;;  %v8503_v32 = vpop.permute.xlu0 %1206  ;;  %v8528_v18 = vrot.slane %v3449_v3, 5 }
  0xfc   : > { %1804 = vrot.lane.b32.xlu1 %v1718_v57, %s8091_s8  ;;  %v8518_v57 = vrot.slane %v3353_v40, 5 }
  0xfe   : > { %1790 = vrot.lane.b32.xlu0 %v1711_v59, %s8091_s8  ;;  %v3359_v59 = vrot.slane %v3357_v42, 4  ;;  %v8533_v29 = vpop.permute.xlu2 %1222 }
 0x100   : > { %1782 = vrot.lane.b32.xlu2 %v1707_v60, %s8091_s8  ;;  %v3213_v60 = vld [vmem:[#allocation2 + $0x38] sm:$0x1] }
 0x101   : > { %v3363_v10 = vshll.u32 %v3213_v60, 16 }
 0x103   : > { %v8489_v20 = vpop.permute.xlu1 %1208  ;;  %v8524_v6 = vpop.permute.xlu0 %1212  ;;  %v3365_v23 = vrot.slane %v3363_v10, 5 }
 0x104   : > { %1810 = vrot.lane.b32.xlu1 %v1721_v63, %s8091_s8  ;;  %v3217_v63 = vld [vmem:[#allocation2 + $0x48] sm:$0xf] }
 0x105   : > { %v3392_v11 = vshrl.u32 %v3217_v63, 16 }
 0x106   : > { %1796 = vrot.lane.b32.xlu0 %v1714_v0, %s8091_s8  ;;  %v3414_v0 = vsel %vm8496_vm13, %v3409_v46, %v3413_v49  ;;  %v1725_v46 = vld [vmem:[#allocation2 + $0xac] sm:$0xf] }
 0x108   : > { %1788 = vrot.lane.b32.xlu2 %v1710_v2, %s8091_s8  ;;  %v3446_v2 = vor.u32 %v3445_v52, %v3442_v50  ;;  %v3222_v50 = vld [vmem:[#allocation2 + $0x5c] sm:$0x1] }
 0x10b   : > { %v8510_v44 = vpop.permute.xlu1 %1214  ;;  %v8541_v40 = vpop.permute.xlu0 %1218 }
 0x10c   : > { %1816 = vrot.lane.b32.xlu1 %v1724_v7, %s8091_s8  ;;  %v1726_v7 = vld [vmem:[#allocation2 + $0xb4] sm:$0xf] }
 0x10e   : > { %1802 = vrot.lane.b32.xlu0 %v1717_v9, %s8091_s8  ;;  %v3360_v9 = vor.u32 %v3359_v59, %v8518_v57  ;;  %v8547_v59 = vrot.slane %v3425_v39, 5 }
 0x110   : > { %1794 = vrot.lane.b32.xlu2 %v1713_v12, %s8091_s8  ;;  %v3395_v12 = vshll.u32 %v3217_v63, 16  ;;  %v8550_v63 = vpop.permute.xlu2 %1776 }
 0x111   : > { %13234 = vst [vmem:[#allocation24_spill] sm:$0xff] %v8550_v63 }
 0x112   : > { %v3397_v28 = vrot.slane %v3395_v12, 5 }
 0x113   : > { %v8530_v19 = vpop.permute.xlu1 %1220 }
 0x114   : > { %1822 = vrot.lane.b32.xlu1 %v1727_v17, %s8091_s8  ;;  %v3447_v17 = vrot.slane %v3446_v2, 4  ;;  %v3226_v2 = vld [vmem:[#allocation2 + $0x6c] sm:$0xf] }
 0x115   : > { %v3467_v12 = vshll.u32 %v3226_v2, 16 }
 0x116   : > { %1808 = vrot.lane.b32.xlu0 %v1720_v21, %s8091_s8  ;;  %v3361_v21 = vrot.slane %v3360_v9, 4  ;;  %v3452_v35 = vsel %vm8496_vm13, %v3447_v17, %v8528_v18 }
 0x118   : > { %1800 = vrot.lane.b32.xlu2 %v1716_v25, %s8091_s8  ;;  %v3394_v25 = vrot.slane %v3392_v11, 4  ;;  %v3366_v36 = vsel %vm8496_vm13, %v3361_v21, %v3365_v23  ;;  %v3464_v11 = vshrl.u32 %v3226_v2, 16  ;;  %v8560_v23 = vpop.permute.xlu0 %1224 }
 0x11a   : > { %v3398_v38 = vor.u32 %v3397_v28, %v3394_v25 }
 0x11c   : > { %3651 = vrot.lane.b32.xlu1 %v3380_v33, %s8090_s20  ;;  %v3349_v33 = vrot.slane %v3347_v16, 5  ;;  %v3399_v52 = vrot.slane %v3398_v38, 4 }
 0x11e   : > { %1814 = vrot.lane.b32.xlu0 %v1723_v30, %s8091_s8  ;;  %v3429_v30 = vshrl.u32 %v3221_v34, 16  ;;  %v3350_v42 = vor.u32 %v3349_v33, %v3346_v31  ;;  %v3404_v9 = vsel %vm8496_vm13, %v3399_v52, %v8500_v27  ;;  %v3466_v33 = vrot.slane %v3464_v11, 4 }
 0x120   : > { %1806 = vrot.lane.b32.xlu2 %v1719_v45, %s8091_s8  ;;  %v3381_v45 = vshrl.u32 %v8482_v13, 16  ;;  %v3431_v60 = vrot.slane %v3429_v30, 4  ;;  %v3435_v13 = vshll.u32 %v3222_v50, 16 }
 0x122   : > { %v3383_v3 = vrot.slane %v3381_v45, 4  ;;  %v3432_v10 = vor.u32 %v3431_v60, %v8547_v59  ;;  %v3437_v31 = vrot.slane %v3435_v13, 5  ;;  %v8575_v60 = vpop.permute.xlu0 %1778 }
 0x123   : > { %13235 = vst [vmem:[#allocation25_spill] sm:$0xff] %v8575_v60 }
 0x124   : > { %3657 = vrot.lane.b32.xlu1 %v3414_v0, %s8090_s20  ;;  %v3351_v0 = vrot.slane %v3350_v42, 4  ;;  %v3384_v16 = vor.u32 %v3383_v3, %v8494_v24  ;;  %v3433_v27 = vrot.slane %v3432_v10, 4  ;;  %v8566_v24 = vld [vmem:[#allocation2 + $0x70] sm:$0xf] }
 0x125   : > { %v3473_v45 = vshll.u32 %v8566_v24, 16 }
 0x126   : > { %1820 = vrot.lane.b32.xlu0 %v1726_v7, %s8091_s8  ;;  %v3220_v7 = vld [vmem:[#allocation2 + $0x54] sm:$0xf]  ;;  %v3356_v15 = vsel %vm8496_vm13, %v3351_v0, %v8518_v57  ;;  %v3469_v57 = vrot.slane %v3467_v12, 5  ;;  %v3385_v34 = vrot.slane %v3384_v16, 4  ;;  %v3438_v30 = vsel %vm8496_vm13, %v3433_v27, %v3437_v31 }
 0x127   : > { %v3416_v17 = vshrl.u32 %v3220_v7, 16  ;;  %v3419_v21 = vshll.u32 %v3220_v7, 16  ;;  %v8580_v3 = vrot.slane %v3473_v45, 5  ;;  %v3225_v7 = vld [vmem:[#allocation2 + $0x68] sm:$0x1] }
 0x128   : > { %1812 = vrot.lane.b32.xlu2 %v1722_v37, %s8091_s8  ;;  %v3387_v37 = vshll.u32 %v3216_v5, 16  ;;  %v3470_v42 = vor.u32 %v3469_v57, %v3466_v33  ;;  %v3459_v12 = vshll.u32 %v3225_v7, 16 }
 0x129   : > { %v3421_v38 = vrot.slane %v3419_v21, 5 }
 0x12a   : > { %v3471_v2 = vrot.slane %v3470_v42, 4  ;;  %v3461_v21 = vrot.slane %v3459_v12, 5 }
 0x12c   : > { %3663 = vrot.lane.b32.xlu1 %v3452_v35, %s8090_s20  ;;  %v3389_v35 = vrot.slane %v3387_v37, 5 }
 0x12e   : > { %v494_v49 = vpop.permute.xlu1 %493  ;;  %3649 = vrot.lane.b32.xlu0 %v3366_v36, %s8090_s20  ;;  %v3418_v36 = vrot.slane %v3416_v17, 4 }
 0x12f   : > { %529 = vst.msk [vmem:[#allocation2 + $0x4] sm:$0xf] %vm527_vm14, %v494_v49  ;;  %v3390_v49 = vsel %vm8496_vm13, %v3385_v34, %v3389_v35 }
 0x130   : > { %1818 = vrot.lane.b32.xlu2 %v1725_v46, %s8091_s8  ;;  %v3453_v46 = vshrl.u32 %v8516_v56, 16  ;;  %v3422_v50 = vor.u32 %v3421_v38, %v3418_v36 }
 0x132   : > { %v3423_v56 = vrot.slane %v3422_v50, 4  ;;  %v3455_v5 = vrot.slane %v3453_v46, 4 }
 0x134   : > { %v3428_v10 = vsel %vm8496_vm13, %v3423_v56, %v8547_v59  ;;  %v3456_v11 = vor.u32 %v3455_v5, %v8528_v18 }
 0x136   : > { %v500_v25 = vpop.permute.xlu1 %499  ;;  %v542_v28 = vld [vmem:[#allocation2 + $0x4] sm:$0xf]  ;;  %3655 = vrot.lane.b32.xlu0 %v3404_v9, %s8090_s20  ;;  %v3476_v9 = vsel %vm8496_vm13, %v3471_v2, %v8580_v3  ;;  %v3457_v17 = vrot.slane %v3456_v11, 4 }
 0x137   : > { %533 = vst.msk [vmem:[#allocation2 + $0x10] sm:$0xf] %vm527_vm14, %v500_v25  ;;  %567 = vrot.lane.b32.xlu1 %v542_v28, %s8092_s17 }
 0x138   : > { %3647 = vrot.lane.b32.xlu2 %v3356_v15, %s8090_s20  ;;  %v3462_v18 = vsel %vm8496_vm13, %v3457_v17, %v3461_v21 }
 0x13a   : > { %v496_v39 = vpop.permute.xlu2 %495 }
 0x13b   : > { %531 = vst.msk [vmem:[#allocation2 + $0x8] sm:$0x1] %vm530_vm15, %v496_v39 }
 0x13e   : > { %v506_v52 = vpop.permute.xlu1 %505  ;;  %v545_v0 = vld [vmem:[#allocation2 + $0x10] sm:$0xf]  ;;  %3661 = vrot.lane.b32.xlu0 %v3438_v30, %s8090_s20 }
 0x13f   : > { %536 = vst.msk [vmem:[#allocation2 + $0x1c] sm:$0xf] %vm527_vm14, %v506_v52  ;;  %573 = vrot.lane.b32.xlu1 %v545_v0, %s8092_s17 }
 0x140   : > { %3653 = vrot.lane.b32.xlu2 %v3390_v49, %s8090_s20 }
 0x142   : > { %v502_v13 = vpop.permute.xlu2 %501  ;;  %v543_v34 = vld [vmem:[#allocation2 + $0x8] sm:$0x1] }
 0x143   : > { %534 = vst.msk [vmem:[#allocation2 + $0x14] sm:$0x1] %vm530_vm15, %v502_v13 }
 0x146   : > { %v512_v15 = vpop.permute.xlu1 %511  ;;  %v548_v16 = vld [vmem:[#allocation2 + $0x1c] sm:$0xf]  ;;  %3667 = vrot.lane.b32.xlu0 %v3476_v9, %s8090_s20 }
 0x147   : > { %539 = vst.msk [vmem:[#allocation2 + $0x28] sm:$0xf] %vm527_vm14, %v512_v15  ;;  %579 = vrot.lane.b32.xlu1 %v548_v16, %s8092_s17  ;;  %v3230_v16 = vld [vmem:[#allocation2 + $0x7c] sm:$0xf] }
 0x148   : > { %v492_v37 = vpop.permute.xlu0 %491  ;;  %3659 = vrot.lane.b32.xlu2 %v3428_v10, %s8090_s20  ;;  %v3497_v21 = vshll.u32 %v3230_v16, 16 }
 0x149   : > { %528 = vst.msk [vmem:[#allocation2] sm:$0xf] %vm527_vm14, %v492_v37  ;;  %v3229_v37 = vld [vmem:[#allocation2 + $0x78] sm:$0xf] }
 0x14a   : > { %v508_v25 = vpop.permute.xlu2 %507  ;;  %v546_v30 = vld [vmem:[#allocation2 + $0x14] sm:$0x1] }
 0x14b   : > { %537 = vst.msk [vmem:[#allocation2 + $0x20] sm:$0x1] %vm530_vm15, %v508_v25  ;;  %v3501_v25 = vshrl.u32 %v3230_v16, 16  ;;  %v3233_v16 = vld [vmem:[#allocation2 + $0x88] sm:$0xf] }
 0x14e   : > { %v551_v59 = vld [vmem:[#allocation2 + $0x28] sm:$0xf]  ;;  %v8599_v28 = vpop.permute.xlu1 %1780 }
 0x14f   : > { %13236 = vst [vmem:[#allocation26_spill] sm:$0xff] %v8599_v28  ;;  %585 = vrot.lane.b32.xlu1 %v551_v59, %s8092_s17  ;;  %v3491_v59 = vshll.u32 %v3229_v37, 16 }
 0x150   : > { %v498_v27 = vpop.permute.xlu0 %497  ;;  %3665 = vrot.lane.b32.xlu2 %v3462_v18, %s8090_s20  ;;  %v541_v31 = vld [vmem:[#allocation2] sm:$0xf]  ;;  %v3488_v18 = vshrl.u32 %v3229_v37, 16 }
 0x151   : > { %532 = vst.msk [vmem:[#allocation2 + $0xc] sm:$0xf] %vm527_vm14, %v498_v27  ;;  %565 = vrot.lane.b32.xlu0 %v541_v31, %s8092_s17  ;;  %v3499_v27 = vrot.slane %v3497_v21, 5  ;;  %v3503_v31 = vrot.slane %v3501_v25, 4  ;;  %v3521_v25 = vshll.u32 %v3233_v16, 16 }
 0x152   : > { %v514_v33 = vpop.permute.xlu2 %513  ;;  %v549_v50 = vld [vmem:[#allocation2 + $0x20] sm:$0x1] }
 0x153   : > { %540 = vst.msk [vmem:[#allocation2 + $0x2c] sm:$0x1] %vm530_vm15, %v514_v33  ;;  %v3490_v33 = vrot.slane %v3488_v18, 4 }
 0x156   : > { %v8606_v57 = vpop.permute.xlu1 %1786 }
 0x157   : > { %13237 = vst [vmem:[#allocation27_spill] sm:$0xff] %v8606_v57 }
 0x158   : > { %v504_v35 = vpop.permute.xlu0 %503  ;;  %569 = vrot.lane.b32.xlu2 %v543_v34, %s8092_s17  ;;  %v544_v36 = vld [vmem:[#allocation2 + $0xc] sm:$0xf]  ;;  %v3231_v34 = vld [vmem:[#allocation2 + $0x80] sm:$0x1] }
 0x159   : > { %535 = vst.msk [vmem:[#allocation2 + $0x18] sm:$0xf] %vm527_vm14, %v504_v35  ;;  %571 = vrot.lane.b32.xlu0 %v544_v36, %s8092_s17  ;;  %v3493_v35 = vrot.slane %v3491_v59, 5  ;;  %v3234_v59 = vld [vmem:[#allocation2 + $0x8c] sm:$0x1] }
 0x15a   : > { %v8611_v38 = vpop.permute.xlu2 %1782  ;;  %v552_v5 = vld [vmem:[#allocation2 + $0x2c] sm:$0x1] }
 0x15b   : > { %13238 = vst [vmem:[#allocation28_spill] sm:$0xff] %v8611_v38 }
 0x15e   : > { %v8613_v39 = vpop.permute.xlu1 %1792 }
 0x160   : > { %v510_v42 = vpop.permute.xlu0 %509  ;;  %575 = vrot.lane.b32.xlu2 %v546_v30, %s8092_s17  ;;  %v547_v45 = vld [vmem:[#allocation2 + $0x18] sm:$0xf]  ;;  %v3504_v30 = vor.u32 %v3503_v31, %v3499_v27  ;;  %v3523_v31 = vrot.slane %v3521_v25, 5 }
 0x161   : > { %538 = vst.msk [vmem:[#allocation2 + $0x24] sm:$0xf] %vm527_vm14, %v510_v42  ;;  %577 = vrot.lane.b32.xlu0 %v547_v45, %s8092_s17  ;;  %v3507_v42 = vshll.u32 %v3231_v34, 16  ;;  %v3494_v45 = vor.u32 %v3493_v35, %v3490_v33  ;;  %v3531_v35 = vshll.u32 %v3234_v59, 16 }
 0x162   : > { %v8618_v46 = vpop.permute.xlu2 %1788 }
 0x163   : > { %13239 = vst [vmem:[#allocation29_spill] sm:$0xff] %v8618_v46 }
 0x166   : > { %v8620_v49 = vpop.permute.xlu1 %1798 }
 0x167   : > { %13240 = vst [vmem:[#allocation30_spill] sm:$0xff] %v8620_v49 }
 0x168   : > { %v8622_v52 = vpop.permute.xlu0 %1784  ;;  %581 = vrot.lane.b32.xlu2 %v549_v50, %s8092_s17  ;;  %v550_v0 = vld [vmem:[#allocation2 + $0x24] sm:$0xf]  ;;  %v3477_v50 = vshrl.u32 %v8566_v24, 16  ;;  %v3525_v24 = vshrl.u32 %v3233_v16, 16 }
 0x169   : > { %13241 = vst [vmem:[#allocation31_spill] sm:$0xff] %v8622_v52  ;;  %583 = vrot.lane.b32.xlu0 %v550_v0, %s8092_s17 }
 0x16a   : > { %v8626_v2 = vpop.permute.xlu2 %1794  ;;  %v3479_v18 = vrot.slane %v3477_v50, 4  ;;  %v3527_v34 = vrot.slane %v3525_v24, 4  ;;  %v13409_v26 = vld [vmem:[#allocation29_spill] sm:$0xff] }
 0x16e   : > { %v8628_v56 = vpop.permute.xlu1 %1804 }
 0x16f   : > { %13242 = vst [vmem:[#allocation32_spill] sm:$0xff] %v8628_v56  ;;  %v3495_v56 = vrot.slane %v3494_v45, 4  ;;  %v3528_v45 = vor.u32 %v3527_v34, %v3523_v31 }
 0x170   : > { %v8630_v13 = vpop.permute.xlu0 %1790  ;;  %587 = vrot.lane.b32.xlu2 %v552_v5, %s8092_s17  ;;  %v3505_v5 = vrot.slane %v3504_v30, 4  ;;  %v3228_v30 = vld [vmem:[#allocation2 + $0x74] sm:$0x1] }
 0x171   : > { %13243 = vst [vmem:[#allocation33_spill] sm:$0xff] %v8630_v13  ;;  %v3509_v13 = vrot.slane %v3507_v42, 5  ;;  %v3500_v21 = vsel %vm8496_vm13, %v3495_v56, %v3499_v27  ;;  %v3480_v42 = vor.u32 %v3479_v18, %v8580_v3  ;;  %v3529_v27 = vrot.slane %v3528_v45, 4 }
 0x172   : > { %v8633_v7 = vpop.permute.xlu2 %1800  ;;  %v3483_v16 = vshll.u32 %v3228_v30, 16  ;;  %v1314_v45 = vrot.slane %v8491_v22, 4 }
 0x173   : > { %v3510_v37 = vsel %vm8496_vm13, %v3505_v5, %v3509_v13  ;;  %v3533_v5 = vrot.slane %v3531_v35, 5 }
 0x174   : > { %3673 = vrot.lane.b32.xlu0 %v3510_v37, %s8090_s20  ;;  %v3232_v37 = vld [vmem:[#allocation2 + $0x84] sm:$0xf]  ;;  %v3485_v24 = vrot.slane %v3483_v16, 5  ;;  %v1348_v16 = vrot.slane %v8533_v29, 4 }
 0x175   : > { %v3512_v50 = vshrl.u32 %v3232_v37, 16  ;;  %v3534_v25 = vsel %vm8496_vm13, %v3529_v27, %v3533_v5  ;;  %v8093_v5 = vmov 1983009808  }
 0x176   : > { %v8635_v9 = vpop.permute.xlu1 %1810  ;;  %v656_v27 = vunpack.c.l.s4 %v8093_v5 }
 0x177   : > { %v3514_v59 = vrot.slane %v3512_v50, 4  ;;  %v1320_v50 = vrot.slane %v8541_v40, 4  ;;  %v1426_v40 = vrot.slane %v8524_v6, 4 }
 0x178   : > { %v8637_v10 = vpop.permute.xlu0 %1796  ;;  %3671 = vrot.lane.b32.xlu2 %v3500_v21, %s8090_s20  ;;  %v3481_v21 = vrot.slane %v3480_v42, 4  ;;  %v8688_v22 = vunpack.c.0.s8 %v656_v27  ;;  %v645_v27 = vld [vmem:[#allocation2 + $0x94] sm:$0xf] }
 0x17a   : > { %v8639_v11 = vpop.permute.xlu2 %1806  ;;  %v3486_v34 = vsel %vm8496_vm13, %v3481_v21, %v3485_v24  ;;  %v1454_v21 = vrot.slane %v8513_v53, 4  ;;  %v1342_v24 = vrot.slane %v8510_v44, 4  ;;  %13251 = vst [vmem:[#allocation41_spill] sm:$0xff] %v8688_v22  ;;  %v1321_v44 = vsel %vm653_vm0, %v1320_v50, %v8474_v4 }
 0x17b   : > { %3669 = vrot.lane.b32.xlu1 %v3486_v34, %s8090_s20  ;;  %v8094_v34 = vmov 1934713408   ;;  %v1432_v50 = vrot.slane %v8530_v19, 4  ;;  %v821_v19 = vrot.slane %v645_v27, 4  ;;  %v651_v27 = vld [vmem:[#allocation2 + $0xb8] sm:$0xf] }
 0x17e   : > { %v8641_v12 = vpop.permute.xlu1 %1816 }
 0x180   : > { %v8643_v15 = vpop.permute.xlu0 %1802  ;;  %3677 = vrot.lane.b32.xlu2 %v3534_v25, %s8090_s20  ;;  %v1315_v25 = vsel %vm653_vm0, %v1314_v45, %v8462_v1  ;;  %v1455_v1 = vsel %vm653_vm0, %v1454_v21, %v8484_v14  ;;  %v1343_v45 = vsel %vm653_vm0, %v1342_v24, %v8451_v62  ;;  %v1325_v21 = vperm.slane %v1321_v44, %v8688_v22  ;;  %v639_v62 = vld [vmem:[#allocation2 + $0x70] sm:$0xf] }
 0x181   : > { %13244 = vst [vmem:[#allocation34_spill] sm:$0xff] %v8643_v15  ;;  %v3515_v15 = vshll.u32 %v3232_v37, 16  ;;  %v1319_v53 = vperm.slane %v1315_v25, %v8688_v22  ;;  %v1427_v24 = vsel %vm653_vm0, %v1426_v40, %v8446_v61 }
 0x182   : > { %v8645_v17 = vpop.permute.xlu2 %1812  ;;  %v8730_v6 = vperm.slane %v1427_v24, %v8688_v22  ;;  %v1326_v40 = vrot.slane %v1325_v21, 4 }
 0x183   : > { %v3517_v3 = vrot.slane %v3515_v15, 5  ;;  %v1328_v25 = vrot.slane %v1319_v53, 4 }
 0x185   : > { %v3518_v35 = vor.u32 %v3517_v3, %v3514_v59  ;;  %v1349_v59 = vsel %vm653_vm0, %v1348_v16, %v8503_v32  ;;  %v1460_v16 = vrot.slane %v8560_v23, 4  ;;  %v1329_v4 = vsel %vm653_vm0, %v1325_v21, %v1328_v25 }
 0x186   : > { %v8647_v36 = vpop.permute.xlu1 %1822 }
 0x187   : > { %v3519_v30 = vrot.slane %v3518_v35, 4  ;;  %v670_v35 = vunpack.c.l.s4 %v8094_v34  ;;  %v1461_v44 = vsel %vm653_vm0, %v1460_v16, %v8489_v20  ;;  %v637_v34 = vld [vmem:[#allocation2 + $0x64] sm:$0xf]  ;;  %v649_v16 = vld [vmem:[#allocation2 + $0xac] sm:$0xf] }
 0x188   : > { %v8650_v0 = vpop.permute.xlu0 %1808 }
 0x189   : > { %v3524_v15 = vsel %vm8496_vm13, %v3519_v30, %v3523_v31  ;;  %v1353_v30 = vperm.slane %v1349_v59, %v8688_v22  ;;  %v1347_v59 = vperm.slane %v1343_v45, %v8688_v22  ;;  %v8725_v23 = vunpack.c.0.s8 %v670_v35 }
 0x18a   : > { %v8652_v49 = vpop.permute.xlu2 %1818  ;;  %3675 = vrot.lane.b32.xlu1 %v3524_v15, %s8090_s20  ;;  %v8716_v15 = vperm.slane %v1455_v1, %v8688_v22  ;;  %v647_v1 = vld [vmem:[#allocation2 + $0xa0] sm:$0xf]  ;;  %v1433_v45 = vsel %vm653_vm0, %v1432_v50, %v8479_v8  ;;  %v641_v8 = vld [vmem:[#allocation2 + $0x7c] sm:$0xf]  ;;  %v643_v50 = vld [vmem:[#allocation2 + $0x88] sm:$0xf] }
 0x18b   : > { %v1354_v32 = vrot.slane %v1353_v30, 4  ;;  %v849_v14 = vrot.slane %v647_v1, 4  ;;  %v1356_v29 = vrot.slane %v1347_v59, 4  ;;  %v822_v1 = vsel %vm653_vm0, %v821_v19, %v637_v34 }
 0x18c   : > { %v1468_v61 = vrot.slane %v8716_v15, 4  ;;  %v826_v21 = vperm.slane %v822_v1, %v8688_v22  ;;  %v1437_v25 = vperm.slane %v1433_v45, %v8688_v22  ;;  %v855_v34 = vrot.slane %v651_v27, 4 }
 0x18d   : > { %v850_v24 = vsel %vm653_vm0, %v849_v14, %v639_v62  ;;  %v1440_v14 = vrot.slane %v8730_v6, 4  ;;  %v1918_v62 = vrot.slane %v8641_v12, 4  ;;  %v8764_v12 = vsel %vm653_vm0, %v1353_v30, %v1356_v29 }
 0x18e   : > { %v8660_v33 = vpop.permute.xlu1 %3651  ;;  %v835_v27 = vrot.slane %v826_v21, 4  ;;  %13259 = vst [vmem:[#allocation49_spill] sm:$0xff] %v8764_v12 }
 0x18f   : > { %13245 = vst [vmem:[#allocation35_spill] sm:$0xff] %v8660_v33  ;;  %v1441_v1 = vsel %vm653_vm0, %v1437_v25, %v1440_v14 }
 0x190   : > { %v8663_v13 = vpop.permute.xlu0 %1814 }
 0x191   : > { %13246 = vst [vmem:[#allocation36_spill] sm:$0xff] %v8663_v13 }
 0x192   : > { %v8665_v56 = vpop.permute.xlu2 %3647 }
 0x193   : > { %13247 = vst [vmem:[#allocation37_spill] sm:$0xff] %v8665_v56 }
 0x196   : > { %v8670_v18 = vpop.permute.xlu1 %3657 }
 0x197   : > { %13248 = vst [vmem:[#allocation38_spill] sm:$0xff] %v8670_v18 }
 0x198   : > { %v8675_v42 = vpop.permute.xlu0 %1820 }
 0x199   : > { %13249 = vst [vmem:[#allocation39_spill] sm:$0xff] %v8675_v42 }
 0x19a   : > { %v8678_v37 = vpop.permute.xlu2 %3653 }
 0x19b   : > { %13250 = vst [vmem:[#allocation40_spill] sm:$0xff] %v8678_v37 }
 0x19e   : > { %v8692_v3 = vpop.permute.xlu1 %3663 }
 0x19f   : > { %13252 = vst [vmem:[#allocation42_spill] sm:$0xff] %v8692_v3  ;;  %v1355_v3 = vsel %vm653_vm0, %v1354_v32, %v1347_v59  ;;  %v8750_v32 = vperm.slane %v1329_v4, %v8725_v23  ;;  %v854_v59 = vperm.slane %v850_v24, %v8688_v22  ;;  %v629_v24 = vld [vmem:[#allocation2 + $0x34] sm:$0xf] }
 0x1a0   : > { %v8696_v31 = vpop.permute.xlu0 %3649  ;;  %v8756_v19 = vperm.slane %v1355_v3, %v8725_v23 }
 0x1a1   : > { %13253 = vst [vmem:[#allocation43_spill] sm:$0xff] %v8696_v31  ;;  %v827_v31 = vrot.slane %v649_v16, 4 }
 0x1a2   : > { %v8708_v5 = vpop.permute.xlu2 %3659  ;;  %13257 = vst [vmem:[#allocation47_spill] sm:$0xff] %v8750_v32 }
 0x1a3   : > { %13254 = vst [vmem:[#allocation44_spill] sm:$0xff] %v8708_v5  ;;  %v1465_v5 = vperm.slane %v1461_v44, %v8688_v22  ;;  %v1327_v44 = vsel %vm653_vm0, %v1326_v40, %v1319_v53  ;;  %v828_v45 = vsel %vm653_vm0, %v827_v31, %v641_v8  ;;  %v863_v8 = vrot.slane %v854_v59, 4 }
 0x1a4   : > { %13258 = vst [vmem:[#allocation48_spill] sm:$0xff] %v8756_v19  ;;  %v832_v16 = vperm.slane %v828_v45, %v8688_v22  ;;  %v8771_v31 = vperm.slane %v1327_v44, %v8725_v23 }
 0x1a5   : > { %v1466_v29 = vrot.slane %v1465_v5, 4 }
 0x1a6   : > { %13260 = vst [vmem:[#allocation50_spill] sm:$0xff] %v8771_v31  ;;  %v833_v14 = vrot.slane %v832_v16, 4 }
 0x1a8   : > { %v8735_v35 = vpop.permute.xlu0 %3655 }
 0x1a9   : > { %13255 = vst [vmem:[#allocation45_spill] sm:$0xff] %v8735_v35  ;;  %v568_v20 = vpop.permute.xlu1 %567  ;;  %v2024_v35 = vrot.slane %v8635_v9, 4  ;;  %v856_v9 = vsel %vm653_vm0, %v855_v34, %v643_v50 }
 0x1aa   : > { %v8742_v56 = vpop.permute.xlu2 %3665  ;;  %603 = vst.msk [vmem:[#allocation2 + $0x4] sm:$0xf] %vm601_vm1, %v568_v20  ;;  %v1469_v20 = vsel %vm653_vm0, %v1465_v5, %v1468_v61  ;;  %v860_v4 = vperm.slane %v856_v9, %v8688_v22  ;;  %v1919_v61 = vsel %vm653_vm0, %v1918_v62, %v8633_v7  ;;  %v836_v5 = vsel %vm653_vm0, %v832_v16, %v835_v27 }
 0x1ab   : > { %13256 = vst [vmem:[#allocation46_spill] sm:$0xff] %v8742_v56  ;;  %v2025_v3 = vsel %vm653_vm0, %v2024_v35, %v8626_v2  ;;  %v8778_v30 = vperm.slane %v1469_v20, %v8725_v23  ;;  %v1438_v2 = vrot.slane %v1437_v25, 4  ;;  %v8781_v35 = vperm.slane %v1441_v1, %v8725_v23 }
 0x1ac   : > { %v861_v45 = vrot.slane %v860_v4, 4  ;;  %v8784_v44 = vperm.slane %v2025_v3, %v8688_v22  ;;  %v8792_v20 = vperm.slane %v1919_v61, %v8688_v22  ;;  %v765_v25 = vrot.slane %v629_v24, 4 }
 0x1ad   : > { %13262 = vst [vmem:[#allocation52_spill] sm:$0xff] %v8778_v30  ;;  %v8801_v27 = vperm.slane %v836_v5, %v8725_v23  ;;  %v834_v61 = vsel %vm653_vm0, %v833_v14, %v826_v21  ;;  %v1467_v24 = vsel %vm653_vm0, %v1466_v29, %v8716_v15  ;;  %v1940_v16 = vrot.slane %v8645_v17, 4 }
 0x1ae   : > { %13263 = vst [vmem:[#allocation53_spill] sm:$0xff] %v8781_v35  ;;  %v862_v9 = vsel %vm653_vm0, %v861_v45, %v854_v59  ;;  %v8819_v29 = vperm.slane %v834_v61, %v8725_v23  ;;  %v8828_v3 = vperm.slane %v1467_v24, %v8725_v23 }
 0x1af   : > { %13264 = vst [vmem:[#allocation54_spill] sm:$0xff] %v8784_v44  ;;  %v8822_v45 = vperm.slane %v862_v9, %v8725_v23  ;;  %v8835_v9 = vld [vmem:[#allocation2 + $0x58] sm:$0xf]  ;;  %v964_v5 = vshrl.u32 %v8801_v27, 16 }
 0x1b0   : > { %v8775_v40 = vpop.permute.xlu0 %3661  ;;  %13265 = vst [vmem:[#allocation55_spill] sm:$0xff] %v8792_v20  ;;  %v952_v19 = vshrl.u32 %v8819_v29, 16 }
 0x1b1   : > { %13261 = vst [vmem:[#allocation51_spill] sm:$0xff] %v8775_v40  ;;  %v574_v50 = vpop.permute.xlu1 %573  ;;  %v1099_v34 = vld [vmem:[#allocation2 + $0x4] sm:$0xf]  ;;  %v873_v14 = vrot.slane %v8822_v45, 4 }
 0x1b2   : > { %v570_v7 = vpop.permute.xlu2 %569  ;;  %607 = vst.msk [vmem:[#allocation2 + $0x10] sm:$0xf] %vm601_vm1, %v574_v50  ;;  %1164 = vrot.lane.b32.xlu0 %v1099_v34, %s8090_s20  ;;  %v2058_v50 = vrot.slane %v8647_v36, 4  ;;  %v621_v53 = vld [vmem:[#allocation2 + $0x4] sm:$0xf]  ;;  %v864_v34 = vsel %vm653_vm0, %v860_v4, %v863_v8 }
 0x1b3   : > { %605 = vst.msk [vmem:[#allocation2 + $0x8] sm:$0x1] %vm604_vm2, %v570_v7  ;;  %v1439_v7 = vsel %vm653_vm0, %v1438_v2, %v8730_v6  ;;  %v631_v4 = vld [vmem:[#allocation2 + $0x40] sm:$0xf]  ;;  %v3200_v8 = vld [vmem:[#allocation2 + $0x4] sm:$0xf]  ;;  %v766_v21 = vsel %vm653_vm0, %v765_v25, %v621_v53  ;;  %v872_v59 = vperm.slane %v864_v34, %v8725_v23 }
 0x1b4   : > { %v2059_v15 = vsel %vm653_vm0, %v2058_v50, %v8639_v11  ;;  %v633_v6 = vld [vmem:[#allocation2 + $0x4c] sm:$0xf]  ;;  %13266 = vst [vmem:[#allocation56_spill] sm:$0xff] %v8819_v29  ;;  %v793_v62 = vrot.slane %v631_v4, 4  ;;  %v3257_v53 = vshll.u32 %v3200_v8, 16  ;;  %v3261_v25 = vshrl.u32 %v3200_v8, 16 }
 0x1b5   : > { %13267 = vst [vmem:[#allocation57_spill] sm:$0xff] %v8822_v45  ;;  %v847_v34 = vrot.slane %v8801_v27, 4  ;;  %v8831_v11 = vperm.slane %v1439_v7, %v8725_v23  ;;  %v8838_v61 = vperm.slane %v766_v21, %v8688_v22  ;;  %v8840_v4 = vld [vmem:[#allocation2 + $0x30] sm:$0xf]  ;;  %v8844_v8 = vsel %vm653_vm0, %v1940_v16, %v8637_v10  ;;  %v8865_v32 = vld [vmem:[#allocation2 + $0x4] sm:$0xf] }
 0x1b6   : > { %13269 = vst [vmem:[#allocation59_spill] sm:$0xff] %v8828_v3  ;;  %v8847_v24 = vperm.slane %v2059_v15, %v8688_v22  ;;  %v771_v7 = vrot.slane %v633_v6, 4  ;;  %v875_v1 = vrot.slane %v872_v59, 4  ;;  %v845_v21 = vrot.slane %v8819_v29, 4 }
 0x1b7   : > { %13270 = vst [vmem:[#allocation60_spill] sm:$0xff] %v8831_v11  ;;  %v8854_v56 = vrot.slane %v3257_v53, 5  ;;  %v3263_v10 = vrot.slane %v3261_v25, 4  ;;  %v965_v16 = vshrl.u32 %v872_v59, 16  ;;  %v848_v15 = vsel %vm653_vm0, 0, %v847_v34 }
 0x1b8   : > { %v8824_v17 = vpop.permute.xlu0 %3667  ;;  %v779_v6 = vrot.slane %v8838_v61, 4  ;;  %v876_v33 = vsel %vm653_vm0, 0, %v875_v1  ;;  %v953_v53 = vshrl.u32 %v8822_v45, 16  ;;  %v874_v25 = vsel %vm653_vm0, 0, %v873_v14 }
 0x1b9   : > { %v580_v2 = vpop.permute.xlu1 %579  ;;  %13268 = vst [vmem:[#allocation58_spill] sm:$0xff] %v8824_v17  ;;  %v1101_v36 = vld [vmem:[#allocation2 + $0x10] sm:$0xf]  ;;  %v970_v34 = vshrl.u32 %v848_v15, 16  ;;  %v3264_v1 = vor.u32 %v3263_v10, %v8854_v56  ;;  %v8871_v29 = vpack.i.b16 %v965_v16, %v964_v5  ;;  %v969_v52 = vpack.i.b16 %v876_v33, %v848_v15 }
 0x1ba   : > { %v576_v50 = vpop.permute.xlu2 %575  ;;  %610 = vst.msk [vmem:[#allocation2 + $0x1c] sm:$0xf] %vm601_vm1, %v580_v2  ;;  %1168 = vrot.lane.b32.xlu2 %v1101_v36, %s8090_s20  ;;  %v3203_v2 = vld [vmem:[#allocation2 + $0x10] sm:$0xf]  ;;  %v963_v36 = vpack.i.b16 %v872_v59, %v8801_v27  ;;  %v3201_v17 = vld [vmem:[#allocation2 + $0x8] sm:$0x1] }
 0x1bb   : > { %608 = vst.msk [vmem:[#allocation2 + $0x14] sm:$0x1] %vm604_vm2, %v576_v50  ;;  %v623_v37 = vld [vmem:[#allocation2 + $0x10] sm:$0xf]  ;;  %v3281_v40 = vshll.u32 %v3203_v2, 16  ;;  %v3285_v27 = vshrl.u32 %v3203_v2, 16  ;;  %v8900_v48 = vunpack.c.l.b16 %v969_v52 }
 0x1bc   : > { %v3267_v31 = vshll.u32 %v3201_v17, 16  ;;  %v846_v59 = vsel %vm653_vm0, 0, %v845_v21  ;;  %v794_v2 = vsel %vm653_vm0, %v793_v62, %v623_v37  ;;  %v8868_v18 = vunpack.c.l.b16 %v963_v36 }
 0x1bd   : > { %v8877_v45 = vrot.slane %v3281_v40, 5  ;;  %v971_v37 = vshrl.u32 %v876_v33, 16  ;;  %v3287_v36 = vrot.slane %v3285_v27, 4  ;;  %v958_v10 = vshrl.u32 %v846_v59, 16 }
 0x1be   : > { %v959_v16 = vshrl.u32 %v874_v25, 16  ;;  %v2355_v40 = vshll.u32 %v8865_v32, 16  ;;  %v13275_v11 = vrot.slane %v8840_v4, 4 }
 0x1c1   : > { %v586_v12 = vpop.permute.xlu1 %585  ;;  %v1701_v50 = vld [vmem:[#allocation2 + $0x1c] sm:$0xf] }
 0x1c2   : > { %v1103_v46 = vld [vmem:[#allocation2 + $0x1c] sm:$0xf]  ;;  %v582_v17 = vpop.permute.xlu2 %581  ;;  %613 = vst.msk [vmem:[#allocation2 + $0x28] sm:$0xf] %vm601_vm1, %v586_v12  ;;  %1770 = vrot.lane.b32.xlu2 %v1701_v50, %s8091_s8  ;;  %v798_v12 = vperm.slane %v794_v2, %v8688_v22  ;;  %v957_v50 = vpack.i.b16 %v874_v25, %v846_v59  ;;  %v1697_v59 = vld [vmem:[#allocation2 + $0x4] sm:$0xf] }
 0x1c3   : > { %v625_v63 = vld [vmem:[#allocation2 + $0x1c] sm:$0xf]  ;;  %1172 = vrot.lane.b32.xlu1 %v1103_v46, %s8090_s20  ;;  %611 = vst.msk [vmem:[#allocation2 + $0x20] sm:$0x1] %vm604_vm2, %v582_v17  ;;  %v566_v62 = vpop.permute.xlu0 %565  ;;  %v8883_v46 = vrot.slane %v3267_v31, 5  ;;  %v8895_v31 = vpack.i.b16 %v971_v37, %v970_v34 }
 0x1c4   : > { %v772_v14 = vsel %vm653_vm0, %v771_v7, %v625_v63  ;;  %v3206_v21 = vld [vmem:[#allocation2 + $0x1c] sm:$0xf]  ;;  %602 = vst.msk [vmem:[#allocation2] sm:$0xf] %vm601_vm1, %v566_v62  ;;  %v8885_v63 = vpack.i.b16 %v953_v53, %v952_v19  ;;  %v3204_v62 = vld [vmem:[#allocation2 + $0x14] sm:$0x1]  ;;  %v3288_v53 = vor.u32 %v3287_v36, %v8877_v45 }
 0x1c5   : > { %v776_v5 = vperm.slane %v772_v14, %v8688_v22  ;;  %v3305_v7 = vshll.u32 %v3206_v21, 16  ;;  %v8889_v17 = vld [vmem:[#allocation2 + $0x3c] sm:$0xf]  ;;  %v3309_v14 = vshrl.u32 %v3206_v21, 16  ;;  %v8897_v19 = vrot.slane %v3264_v1, 4 }
 0x1c6   : > { %v807_v25 = vrot.slane %v798_v12, 4 }
 0x1c7   : > { %v780_v33 = vsel %vm653_vm0, %v776_v5, %v779_v6  ;;  %v777_v15 = vrot.slane %v776_v5, 4  ;;  %v8902_v6 = vpack.i.b16 %v959_v16, %v958_v10  ;;  %v8914_v36 = vrot.slane %v3305_v7, 5 }
 0x1c8   : > { %v8892_v27 = vperm.slane %v780_v33, %v8725_v23  ;;  %v8907_v33 = vld [vmem:[#allocation2 + $0x48] sm:$0xf]  ;;  %v3291_v10 = vshll.u32 %v3204_v62, 16  ;;  %v8916_v16 = vunpack.c.l.b16 %v957_v50  ;;  %v3311_v34 = vrot.slane %v3309_v14, 4 }
 0x1c9   : > { %v778_v5 = vsel %vm653_vm0, %v777_v15, %v8838_v61  ;;  %v1105_v37 = vld [vmem:[#allocation2 + $0x28] sm:$0xf]  ;;  %v13271_v61 = vrot.slane %v8835_v9, 4  ;;  %v8935_v7 = vrot.slane %v2355_v40, 5 }
 0x1ca   : > { %v627_v1 = vld [vmem:[#allocation2 + $0x28] sm:$0xf]  ;;  %v588_v2 = vpop.permute.xlu2 %587  ;;  %1176 = vrot.lane.b32.xlu0 %v1105_v37, %s8090_s20  ;;  %v3207_v21 = vld [vmem:[#allocation2 + $0x20] sm:$0x1]  ;;  %v791_v28 = vrot.slane %v8892_v27, 4  ;;  %v8930_v37 = vperm.slane %v778_v5, %v8725_v23  ;;  %v8938_v38 = vrot.slane %v3291_v10, 5  ;;  %v3312_v9 = vor.u32 %v3311_v34, %v8914_v36 }
 0x1cb   : > { %1762 = vrot.lane.b32.xlu1 %v1697_v59, %s8091_s8  ;;  %v800_v15 = vsel %vm653_vm0, %v13271_v61, %v627_v1  ;;  %v3209_v51 = vld [vmem:[#allocation2 + $0x28] sm:$0xf]  ;;  %614 = vst.msk [vmem:[#allocation2 + $0x2c] sm:$0x1] %vm604_vm2, %v588_v2  ;;  %v572_v50 = vpop.permute.xlu0 %571  ;;  %v1098_v62 = vld [vmem:[#allocation2] sm:$0xf] }
 0x1cc   : > { %v804_v52 = vperm.slane %v800_v15, %v8688_v22  ;;  %v8927_v59 = vrot.slane %v3288_v53, 4  ;;  %13272 = vst [vmem:[#allocation61_spill] sm:$0xff] %v8930_v37  ;;  %1162 = vrot.lane.b32.xlu2 %v1098_v62, %s8090_s20  ;;  %v3315_v14 = vshll.u32 %v3207_v21, 16  ;;  %v3329_v1 = vshll.u32 %v3209_v51, 16  ;;  %v3199_v15 = vld [vmem:[#allocation2] sm:$0xf] }
 0x1cd   : > { %606 = vst.msk [vmem:[#allocation2 + $0xc] sm:$0xf] %vm601_vm1, %v572_v50  ;;  %v3333_v61 = vshrl.u32 %v3209_v51, 16  ;;  %v916_v50 = vshrl.u32 %v8892_v27, 16  ;;  %v8945_v21 = vsel %vm653_vm0, 0, %v791_v28  ;;  %v3248_v40 = vshrl.u32 %v3199_v15, 16 }
 0x1ce   : > { %13273 = vst [vmem:[#allocation62_spill] sm:$0xff] %v8935_v7  ;;  %v808_v2 = vsel %vm653_vm0, %v804_v52, %v807_v25  ;;  %v805_v53 = vrot.slane %v804_v52, 4  ;;  %v3251_v62 = vshll.u32 %v3199_v15, 16  ;;  %v789_v25 = vrot.slane %v8930_v37, 4  ;;  %v1699_v10 = vld [vmem:[#allocation2 + $0x10] sm:$0xf] }
 0x1cf   : > { %v816_v54 = vperm.slane %v808_v2, %v8725_v23  ;;  %v8949_v52 = vrot.slane %v3315_v14, 5  ;;  %v8951_v60 = vrot.slane %v3329_v1, 5  ;;  %v3335_v5 = vrot.slane %v3333_v61, 4  ;;  %v1703_v55 = vld [vmem:[#allocation2 + $0x28] sm:$0xf] }
 0x1d0   : > { %v806_v51 = vsel %vm653_vm0, %v805_v53, %v798_v12  ;;  %v3250_v28 = vrot.slane %v3248_v40, 4  ;;  %v3253_v57 = vrot.slane %v3251_v62, 5  ;;  %v8959_v53 = vrot.slane %v3312_v9, 4  ;;  %v1696_v30 = vld [vmem:[#allocation2] sm:$0xf] }
 0x1d1   : > { %v917_v2 = vshrl.u32 %v816_v54, 16  ;;  %v819_v34 = vrot.slane %v816_v54, 4  ;;  %v8954_v41 = vperm.slane %v806_v51, %v8725_v23  ;;  %v915_v12 = vpack.i.b16 %v816_v54, %v8892_v27 }
 0x1d2   : > { %1766 = vrot.lane.b32.xlu0 %v1699_v10, %s8091_s8  ;;  %v3210_v1 = vld [vmem:[#allocation2 + $0x2c] sm:$0x1]  ;;  %v904_v61 = vshrl.u32 %v8930_v37, 16  ;;  %v922_v62 = vshrl.u32 %v8945_v21, 16  ;;  %v620_v10 = vld [vmem:[#allocation2] sm:$0xf]  ;;  %v3254_v14 = vor.u32 %v3253_v57, %v3250_v28 }
 0x1d3   : > { %13274 = vst [vmem:[#allocation63_spill] sm:$0xff] %v8954_v41  ;;  %1774 = vrot.lane.b32.xlu1 %v1703_v55, %s8091_s8  ;;  %v578_v15 = vpop.permute.xlu0 %577  ;;  %v918_v51 = vpack.i.b16 %v917_v2, %v916_v50  ;;  %v820_v40 = vsel %vm653_vm0, 0, %v819_v34  ;;  %v790_v55 = vsel %vm653_vm0, 0, %v789_v25  ;;  %v3339_v27 = vshll.u32 %v3210_v1, 16 }
 0x1d4   : > { %609 = vst.msk [vmem:[#allocation2 + $0x18] sm:$0xf] %vm601_vm1, %v578_v15  ;;  %v905_v9 = vshrl.u32 %v8954_v41, 16  ;;  %v3202_v37 = vld [vmem:[#allocation2 + $0xc] sm:$0xf]  ;;  %v3336_v50 = vor.u32 %v3335_v5, %v8951_v60  ;;  %v921_v2 = vpack.i.b16 %v820_v40, %v8945_v21  ;;  %v817_v25 = vrot.slane %v8954_v41, 4 }
 0x1d5   : > { %v3272_v34 = vshrl.u32 %v3202_v37, 16  ;;  %v8978_v47 = vunpack.c.l.b16 %v915_v12  ;;  %v3275_v58 = vshll.u32 %v3202_v37, 16  ;;  %v910_v43 = vshrl.u32 %v790_v55, 16  ;;  %v622_v44 = vld [vmem:[#allocation2 + $0xc] sm:$0xf] }
 0x1d6   : > { %v906_v15 = vpack.i.b16 %v905_v9, %v904_v61  ;;  %v1034_v3 = vunpack.c.l.b16 %v918_v51  ;;  %v818_v54 = vsel %vm653_vm0, 0, %v817_v25  ;;  %v654_v57 = vsel %vm653_vm0, %v13275_v11, %v620_v10  ;;  %v1100_v12 = vld [vmem:[#allocation2 + $0xc] sm:$0xf] }
 0x1d7   : > { %v3274_v1 = vrot.slane %v3272_v34, 4  ;;  %v8984_v28 = vrot.slane %v3339_v27, 5  ;;  %v8986_v5 = vrot.slane %v3254_v14, 4  ;;  %v909_v21 = vpack.i.b16 %v818_v54, %v790_v55 }
 0x1d8   : > { %v3277_v41 = vrot.slane %v3275_v58, 5  ;;  %v8988_v42 = vunpack.c.l.b16 %v921_v2  ;;  %v1014_v37 = vunpack.c.l.b16 %v906_v15  ;;  %v923_v61 = vshrl.u32 %v820_v40, 16  ;;  %v644_v2 = vld [vmem:[#allocation2 + $0x90] sm:$0xf] }
 0x1d9   : > { %v911_v51 = vshrl.u32 %v818_v54, 16  ;;  %v8993_v9 = vrot.slane %v3336_v50, 4  ;;  %v8995_v11 = vunpack.c.l.b16 %v909_v21  ;;  %v9000_v40 = vperm.slane %v654_v57, %v8688_v22  ;;  %v640_v21 = vld [vmem:[#allocation2 + $0x78] sm:$0xf] }
 0x1da   : > { %v3278_v14 = vor.u32 %v3277_v41, %v3274_v1  ;;  %v924_v27 = vpack.i.b16 %v923_v61, %v922_v62  ;;  %v13276_v54 = vrot.slane %v8889_v17, 4  ;;  %v646_v1 = vld [vmem:[#allocation2 + $0x9c] sm:$0xf]  ;;  %v642_v41 = vld [vmem:[#allocation2 + $0x84] sm:$0xf]  ;;  %v709_v4 = vrot.slane %v644_v2, 4 }
 0x1db   : > { %1166 = vrot.lane.b32.xlu1 %v1100_v12, %s8090_s20  ;;  %v584_v10 = vpop.permute.xlu0 %583  ;;  %v1102_v55 = vld [vmem:[#allocation2 + $0x18] sm:$0xf]  ;;  %v8997_v25 = vpack.i.b16 %v911_v51, %v910_v43  ;;  %v13277_v43 = vunpack.c.l.b16 %v8871_v29  ;;  %v667_v61 = vrot.slane %v9000_v40, 4  ;;  %v737_v13 = vrot.slane %v646_v1, 4 }
 0x1dc   : > { %v3205_v58 = vld [vmem:[#allocation2 + $0x18] sm:$0xf]  ;;  %v682_v34 = vsel %vm653_vm0, %v13276_v54, %v622_v44  ;;  %612 = vst.msk [vmem:[#allocation2 + $0x24] sm:$0xf] %vm601_vm1, %v584_v10  ;;  %1170 = vrot.lane.b32.xlu0 %v1102_v55, %s8090_s20  ;;  %v13278_v44 = vunpack.c.l.b16 %v8885_v63  ;;  %v9025_v12 = vrot.slane %v3278_v14, 4  ;;  %v1044_v51 = vunpack.c.l.b16 %v924_v27 }
 0x1dd   : > { %v9013_v62 = vpack.c.b16 %v13277_v43, %v1034_v3  ;;  %v3296_v50 = vshrl.u32 %v3205_v58, 16  ;;  %v3299_v15 = vshll.u32 %v3205_v58, 16  ;;  %v624_v29 = vld [vmem:[#allocation2 + $0x18] sm:$0xf]  ;;  %v648_v3 = vld [vmem:[#allocation2 + $0xa8] sm:$0xf]  ;;  %v9033_v54 = vperm.slane %v682_v34, %v8688_v22 }
 0x1de   : > { %v9019_v57 = vpack.c.b16 %v13278_v44, %v1014_v37  ;;  %v634_v10 = vld [vmem:[#allocation2 + $0x54] sm:$0xf]  ;;  %v636_v55 = vld [vmem:[#allocation2 + $0x60] sm:$0xf]  ;;  %v13279_v63 = vrot.slane %v8907_v33, 4  ;;  %v1024_v14 = vunpack.c.l.b16 %v8997_v25  ;;  %v715_v20 = vrot.slane %v648_v3, 4 }
 0x1df   : > { %v650_v58 = vld [vmem:[#allocation2 + $0xb4] sm:$0xf]  ;;  %v3298_v43 = vrot.slane %v3296_v50, 4  ;;  %v638_v44 = vld [vmem:[#allocation2 + $0x6c] sm:$0xf]  ;;  %v3301_v27 = vrot.slane %v3299_v15, 5  ;;  %v710_v2 = vsel %vm653_vm0, %v709_v4, %v636_v55 }
 0x1e0   : > { %v660_v37 = vsel %vm653_vm0, %v13279_v63, %v624_v29  ;;  %v1700_v33 = vld [vmem:[#allocation2 + $0x18] sm:$0xf]  ;;  %v687_v25 = vrot.slane %v634_v10, 4  ;;  %v743_v29 = vrot.slane %v650_v58, 4  ;;  %v13280_v63 = vunpack.c.l.b16 %v8895_v31 }
 0x1e1   : > { %v664_v17 = vperm.slane %v660_v37, %v8688_v22  ;;  %v716_v15 = vsel %vm653_vm0, %v715_v20, %v640_v21  ;;  %v9051_v34 = vperm.slane %v710_v2, %v8688_v22  ;;  %v738_v10 = vsel %vm653_vm0, %v737_v13, %v638_v44 }
 0x1e2   : > { %v9046_v37 = vpack.c.b16 %v13280_v63, %v1044_v51  ;;  %v744_v31 = vsel %vm653_vm0, %v743_v29, %v642_v41  ;;  %v3302_v4 = vor.u32 %v3301_v27, %v3298_v43  ;;  %v695_v43 = vrot.slane %v9033_v54, 4 }
 0x1e3   : > { %v668_v50 = vsel %vm653_vm0, %v664_v17, %v667_v61  ;;  %1768 = vrot.lane.b32.xlu1 %v1700_v33, %s8091_s8  ;;  %v665_v1 = vrot.slane %v664_v17, 4  ;;  %v1104_v3 = vld [vmem:[#allocation2 + $0x24] sm:$0xf]  ;;  %v9054_v61 = vperm.slane %v716_v15, %v8688_v22  ;;  %v723_v58 = vrot.slane %v9051_v34, 4 }
 0x1e4   : > { %v3208_v35 = vld [vmem:[#allocation2 + $0x24] sm:$0xf]  ;;  %1174 = vrot.lane.b32.xlu2 %v1104_v3, %s8090_s20  ;;  %1760 = vrot.lane.b32.xlu0 %v1696_v30, %s8091_s8  ;;  %v676_v51 = vperm.slane %v668_v50, %v8725_v23  ;;  %v9064_v33 = vperm.slane %v738_v10, %v8688_v22  ;;  %v9067_v13 = vperm.slane %v744_v31, %v8688_v22  ;;  %v9080_v63 = vrot.slane %v3302_v4, 4 }
 0x1e5   : > { %v3320_v20 = vshrl.u32 %v3208_v35, 16  ;;  %v3323_v17 = vshll.u32 %v3208_v35, 16  ;;  %v626_v21 = vld [vmem:[#allocation2 + $0x24] sm:$0xf]  ;;  %v13281_v35 = vunpack.c.l.b16 %v8902_v6  ;;  %v724_v50 = vsel %vm653_vm0, %v9054_v61, %v723_v58 }
 0x1e6   : > { %v688_v55 = vsel %vm653_vm0, %v687_v25, %v626_v21  ;;  %v751_v25 = vrot.slane %v9064_v33, 4  ;;  %v666_v29 = vsel %vm653_vm0, %v665_v1, %v9000_v40  ;;  %v732_v3 = vperm.slane %v724_v50, %v8725_v23  ;;  %v1698_v1 = vld [vmem:[#allocation2 + $0xc] sm:$0xf] }
 0x1e7   : > { %v3322_v41 = vrot.slane %v3320_v20, 4  ;;  %v3325_v44 = vrot.slane %v3323_v17, 5  ;;  %v692_v30 = vperm.slane %v688_v55, %v8688_v22  ;;  %v9073_v27 = vpack.c.b16 %v13281_v35, %v1024_v14  ;;  %v1702_v55 = vld [vmem:[#allocation2 + $0x24] sm:$0xf] }
 0x1e8   : > { %v679_v10 = vrot.slane %v676_v51, 4  ;;  %v752_v14 = vsel %vm653_vm0, %v9067_v13, %v751_v25  ;;  %v9088_v31 = vperm.slane %v666_v29, %v8725_v23  ;;  %v13283_v40 = vpack.c.b16 %v8868_v18, %v8978_v47 }
 0x1e9   : > { %v3326_v2 = vor.u32 %v3325_v44, %v3322_v41  ;;  %v696_v15 = vsel %vm653_vm0, %v692_v30, %v695_v43  ;;  %v735_v4 = vrot.slane %v732_v3, 4  ;;  %v760_v20 = vperm.slane %v752_v14, %v8725_v23 }
 0x1ea   : > { %v704_v6 = vperm.slane %v696_v15, %v8725_v23  ;;  %13282 = vst [vmem:[#allocation64_spill] sm:$0xff] %v9088_v31  ;;  %v892_v17 = vshrl.u32 %v676_v51, 16  ;;  %v940_v21 = vshrl.u32 %v732_v3, 16  ;;  %v693_v43 = vrot.slane %v692_v30, 4 }
 0x1eb   : > { %1032 = vrot.lane.b32.xlu1 %v13283_v40, %s8095_s18  ;;  %v9095_v58 = vrot.slane %v3326_v2, 4  ;;  %v763_v35 = vrot.slane %v760_v20, 4  ;;  %v941_v50 = vshrl.u32 %v760_v20, 16  ;;  %v721_v18 = vrot.slane %v9054_v61, 4 }
 0x1ec   : > { %v707_v41 = vrot.slane %v704_v6, 4  ;;  %v893_v44 = vshrl.u32 %v704_v6, 16  ;;  %1764 = vrot.lane.b32.xlu2 %v1698_v1, %s8091_s8  ;;  %1772 = vrot.lane.b32.xlu0 %v1702_v55, %s8091_s8  ;;  %v891_v47 = vpack.i.b16 %v704_v6, %v676_v51  ;;  %v9104_v29 = vsel %vm653_vm0, 0, %v735_v4 }
 0x1ed   : > { %v677_v2 = vrot.slane %v9088_v31, 4  ;;  %v2359_v15 = vshrl.u32 %v8865_v32, 16  ;;  %v9109_v30 = vsel %vm653_vm0, 0, %v763_v35  ;;  %v942_v40 = vpack.i.b16 %v941_v50, %v940_v21 }
 0x1ee   : > { %v9101_v25 = vsel %vm653_vm0, 0, %v707_v41  ;;  %v894_v14 = vpack.i.b16 %v893_v44, %v892_v17  ;;  %v939_v1 = vpack.i.b16 %v760_v20, %v732_v3  ;;  %v9120_v6 = vsel %vm653_vm0, 0, %v679_v10 }
 0x1ef   : > { %v694_v32 = vsel %vm653_vm0, %v693_v43, %v9033_v54  ;;  %v897_v4 = vpack.i.b16 %v9101_v25, %v9120_v6  ;;  %v9126_v3 = vunpack.c.l.b16 %v891_v47  ;;  %v722_v17 = vsel %vm653_vm0, %v721_v18, %v9051_v34 }
 0x1f0   : > { %v9129_v20 = vperm.slane %v694_v32, %v8725_v23  ;;  %v945_v21 = vpack.i.b16 %v9109_v30, %v9104_v29  ;;  %v678_v10 = vsel %vm653_vm0, 0, %v677_v2  ;;  %v9137_v55 = vperm.slane %v722_v17, %v8725_v23 }
 0x1f1   : > { %v749_v54 = vrot.slane %v9067_v13, 4  ;;  %v13286_v41 = vsel %vm8496_vm13, %v8897_v19, %v8883_v46  ;;  %v996_v44 = vunpack.c.l.b16 %v894_v14  ;;  %v997_v43 = vunpack.c.l.b16 %v942_v40  ;;  %v2296_v40 = vld [vmem:[#allocation2 + $0x8] sm:$0x1] }
 0x1f2   : > { %13284 = vst [vmem:[#allocation65_spill] sm:$0xff] %v9129_v20  ;;  %v9146_v34 = vunpack.c.l.b16 %v939_v1  ;;  %v705_v35 = vrot.slane %v9129_v20, 4  ;;  %v733_v50 = vrot.slane %v9137_v55, 4  ;;  %v880_v13 = vshrl.u32 %v9088_v31, 16 }
 0x1f3   : > { %13285 = vst [vmem:[#allocation66_spill] sm:$0xff] %v9137_v55  ;;  %3633 = vrot.lane.b32.xlu1 %v13286_v41, %s8090_s20  ;;  %v750_v47 = vsel %vm653_vm0, %v749_v54, %v9064_v33  ;;  %v881_v18 = vshrl.u32 %v9129_v20, 16  ;;  %v13287_v46 = vsel %vm8496_vm13, %v8959_v53, %v8949_v52  ;;  %v13288_v19 = vsel %vm8496_vm13, %v8927_v59, %v8938_v38  ;;  %v2298_v54 = vld [vmem:[#allocation2 + $0x10] sm:$0xf]  ;;  %v2301_v20 = vld [vmem:[#allocation2 + $0x1c] sm:$0xf] }
 0x1f4   : > { %3641 = vrot.lane.b32.xlu2 %v13287_v46, %s8090_s20  ;;  %3637 = vrot.lane.b32.xlu0 %v13288_v19, %s8090_s20  ;;  %v706_v33 = vsel %vm653_vm0, 0, %v705_v35  ;;  %v9168_v2 = vperm.slane %v750_v47, %v8725_v23  ;;  %v928_v14 = vshrl.u32 %v9137_v55, 16  ;;  %v2361_v1 = vrot.slane %v2359_v15, 4 }
 0x1f5   : > { %v734_v32 = vsel %vm653_vm0, 0, %v733_v50  ;;  %v886_v52 = vshrl.u32 %v678_v10, 16  ;;  %v887_v53 = vshrl.u32 %v706_v33, 16  ;;  %v885_v17 = vpack.i.b16 %v706_v33, %v678_v10 }
 0x1f6   : > { %13289 = vst [vmem:[#allocation67_spill] sm:$0xff] %v9168_v2  ;;  %v761_v41 = vrot.slane %v9168_v2, 4  ;;  %v882_v46 = vpack.i.b16 %v881_v18, %v880_v13  ;;  %v929_v38 = vshrl.u32 %v9168_v2, 16  ;;  %v2362_v59 = vor.u32 %v2361_v1, %v8935_v7  ;;  %v2302_v1 = vld [vmem:[#allocation2 + $0x20] sm:$0x1] }
 0x1f7   : > { %v9175_v35 = vunpack.c.l.b16 %v897_v4  ;;  %v9177_v47 = vunpack.c.l.b16 %v945_v21  ;;  %v934_v19 = vshrl.u32 %v734_v32, 16  ;;  %v2365_v51 = vshll.u32 %v2296_v40, 16 }
 0x1f8   : > { %v762_v15 = vsel %vm653_vm0, 0, %v761_v41  ;;  %v888_v50 = vpack.i.b16 %v887_v53, %v886_v52  ;;  %v930_v61 = vpack.i.b16 %v929_v38, %v928_v14  ;;  %v2379_v10 = vshll.u32 %v2298_v54, 16  ;;  %v2299_v14 = vld [vmem:[#allocation2 + $0x14] sm:$0x1]  ;;  %v2304_v53 = vld [vmem:[#allocation2 + $0x28] sm:$0xf] }
 0x1f9   : > { %v9180_v33 = vpack.c.b16 %v997_v43, %v996_v44  ;;  %v935_v18 = vshrl.u32 %v762_v15, 16  ;;  %v933_v31 = vpack.i.b16 %v762_v15, %v734_v32  ;;  %v13290_v4 = vsel %vm8496_vm13, %v8993_v9, %v8984_v28  ;;  %v2305_v15 = vld [vmem:[#allocation2 + $0x2c] sm:$0x1] }
 0x1fa   : > { %v9190_v21 = vunpack.c.l.b16 %v885_v17  ;;  %v976_v40 = vunpack.c.l.b16 %v882_v46  ;;  %v9192_v52 = vrot.slane %v2362_v59, 4  ;;  %v2383_v44 = vshrl.u32 %v2298_v54, 16  ;;  %v2307_v54 = vld [vmem:[#allocation2 + $0x34] sm:$0xf] }
 0x1fb   : > { %3645 = vrot.lane.b32.xlu1 %v13290_v4, %s8090_s20  ;;  %v936_v43 = vpack.i.b16 %v935_v18, %v934_v19  ;;  %v9194_v41 = vrot.slane %v2365_v51, 5  ;;  %v9196_v32 = vrot.slane %v2379_v10, 5  ;;  %v2403_v38 = vshll.u32 %v2301_v20, 16 }
 0x1fc   : > { %1037 = vrot.lane.b32.xlu2 %v9013_v62, %s8096_s19  ;;  %v13292_v28 = vpack.c.b16 %v8900_v48, %v8988_v42  ;;  %v986_v9 = vunpack.c.l.b16 %v888_v50  ;;  %v977_v17 = vunpack.c.l.b16 %v930_v61  ;;  %v2385_v46 = vrot.slane %v2383_v44, 4  ;;  %v2310_v42 = vld [vmem:[#allocation2 + $0x40] sm:$0xf] }
 0x1fd   : > { %13291 = vst [vmem:[#allocation68_spill] sm:$0xff] %v9196_v32  ;;  %v2407_v59 = vshrl.u32 %v2301_v20, 16  ;;  %v987_v51 = vunpack.c.l.b16 %v936_v43  ;;  %v9204_v19 = vunpack.c.l.b16 %v933_v31  ;;  %v2389_v10 = vshll.u32 %v2299_v14, 16  ;;  %v2308_v14 = vld [vmem:[#allocation2 + $0x38] sm:$0x1] }
 0x1fe   : > { %1042 = vrot.lane.b32.xlu0 %v13292_v28, %s8097_s21  ;;  %v9206_v18 = vrot.slane %v2403_v38, 5  ;;  %v2413_v62 = vshll.u32 %v2302_v1, 16  ;;  %v2427_v13 = vshll.u32 %v2304_v53, 16  ;;  %v2431_v2 = vshrl.u32 %v2304_v53, 16  ;;  %v2313_v38 = vld [vmem:[#allocation2 + $0x4c] sm:$0xf] }
 0x1ff   : > { %v2409_v4 = vrot.slane %v2407_v59, 4  ;;  %v2386_v31 = vor.u32 %v2385_v46, %v9196_v32  ;;  %v2451_v20 = vshll.u32 %v2307_v54, 16  ;;  %v9215_v50 = vpack.c.b16 %v977_v17, %v976_v40  ;;  %v2311_v17 = vld [vmem:[#allocation2 + $0x44] sm:$0x1]  ;;  %v2322_v32 = vld [vmem:[#allocation2 + $0x70] sm:$0xf] }
 0x200   : > { %13293 = vst [vmem:[#allocation69_spill] sm:$0xff] %v9206_v18  ;;  %v9217_v44 = vrot.slane %v2427_v13, 5  ;;  %v2433_v1 = vrot.slane %v2431_v2, 4  ;;  %v2437_v43 = vshll.u32 %v2305_v15, 16  ;;  %v9221_v28 = vrot.slane %v2389_v10, 5 }
 0x201   : > { %v9223_v59 = vrot.slane %v2451_v20, 5  ;;  %v2455_v48 = vshrl.u32 %v2307_v54, 16  ;;  %v9227_v40 = vpack.c.b16 %v987_v51, %v986_v9  ;;  %v2410_v13 = vor.u32 %v2409_v4, %v9206_v18  ;;  %v2316_v15 = vld [vmem:[#allocation2 + $0x58] sm:$0xf] }
 0x202   : > { %13294 = vst [vmem:[#allocation70_spill] sm:$0xff] %v9217_v44  ;;  %v9230_v2 = vrot.slane %v2413_v62, 5  ;;  %v2475_v46 = vshll.u32 %v2310_v42, 16  ;;  %v9232_v53 = vrot.slane %v2386_v31, 4  ;;  %v2461_v61 = vshll.u32 %v2308_v14, 16 }
 0x203   : > { %13295 = vst [vmem:[#allocation71_spill] sm:$0xff] %v9223_v59  ;;  %1017 = vrot.lane.b32.xlu1 %v9019_v57, %s8098_s22  ;;  %v2457_v10 = vrot.slane %v2455_v48, 4  ;;  %v2479_v20 = vshrl.u32 %v2310_v42, 16  ;;  %v13296_v57 = vsel %vm8496_vm13, %v8986_v5, %v8854_v56  ;;  %v13297_v9 = vpack.c.b16 %v8916_v16, %v8995_v11  ;;  %v2314_v48 = vld [vmem:[#allocation2 + $0x50] sm:$0x1] }
 0x204   : > { %v2434_v54 = vor.u32 %v2433_v1, %v9217_v44  ;;  %v9245_v51 = vrot.slane %v2437_v43, 5  ;;  %v9247_v4 = vrot.slane %v2475_v46, 5  ;;  %v2499_v62 = vshll.u32 %v2313_v38, 16  ;;  %v2319_v42 = vld [vmem:[#allocation2 + $0x64] sm:$0xf] }
 0x205   : > { %1022 = vrot.lane.b32.xlu2 %v13297_v9, %s8099_s24  ;;  %v2458_v5 = vor.u32 %v2457_v10, %v9223_v59  ;;  %v2481_v31 = vrot.slane %v2479_v20, 4  ;;  %v2503_v14 = vshrl.u32 %v2313_v38, 16  ;;  %v2317_v16 = vld [vmem:[#allocation2 + $0x5c] sm:$0x1]  ;;  %v9254_v11 = vrot.slane %v2410_v13, 4 }
 0x206   : > { %3631 = vrot.lane.b32.xlu0 %v13296_v57, %s8090_s20  ;;  %13298 = vst [vmem:[#allocation72_spill] sm:$0xff] %v9247_v4  ;;  %v2485_v1 = vshll.u32 %v2311_v17, 16  ;;  %v9256_v43 = vrot.slane %v2499_v62, 5  ;;  %v2523_v46 = vshll.u32 %v2316_v15, 16  ;;  %v2320_v57 = vld [vmem:[#allocation2 + $0x68] sm:$0x1] }
 0x207   : > { %v9258_v9 = vrot.slane %v2461_v61, 5  ;;  %v2482_v55 = vor.u32 %v2481_v31, %v9247_v4  ;;  %v2505_v44 = vrot.slane %v2503_v14, 4  ;;  %v2527_v18 = vshrl.u32 %v2316_v15, 16  ;;  %v2325_v15 = vld [vmem:[#allocation2 + $0x7c] sm:$0xf] }
 0x208   : > { %13299 = vst [vmem:[#allocation73_spill] sm:$0xff] %v9256_v43  ;;  %v9261_v56 = vrot.slane %v2434_v54, 4  ;;  %v2509_v10 = vshll.u32 %v2314_v48, 16  ;;  %v9263_v20 = vrot.slane %v2523_v46, 5  ;;  %v2547_v38 = vshll.u32 %v2319_v42, 16 }
 0x209   : > { %v9265_v13 = vrot.slane %v2458_v5, 4  ;;  %v2506_v17 = vor.u32 %v2505_v44, %v9256_v43  ;;  %v2529_v62 = vrot.slane %v2527_v18, 4  ;;  %v2533_v59 = vshll.u32 %v2317_v16, 16  ;;  %v2323_v18 = vld [vmem:[#allocation2 + $0x74] sm:$0x1] }
 0x20a   : > { %13300 = vst [vmem:[#allocation74_spill] sm:$0xff] %v9263_v20  ;;  %v13301_v61 = vsel %vm8496_vm13, %v9080_v63, %v8914_v36  ;;  %v9278_v48 = vrot.slane %v2485_v1, 5  ;;  %v9280_v5 = vrot.slane %v2547_v38, 5  ;;  %v2551_v44 = vshrl.u32 %v2319_v42, 16  ;;  %v2328_v1 = vld [vmem:[#allocation2 + $0x88] sm:$0xf] }
 0x20b   : > { %3639 = vrot.lane.b32.xlu1 %v13301_v61, %s8090_s20  ;;  %v9286_v14 = vrot.slane %v2482_v55, 4  ;;  %v2557_v36 = vshll.u32 %v2320_v57, 16  ;;  %v2571_v63 = vshll.u32 %v2322_v32, 16  ;;  %v13303_v16 = vsel %vm8496_vm13, %v9095_v58, %v8951_v60  ;;  %v2331_v61 = vld [vmem:[#allocation2 + $0x94] sm:$0xf] }
 0x20c   : > { %13302 = vst [vmem:[#allocation75_spill] sm:$0xff] %v9280_v5  ;;  %v13304_v42 = vsel %vm8496_vm13, %v9025_v12, %v8877_v45  ;;  %v9300_v46 = vrot.slane %v2509_v10, 5  ;;  %v2530_v55 = vor.u32 %v2529_v62, %v9263_v20  ;;  %v2553_v57 = vrot.slane %v2551_v44, 4  ;;  %v2326_v45 = vld [vmem:[#allocation2 + $0x80] sm:$0x1] }
 0x20d   : > { %3635 = vrot.lane.b32.xlu2 %v13304_v42, %s8090_s20  ;;  %v2575_v38 = vshrl.u32 %v2322_v32, 16  ;;  %v9307_v58 = vrot.slane %v2506_v17, 4  ;;  %v2595_v31 = vshll.u32 %v2325_v15, 16  ;;  %v9312_v10 = vrot.slane %v2571_v63, 5  ;;  %v2329_v44 = vld [vmem:[#allocation2 + $0x8c] sm:$0x1] }
 0x20e   : > { %3643 = vrot.lane.b32.xlu0 %v13303_v16, %s8090_s20  ;;  %v9309_v16 = vrot.slane %v2533_v59, 5  ;;  %v2554_v12 = vor.u32 %v2553_v57, %v9280_v5  ;;  %v2599_v62 = vshrl.u32 %v2325_v15, 16  ;;  %v9318_v54 = vrot.slane %v2557_v36, 5  ;;  %v2332_v59 = vld [vmem:[#allocation2 + $0x98] sm:$0x1] }
 0x20f   : > { %13305 = vst [vmem:[#allocation76_spill] sm:$0xff] %v9312_v10  ;;  %v2577_v42 = vrot.slane %v2575_v38, 4  ;;  %v2581_v17 = vshll.u32 %v2323_v18, 16  ;;  %v2619_v60 = vshll.u32 %v2328_v1, 16  ;;  %v9320_v20 = vrot.slane %v2530_v55, 4 }
 0x210   : > { %v9322_v43 = vrot.slane %v2595_v31, 5  ;;  %v2601_v57 = vrot.slane %v2599_v62, 4  ;;  %v2623_v63 = vshrl.u32 %v2328_v1, 16  ;;  %v2334_v5 = vld [vmem:[#allocation2 + $0xa0] sm:$0xf]  ;;  %v9324_v38 = vrot.slane %v2554_v12, 4 }
 0x211   : > { %v2605_v15 = vshll.u32 %v2326_v45, 16  ;;  %v9326_v4 = vrot.slane %v2619_v60, 5  ;;  %v2643_v7 = vshll.u32 %v2331_v61, 16  ;;  %v2512_v18 = vsel %vm8496_vm13, %v9307_v58, %v9300_v46  ;;  %v2335_v46 = vld [vmem:[#allocation2 + $0xa4] sm:$0x1] }
 0x212   : > { %13306 = vst [vmem:[#allocation77_spill] sm:$0xff] %v9322_v43  ;;  %v2578_v31 = vor.u32 %v2577_v42, %v9312_v10  ;;  %v2625_v36 = vrot.slane %v2623_v63, 4  ;;  %v2629_v1 = vshll.u32 %v2329_v44, 16  ;;  %v9335_v55 = vrot.slane %v2581_v17, 5  ;;  %v2337_v58 = vld [vmem:[#allocation2 + $0xac] sm:$0xf] }
 0x213   : > { %13307 = vst [vmem:[#allocation78_spill] sm:$0xff] %v9326_v4  ;;  %1047 = vrot.lane.b32.xlu1 %v9046_v37, %s8100_s25  ;;  %v9337_v12 = vrot.slane %v2643_v7, 5  ;;  %v2647_v60 = vshrl.u32 %v2331_v61, 16  ;;  %v2653_v45 = vshll.u32 %v2332_v59, 16  ;;  %v13308_v37 = vpack.c.b16 %v9177_v47, %v9175_v35  ;;  %v2338_v44 = vld [vmem:[#allocation2 + $0xb0] sm:$0x1] }
 0x214   : > { %v2536_v42 = vsel %vm8496_vm13, %v9320_v20, %v9309_v16  ;;  %v2602_v7 = vor.u32 %v2601_v57, %v9322_v43  ;;  %v2626_v61 = vor.u32 %v2625_v36, %v9326_v4  ;;  %v2667_v62 = vshll.u32 %v2334_v5, 16  ;;  %v2340_v57 = vld [vmem:[#allocation2 + $0xb8] sm:$0xf]  ;;  %v2341_v43 = vld [vmem:[#allocation2 + $0xbc] sm:$0x1] }
 0x215   : > { %1004 = vrot.lane.b32.xlu2 %v13308_v37, %s8097_s21  ;;  %v9355_v35 = vrot.slane %v2605_v15, 5  ;;  %v2649_v47 = vrot.slane %v2647_v60, 4  ;;  %v2671_v17 = vshrl.u32 %v2334_v5, 16  ;;  %v9357_v59 = vrot.slane %v2578_v31, 4 }
 0x216   : > { %1027 = vrot.lane.b32.xlu0 %v9073_v27, %s8101_s26  ;;  %v2560_v27 = vsel %vm8496_vm13, %v9324_v38, %v9318_v54  ;;  %v9359_v63 = vrot.slane %v2629_v1, 5  ;;  %v2655_v20 = vrot.slane %v2653_v45, 5  ;;  %v9361_v16 = vrot.slane %v2667_v62, 5 }
 0x217   : > { %v2650_v36 = vor.u32 %v2649_v47, %v9337_v12  ;;  %v2673_v37 = vrot.slane %v2671_v17, 4  ;;  %v2677_v32 = vshll.u32 %v2335_v46, 16  ;;  %v2691_v4 = vshll.u32 %v2337_v58, 16 }
 0x218   : > { %v2603_v10 = vrot.slane %v2602_v7, 4  ;;  %v2627_v54 = vrot.slane %v2626_v61, 4  ;;  %v2695_v38 = vshrl.u32 %v2337_v58, 16  ;;  %v2701_v15 = vshll.u32 %v2338_v44, 16 }
 0x219   : > { %v2651_v60 = vrot.slane %v2650_v36, 4  ;;  %v2674_v5 = vor.u32 %v2673_v37, %v9361_v16  ;;  %v2679_v31 = vrot.slane %v2677_v32, 5  ;;  %v9365_v1 = vrot.slane %v2691_v4, 5 }
 0x21a   : > { %v2697_v45 = vrot.slane %v2695_v38, 4  ;;  %v2703_v62 = vrot.slane %v2701_v15, 5  ;;  %v2715_v47 = vshll.u32 %v2340_v57, 16  ;;  %v2719_v17 = vshrl.u32 %v2340_v57, 16 }
 0x21b   : > { %999 = vrot.lane.b32.xlu1 %v9180_v33, %s8096_s19  ;;  %v2656_v46 = vsel %vm8496_vm13, %v2651_v60, %v2655_v20  ;;  %v2675_v7 = vrot.slane %v2674_v5, 4  ;;  %v2725_v61 = vshll.u32 %v2341_v43, 16  ;;  %v13309_v58 = vsel %vm8496_vm13, %v9265_v13, %v9258_v9 }
 0x21c   : > { %v2873_v32 = vrot.slane %v13309_v58, 4  ;;  %v13310_v4 = vpack.c.b16 %v9146_v34, %v9126_v3  ;;  %v2698_v33 = vor.u32 %v2697_v45, %v9365_v1  ;;  %v9383_v44 = vrot.slane %v2715_v47, 5 }
 0x21d   : > { %989 = vrot.lane.b32.xlu2 %v9227_v40, %s8101_s26  ;;  %v2721_v20 = vrot.slane %v2719_v17, 4  ;;  %v2879_v43 = vrot.slane %v2512_v18, 4  ;;  %v2584_v9 = vsel %vm8496_vm13, %v9357_v59, %v9335_v55  ;;  %v2608_v13 = vsel %vm8496_vm13, %v2603_v10, %v9355_v35 }
 0x21e   : > { %994 = vrot.lane.b32.xlu0 %v13310_v4, %s8095_s18  ;;  %v2632_v3 = vsel %vm8496_vm13, %v2627_v54, %v9359_v63  ;;  %v13311_v34 = vsel %vm8496_vm13, %v9192_v52, %v9194_v41  ;;  %v2699_v18 = vrot.slane %v2698_v33, 4  ;;  %v2727_v36 = vrot.slane %v2725_v61, 5 }
 0x21f   : > { %v2874_v40 = vsel %vm653_vm0, %v2873_v32, %v13311_v34  ;;  %v2722_v57 = vor.u32 %v2721_v20, %v9383_v44  ;;  %v13312_v10 = vsel %vm8496_vm13, %v9254_v11, %v9230_v2  ;;  %v13313_v52 = vsel %vm8496_vm13, %v9286_v14, %v9278_v48 }
 0x220   : > { %v9403_v55 = vperm.slane %v2874_v40, %v8688_v22  ;;  %v2880_v35 = vsel %vm653_vm0, %v2879_v43, %v13312_v10  ;;  %v2901_v41 = vrot.slane %v13313_v52, 4  ;;  %v2907_v59 = vrot.slane %v2536_v42, 4  ;;  %v13318_v40 = vld [vmem:[#allocation34_spill] sm:$0xff] }
 0x221   : > { %v2929_v63 = vrot.slane %v2656_v46, 4  ;;  %v2680_v37 = vsel %vm8496_vm13, %v2675_v7, %v2679_v31  ;;  %v2704_v54 = vsel %vm8496_vm13, %v2699_v18, %v2703_v62  ;;  %v2723_v38 = vrot.slane %v2722_v57, 4 }
 0x222   : > { %v9421_v15 = vperm.slane %v2880_v35, %v8688_v22  ;;  %v2887_v2 = vrot.slane %v9403_v55, 4  ;;  %v13314_v11 = vsel %vm8496_vm13, %v9232_v53, %v9221_v28  ;;  %v13315_v14 = vsel %vm8496_vm13, %v9261_v56, %v9245_v51 }
 0x223   : > { %v2902_v48 = vsel %vm653_vm0, %v2901_v41, %v13314_v11  ;;  %v2908_v42 = vsel %vm653_vm0, %v2907_v59, %v13315_v14  ;;  %v2930_v60 = vsel %vm653_vm0, %v2929_v63, %v2560_v27  ;;  %v13316_v5 = vpack.c.b16 %v9204_v19, %v9190_v21 }
 0x224   : > { %v2728_v31 = vsel %vm8496_vm13, %v2723_v38, %v2727_v36  ;;  %v9444_v53 = vperm.slane %v2902_v48, %v8688_v22  ;;  %v9447_v28 = vperm.slane %v2908_v42, %v8688_v22  ;;  %v9450_v51 = vperm.slane %v2930_v60, %v8688_v22 }
 0x225   : > { %984 = vrot.lane.b32.xlu1 %v13316_v5, %s8099_s24  ;;  %v2888_v56 = vsel %vm653_vm0, %v9421_v15, %v2887_v2  ;;  %v2935_v27 = vrot.slane %v2704_v54, 4  ;;  %v2957_v45 = vrot.slane %v2680_v37, 4  ;;  %v2963_v62 = vrot.slane %v2728_v31, 4 }
 0x226   : > { %v13317_v21 = vrot.slane %v8650_v0, 4  ;;  %979 = vrot.lane.b32.xlu0 %v9215_v50, %s8098_s22  ;;  %v9461_v47 = vperm.slane %v2888_v56, %v8725_v23  ;;  %v2915_v17 = vrot.slane %v9444_v53, 4  ;;  %v2943_v46 = vrot.slane %v9450_v51, 4 }
 0x227   : > { %v2030_v7 = vrot.slane %v8652_v49, 4  ;;  %v2936_v61 = vsel %vm653_vm0, %v2935_v27, %v2608_v13  ;;  %v2958_v58 = vsel %vm653_vm0, %v2957_v45, %v2584_v9  ;;  %v2964_v0 = vsel %vm653_vm0, %v2963_v62, %v2632_v3  ;;  %v13326_v9 = vld [vmem:[#allocation70_spill] sm:$0xff]  ;;  %v2330_v45 = vld [vmem:[#allocation2 + $0x90] sm:$0xf] }
 0x228   : > { %v1913_v19 = vsel %vm653_vm0, %v13317_v21, %v8613_v39  ;;  %v2916_v39 = vsel %vm653_vm0, %v9447_v28, %v2915_v17  ;;  %v2940_v50 = vperm.slane %v2936_v61, %v8688_v22  ;;  %v2962_v32 = vperm.slane %v2958_v58, %v8688_v22  ;;  %v2294_v21 = vld [vmem:[#allocation2] sm:$0xf] }
 0x229   : > { %v2968_v4 = vperm.slane %v2964_v0, %v8688_v22  ;;  %v9476_v33 = vperm.slane %v8844_v8, %v8688_v22  ;;  %v9479_v49 = vperm.slane %v1913_v19, %v8688_v22  ;;  %v9482_v20 = vperm.slane %v2916_v39, %v8725_v23 }
 0x22a   : > { %v2899_v43 = vrot.slane %v9461_v47, 4  ;;  %v2944_v13 = vsel %vm653_vm0, %v2940_v50, %v2943_v46  ;;  %v2971_v3 = vrot.slane %v2962_v32, 4  ;;  %v899_v34 = vshrl.u32 %v9101_v25, 16 }
 0x22b   : > { %v9490_v18 = vsel %vm653_vm0, %v2030_v7, %v13318_v40  ;;  %v9493_v8 = vperm.slane %v2944_v13, %v8725_v23  ;;  %v3023_v57 = vpack.i.b16 %v9482_v20, %v9461_v47  ;;  %v898_v36 = vshrl.u32 %v9120_v6, 16 }
 0x22c   : > { %v2972_v10 = vsel %vm653_vm0, %v2968_v4, %v2971_v3  ;;  %v9500_v35 = vsel %vm653_vm0, 0, %v2899_v43  ;;  %v2927_v52 = vrot.slane %v9482_v20, 4  ;;  %v946_v6 = vshrl.u32 %v9104_v29, 16 }
 0x22d   : > { %v9506_v63 = vperm.slane %v2972_v10, %v8725_v23  ;;  %v3137_v37 = vunpack.c.l.b16 %v3023_v57  ;;  %v2955_v54 = vrot.slane %v9493_v8, 4  ;;  %v900_v38 = vpack.i.b16 %v899_v34, %v898_v36  ;;  %v2297_v34 = vld [vmem:[#allocation2 + $0xc] sm:$0xf]  ;;  %v2300_v10 = vld [vmem:[#allocation2 + $0x18] sm:$0xf] }
 0x22e   : > { %v9510_v2 = vsel %vm653_vm0, 0, %v2927_v52  ;;  %v947_v11 = vshrl.u32 %v9109_v30, 16  ;;  %v2885_v48 = vrot.slane %v9421_v15, 4  ;;  %v2913_v58 = vrot.slane %v9447_v28, 4 }
 0x22f   : > { %v3071_v14 = vpack.i.b16 %v9506_v63, %v9493_v8  ;;  %v9518_v42 = vsel %vm653_vm0, 0, %v2955_v54  ;;  %v2983_v60 = vrot.slane %v9506_v63, 4  ;;  %v3029_v5 = vpack.i.b16 %v9510_v2, %v9500_v35 }
 0x230   : > { %v948_v29 = vpack.i.b16 %v947_v11, %v946_v6  ;;  %v1006_v27 = vunpack.c.l.b16 %v900_v38  ;;  %v2886_v62 = vsel %vm653_vm0, %v2885_v48, %v9403_v55  ;;  %v2941_v0 = vrot.slane %v2940_v50, 4 }
 0x231   : > { %v3138_v30 = vunpack.c.l.b16 %v3071_v14  ;;  %v9526_v15 = vsel %vm653_vm0, 0, %v2983_v60  ;;  %v3147_v17 = vunpack.c.l.b16 %v3029_v5  ;;  %v9534_v7 = vperm.slane %v2886_v62, %v8725_v23  ;;  %v2306_v60 = vld [vmem:[#allocation2 + $0x30] sm:$0xf] }
 0x232   : > { %v3077_v19 = vpack.i.b16 %v9526_v15, %v9518_v42  ;;  %v1007_v46 = vunpack.c.l.b16 %v948_v29  ;;  %v2969_v39 = vrot.slane %v2968_v4, 4  ;;  %v2346_v55 = vshrl.u32 %v2294_v21, 16 }
 0x233   : > { %v3139_v61 = vpack.c.b16 %v3138_v30, %v3137_v37  ;;  %v3012_v3 = vshrl.u32 %v9534_v7, 16  ;;  %v2914_v40 = vsel %vm653_vm0, %v2913_v58, %v9444_v53  ;;  %v2942_v57 = vsel %vm653_vm0, %v2941_v0, %v9450_v51  ;;  %v2303_v53 = vld [vmem:[#allocation2 + $0x24] sm:$0xf] }
 0x234   : > { %v3148_v43 = vunpack.c.l.b16 %v3077_v19  ;;  %v1008_v13 = vpack.c.b16 %v1007_v46, %v1006_v27  ;;  %v2970_v36 = vsel %vm653_vm0, %v2969_v39, %v2962_v32  ;;  %v2349_v28 = vshll.u32 %v2294_v21, 16  ;;  %v2309_v46 = vld [vmem:[#allocation2 + $0x3c] sm:$0xf] }
 0x235   : > { %3140 = vrot.lane.b32.xlu2 %v3139_v61, %s8095_s18  ;;  %v9546_v4 = vperm.slane %v2914_v40, %v8725_v23  ;;  %v9549_v52 = vperm.slane %v2942_v57, %v8725_v23  ;;  %v9552_v37 = vperm.slane %v2970_v36, %v8725_v23  ;;  %v2348_v54 = vrot.slane %v2346_v55, 4  ;;  %v2312_v57 = vld [vmem:[#allocation2 + $0x48] sm:$0xf] }
 0x236   : > { %v3149_v50 = vpack.c.b16 %v3148_v43, %v3147_v17  ;;  %1009 = vrot.lane.b32.xlu0 %v1008_v13, %s8100_s25  ;;  %v2351_v38 = vrot.slane %v2349_v28, 5  ;;  %v2370_v51 = vshrl.u32 %v2297_v34, 16  ;;  %v2373_v6 = vshll.u32 %v2297_v34, 16 }
 0x237   : > { %v3013_v32 = vshrl.u32 %v9546_v4, 16  ;;  %v3060_v11 = vshrl.u32 %v9549_v52, 16  ;;  %v3061_v48 = vshrl.u32 %v9552_v37, 16  ;;  %v2394_v14 = vshrl.u32 %v2300_v10, 16 }
 0x238   : > { %3150 = vrot.lane.b32.xlu1 %v3149_v50, %s8097_s21  ;;  %v2352_v5 = vor.u32 %v2351_v38, %v2348_v54  ;;  %v2372_v29 = vrot.slane %v2370_v51, 4  ;;  %v2375_v27 = vrot.slane %v2373_v6, 5  ;;  %v2397_v30 = vshll.u32 %v2300_v10, 16  ;;  %v2315_v50 = vld [vmem:[#allocation2 + $0x54] sm:$0xf]  ;;  %v9563_v6 = vpop.permute.xlu1 %3669 }
 0x239   : > { %v3014_v62 = vpack.i.b16 %v3013_v32, %v3012_v3  ;;  %v3062_v21 = vpack.i.b16 %v3061_v48, %v3060_v11  ;;  %v2396_v19 = vrot.slane %v2394_v14, 4  ;;  %v2418_v17 = vshrl.u32 %v2303_v53, 16  ;;  %13321 = vst [vmem:[#allocation34_spill] sm:$0xff] %v9563_v6  ;;  %v13322_v32 = vld [vmem:[#allocation62_spill] sm:$0xff] }
 0x23a   : > { %v9558_v61 = vrot.slane %v2352_v5, 4  ;;  %v2376_v58 = vor.u32 %v2375_v27, %v2372_v29  ;;  %v2399_v0 = vrot.slane %v2397_v30, 5  ;;  %v2421_v39 = vshll.u32 %v2303_v53, 16  ;;  %v2318_v5 = vld [vmem:[#allocation2 + $0x60] sm:$0xf]  ;;  %v9607_v53 = vpop.permute.xlu0 %3673 }
 0x23b   : > { %v3122_v43 = vunpack.c.l.b16 %v3014_v62  ;;  %v3123_v13 = vunpack.c.l.b16 %v3062_v21  ;;  %v2420_v34 = vrot.slane %v2418_v17, 4  ;;  %v2442_v55 = vshrl.u32 %v2306_v60, 16 }
 0x23c   : > { %v9561_v36 = vrot.slane %v2376_v58, 4  ;;  %v2400_v10 = vor.u32 %v2399_v0, %v2396_v19  ;;  %v2423_v3 = vrot.slane %v2421_v39, 5  ;;  %v2445_v38 = vshll.u32 %v2306_v60, 16  ;;  %v13323_v60 = vld [vmem:[#allocation68_spill] sm:$0xff] }
 0x23d   : > { %v3124_v28 = vpack.c.b16 %v3123_v13, %v3122_v43  ;;  %v2444_v54 = vrot.slane %v2442_v55, 4  ;;  %v2466_v51 = vshrl.u32 %v2309_v46, 16  ;;  %v2469_v14 = vshll.u32 %v2309_v46, 16  ;;  %v2321_v0 = vld [vmem:[#allocation2 + $0x6c] sm:$0xf]  ;;  %v13330_v55 = vld [vmem:[#allocation73_spill] sm:$0xff] }
 0x23e   : > { %v9569_v11 = vrot.slane %v2400_v10, 4  ;;  %v2424_v48 = vor.u32 %v2423_v3, %v2420_v34  ;;  %v2447_v29 = vrot.slane %v2445_v38, 5  ;;  %v2490_v30 = vshrl.u32 %v2312_v57, 16  ;;  %v13324_v34 = vld [vmem:[#allocation69_spill] sm:$0xff]  ;;  %v2324_v38 = vld [vmem:[#allocation2 + $0x78] sm:$0xf] }
 0x23f   : > { %3125 = vrot.lane.b32.xlu2 %v3124_v28, %s8098_s22  ;;  %v2468_v27 = vrot.slane %v2466_v51, 4  ;;  %v2493_v62 = vshll.u32 %v2312_v57, 16  ;;  %v2471_v17 = vrot.slane %v2469_v14, 5  ;;  %v2514_v58 = vshrl.u32 %v2315_v50, 16  ;;  %v9582_v28 = vpop.permute.xlu2 %3671  ;;  %13331 = vst [vmem:[#allocation69_spill] sm:$0xff] %v9607_v53  ;;  %v13335_v53 = vld [vmem:[#allocation76_spill] sm:$0xff] }
 0x240   : > { %v9576_v19 = vrot.slane %v2424_v48, 4  ;;  %v2448_v39 = vor.u32 %v2447_v29, %v2444_v54  ;;  %v2492_v43 = vrot.slane %v2490_v30, 4  ;;  %v2517_v13 = vshll.u32 %v2315_v50, 16  ;;  %13325 = vst [vmem:[#allocation62_spill] sm:$0xff] %v9582_v28 }
 0x241   : > { %v2495_v46 = vrot.slane %v2493_v62, 5  ;;  %v2472_v57 = vor.u32 %v2471_v17, %v2468_v27  ;;  %v2516_v10 = vrot.slane %v2514_v58, 4  ;;  %v2538_v3 = vshrl.u32 %v2318_v5, 16  ;;  %v2327_v62 = vld [vmem:[#allocation2 + $0x84] sm:$0xf] }
 0x242   : > { %v9584_v51 = vrot.slane %v2448_v39, 4  ;;  %v2519_v14 = vrot.slane %v2517_v13, 5  ;;  %v2541_v59 = vshll.u32 %v2318_v5, 16  ;;  %v2562_v50 = vshrl.u32 %v2321_v0, 16  ;;  %v13327_v39 = vld [vmem:[#allocation71_spill] sm:$0xff] }
 0x243   : > { %v2496_v48 = vor.u32 %v2495_v46, %v2492_v43  ;;  %v9586_v54 = vrot.slane %v2472_v57, 4  ;;  %v2540_v29 = vrot.slane %v2538_v3, 4  ;;  %v2565_v30 = vshll.u32 %v2321_v0, 16  ;;  %v13328_v57 = vld [vmem:[#allocation72_spill] sm:$0xff] }
 0x244   : > { %v2520_v58 = vor.u32 %v2519_v14, %v2516_v10  ;;  %v2543_v40 = vrot.slane %v2541_v59, 5  ;;  %v2454_v5 = vsel %vm8496_vm13, %v9584_v51, %v13327_v39  ;;  %v2564_v43 = vrot.slane %v2562_v50, 4  ;;  %v2333_v59 = vld [vmem:[#allocation2 + $0x9c] sm:$0xf] }
 0x245   : > { %v2497_v17 = vrot.slane %v2496_v48, 4  ;;  %v2567_v46 = vrot.slane %v2565_v30, 5  ;;  %v2586_v13 = vshrl.u32 %v2324_v38, 16  ;;  %v2478_v0 = vsel %vm8496_vm13, %v9586_v54, %v13328_v57  ;;  %v9600_v48 = vpop.permute.xlu1 %3675  ;;  %v2336_v54 = vld [vmem:[#allocation2 + $0xa8] sm:$0xf] }
 0x246   : > { %v2521_v3 = vrot.slane %v2520_v58, 4  ;;  %v2544_v56 = vor.u32 %v2543_v40, %v2540_v29  ;;  %v2589_v31 = vshll.u32 %v2324_v38, 16  ;;  %13329 = vst [vmem:[#allocation68_spill] sm:$0xff] %v9600_v48  ;;  %v2610_v27 = vshrl.u32 %v2327_v62, 16 }
 0x247   : > { %v2568_v10 = vor.u32 %v2567_v46, %v2564_v43  ;;  %v2588_v14 = vrot.slane %v2586_v13, 4  ;;  %v2613_v21 = vshll.u32 %v2327_v62, 16  ;;  %v2502_v51 = vsel %vm8496_vm13, %v2497_v17, %v13330_v55  ;;  %v2339_v43 = vld [vmem:[#allocation2 + $0xb4] sm:$0xf]  ;;  %v13332_v46 = vld [vmem:[#allocation74_spill] sm:$0xff]  ;;  %v9618_v6 = vpop.permute.xlu2 %3677 }
 0x248   : > { %v9605_v50 = vrot.slane %v2544_v56, 4  ;;  %v2591_v30 = vrot.slane %v2589_v31, 5  ;;  %v2634_v39 = vshrl.u32 %v2330_v45, 16  ;;  %v2612_v38 = vrot.slane %v2610_v27, 4  ;;  %v13333_v56 = vld [vmem:[#allocation75_spill] sm:$0xff]  ;;  %13334 = vst [vmem:[#allocation70_spill] sm:$0xff] %v9618_v6 }
 0x249   : > { %v9609_v40 = vrot.slane %v2568_v10, 4  ;;  %v2615_v29 = vrot.slane %v2613_v21, 5  ;;  %v2637_v58 = vshll.u32 %v2330_v45, 16  ;;  %v2526_v62 = vsel %vm8496_vm13, %v2521_v3, %v13332_v46 }
 0x24a   : > { %v2592_v13 = vor.u32 %v2591_v30, %v2588_v14  ;;  %v2636_v57 = vrot.slane %v2634_v39, 4  ;;  %v2658_v55 = vshrl.u32 %v2333_v59, 16  ;;  %v2550_v31 = vsel %vm8496_vm13, %v9605_v50, %v13333_v56 }
 0x24b   : > { %v2616_v17 = vor.u32 %v2615_v29, %v2612_v38  ;;  %v2639_v48 = vrot.slane %v2637_v58, 5  ;;  %v2661_v10 = vshll.u32 %v2333_v59, 16  ;;  %v2682_v27 = vshrl.u32 %v2336_v54, 16  ;;  %v13336_v29 = vld [vmem:[#allocation77_spill] sm:$0xff] }
 0x24c   : > { %v2593_v21 = vrot.slane %v2592_v13, 4  ;;  %v2660_v45 = vrot.slane %v2658_v55, 4  ;;  %v2685_v28 = vshll.u32 %v2336_v54, 16  ;;  %v2574_v3 = vsel %vm8496_vm13, %v9609_v40, %v13335_v53 }
 0x24d   : > { %v2640_v14 = vor.u32 %v2639_v48, %v2636_v57  ;;  %v2663_v30 = vrot.slane %v2661_v10, 5  ;;  %v2706_v39 = vshrl.u32 %v2339_v43, 16  ;;  %v2617_v46 = vrot.slane %v2616_v17, 4 }
 0x24e   : > { %v2684_v25 = vrot.slane %v2682_v27, 4  ;;  %v2687_v50 = vrot.slane %v2685_v28, 5  ;;  %v2709_v38 = vshll.u32 %v2339_v43, 16  ;;  %v2598_v59 = vsel %vm8496_vm13, %v2593_v21, %v13336_v29  ;;  %v9630_v28 = vpop.permute.xlu1 %1172 }
 0x24f   : > { %v2641_v58 = vrot.slane %v2640_v14, 4  ;;  %v2664_v13 = vor.u32 %v2663_v30, %v2660_v45  ;;  %v2708_v55 = vrot.slane %v2706_v39, 4  ;;  %v2761_v6 = vrot.slane %v2454_v5, 4  ;;  %v13341_v45 = vld [vmem:[#allocation78_spill] sm:$0xff]  ;;  %v9679_v14 = vpop.permute.xlu2 %1168 }
 0x250   : > { %v2688_v54 = vor.u32 %v2687_v50, %v2684_v25  ;;  %v2711_v56 = vrot.slane %v2709_v38, 5  ;;  %v2767_v41 = vrot.slane %v2502_v51, 4  ;;  %v2789_v40 = vrot.slane %v2478_v0, 4  ;;  %v9644_v0 = vpop.permute.xlu0 %1164 }
 0x251   : > { %v2646_v53 = vsel %vm8496_vm13, %v2641_v58, %v9337_v12  ;;  %v2665_v48 = vrot.slane %v2664_v13, 4  ;;  %v2795_v57 = vrot.slane %v2526_v62, 4  ;;  %v13337_v10 = vsel %vm8496_vm13, %v9558_v61, %v13322_v32 }
 0x252   : > { %v2689_v43 = vrot.slane %v2688_v54, 4  ;;  %v2712_v17 = vor.u32 %v2711_v56, %v2708_v55  ;;  %v2762_v25 = vsel %vm653_vm0, %v2761_v6, %v13337_v10  ;;  %v13338_v5 = vsel %vm8496_vm13, %v9569_v11, %v13324_v34 }
 0x253   : > { %v2768_v12 = vsel %vm653_vm0, %v2767_v41, %v13338_v5  ;;  %v2670_v51 = vsel %vm8496_vm13, %v2665_v48, %v9361_v16  ;;  %v9650_v62 = vperm.slane %v2762_v25, %v8688_v22  ;;  %v13339_v6 = vsel %vm8496_vm13, %v9561_v36, %v13323_v60 }
 0x254   : > { %v9653_v61 = vperm.slane %v2768_v12, %v8688_v22  ;;  %v2790_v32 = vsel %vm653_vm0, %v2789_v40, %v13339_v6  ;;  %v2694_v41 = vsel %vm8496_vm13, %v2689_v43, %v9365_v1  ;;  %v2713_v11 = vrot.slane %v2712_v17, 4 }
 0x255   : > { %v9665_v16 = vperm.slane %v2790_v32, %v8688_v22  ;;  %v13340_v34 = vsel %vm8496_vm13, %v9576_v19, %v13326_v9  ;;  %v2622_v36 = vsel %vm8496_vm13, %v2617_v46, %v13341_v45  ;;  %v2817_v27 = vrot.slane %v2646_v53, 4 }
 0x256   : > { %v2796_v21 = vsel %vm653_vm0, %v2795_v57, %v13340_v34  ;;  %v2823_v1 = vrot.slane %v2694_v41, 4  ;;  %v2718_v30 = vsel %vm8496_vm13, %v2713_v11, %v9383_v44  ;;  %v2775_v39 = vrot.slane %v9650_v62, 4  ;;  %v9723_v5 = vpop.permute.xlu1 %1762  ;;  %v13346_v34 = vld [vmem:[#allocation36_spill] sm:$0xff] }
 0x257   : > { %v9677_v60 = vperm.slane %v2796_v21, %v8688_v22  ;;  %v2803_v9 = vrot.slane %v9665_v16, 4  ;;  %v2845_v19 = vrot.slane %v2670_v51, 4  ;;  %v2818_v50 = vsel %vm653_vm0, %v2817_v27, %v2550_v31 }
 0x258   : > { %v2824_v46 = vsel %vm653_vm0, %v2823_v1, %v2598_v59  ;;  %v2851_v38 = vrot.slane %v2718_v30, 4  ;;  %v3024_v29 = vshrl.u32 %v9461_v47, 16  ;;  %v2776_v58 = vsel %vm653_vm0, %v9653_v61, %v2775_v39  ;;  %v9721_v25 = vpop.permute.xlu0 %1176  ;;  %v13347_v30 = vld [vmem:[#allocation55_spill] sm:$0xff] }
 0x259   : > { %v2804_v13 = vsel %vm653_vm0, %v9677_v60, %v2803_v9  ;;  %v9694_v44 = vperm.slane %v2818_v50, %v8688_v22  ;;  %v9697_v55 = vperm.slane %v2824_v46, %v8688_v22  ;;  %v2846_v31 = vsel %vm653_vm0, %v2845_v19, %v2574_v3  ;;  %v9752_v50 = vpop.permute.xlu2 %1770 }
 0x25a   : > { %v9700_v54 = vperm.slane %v2804_v13, %v8725_v23  ;;  %v2852_v59 = vsel %vm653_vm0, %v2851_v38, %v2622_v36  ;;  %v3025_v47 = vshrl.u32 %v9482_v20, 16  ;;  %v9707_v53 = vperm.slane %v2846_v31, %v8688_v22 }
 0x25b   : > { %v2831_v56 = vrot.slane %v9694_v44, 4  ;;  %v9710_v48 = vperm.slane %v2852_v59, %v8688_v22  ;;  %v3072_v40 = vshrl.u32 %v9493_v8, 16  ;;  %v9714_v57 = vperm.slane %v2776_v58, %v8725_v23  ;;  %v13349_v59 = vld [vmem:[#allocation30_spill] sm:$0xff] }
 0x25c   : > { %v3026_v43 = vpack.i.b16 %v3025_v47, %v3024_v29  ;;  %v3073_v3 = vshrl.u32 %v9506_v63, 16  ;;  %v13342_v17 = vshrl.u32 %v9500_v35, 16  ;;  %v13343_v20 = vshrl.u32 %v9510_v2, 16 }
 0x25d   : > { %v2035_v12 = vperm.slane %v9490_v18, %v8688_v22  ;;  %v2832_v8 = vsel %vm653_vm0, %v9697_v55, %v2831_v56  ;;  %v2859_v51 = vrot.slane %v9707_v53, 4  ;;  %v13344_v6 = vshrl.u32 %v9518_v42, 16 }
 0x25e   : > { %v3032_v10 = vpack.i.b16 %v13343_v20, %v13342_v17  ;;  %v13345_v63 = vshrl.u32 %v9526_v15, 16  ;;  %v9735_v2 = vperm.slane %v2832_v8, %v8725_v23  ;;  %v2999_v32 = vpack.i.b16 %v9700_v54, %v9714_v57 }
 0x25f   : > { %v3074_v41 = vpack.i.b16 %v3073_v3, %v3072_v40  ;;  %v3142_v11 = vunpack.c.l.b16 %v3026_v43  ;;  %v2052_v18 = vrot.slane %v13346_v34, 4  ;;  %v2860_v21 = vsel %vm653_vm0, %v9710_v48, %v2859_v51  ;;  %v13350_v3 = vld [vmem:[#allocation39_spill] sm:$0xff] }
 0x260   : > { %v3080_v35 = vpack.i.b16 %v13345_v63, %v13344_v6  ;;  %v3152_v45 = vunpack.c.l.b16 %v3032_v10  ;;  %v9743_v42 = vperm.slane %v2860_v21, %v8725_v23  ;;  %v2897_v27 = vrot.slane %v9534_v7, 4  ;;  %v9768_v34 = vpop.permute.xlu0 %1766 }
 0x261   : > { %v3143_v15 = vunpack.c.l.b16 %v3074_v41  ;;  %v2925_v1 = vrot.slane %v9546_v4, 4  ;;  %v13348_v39 = vrot.slane %v13347_v30, 4  ;;  %v1926_v19 = vrot.slane %v9479_v49, 4 }
 0x262   : > { %v3153_v36 = vunpack.c.l.b16 %v3080_v35  ;;  %v2953_v38 = vrot.slane %v9549_v52, 4  ;;  %v3047_v29 = vpack.i.b16 %v9743_v42, %v9735_v2  ;;  %v3099_v58 = vunpack.c.l.b16 %v2999_v32 }
 0x263   : > { %v1925_v9 = vsel %vm653_vm0, %v13348_v39, %v9479_v49  ;;  %v3144_v13 = vpack.c.b16 %v3143_v15, %v3142_v11  ;;  %v2898_v31 = vsel %vm653_vm0, 0, %v2897_v27  ;;  %v2053_v47 = vsel %vm653_vm0, %v2052_v18, %v13349_v59  ;;  %v9770_v18 = vpop.permute.xlu1 %1774 }
 0x264   : > { %v3154_v46 = vpack.c.b16 %v3153_v36, %v3152_v45  ;;  %v2926_v56 = vsel %vm653_vm0, 0, %v2925_v1  ;;  %v2954_v49 = vsel %vm653_vm0, 0, %v2953_v38  ;;  %v2981_v40 = vrot.slane %v9552_v37, 4  ;;  %v13351_v38 = vld [vmem:[#allocation54_spill] sm:$0xff] }
 0x265   : > { %v2036_v43 = vrot.slane %v2035_v12, 4  ;;  %v1946_v17 = vrot.slane %v13350_v3, 4  ;;  %v3100_v20 = vunpack.c.l.b16 %v3047_v29  ;;  %3145 = vrot.lane.b32.xlu0 %v3144_v13, %s8096_s19  ;;  %v3018_v10 = vshrl.u32 %v2898_v31, 16 }
 0x266   : > { %3155 = vrot.lane.b32.xlu2 %v3154_v46, %s8100_s25  ;;  %v2982_v8 = vsel %vm653_vm0, 0, %v2981_v40  ;;  %v3019_v51 = vshrl.u32 %v2926_v56, 16  ;;  %v3066_v6 = vshrl.u32 %v2954_v49, 16  ;;  %v3017_v63 = vpack.i.b16 %v2926_v56, %v2898_v31  ;;  %v13353_v31 = vld [vmem:[#allocation32_spill] sm:$0xff] }
 0x267   : > { %v2057_v35 = vperm.slane %v2053_v47, %v8688_v22  ;;  %v3101_v32 = vpack.c.b16 %v3100_v20, %v3099_v58  ;;  %v3067_v41 = vshrl.u32 %v2982_v8, 16  ;;  %v3065_v11 = vpack.i.b16 %v2982_v8, %v2954_v49 }
 0x268   : > { %v3020_v21 = vpack.i.b16 %v3019_v51, %v3018_v10  ;;  %v3127_v45 = vunpack.c.l.b16 %v3017_v63  ;;  %v3000_v36 = vshrl.u32 %v9714_v57, 16  ;;  %v3001_v15 = vshrl.u32 %v9700_v54, 16  ;;  %v9784_v10 = vpop.permute.xlu2 %1162 }
 0x269   : > { %3102 = vrot.lane.b32.xlu1 %v3101_v32, %s8095_s18  ;;  %v3068_v27 = vpack.i.b16 %v3067_v41, %v3066_v6  ;;  %v3128_v1 = vunpack.c.l.b16 %v3065_v11  ;;  %v3048_v39 = vshrl.u32 %v9735_v2, 16  ;;  %v3049_v46 = vshrl.u32 %v9743_v42, 16  ;;  %v13354_v6 = vld [vmem:[#allocation60_spill] sm:$0xff]  ;;  %v13356_v41 = vld [vmem:[#allocation59_spill] sm:$0xff] }
 0x26a   : > { %v2037_v29 = vsel %vm653_vm0, %v2036_v43, %v13351_v38  ;;  %v13352_v58 = vrot.slane %v13351_v38, 4  ;;  %v1947_v59 = vsel %vm653_vm0, %v1946_v17, %v13353_v31  ;;  %v3002_v47 = vpack.i.b16 %v3001_v15, %v3000_v36 }
 0x26b   : > { %v3132_v56 = vunpack.c.l.b16 %v3020_v21  ;;  %v3133_v49 = vunpack.c.l.b16 %v3068_v27  ;;  %v3129_v40 = vpack.c.b16 %v3128_v1, %v3127_v45  ;;  %v3050_v3 = vpack.i.b16 %v3049_v46, %v3048_v39  ;;  %v13357_v21 = vld [vmem:[#allocation33_spill] sm:$0xff] }
 0x26c   : > { %v2039_v13 = vsel %vm653_vm0, %v2035_v12, %v13352_v58  ;;  %v2066_v20 = vrot.slane %v2057_v35, 4  ;;  %v3104_v8 = vunpack.c.l.b16 %v3002_v47  ;;  %v2773_v51 = vrot.slane %v9653_v61, 4 }
 0x26d   : > { %v1557_v43 = vshrl.u32 %v13354_v6, 16  ;;  %v13355_v63 = vrot.slane %v8847_v24, 4  ;;  %v9792_v32 = vperm.slane %v1947_v59, %v8688_v22  ;;  %3130 = vrot.lane.b32.xlu0 %v3129_v40, %s8099_s24  ;;  %v3105_v17 = vunpack.c.l.b16 %v3050_v3  ;;  %v9832_v59 = vpop.permute.xlu0 %1170 }
 0x26e   : > { %v1558_v11 = vshrl.u32 %v13356_v41, 16  ;;  %v9800_v61 = vsel %vm653_vm0, %v13347_v30, %v1926_v19  ;;  %v9803_v15 = vperm.slane %v1925_v9, %v8725_v23  ;;  %v3134_v27 = vpack.c.b16 %v3133_v49, %v3132_v56  ;;  %v13360_v19 = vld [vmem:[#allocation52_spill] sm:$0xff]  ;;  %v13361_v9 = vld [vmem:[#allocation53_spill] sm:$0xff] }
 0x26f   : > { %v2065_v12 = vsel %vm653_vm0, %v13355_v63, %v2057_v35  ;;  %v9806_v35 = vperm.slane %v2039_v13, %v8725_v23  ;;  %v3106_v1 = vpack.c.b16 %v3105_v17, %v3104_v8  ;;  %v2774_v39 = vsel %vm653_vm0, %v2773_v51, %v9650_v62  ;;  %v13364_v56 = vld [vmem:[#allocation16_spill] sm:$0xff] }
 0x270   : > { %13358 = vst [vmem:[#allocation71_spill] sm:$0xff] %v9803_v15  ;;  %v9811_v46 = vperm.slane %v2037_v29, %v8725_v23  ;;  %v2067_v38 = vsel %vm653_vm0, %v8847_v24, %v2066_v20  ;;  %v9816_v30 = vperm.slane %v2065_v12, %v8725_v23  ;;  %v13362_v58 = vpack.i.b16 %v13360_v19, %v13361_v9  ;;  %v9830_v24 = vpop.permute.xlu1 %1166  ;;  %v9848_v12 = vpop.permute.xlu2 %1174 }
 0x271   : > { %v1952_v13 = vrot.slane %v9792_v32, 4  ;;  %3135 = vrot.lane.b32.xlu1 %v3134_v27, %s8101_s26  ;;  %3107 = vrot.lane.b32.xlu2 %v3106_v1, %s8096_s19  ;;  %v9827_v62 = vperm.slane %v2774_v39, %v8725_v23  ;;  %v2801_v29 = vrot.slane %v9677_v60, 4  ;;  %v9834_v47 = vpack.i.b16 %v1558_v11, %v1557_v43 }
 0x272   : > { %13359 = vst [vmem:[#allocation72_spill] sm:$0xff] %v9811_v46  ;;  %v9821_v31 = vunpack.c.l.b16 %v13362_v58  ;;  %v13365_v49 = vrot.slane %v13364_v56, 4  ;;  %v2829_v3 = vrot.slane %v9697_v55, 4  ;;  %v2857_v20 = vrot.slane %v9710_v48, 4  ;;  %v13369_v56 = vld [vmem:[#allocation22_spill] sm:$0xff] }
 0x273   : > { %13363 = vst [vmem:[#allocation73_spill] sm:$0xff] %v9827_v62  ;;  %v2787_v8 = vrot.slane %v9714_v57, 4  ;;  %v2802_v60 = vsel %vm653_vm0, %v2801_v29, %v9665_v16  ;;  %v2988_v51 = vshrl.u32 %v9827_v62, 16  ;;  %v2815_v63 = vrot.slane %v9700_v54, 4 }
 0x274   : > { %v1371_v40 = vsel %vm653_vm0, %v13365_v49, %v9644_v0  ;;  %v2843_v43 = vrot.slane %v9735_v2, 4  ;;  %v9851_v17 = vperm.slane %v2802_v60, %v8725_v23  ;;  %v2830_v0 = vsel %vm653_vm0, %v2829_v3, %v9694_v44 }
 0x275   : > { %v2858_v55 = vsel %vm653_vm0, %v2857_v20, %v9707_v53  ;;  %v2788_v48 = vsel %vm653_vm0, 0, %v2787_v8  ;;  %v9859_v16 = vperm.slane %v2830_v0, %v8725_v23  ;;  %v2816_v57 = vsel %vm653_vm0, 0, %v2815_v63 }
 0x276   : > { %13366 = vst [vmem:[#allocation74_spill] sm:$0xff] %v9851_v17  ;;  %v9862_v54 = vperm.slane %v2858_v55, %v8725_v23  ;;  %v2844_v2 = vsel %vm653_vm0, 0, %v2843_v43  ;;  %v2989_v11 = vshrl.u32 %v9851_v17, 16  ;;  %v2871_v27 = vrot.slane %v9743_v42, 4 }
 0x277   : > { %13367 = vst [vmem:[#allocation75_spill] sm:$0xff] %v9859_v16  ;;  %v3005_v44 = vpack.i.b16 %v2816_v57, %v2788_v48  ;;  %v2785_v1 = vrot.slane %v9827_v62, 4  ;;  %v3036_v53 = vshrl.u32 %v9859_v16, 16  ;;  %v2813_v58 = vrot.slane %v9851_v17, 4 }
 0x278   : > { %13368 = vst [vmem:[#allocation76_spill] sm:$0xff] %v9862_v54  ;;  %v3037_v39 = vshrl.u32 %v9862_v54, 16  ;;  %v2841_v29 = vrot.slane %v9859_v16, 4  ;;  %v13370_v49 = vrot.slane %v13369_v56, 4  ;;  %v2990_v20 = vpack.i.b16 %v2989_v11, %v2988_v51  ;;  %v13371_v56 = vld [vmem:[#allocation17_spill] sm:$0xff] }
 0x279   : > { %v2872_v8 = vsel %vm653_vm0, 0, %v2871_v27  ;;  %v3109_v42 = vunpack.c.l.b16 %v3005_v44  ;;  %v2786_v43 = vsel %vm653_vm0, 0, %v2785_v1  ;;  %v2814_v0 = vsel %vm653_vm0, 0, %v2813_v58  ;;  %v9887_v44 = vpop.permute.xlu1 %1768  ;;  %v9889_v1 = vpop.permute.xlu0 %1760 }
 0x27a   : > { %v1377_v3 = vsel %vm653_vm0, %v13370_v49, %v9630_v28  ;;  %v3038_v60 = vpack.i.b16 %v3037_v39, %v3036_v53  ;;  %v3053_v63 = vpack.i.b16 %v2872_v8, %v2844_v2  ;;  %v3084_v55 = vunpack.c.l.b16 %v2990_v20 }
 0x27b   : > { %v2842_v45 = vsel %vm653_vm0, 0, %v2841_v29  ;;  %v2869_v36 = vrot.slane %v9862_v54, 4  ;;  %v2993_v16 = vpack.i.b16 %v2814_v0, %v2786_v43  ;;  %v13372_v17 = vrot.slane %v13371_v56, 4 }
 0x27c   : > { %v1375_v51 = vperm.slane %v1371_v40, %v8688_v22  ;;  %v3085_v11 = vunpack.c.l.b16 %v3038_v60  ;;  %v3110_v27 = vunpack.c.l.b16 %v3053_v63  ;;  %v9892_v53 = vperm.slane %v2067_v38, %v8725_v23  ;;  %v9907_v63 = vpop.permute.xlu2 %1764 }
 0x27d   : > { %v1399_v28 = vsel %vm653_vm0, %v13372_v17, %v9679_v14  ;;  %v13373_v39 = vrot.slane %v9476_v33, 4  ;;  %v1381_v29 = vperm.slane %v1377_v3, %v8688_v22  ;;  %v2870_v14 = vsel %vm653_vm0, 0, %v2869_v36 }
 0x27e   : > { %v3086_v40 = vpack.c.b16 %v3085_v11, %v3084_v55  ;;  %v3111_v17 = vpack.c.b16 %v3110_v27, %v3109_v42  ;;  %v3041_v49 = vpack.i.b16 %v2870_v14, %v2842_v45  ;;  %v3089_v20 = vunpack.c.l.b16 %v2993_v16  ;;  %v13374_v16 = vld [vmem:[#allocation27_spill] sm:$0xff]  ;;  %v3238_v27 = vld [vmem:[#allocation2 + $0x9c] sm:$0xf] }
 0x27f   : > { %v9898_v58 = vsel %vm653_vm0, %v9792_v32, %v13373_v39  ;;  %v1953_v60 = vsel %vm653_vm0, %v1952_v13, %v9476_v33  ;;  %v9905_v38 = vperm.slane %v1399_v28, %v8688_v22  ;;  %v3006_v56 = vshrl.u32 %v2788_v48, 16  ;;  %v13376_v13 = vld [vmem:[#allocation15_spill] sm:$0xff] }
 0x280   : > { %v3007_v54 = vshrl.u32 %v2816_v57, 16  ;;  %v1384_v32 = vrot.slane %v1375_v51, 4  ;;  %3087 = vrot.lane.b32.xlu1 %v3086_v40, %s8098_s22  ;;  %3112 = vrot.lane.b32.xlu0 %v3111_v17, %s8097_s21  ;;  %v3090_v36 = vunpack.c.l.b16 %v3041_v49  ;;  %v3054_v3 = vshrl.u32 %v2844_v2, 16  ;;  %v13378_v40 = vld [vmem:[#allocation21_spill] sm:$0xff] }
 0x281   : > { %v3055_v42 = vshrl.u32 %v2872_v8, 16  ;;  %v13375_v55 = vrot.slane %v13374_v16, 4  ;;  %v13377_v28 = vrot.slane %v13376_v13, 4  ;;  %v1382_v48 = vrot.slane %v1381_v29, 4  ;;  %v9924_v16 = vld [vmem:[#allocation2 + $0xa0] sm:$0xf] }
 0x282   : > { %v3008_v57 = vpack.i.b16 %v3007_v54, %v3006_v56  ;;  %v1385_v39 = vsel %vm653_vm0, %v1381_v29, %v1384_v32  ;;  %v13379_v17 = vrot.slane %v13378_v40, 4  ;;  %v3091_v8 = vpack.c.b16 %v3090_v36, %v3089_v20 }
 0x283   : > { %v1975_v33 = vsel %vm653_vm0, %v13375_v55, %v9752_v50  ;;  %v1259_v11 = vsel %vm653_vm0, %v13377_v28, %v9784_v10  ;;  %v3056_v49 = vpack.i.b16 %v3055_v42, %v3054_v3  ;;  %v2994_v55 = vshrl.u32 %v2786_v43, 16 }
 0x284   : > { %v1405_v2 = vsel %vm653_vm0, %v13379_v17, %v9721_v25  ;;  %v3114_v50 = vunpack.c.l.b16 %v3008_v57  ;;  %v2995_v62 = vshrl.u32 %v2814_v0, 16  ;;  %v3042_v13 = vshrl.u32 %v2842_v45, 16  ;;  %3092 = vrot.lane.b32.xlu2 %v3091_v8, %s8099_s24  ;;  %v3236_v0 = vld [vmem:[#allocation2 + $0x94] sm:$0xf]  ;;  %v9932_v45 = vpop.permute.xlu1 %1032  ;;  %v9934_v57 = vpop.permute.xlu0 %1772 }
 0x285   : > { %v3115_v10 = vunpack.c.l.b16 %v3056_v49  ;;  %v3043_v54 = vshrl.u32 %v2870_v14, 16  ;;  %v3560_v56 = vshrl.u32 %v3238_v27, 16  ;;  %v3563_v28 = vshll.u32 %v3238_v27, 16 }
 0x286   : > { %v9928_v29 = vperm.slane %v1975_v33, %v8688_v22  ;;  %v1383_v32 = vsel %vm653_vm0, %v1382_v48, %v1375_v51  ;;  %v2996_v25 = vpack.i.b16 %v2995_v62, %v2994_v55  ;;  %v3569_v20 = vshll.u32 %v9924_v16, 16 }
 0x287   : > { %v3116_v36 = vpack.c.b16 %v3115_v10, %v3114_v50  ;;  %v3044_v3 = vpack.i.b16 %v3043_v54, %v3042_v13  ;;  %v3562_v42 = vrot.slane %v3560_v56, 4  ;;  %v3565_v43 = vrot.slane %v3563_v28, 5  ;;  %v9956_v50 = vpop.permute.xlu2 %3641  ;;  %v3237_v28 = vld [vmem:[#allocation2 + $0x98] sm:$0x1] }
 0x288   : > { %v9937_v14 = vperm.slane %v1259_v11, %v8688_v22  ;;  %v9940_v33 = vperm.slane %v1385_v39, %v8725_v23  ;;  %v9943_v51 = vperm.slane %v1405_v2, %v8688_v22  ;;  %v3094_v62 = vunpack.c.l.b16 %v2996_v25  ;;  %v13380_v11 = vld [vmem:[#allocation25_spill] sm:$0xff]  ;;  %13382 = vst [vmem:[#allocation77_spill] sm:$0xff] %v9956_v50 }
 0x289   : > { %v9946_v48 = vperm.slane %v1383_v32, %v8725_v23  ;;  %3117 = vrot.lane.b32.xlu1 %v3116_v36, %s8100_s25  ;;  %v3095_v27 = vunpack.c.l.b16 %v3044_v3  ;;  %v3566_v40 = vor.u32 %v3565_v43, %v3562_v42  ;;  %v9949_v17 = vrot.slane %v3569_v20, 5  ;;  %v3235_v32 = vld [vmem:[#allocation2 + $0x90] sm:$0xf]  ;;  %v3242_v3 = vld [vmem:[#allocation2 + $0xac] sm:$0xf] }
 0x28a   : > { %v1412_v8 = vrot.slane %v9905_v38, 4  ;;  %v13381_v49 = vrot.slane %v13380_v11, 4  ;;  %v3545_v2 = vshll.u32 %v3236_v0, 16  ;;  %v9960_v13 = vperm.slane %v1953_v60, %v8725_v23  ;;  %v3243_v60 = vld [vmem:[#allocation2 + $0xb0] sm:$0x1] }
 0x28b   : > { %v9964_v10 = vperm.slane %v9898_v58, %v8725_v23  ;;  %v3096_v54 = vpack.c.b16 %v3095_v27, %v3094_v62  ;;  %v3567_v56 = vrot.slane %v3566_v40, 4  ;;  %v1980_v25 = vrot.slane %v9928_v29, 4  ;;  %v13384_v58 = vld [vmem:[#allocation20_spill] sm:$0xff] }
 0x28c   : > { %v1969_v39 = vsel %vm653_vm0, %v13381_v49, %v9723_v5  ;;  %13383 = vst [vmem:[#allocation78_spill] sm:$0xff] %v9960_v13  ;;  %v1413_v36 = vsel %vm653_vm0, %v9943_v51, %v1412_v8  ;;  %v13385_v43 = vrot.slane %v13384_v58, 4  ;;  %v3547_v40 = vrot.slane %v3545_v2, 5  ;;  %v3241_v2 = vld [vmem:[#allocation2 + $0xa8] sm:$0xf]  ;;  %v9995_v13 = vpop.permute.xlu1 %3633 }
 0x28d   : > { %v9973_v42 = vperm.slane %v1969_v39, %v8688_v22  ;;  %3097 = vrot.lane.b32.xlu0 %v3096_v54, %s8101_s26  ;;  %v3572_v27 = vsel %vm8496_vm13, %v3567_v56, %v9949_v17  ;;  %v3549_v8 = vshrl.u32 %v3236_v0, 16  ;;  %v3555_v11 = vshll.u32 %v3237_v28, 16  ;;  %v13386_v54 = vld [vmem:[#allocation28_spill] sm:$0xff]  ;;  %13388 = vst [vmem:[#allocation36_spill] sm:$0xff] %v9995_v13 }
 0x28e   : > { %v1293_v62 = vsel %vm653_vm0, %v13385_v43, %v9848_v12  ;;  %3683 = vrot.lane.b32.xlu2 %v3572_v27, %s8090_s20  ;;  %v3536_v49 = vshrl.u32 %v3235_v32, 16  ;;  %v1410_v39 = vrot.slane %v9943_v51, 4  ;;  %v9986_v5 = vperm.slane %v1413_v36, %v8725_v23  ;;  %v9997_v36 = vpop.permute.xlu0 %3637 }
 0x28f   : > { %v3539_v58 = vshll.u32 %v3235_v32, 16  ;;  %v3593_v12 = vshll.u32 %v3242_v3, 16  ;;  %v13387_v43 = vrot.slane %v13386_v54, 4  ;;  %v3551_v56 = vrot.slane %v3549_v8, 4  ;;  %13389 = vst [vmem:[#allocation55_spill] sm:$0xff] %v9997_v36  ;;  %v10007_v36 = vpop.permute.xlu2 %1037 }
 0x290   : > { %v3538_v55 = vrot.slane %v3536_v49, 4  ;;  %v3597_v27 = vshrl.u32 %v3242_v3, 16  ;;  %v3573_v0 = vshrl.u32 %v9924_v16, 16  ;;  %v3603_v51 = vshll.u32 %v3243_v60, 16 }
 0x291   : > { %v1997_v20 = vsel %vm653_vm0, %v13387_v43, %v9768_v34  ;;  %v3541_v28 = vrot.slane %v3539_v58, 5  ;;  %v9993_v50 = vrot.slane %v3593_v12, 5  ;;  %v1981_v32 = vsel %vm653_vm0, %v1980_v25, %v9973_v42 }
 0x292   : > { %v3552_v54 = vor.u32 %v3551_v56, %v3547_v40  ;;  %v3557_v15 = vrot.slane %v3555_v11, 5  ;;  %v3599_v34 = vrot.slane %v3597_v27, 4  ;;  %v2001_v8 = vperm.slane %v1997_v20, %v8688_v22  ;;  %v3240_v20 = vld [vmem:[#allocation2 + $0xa4] sm:$0x1] }
 0x293   : > { %v13390_v3 = vrot.slane %v13357_v21, 4  ;;  %v3542_v49 = vor.u32 %v3541_v28, %v3538_v55  ;;  %v3584_v58 = vshrl.u32 %v3241_v2, 16  ;;  %v3605_v43 = vrot.slane %v3603_v51, 5 }
 0x294   : > { %v3553_v60 = vrot.slane %v3552_v54, 4  ;;  %v3600_v12 = vor.u32 %v3599_v34, %v9993_v50  ;;  %v3587_v13 = vshll.u32 %v3241_v2, 16  ;;  %v1411_v25 = vsel %vm653_vm0, %v1410_v39, %v9905_v38  ;;  %v3245_v2 = vld [vmem:[#allocation2 + $0xb8] sm:$0xf] }
 0x295   : > { %v2003_v16 = vsel %vm653_vm0, %v13390_v3, %v9770_v18  ;;  %v3543_v11 = vrot.slane %v3542_v49, 4  ;;  %v3586_v56 = vrot.slane %v3584_v58, 4  ;;  %v3575_v27 = vrot.slane %v3573_v0, 4 }
 0x296   : > { %v2007_v21 = vperm.slane %v2003_v16, %v8688_v22  ;;  %v3558_v18 = vsel %vm8496_vm13, %v3553_v60, %v3557_v15  ;;  %v3601_v55 = vrot.slane %v3600_v12, 4  ;;  %v3589_v28 = vrot.slane %v3587_v13, 5  ;;  %v3246_v16 = vld [vmem:[#allocation2 + $0xbc] sm:$0x1] }
 0x297   : > { %v1982_v54 = vrot.slane %v9973_v42, 4  ;;  %v10016_v51 = vperm.slane %v1293_v62, %v8688_v22  ;;  %3681 = vrot.lane.b32.xlu1 %v3558_v18, %s8090_s20  ;;  %v3548_v38 = vsel %vm8496_vm13, %v3543_v11, %v3547_v40  ;;  %v3576_v39 = vor.u32 %v3575_v27, %v9949_v17  ;;  %v3244_v42 = vld [vmem:[#allocation2 + $0xb4] sm:$0xf]  ;;  %v10038_v27 = vpop.permute.xlu1 %3645  ;;  %v10040_v18 = vpop.permute.xlu0 %1042 }
 0x298   : > { %v2010_v0 = vrot.slane %v2001_v8, 4  ;;  %3679 = vrot.lane.b32.xlu0 %v3548_v38, %s8090_s20  ;;  %v3606_v15 = vsel %vm8496_vm13, %v3601_v55, %v3605_v43  ;;  %v3590_v13 = vor.u32 %v3589_v28, %v3586_v56  ;;  %v3579_v34 = vshll.u32 %v3240_v20, 16  ;;  %v13392_v43 = vld [vmem:[#allocation26_spill] sm:$0xff]  ;;  %v13394_v28 = vld [vmem:[#allocation19_spill] sm:$0xff] }
 0x299   : > { %v10026_v62 = vperm.slane %v1411_v25, %v8725_v23  ;;  %v10029_v3 = vperm.slane %v1981_v32, %v8725_v23  ;;  %3689 = vrot.lane.b32.xlu2 %v3606_v15, %s8090_s20  ;;  %v3577_v40 = vrot.slane %v3576_v39, 4  ;;  %v1520_v17 = vpack.i.b16 %v9986_v5, %v9940_v33 }
 0x29a   : > { %v2008_v49 = vrot.slane %v2007_v21, 4  ;;  %v3591_v58 = vrot.slane %v3590_v13, 4  ;;  %v3581_v60 = vrot.slane %v3579_v34, 5  ;;  %v3617_v12 = vshll.u32 %v3245_v2, 16 }
 0x29b   : > { %13391 = vst [vmem:[#allocation30_spill] sm:$0xff] %v10029_v3  ;;  %v13393_v11 = vrot.slane %v13392_v43, 4  ;;  %v1634_v56 = vunpack.c.l.b16 %v1520_v17  ;;  %v3621_v20 = vshrl.u32 %v3245_v2, 16  ;;  %v3608_v32 = vshrl.u32 %v3244_v42, 16  ;;  %v10058_v43 = vpop.permute.xlu2 %1022 }
 0x29c   : > { %v2011_v55 = vsel %vm653_vm0, %v2007_v21, %v2010_v0  ;;  %v13395_v38 = vrot.slane %v13394_v28, 4  ;;  %v3596_v15 = vsel %vm8496_vm13, %v3591_v58, %v9993_v50  ;;  %v3627_v13 = vshll.u32 %v3246_v16, 16 }
 0x29d   : > { %v1885_v25 = vsel %vm653_vm0, %v13393_v11, %v9907_v63  ;;  %v1983_v63 = vsel %vm653_vm0, %v9928_v29, %v1982_v54  ;;  %v3582_v2 = vsel %vm8496_vm13, %v3577_v40, %v3581_v60  ;;  %v3619_v34 = vrot.slane %v3617_v12, 5 }
 0x29e   : > { %v1287_v39 = vsel %vm653_vm0, %v13395_v38, %v9830_v24  ;;  %v3623_v17 = vrot.slane %v3621_v20, 4  ;;  %v2009_v21 = vsel %vm653_vm0, %v2008_v49, %v2001_v8  ;;  %v10056_v0 = vperm.slane %v1885_v25, %v8688_v22 }
 0x29f   : > { %v3610_v24 = vrot.slane %v3608_v32, 4  ;;  %v3611_v11 = vshll.u32 %v3244_v42, 16  ;;  %v2019_v50 = vperm.slane %v2011_v55, %v8725_v23  ;;  %v10062_v16 = vperm.slane %v1287_v39, %v8688_v22  ;;  %3687 = vrot.lane.b32.xlu1 %v3596_v15, %s8090_s20  ;;  %v13397_v39 = vld [vmem:[#allocation18_spill] sm:$0xff] }
 0x2a0   : > { %v1636_v29 = vpack.c.b16 %v9821_v31, %v1634_v56  ;;  %v3624_v54 = vor.u32 %v3623_v17, %v3619_v34  ;;  %3685 = vrot.lane.b32.xlu0 %v3582_v2, %s8090_s20  ;;  %v3629_v8 = vrot.slane %v3627_v13, 5  ;;  %v1509_v49 = vshrl.u32 %v9946_v48, 16 }
 0x2a1   : > { %v3613_v40 = vrot.slane %v3611_v11, 5  ;;  %v1510_v58 = vshrl.u32 %v10026_v62, 16  ;;  %v1424_v42 = vrot.slane %v9986_v5, 4  ;;  %v1991_v60 = vperm.slane %v1983_v63, %v8725_v23 }
 0x2a2   : > { %v1298_v12 = vrot.slane %v10016_v51, 4  ;;  %1637 = vrot.lane.b32.xlu2 %v1636_v29, %s8095_s18  ;;  %v3625_v25 = vrot.slane %v3624_v54, 4  ;;  %v10076_v55 = vperm.slane %v2009_v21, %v8725_v23  ;;  %v2022_v28 = vrot.slane %v2019_v50, 4 }
 0x2a3   : > { %v3614_v20 = vor.u32 %v3613_v40, %v3610_v24  ;;  %v1511_v32 = vpack.i.b16 %v1510_v58, %v1509_v49  ;;  %v13398_v15 = vrot.slane %v13397_v39, 4  ;;  %v2119_v11 = vshrl.u32 %v1991_v60, 16  ;;  %v10089_v40 = vpop.permute.xlu1 %1017  ;;  %v10091_v49 = vpop.permute.xlu0 %3631  ;;  %v13399_v58 = vld [vmem:[#allocation31_spill] sm:$0xff] }
 0x2a4   : > { %13396 = vst [vmem:[#allocation39_spill] sm:$0xff] %v10076_v55  ;;  %v1299_v63 = vsel %vm653_vm0, %v1298_v12, %v10062_v16  ;;  %v3630_v2 = vsel %vm8496_vm13, %v3625_v25, %v3629_v8  ;;  %v2120_v29 = vshrl.u32 %v2019_v50, 16  ;;  %v2167_v21 = vshrl.u32 %v9806_v35, 16 }
 0x2a5   : > { %v1265_v13 = vsel %vm653_vm0, %v13398_v15, %v9832_v59  ;;  %v3615_v17 = vrot.slane %v3614_v20, 4  ;;  %v1619_v24 = vunpack.c.l.b16 %v1511_v32  ;;  %v2168_v54 = vshrl.u32 %v9892_v53, 16 }
 0x2a6   : > { %v1300_v59 = vrot.slane %v10062_v16, 4  ;;  %v13400_v12 = vrot.slane %v13399_v58, 4  ;;  %v13401_v25 = vunpack.c.l.b16 %v9834_v47  ;;  %v2121_v32 = vpack.i.b16 %v2120_v29, %v2119_v11  ;;  %v10106_v16 = vpop.permute.xlu2 %3635 }
 0x2a7   : > { %v3620_v8 = vsel %vm8496_vm13, %v3615_v17, %v3619_v34  ;;  %3693 = vrot.lane.b32.xlu1 %v3630_v2, %s8090_s20  ;;  %v2169_v15 = vpack.i.b16 %v2168_v54, %v2167_v21  ;;  %v2118_v31 = vpack.i.b16 %v2019_v50, %v1991_v60  ;;  %v2166_v38 = vpack.i.b16 %v9892_v53, %v9806_v35 }
 0x2a8   : > { %v1863_v39 = vsel %vm653_vm0, %v13400_v12, %v9887_v44  ;;  %v1621_v20 = vpack.c.b16 %v13401_v25, %v1619_v24  ;;  %3691 = vrot.lane.b32.xlu0 %v3620_v8, %s8090_s20  ;;  %13402 = vst [vmem:[#allocation54_spill] sm:$0xff] %v10106_v16  ;;  %v1994_v58 = vrot.slane %v1991_v60, 4  ;;  %v10109_v44 = vsel %vm653_vm0, 0, %v2022_v28 }
 0x2a9   : > { %v2050_v34 = vrot.slane %v9806_v35, 4  ;;  %v2078_v47 = vrot.slane %v9892_v53, 4  ;;  %v10114_v2 = vperm.slane %v1299_v63, %v8725_v23  ;;  %v10117_v50 = vperm.slane %v1265_v13, %v8688_v22 }
 0x2aa   : > { %1622 = vrot.lane.b32.xlu2 %v1621_v20, %s8098_s22  ;;  %v2237_v17 = vunpack.c.l.b16 %v2121_v32  ;;  %v2238_v24 = vunpack.c.l.b16 %v2169_v15  ;;  %v2232_v11 = vunpack.c.l.b16 %v2118_v31  ;;  %v10121_v60 = vsel %vm653_vm0, 0, %v1994_v58  ;;  %v13404_v15 = vld [vmem:[#allocation24_spill] sm:$0xff] }
 0x2ab   : > { %v10124_v28 = vsel %vm653_vm0, 0, %v2050_v34  ;;  %v10127_v35 = vsel %vm653_vm0, 0, %v2078_v47  ;;  %v10130_v53 = vperm.slane %v1863_v39, %v8688_v22  ;;  %v2233_v63 = vunpack.c.l.b16 %v2166_v38 }
 0x2ac   : > { %v2124_v13 = vpack.i.b16 %v10109_v44, %v10121_v60  ;;  %v2172_v29 = vpack.i.b16 %v10127_v35, %v10124_v28  ;;  %v2239_v31 = vpack.c.b16 %v2238_v24, %v2237_v17  ;;  %v13403_v21 = vrot.slane %v9940_v33, 4 }
 0x2ad   : > { %v1425_v12 = vsel %vm653_vm0, 0, %v1424_v42  ;;  %v1452_v8 = vrot.slane %v13361_v9, 4  ;;  %v1480_v39 = vrot.slane %v13360_v19, 4  ;;  %v1301_v32 = vsel %vm653_vm0, %v10016_v51, %v1300_v59  ;;  %v10156_v59 = vpop.permute.xlu1 %3639 }
 0x2ae   : > { %v1397_v54 = vsel %vm653_vm0, 0, %v13403_v21  ;;  %v2242_v25 = vunpack.c.l.b16 %v2124_v13  ;;  %v2243_v20 = vunpack.c.l.b16 %v2172_v29  ;;  %v13405_v58 = vrot.slane %v13404_v15, 4  ;;  %13407 = vst [vmem:[#allocation32_spill] sm:$0xff] %v10156_v59  ;;  %v10158_v21 = vpop.permute.xlu0 %3643 }
 0x2af   : > { %v1526_v38 = vpack.i.b16 %v1425_v12, %v1397_v54  ;;  %v2234_v47 = vpack.c.b16 %v2233_v63, %v2232_v11  ;;  %v1453_v17 = vsel %vm653_vm0, 0, %v1452_v8  ;;  %v13406_v24 = vrot.slane %v9937_v14, 4  ;;  %2240 = vrot.lane.b32.xlu1 %v2239_v31, %s8096_s19  ;;  %13408 = vst [vmem:[#allocation60_spill] sm:$0xff] %v10158_v21 }
 0x2b0   : > { %v1857_v34 = vsel %vm653_vm0, %v13405_v58, %v9889_v1  ;;  %v2244_v29 = vpack.c.b16 %v2243_v20, %v2242_v25  ;;  %v1481_v51 = vsel %vm653_vm0, 0, %v1480_v39  ;;  %v1521_v11 = vshrl.u32 %v9940_v33, 16  ;;  %v10170_v39 = vpop.permute.xlu2 %1004 }
 0x2b1   : > { %v1273_v13 = vsel %vm653_vm0, %v10117_v50, %v13406_v24  ;;  %2235 = vrot.lane.b32.xlu0 %v2234_v47, %s8095_s18  ;;  %v1574_v1 = vpack.i.b16 %v1481_v51, %v1453_v17  ;;  %v1522_v63 = vshrl.u32 %v9986_v5, 16  ;;  %v1569_v8 = vshrl.u32 %v13361_v9, 16 }
 0x2b2   : > { %v1868_v15 = vrot.slane %v10130_v53, 4  ;;  %v10166_v31 = vperm.slane %v1857_v34, %v8688_v22  ;;  %2245 = vrot.lane.b32.xlu2 %v2244_v29, %s8097_s21  ;;  %v1644_v25 = vunpack.c.l.b16 %v1526_v38  ;;  %v1570_v20 = vshrl.u32 %v13360_v19, 16 }
 0x2b3   : > { %v1523_v58 = vpack.i.b16 %v1522_v63, %v1521_v11  ;;  %v1527_v47 = vshrl.u32 %v1397_v54, 16  ;;  %v1528_v24 = vshrl.u32 %v1425_v12, 16  ;;  %v1575_v33 = vshrl.u32 %v1453_v17, 16 }
 0x2b4   : > { %v10173_v5 = vperm.slane %v1301_v32, %v8725_v23  ;;  %v1645_v9 = vunpack.c.l.b16 %v1574_v1  ;;  %v1571_v42 = vpack.i.b16 %v1570_v20, %v1569_v8  ;;  %v1576_v56 = vshrl.u32 %v1481_v51, 16  ;;  %v13412_v20 = vld [vmem:[#allocation63_spill] sm:$0xff] }
 0x2b5   : > { %v13410_v29 = vrot.slane %v13409_v26, 4  ;;  %v1639_v19 = vunpack.c.l.b16 %v1523_v58  ;;  %v1529_v21 = vpack.i.b16 %v1528_v24, %v1527_v47  ;;  %v10181_v11 = vperm.slane %v1273_v13, %v8725_v23  ;;  %v13411_v13 = vld [vmem:[#allocation61_spill] sm:$0xff]  ;;  %v13414_v47 = vld [vmem:[#allocation56_spill] sm:$0xff] }
 0x2b6   : > { %v1646_v54 = vpack.c.b16 %v1645_v9, %v1644_v25  ;;  %v1640_v12 = vunpack.c.l.b16 %v1571_v42  ;;  %v1577_v17 = vpack.i.b16 %v1576_v56, %v1575_v33  ;;  %v1869_v32 = vsel %vm653_vm0, %v1868_v15, %v10166_v31  ;;  %v13415_v24 = vld [vmem:[#allocation57_spill] sm:$0xff] }
 0x2b7   : > { %v1891_v38 = vsel %vm653_vm0, %v13410_v29, %v9934_v57  ;;  %v1870_v51 = vrot.slane %v10166_v31, 4  ;;  %v1649_v1 = vunpack.c.l.b16 %v1529_v21  ;;  %v2020_v63 = vrot.slane %v10076_v55, 4 }
 0x2b8   : > { %v10188_v26 = vperm.slane %v1891_v38, %v8688_v22  ;;  %1647 = vrot.lane.b32.xlu1 %v1646_v54, %s8097_s21  ;;  %v1641_v57 = vpack.c.b16 %v1640_v12, %v1639_v19  ;;  %v1650_v8 = vunpack.c.l.b16 %v1577_v17  ;;  %v903_v25 = vpack.i.b16 %v13412_v20, %v13411_v13  ;;  %v10203_v38 = vpop.permute.xlu1 %1047  ;;  %v10205_v19 = vpop.permute.xlu0 %1027 }
 0x2b9   : > { %v13413_v56 = vrot.slane %v10029_v3, 4  ;;  %v2021_v15 = vsel %vm653_vm0, 0, %v2020_v63  ;;  %v2048_v21 = vrot.slane %v9811_v46, 4  ;;  %v2076_v31 = vrot.slane %v9816_v30, 4  ;;  %v10213_v20 = vpop.permute.xlu2 %989 }
 0x2ba   : > { %1642 = vrot.lane.b32.xlu0 %v1641_v57, %s8096_s19  ;;  %v1651_v58 = vpack.c.b16 %v1650_v8, %v1649_v1  ;;  %v951_v33 = vpack.i.b16 %v13415_v24, %v13414_v47  ;;  %v2107_v29 = vshrl.u32 %v10029_v3, 16  ;;  %v2108_v17 = vshrl.u32 %v10076_v55, 16 }
 0x2bb   : > { %v1993_v42 = vsel %vm653_vm0, 0, %v13413_v56  ;;  %v2049_v54 = vsel %vm653_vm0, 0, %v2048_v21  ;;  %v2077_v12 = vsel %vm653_vm0, 0, %v2076_v31  ;;  %v2155_v63 = vshrl.u32 %v9811_v46, 16 }
 0x2bc   : > { %v2112_v9 = vpack.i.b16 %v2021_v15, %v1993_v42  ;;  %1652 = vrot.lane.b32.xlu2 %v1651_v58, %s8100_s25  ;;  %v2160_v1 = vpack.i.b16 %v2077_v12, %v2049_v54  ;;  %v2156_v8 = vshrl.u32 %v9816_v30, 16  ;;  %v2113_v13 = vshrl.u32 %v1993_v42, 16 }
 0x2bd   : > { %v2109_v56 = vpack.i.b16 %v2108_v17, %v2107_v29  ;;  %v2114_v47 = vshrl.u32 %v2021_v15, 16  ;;  %v2161_v24 = vshrl.u32 %v2049_v54, 16  ;;  %v2162_v34 = vshrl.u32 %v2077_v12, 16 }
 0x2be   : > { %v2222_v57 = vunpack.c.l.b16 %v2112_v9  ;;  %v13416_v21 = vrot.slane %v10117_v50, 4  ;;  %v1011_v55 = vunpack.c.l.b16 %v903_v25  ;;  %v2223_v46 = vunpack.c.l.b16 %v2160_v1 }
 0x2bf   : > { %v2157_v3 = vpack.i.b16 %v2156_v8, %v2155_v63  ;;  %v1012_v58 = vunpack.c.l.b16 %v951_v33  ;;  %v2217_v59 = vunpack.c.l.b16 %v2109_v56  ;;  %v2115_v9 = vpack.i.b16 %v2114_v47, %v2113_v13 }
 0x2c0   : > { %v1271_v31 = vsel %vm653_vm0, %v13416_v21, %v9937_v14  ;;  %v2163_v16 = vpack.i.b16 %v2162_v34, %v2161_v24  ;;  %v10220_v42 = vperm.slane %v1869_v32, %v8725_v23  ;;  %v13417_v29 = vrot.slane %v10056_v0, 4  ;;  %v10249_v8 = vpop.permute.xlu1 %999  ;;  %v10251_v13 = vpop.permute.xlu0 %994 }
 0x2c1   : > { %v2224_v54 = vpack.c.b16 %v2223_v46, %v2222_v57  ;;  %v2218_v12 = vunpack.c.l.b16 %v2157_v3  ;;  %v1871_v14 = vsel %vm653_vm0, %v10130_v53, %v1870_v51  ;;  %v1896_v50 = vrot.slane %v10188_v26, 4 }
 0x2c2   : > { %v1899_v15 = vsel %vm653_vm0, %v10188_v26, %v13417_v29  ;;  %v2227_v25 = vunpack.c.l.b16 %v2115_v9  ;;  %v2228_v33 = vunpack.c.l.b16 %v2163_v16  ;;  %v10230_v17 = vperm.slane %v1271_v31, %v8725_v23  ;;  %v10264_v29 = vpop.permute.xlu2 %3140 }
 0x2c3   : > { %2225 = vrot.lane.b32.xlu1 %v2224_v54, %s8099_s24  ;;  %v2219_v34 = vpack.c.b16 %v2218_v12, %v2217_v59  ;;  %v13418_v32 = vrot.slane %v9946_v48, 4  ;;  %v10237_v46 = vperm.slane %v1899_v15, %v8725_v23  ;;  %v1013_v3 = vpack.c.b16 %v1012_v58, %v1011_v55 }
 0x2c4   : > { %v2229_v53 = vpack.c.b16 %v2228_v33, %v2227_v25  ;;  %v13419_v51 = vrot.slane %v10026_v62, 4  ;;  %v10244_v1 = vperm.slane %v1871_v14, %v8725_v23  ;;  %v1450_v57 = vrot.slane %v13354_v6, 4 }
 0x2c5   : > { %v1395_v63 = vsel %vm653_vm0, 0, %v13418_v32  ;;  %2220 = vrot.lane.b32.xlu0 %v2219_v34, %s8098_s22  ;;  %v1897_v55 = vsel %vm653_vm0, %v1896_v50, %v10056_v0  ;;  %v1073_v56 = vsel %vm1049_vm3, %v1013_v3, %v10089_v40  ;;  %v1478_v47 = vrot.slane %v13356_v41, 4 }
 0x2c6   : > { %v1423_v16 = vsel %vm653_vm0, 0, %v13419_v51  ;;  %2230 = vrot.lane.b32.xlu2 %v2229_v53, %s8101_s26  ;;  %v1515_v24 = vshrl.u32 %v1395_v63, 16  ;;  %v1451_v21 = vsel %vm653_vm0, 0, %v1450_v57  ;;  %v10262_v9 = vperm.slane %v9800_v61, %v8725_v23 }
 0x2c7   : > { %v1516_v31 = vshrl.u32 %v1423_v16, 16  ;;  %v1514_v58 = vpack.i.b16 %v1423_v16, %v1395_v63  ;;  %v1479_v0 = vsel %vm653_vm0, 0, %v1478_v47  ;;  %v1563_v15 = vshrl.u32 %v1451_v21, 16 }
 0x2c8   : > { %v2094_v40 = vpack.i.b16 %v10237_v46, %v10244_v1  ;;  %v1564_v12 = vshrl.u32 %v1479_v0, 16  ;;  %v1562_v14 = vpack.i.b16 %v1479_v0, %v1451_v21  ;;  %v10270_v25 = vperm.slane %v1897_v55, %v8725_v23 }
 0x2c9   : > { %v1517_v54 = vpack.i.b16 %v1516_v31, %v1515_v24  ;;  %v1624_v50 = vunpack.c.l.b16 %v1514_v58  ;;  %v2142_v61 = vpack.i.b16 %v9964_v10, %v10262_v9  ;;  %v1075_v53 = vsel %vm1053_vm4, %v1073_v56, %v10058_v43  ;;  %v13420_v58 = vld [vmem:[#allocation49_spill] sm:$0xff] }
 0x2ca   : > { %v2194_v33 = vunpack.c.l.b16 %v2094_v40  ;;  %v1565_v34 = vpack.i.b16 %v1564_v12, %v1563_v15  ;;  %v1625_v63 = vunpack.c.l.b16 %v1562_v14  ;;  %v3011_v51 = vpack.i.b16 %v9546_v4, %v9534_v7 }
 0x2cb   : > { %v1629_v32 = vunpack.c.l.b16 %v1517_v54  ;;  %v2195_v3 = vunpack.c.l.b16 %v2142_v61  ;;  %v1077_v55 = vsel %vm1056_vm5, %v1075_v53, %v10205_v19  ;;  %v3059_v47 = vpack.i.b16 %v9552_v37, %v9549_v52  ;;  %v10294_v52 = vpop.permute.xlu1 %984  ;;  %v10296_v37 = vpop.permute.xlu0 %979  ;;  %v13421_v19 = vld [vmem:[#allocation47_spill] sm:$0xff] }
 0x2cc   : > { %v1630_v16 = vunpack.c.l.b16 %v1565_v34  ;;  %v1626_v57 = vpack.c.b16 %v1625_v63, %v1624_v50  ;;  %v1910_v24 = vrot.slane %v10237_v46, 4  ;;  %v1079_v31 = vsel %vm1059_vm6, %v1077_v55, %v9932_v45  ;;  %v10310_v61 = vpop.permute.xlu2 %3125 }
 0x2cd   : > { %v2196_v21 = vpack.c.b16 %v2195_v3, %v2194_v33  ;;  %v10287_v43 = vperm.slane %v13420_v58, %v8725_v23  ;;  %v10290_v7 = vunpack.c.l.b16 %v3011_v51  ;;  %v1496_v4 = vpack.i.b16 %v10173_v5, %v10181_v11  ;;  %v13423_v58 = vld [vmem:[#allocation48_spill] sm:$0xff] }
 0x2ce   : > { %v1631_v56 = vpack.c.b16 %v1630_v16, %v1629_v32  ;;  %1627 = vrot.lane.b32.xlu0 %v1626_v57, %s8099_s24  ;;  %v1081_v45 = vsel %vm1062_vm7, %v1079_v31, %v10007_v36  ;;  %v2125_v15 = vshrl.u32 %v10121_v60, 16  ;;  %v2126_v40 = vshrl.u32 %v10109_v44, 16 }
 0x2cf   : > { %2197 = vrot.lane.b32.xlu2 %v2196_v21, %s8095_s18  ;;  %v1544_v0 = vpack.i.b16 %v10287_v43, %v13421_v19  ;;  %v10306_v54 = vunpack.c.l.b16 %v3059_v47  ;;  %v1596_v12 = vunpack.c.l.b16 %v1496_v4  ;;  %v2173_v14 = vshrl.u32 %v10124_v28, 16  ;;  %v13422_v47 = vld [vmem:[#allocation50_spill] sm:$0xff] }
 0x2d0   : > { %1632 = vrot.lane.b32.xlu1 %v1631_v56, %s8101_s26  ;;  %v2174_v50 = vshrl.u32 %v10127_v35, 16  ;;  %v2127_v36 = vpack.i.b16 %v2126_v40, %v2125_v15  ;;  %v1497_v34 = vshrl.u32 %v10181_v11, 16  ;;  %v1498_v32 = vshrl.u32 %v10173_v5, 16 }
 0x2d1   : > { %v1597_v33 = vunpack.c.l.b16 %v1544_v0  ;;  %v10316_v44 = vsel %vm1065_vm8, %v1081_v45, %v10040_v18  ;;  %v1545_v63 = vshrl.u32 %v13421_v19, 16  ;;  %v1546_v3 = vshrl.u32 %v10287_v43, 16 }
 0x2d2   : > { %v2175_v60 = vpack.i.b16 %v2174_v50, %v2173_v14  ;;  %v2247_v53 = vunpack.c.l.b16 %v2127_v36  ;;  %v1499_v35 = vpack.i.b16 %v1498_v32, %v1497_v34  ;;  %v1485_v51 = vshrl.u32 %v10230_v17, 16 }
 0x2d3   : > { %v1598_v28 = vpack.c.b16 %v1597_v33, %v1596_v12  ;;  %v1547_v57 = vpack.i.b16 %v1546_v3, %v1545_v63  ;;  %v1486_v55 = vshrl.u32 %v10114_v2, 16  ;;  %v1533_v21 = vshrl.u32 %v13422_v47, 16  ;;  %v10333_v3 = vpop.permute.xlu1 %3150 }
 0x2d4   : > { %v2248_v16 = vunpack.c.l.b16 %v2175_v60  ;;  %v1601_v31 = vunpack.c.l.b16 %v1499_v35  ;;  %v1534_v18 = vshrl.u32 %v13423_v58, 16  ;;  %v2095_v56 = vshrl.u32 %v10244_v1, 16  ;;  %v13424_v60 = vld [vmem:[#allocation71_spill] sm:$0xff] }
 0x2d5   : > { %v2096_v4 = vshrl.u32 %v10237_v46, 16  ;;  %v1602_v0 = vunpack.c.l.b16 %v1547_v57  ;;  %v1487_v15 = vpack.i.b16 %v1486_v55, %v1485_v51  ;;  %v2143_v40 = vshrl.u32 %v10262_v9, 16  ;;  %v13425_v57 = vld [vmem:[#allocation78_spill] sm:$0xff] }
 0x2d6   : > { %v2249_v45 = vpack.c.b16 %v2248_v16, %v2247_v53  ;;  %v1535_v12 = vpack.i.b16 %v1534_v18, %v1533_v21  ;;  %v2144_v50 = vshrl.u32 %v9964_v10, 16  ;;  %v2083_v33 = vshrl.u32 %v10220_v42, 16  ;;  %v10335_v53 = vpop.permute.xlu0 %1009  ;;  %v13426_v21 = vld [vmem:[#allocation66_spill] sm:$0xff]  ;;  %v13427_v18 = vld [vmem:[#allocation67_spill] sm:$0xff] }
 0x2d7   : > { %v2097_v14 = vpack.i.b16 %v2096_v4, %v2095_v56  ;;  %v1603_v36 = vpack.c.b16 %v1602_v0, %v1601_v31  ;;  %v1581_v34 = vunpack.c.l.b16 %v1487_v15  ;;  %v2084_v32 = vshrl.u32 %v10270_v25, 16  ;;  %v13428_v56 = vld [vmem:[#allocation64_spill] sm:$0xff]  ;;  %v13429_v4 = vld [vmem:[#allocation65_spill] sm:$0xff]  ;;  %v10344_v15 = vpop.permute.xlu2 %3155 }
 0x2d8   : > { %1599 = vrot.lane.b32.xlu1 %v1598_v28, %s8095_s18  ;;  %2250 = vrot.lane.b32.xlu0 %v2249_v45, %s8100_s25  ;;  %v2131_v63 = vshrl.u32 %v13424_v60, 16  ;;  %v1582_v35 = vunpack.c.l.b16 %v1535_v12  ;;  %v2145_v51 = vpack.i.b16 %v2144_v50, %v2143_v40  ;;  %v2132_v55 = vshrl.u32 %v13425_v57, 16 }
 0x2d9   : > { %v2199_v16 = vunpack.c.l.b16 %v2097_v14  ;;  %1604 = vrot.lane.b32.xlu2 %v1603_v36, %s8096_s19  ;;  %v2085_v28 = vpack.i.b16 %v2084_v32, %v2083_v33  ;;  %v927_v31 = vpack.i.b16 %v13427_v18, %v13426_v21  ;;  %v879_v45 = vpack.i.b16 %v13429_v4, %v13428_v56 }
 0x2da   : > { %v1882_v0 = vrot.slane %v10244_v1, 4  ;;  %v1583_v59 = vpack.c.b16 %v1582_v35, %v1581_v34  ;;  %v2200_v26 = vunpack.c.l.b16 %v2145_v51  ;;  %v2133_v12 = vpack.i.b16 %v2132_v55, %v2131_v63 }
 0x2db   : > { %v10349_v40 = vsel %vm653_vm0, 0, %v1910_v24  ;;  %v2179_v14 = vunpack.c.l.b16 %v2085_v28  ;;  %v974_v50 = vunpack.c.l.b16 %v927_v31  ;;  %v973_v33 = vunpack.c.l.b16 %v879_v45 }
 0x2dc   : > { %v10352_v36 = vsel %vm653_vm0, 0, %v1882_v0  ;;  %v2201_v32 = vpack.c.b16 %v2200_v26, %v2199_v16  ;;  %v2180_v21 = vunpack.c.l.b16 %v2133_v12  ;;  %v1938_v1 = vrot.slane %v10262_v9, 4  ;;  %v10389_v12 = vpop.permute.xlu1 %3102 }
 0x2dd   : > { %v1966_v18 = vrot.slane %v9964_v10, 4  ;;  %v975_v34 = vpack.c.b16 %v974_v50, %v973_v33  ;;  %v2100_v63 = vpack.i.b16 %v10349_v40, %v10352_v36  ;;  %v13430_v46 = vrot.slane %v10181_v11, 4 }
 0x2de   : > { %v1312_v35 = vrot.slane %v10173_v5, 4  ;;  %v2181_v51 = vpack.c.b16 %v2180_v21, %v2179_v14  ;;  %v10363_v55 = vsel %vm653_vm0, 0, %v1938_v1  ;;  %v1340_v9 = vrot.slane %v13421_v19, 4 }
 0x2df   : > { %v1285_v24 = vsel %vm653_vm0, 0, %v13430_v46  ;;  %v10366_v26 = vsel %vm653_vm0, 0, %v1966_v18  ;;  %v1052_v10 = vsel %vm1049_vm3, %v975_v34, %v10296_v37  ;;  %v2204_v5 = vunpack.c.l.b16 %v2100_v63  ;;  %v10399_v1 = vpop.permute.xlu2 %3107 }
 0x2e0   : > { %1584 = vrot.lane.b32.xlu1 %v1583_v59, %s8098_s22  ;;  %2202 = vrot.lane.b32.xlu0 %v2201_v32, %s8096_s19  ;;  %v2148_v11 = vpack.i.b16 %v10366_v26, %v10363_v55  ;;  %v1313_v16 = vsel %vm653_vm0, 0, %v1312_v35  ;;  %v1055_v28 = vsel %vm1053_vm4, %v1052_v10, %v10294_v52  ;;  %v1341_v31 = vsel %vm653_vm0, 0, %v1340_v9  ;;  %v10391_v52 = vpop.permute.xlu0 %3145 }
 0x2e1   : > { %v1368_v19 = vrot.slane %v10287_v43, 4  ;;  %v1502_v56 = vpack.i.b16 %v1313_v16, %v1285_v24  ;;  %2182 = vrot.lane.b32.xlu2 %v2181_v51, %s8098_s22  ;;  %v1058_v59 = vsel %vm1056_vm5, %v1055_v28, %v10213_v20  ;;  %v1282_v4 = vrot.slane %v10230_v17, 4 }
 0x2e2   : > { %v2205_v37 = vunpack.c.l.b16 %v2148_v11  ;;  %v13431_v45 = vrot.slane %v10114_v2, 4  ;;  %v1338_v50 = vrot.slane %v13422_v47, 4  ;;  %v1366_v33 = vrot.slane %v13423_v58, 4 }
 0x2e3   : > { %v1369_v43 = vsel %vm653_vm0, 0, %v1368_v19  ;;  %v1606_v14 = vunpack.c.l.b16 %v1502_v56  ;;  %v10397_v21 = vsel %vm653_vm0, 0, %v1282_v4  ;;  %v1085_v46 = vsel %vm1068_vm9, %v10316_v44, %v10203_v38 }
 0x2e4   : > { %v10387_v0 = vsel %vm653_vm0, 0, %v13431_v45  ;;  %v2206_v20 = vpack.c.b16 %v2205_v37, %v2204_v5  ;;  %v1550_v32 = vpack.i.b16 %v1369_v43, %v1341_v31  ;;  %v10402_v18 = vsel %vm653_vm0, 0, %v1338_v50 }
 0x2e5   : > { %v10405_v34 = vsel %vm653_vm0, 0, %v1366_v33  ;;  %v1490_v63 = vpack.i.b16 %v10387_v0, %v10397_v21  ;;  %v1089_v9 = vunpack.c.l.b16 %v1085_v46  ;;  %v1091_v10 = vunpack.c.h.b16 %v1085_v46 }
 0x2e6   : > { %v1607_v35 = vunpack.c.l.b16 %v1550_v32  ;;  %v1538_v51 = vpack.i.b16 %v10405_v34, %v10402_v18  ;;  %v1061_v5 = vsel %vm1059_vm6, %v1058_v59, %v10251_v13  ;;  %v1503_v28 = vshrl.u32 %v1285_v24, 16 }
 0x2e7   : > { %v1586_v11 = vunpack.c.l.b16 %v1490_v63  ;;  %v1504_v19 = vshrl.u32 %v1313_v16, 16  ;;  %v1064_v4 = vsel %vm1062_vm7, %v1061_v5, %v10249_v8  ;;  %v1551_v38 = vshrl.u32 %v1341_v31, 16 }
 0x2e8   : > { %2207 = vrot.lane.b32.xlu1 %v2206_v20, %s8097_s21  ;;  %v1608_v56 = vpack.c.b16 %v1607_v35, %v1606_v14  ;;  %v1587_v37 = vunpack.c.l.b16 %v1538_v51  ;;  %v1067_v44 = vsel %vm1065_vm8, %v1064_v4, %v10170_v39  ;;  %v1552_v50 = vshrl.u32 %v1369_v43, 16  ;;  %v3136_v35 = vpop.permute.xlu1 %3135 }
 0x2e9   : > { %v1505_v45 = vpack.i.b16 %v1504_v19, %v1503_v28  ;;  %v13432_v33 = vrot.slane %v10220_v42, 4  ;;  %v1070_v24 = vsel %vm1068_vm9, %v1067_v44, %v10335_v53  ;;  %v1908_v16 = vrot.slane %v10270_v25, 4  ;;  %v3131_v53 = vpop.permute.xlu0 %3130 }
 0x2ea   : > { %1609 = vrot.lane.b32.xlu0 %v1608_v56, %s8097_s21  ;;  %v1588_v13 = vpack.c.b16 %v1587_v37, %v1586_v11  ;;  %v1936_v8 = vrot.slane %v13424_v60, 4  ;;  %v1088_v31 = vunpack.c.l.b16 %v1070_v24  ;;  %v1090_v59 = vunpack.c.h.b16 %v1070_v24 }
 0x2eb   : > { %v1881_v32 = vsel %vm653_vm0, 0, %v13432_v33  ;;  %v1553_v14 = vpack.i.b16 %v1552_v50, %v1551_v38  ;;  %v1611_v39 = vunpack.c.l.b16 %v1505_v45  ;;  %v1909_v43 = vsel %vm653_vm0, 0, %v1908_v16  ;;  %v3093_v38 = vpop.permute.xlu2 %3092 }
 0x2ec   : > { %1589 = vrot.lane.b32.xlu2 %v1588_v13, %s8099_s24  ;;  %v1937_v20 = vsel %vm653_vm0, 0, %v1936_v8  ;;  %v1964_v63 = vrot.slane %v13425_v57, 4  ;;  %v2101_v46 = vshrl.u32 %v10352_v36, 16  ;;  %v1092_v51 = vpack.c.b16 %v1089_v9, %v1088_v31 }
 0x2ed   : > { %v1093_v11 = vpack.c.b16 %v1091_v10, %v1090_v59  ;;  %v1612_v5 = vunpack.c.l.b16 %v1553_v14  ;;  %v2088_v28 = vpack.i.b16 %v1909_v43, %v1881_v32  ;;  %v2102_v56 = vshrl.u32 %v10349_v40, 16 }
 0x2ee   : > { %v1965_v19 = vsel %vm653_vm0, 0, %v1964_v63  ;;  %v2149_v37 = vshrl.u32 %v10363_v55, 16  ;;  %v2150_v4 = vshrl.u32 %v10366_v26, 16  ;;  %1096 = vst [vmem:[#allocation3] sm:$0xff] %v1092_v51  ;;  %v2089_v9 = vshrl.u32 %v1881_v32, 16 }
 0x2ef   : > { %v1613_v44 = vpack.c.b16 %v1612_v5, %v1611_v39  ;;  %v2136_v45 = vpack.i.b16 %v1965_v19, %v1937_v20  ;;  %v2184_v50 = vunpack.c.l.b16 %v2088_v28  ;;  %1097 = vst [vmem:[#allocation3 + $0x8] sm:$0xff] %v1093_v11  ;;  %v2103_v36 = vpack.i.b16 %v2102_v56, %v2101_v46  ;;  %v13434_v11 = vld [vmem:[#allocation74_spill] sm:$0xff]  ;;  %v13435_v5 = vld [vmem:[#allocation75_spill] sm:$0xff]  ;;  %v13436_v28 = vld [vmem:[#allocation76_spill] sm:$0xff] }
 0x2f0   : > { %v2151_v33 = vpack.i.b16 %v2150_v4, %v2149_v37  ;;  %v2090_v10 = vshrl.u32 %v1909_v43, 16  ;;  %v2137_v24 = vshrl.u32 %v1937_v20, 16  ;;  %v2138_v16 = vshrl.u32 %v1965_v19, 16 }
 0x2f1   : > { %1614 = vrot.lane.b32.xlu1 %v1613_v44, %s8100_s25  ;;  %v2185_v13 = vunpack.c.l.b16 %v2136_v45  ;;  %v3121_v40 = vpack.c.b16 %v10306_v54, %v10290_v7  ;;  %v2209_v55 = vunpack.c.l.b16 %v2103_v36  ;;  %v1491_v14 = vshrl.u32 %v10397_v21, 16  ;;  %v13433_v21 = vld [vmem:[#allocation73_spill] sm:$0xff] }
 0x2f2   : > { %v2210_v26 = vunpack.c.l.b16 %v2151_v33  ;;  %v2091_v8 = vpack.i.b16 %v2090_v10, %v2089_v9  ;;  %v2139_v59 = vpack.i.b16 %v2138_v16, %v2137_v24  ;;  %v1492_v39 = vshrl.u32 %v10387_v0, 16  ;;  %v3088_v19 = vpop.permute.xlu1 %3087  ;;  %v3113_v56 = vpop.permute.xlu0 %3112 }
 0x2f3   : > { %v2186_v31 = vpack.c.b16 %v2185_v13, %v2184_v50  ;;  %v3174_v32 = vsel %vm1049_vm3, %v3121_v40, %v10310_v61  ;;  %v1539_v20 = vshrl.u32 %v10402_v18, 16  ;;  %v1540_v54 = vshrl.u32 %v10405_v34, 16  ;;  %v10455_v34 = vpop.permute.xlu2 %3683 }
 0x2f4   : > { %v2211_v43 = vpack.c.b16 %v2210_v26, %v2209_v55  ;;  %v2189_v63 = vunpack.c.l.b16 %v2091_v8  ;;  %v2190_v46 = vunpack.c.l.b16 %v2139_v59  ;;  %v1493_v7 = vpack.i.b16 %v1492_v39, %v1491_v14  ;;  %v13437_v26 = vld [vmem:[#allocation35_spill] sm:$0xff] }
 0x2f5   : > { %2187 = vrot.lane.b32.xlu0 %v2186_v31, %s8099_s24  ;;  %v3176_v51 = vsel %vm1053_vm4, %v3174_v32, %v3131_v53  ;;  %v2987_v0 = vpack.i.b16 %v13434_v11, %v13433_v21  ;;  %v3035_v61 = vpack.i.b16 %v13436_v28, %v13435_v5  ;;  %v1541_v18 = vpack.i.b16 %v1540_v54, %v1539_v20  ;;  %v13438_v31 = vld [vmem:[#allocation38_spill] sm:$0xff]  ;;  %v13439_v14 = vld [vmem:[#allocation51_spill] sm:$0xff]  ;;  %v13440_v32 = vld [vmem:[#allocation40_spill] sm:$0xff] }
 0x2f6   : > { %2212 = vrot.lane.b32.xlu2 %v2211_v43, %s8100_s25  ;;  %v2191_v37 = vpack.c.b16 %v2190_v46, %v2189_v63  ;;  %v1591_v4 = vunpack.c.l.b16 %v1493_v7  ;;  %v3178_v44 = vsel %vm1056_vm5, %v3176_v51, %v3136_v35  ;;  %v3755_v8 = vrot.slane %v13437_v26, 4  ;;  %v13441_v63 = vld [vmem:[#allocation43_spill] sm:$0xff]  ;;  %v13442_v7 = vld [vmem:[#allocation37_spill] sm:$0xff]  ;;  %v13445_v28 = vld [vmem:[#allocation36_spill] sm:$0xff] }
 0x2f7   : > { %v3081_v45 = vunpack.c.l.b16 %v2987_v0  ;;  %v3082_v50 = vunpack.c.l.b16 %v3035_v61  ;;  %v1592_v53 = vunpack.c.l.b16 %v1541_v18  ;;  %v3180_v36 = vsel %vm1059_vm6, %v3178_v44, %v10264_v29  ;;  %v13443_v51 = vld [vmem:[#allocation77_spill] sm:$0xff]  ;;  %v13444_v0 = vld [vmem:[#allocation44_spill] sm:$0xff] }
 0x2f8   : > { %v3182_v35 = vsel %vm1062_vm7, %v3180_v36, %v10391_v52  ;;  %v3845_v59 = vrot.slane %v13438_v31, 4  ;;  %v3873_v39 = vrot.slane %v13439_v14, 4  ;;  %v3867_v43 = vrot.slane %v13440_v32, 4  ;;  %v13448_v36 = vld [vmem:[#allocation54_spill] sm:$0xff] }
 0x2f9   : > { %2192 = vrot.lane.b32.xlu1 %v2191_v37, %s8101_s26  ;;  %v1593_v9 = vpack.c.b16 %v1592_v53, %v1591_v4  ;;  %v3083_v10 = vpack.c.b16 %v3082_v50, %v3081_v45  ;;  %v3184_v24 = vsel %vm1065_vm8, %v3182_v35, %v10333_v3  ;;  %v3839_v20 = vrot.slane %v13441_v63, 4  ;;  %v13447_v45 = vld [vmem:[#allocation45_spill] sm:$0xff] }
 0x2fa   : > { %v3186_v3 = vsel %vm1068_vm9, %v3184_v24, %v10344_v15  ;;  %v3727_v54 = vrot.slane %v13442_v7, 4  ;;  %v3846_v21 = vsel %vm653_vm0, %v3845_v59, %v13443_v51  ;;  %v3874_v11 = vsel %vm653_vm0, %v3873_v39, %v10038_v27  ;;  %v13446_v15 = vld [vmem:[#allocation55_spill] sm:$0xff]  ;;  %v13451_v63 = vld [vmem:[#allocation69_spill] sm:$0xff] }
 0x2fb   : > { %v3159_v13 = vsel %vm1049_vm3, %v3083_v10, %v3088_v19  ;;  %v3118_v16 = vpop.permute.xlu1 %3117  ;;  %v3690_v46 = vpop.permute.xlu2 %3689  ;;  %v3761_v5 = vrot.slane %v13444_v0, 4  ;;  %v3840_v61 = vsel %vm653_vm0, %v3839_v20, %v13445_v28  ;;  %v3868_v19 = vsel %vm653_vm0, %v3867_v43, %v13446_v15 }
 0x2fc   : > { %v3161_v55 = vsel %vm1053_vm4, %v3159_v13, %v3093_v38  ;;  %v3190_v37 = vunpack.c.l.b16 %v3186_v3  ;;  %v3192_v18 = vunpack.c.h.b16 %v3186_v3  ;;  %v3733_v50 = vrot.slane %v13447_v45, 4  ;;  %v13454_v45 = vld [vmem:[#allocation58_spill] sm:$0xff] }
 0x2fd   : > { %1594 = vrot.lane.b32.xlu0 %v1593_v9, %s8101_s26  ;;  %v3850_v27 = vperm.slane %v3846_v21, %v8688_v22  ;;  %v3728_v53 = vsel %vm653_vm0, %v3727_v54, %v10091_v49  ;;  %v3756_v9 = vsel %vm653_vm0, %v3755_v8, %v13448_v36  ;;  %v3901_v10 = vrot.slane %v3690_v46, 4  ;;  %v13452_v21 = vld [vmem:[#allocation46_spill] sm:$0xff] }
 0x2fe   : > { %v3844_v24 = vperm.slane %v3840_v61, %v8688_v22  ;;  %v3732_v31 = vperm.slane %v3728_v53, %v8688_v22  ;;  %v3760_v8 = vperm.slane %v3756_v9, %v8688_v22  ;;  %v3811_v51 = vrot.slane %v10455_v34, 4 }
 0x2ff   : > { %v3098_v40 = vpop.permute.xlu0 %3097  ;;  %v3851_v59 = vrot.slane %v3850_v27, 4  ;;  %v3902_v20 = vsel %vm653_vm0, %v3901_v10, %v13451_v63 }
 0x300   : > { %v3163_v29 = vsel %vm1056_vm5, %v3161_v55, %v3098_v40  ;;  %v13449_v40 = vld [vmem:[#allocation32_spill] sm:$0xff]  ;;  %v3853_v46 = vrot.slane %v3844_v24, 4  ;;  %v3741_v54 = vrot.slane %v3732_v31, 4  ;;  %v3769_v0 = vrot.slane %v3760_v8, 4 }
 0x301   : > { %v3165_v52 = vsel %vm1059_vm6, %v3163_v29, %v10389_v12  ;;  %v3734_v55 = vsel %vm653_vm0, %v3733_v50, %v13449_v40  ;;  %v13450_v29 = vld [vmem:[#allocation60_spill] sm:$0xff]  ;;  %v3852_v3 = vsel %vm653_vm0, %v3851_v59, %v3844_v24  ;;  %v10520_v28 = vperm.slane %v3902_v20, %v8688_v22 }
 0x302   : > { %v3167_v38 = vsel %vm1062_vm7, %v3165_v52, %v10399_v1  ;;  %v3762_v26 = vsel %vm653_vm0, %v3761_v5, %v13450_v29  ;;  %v3738_v32 = vperm.slane %v3734_v55, %v8688_v22  ;;  %v3812_v50 = vsel %vm653_vm0, %v3811_v51, %v13454_v45 }
 0x303   : > { %v3169_v12 = vsel %vm1065_vm8, %v3167_v38, %v3113_v56  ;;  %v3878_v56 = vperm.slane %v3874_v11, %v8688_v22  ;;  %v3766_v43 = vperm.slane %v3762_v26, %v8688_v22  ;;  %v10513_v7 = vpop.permute.xlu2 %1637  ;;  %v3816_v55 = vperm.slane %v3812_v50, %v8688_v22 }
 0x304   : > { %v3171_v1 = vsel %vm1068_vm9, %v3169_v12, %v3118_v16  ;;  %v3872_v16 = vperm.slane %v3868_v19, %v8688_v22  ;;  %v3739_v15 = vrot.slane %v3738_v32, 4  ;;  %v3742_v19 = vsel %vm653_vm0, %v3738_v32, %v3741_v54 }
 0x305   : > { %v3189_v4 = vunpack.c.l.b16 %v3171_v1  ;;  %v3191_v44 = vunpack.c.h.b16 %v3171_v1  ;;  %v3879_v14 = vrot.slane %v3878_v56, 4  ;;  %v3767_v1 = vrot.slane %v3766_v43, 4 }
 0x306   : > { %v3881_v38 = vrot.slane %v3872_v16, 4  ;;  %v3770_v34 = vsel %vm653_vm0, %v3766_v43, %v3769_v0  ;;  %v10543_v10 = vperm.slane %v3742_v19, %v8725_v23  ;;  %v3740_v24 = vsel %vm653_vm0, %v3739_v15, %v3732_v31 }
 0x307   : > { %v3193_v35 = vpack.c.b16 %v3190_v37, %v3189_v4  ;;  %v3194_v13 = vpack.c.b16 %v3192_v18, %v3191_v44  ;;  %v3880_v5 = vsel %vm653_vm0, %v3879_v14, %v3872_v16  ;;  %v10525_v37 = vperm.slane %v3852_v3, %v8725_v23 }
 0x308   : > { %v3882_v61 = vsel %vm653_vm0, %v3878_v56, %v3881_v38  ;;  %v3854_v4 = vsel %vm653_vm0, %v3850_v27, %v3853_v46  ;;  %v10533_v44 = vperm.slane %v3880_v5, %v8725_v23  ;;  %v13455_v56 = vld [vmem:[#allocation42_spill] sm:$0xff]  ;;  %v3768_v16 = vsel %vm653_vm0, %v3767_v1, %v3760_v8 }
 0x309   : > { %3197 = vst [vmem:[#allocation3 + $0x30] sm:$0xff] %v3193_v35  ;;  %v3682_v49 = vpop.permute.xlu1 %3681  ;;  %v10540_v9 = vperm.slane %v3882_v61, %v8725_v23  ;;  %v3907_v35 = vrot.slane %v10520_v28, 4  ;;  %v10549_v40 = vperm.slane %v3770_v34, %v8725_v23  ;;  %v10558_v14 = vperm.slane %v3854_v4, %v8725_v23 }
 0x30a   : > { %3198 = vst [vmem:[#allocation3 + $0x38] sm:$0xff] %v3194_v13  ;;  %v3895_v39 = vrot.slane %v3682_v49, 4  ;;  %v3680_v52 = vpop.permute.xlu0 %3679  ;;  %v13456_v49 = vld [vmem:[#allocation62_spill] sm:$0xff]  ;;  %v1508_v31 = vpack.i.b16 %v10026_v62, %v9946_v48  ;;  %v10567_v43 = vperm.slane %v3740_v24, %v8725_v23  ;;  %v3753_v63 = vrot.slane %v10543_v10, 4 }
 0x30b   : > { %v3783_v12 = vrot.slane %v3680_v52, 4  ;;  %13453 = vst [vmem:[#allocation59_spill] sm:$0xff] %v10533_v44  ;;  %v3863_v52 = vrot.slane %v10525_v37, 4  ;;  %v10570_v20 = vpop.permute.xlu2 %1622  ;;  %v10573_v3 = vperm.slane %v3768_v16, %v8725_v23  ;;  %v3966_v62 = vshrl.u32 %v10543_v10, 16 }
 0x30c   : > { %v3896_v11 = vsel %vm653_vm0, %v3895_v39, %v13452_v21  ;;  %v3891_v39 = vrot.slane %v10533_v44, 4  ;;  %v3967_v46 = vshrl.u32 %v10549_v40, 16  ;;  %v3781_v38 = vrot.slane %v10549_v40, 4 }
 0x30d   : > { %v10529_v18 = vperm.slane %v3896_v11, %v8688_v22  ;;  %v3784_v53 = vsel %vm653_vm0, %v3783_v12, %v13455_v56  ;;  %13457 = vst [vmem:[#allocation33_spill] sm:$0xff] %v10573_v3  ;;  %v3825_v54 = vrot.slane %v3816_v55, 4  ;;  %v1556_v11 = vpack.i.b16 %v13356_v41, %v13354_v6  ;;  %v13458_v56 = vld [vmem:[#allocation34_spill] sm:$0xff] }
 0x30e   : > { %v3788_v26 = vperm.slane %v3784_v53, %v8688_v22  ;;  %v10583_v12 = vunpack.c.l.b16 %v1508_v31  ;;  %v10586_v61 = vsel %vm653_vm0, 0, %v3891_v39  ;;  %v3965_v34 = vpack.i.b16 %v10549_v40, %v10543_v10  ;;  %v13461_v10 = vld [vmem:[#allocation30_spill] sm:$0xff] }
 0x30f   : > { %v3908_v29 = vsel %vm653_vm0, %v3907_v35, %v10529_v18  ;;  %v10592_v4 = vsel %vm653_vm0, 0, %v3863_v52  ;;  %v3968_v50 = vpack.i.b16 %v3967_v46, %v3966_v62  ;;  %v3954_v41 = vshrl.u32 %v10567_v43, 16 }
 0x310   : > { %v10576_v48 = vperm.slane %v3908_v29, %v8725_v23  ;;  %v3797_v51 = vrot.slane %v3788_v26, 4  ;;  %v10610_v31 = vunpack.c.l.b16 %v1556_v11  ;;  %v4065_v52 = vunpack.c.l.b16 %v3965_v34 }
 0x311   : > { %v3688_v36 = vpop.permute.xlu1 %3687  ;;  %v4070_v46 = vunpack.c.l.b16 %v3968_v50 }
 0x312   : > { %v3789_v13 = vrot.slane %v3688_v36, 4  ;;  %v3686_v27 = vpop.permute.xlu0 %3685  ;;  %v3919_v6 = vrot.slane %v10576_v48, 4  ;;  %v13459_v36 = vld [vmem:[#allocation70_spill] sm:$0xff] }
 0x313   : > { %v3923_v21 = vrot.slane %v3686_v27, 4  ;;  %v3955_v27 = vshrl.u32 %v10573_v3, 16 }
 0x314   : > { %v3790_v59 = vsel %vm653_vm0, %v3789_v13, %v13456_v49  ;;  %v3983_v13 = vpack.i.b16 %v10586_v61, %v10592_v4  ;;  %v13460_v49 = vld [vmem:[#allocation68_spill] sm:$0xff] }
 0x315   : > { %v3794_v8 = vperm.slane %v3790_v59, %v8688_v22  ;;  %v3924_v53 = vsel %vm653_vm0, %v3923_v21, %v13458_v56  ;;  %v10621_v21 = vpop.permute.xlu2 %2245  ;;  %v3751_v56 = vrot.slane %v10567_v43, 4 }
 0x316   : > { %v10615_v62 = vperm.slane %v3924_v53, %v8688_v22  ;;  %v4093_v34 = vunpack.c.l.b16 %v3983_v13 }
 0x317   : > { %v3795_v0 = vrot.slane %v3794_v8, 4  ;;  %v3798_v15 = vsel %vm653_vm0, %v3794_v8, %v3797_v51  ;;  %v3909_v8 = vrot.slane %v10529_v18, 4  ;;  %v10619_v51 = vsel %vm653_vm0, 0, %v3919_v6 }
 0x318   : > { %v3806_v16 = vperm.slane %v3798_v15, %v8725_v23 }
 0x319   : > { %v3694_v5 = vpop.permute.xlu1 %3693  ;;  %v3796_v24 = vsel %vm653_vm0, %v3795_v0, %v3788_v26 }
 0x31a   : > { %v3929_v19 = vrot.slane %v3694_v5, 4  ;;  %v3692_v1 = vpop.permute.xlu0 %3691  ;;  %v10624_v0 = vperm.slane %v3796_v24, %v8725_v23  ;;  %v10627_v5 = vpack.i.b16 %v3955_v27, %v3954_v41 }
 0x31b   : > { %v3817_v45 = vrot.slane %v3692_v1, 4  ;;  %v4014_v1 = vshrl.u32 %v3806_v16, 16 }
 0x31c   : > { %v3930_v35 = vsel %vm653_vm0, %v3929_v19, %v13459_v36  ;;  %v4002_v24 = vshrl.u32 %v10624_v0, 16 }
 0x31d   : > { %v10606_v29 = vperm.slane %v3930_v35, %v8688_v22  ;;  %v3818_v59 = vsel %vm653_vm0, %v3817_v45, %v13460_v49  ;;  %v3809_v49 = vrot.slane %v3806_v16, 4 }
 0x31e   : > { %v3822_v39 = vperm.slane %v3818_v59, %v8688_v22 }
 0x31f   : > { %v3935_v26 = vrot.slane %v10606_v29, 4 }
 0x320   : > { %v3823_v11 = vrot.slane %v3822_v39, 4  ;;  %v3826_v18 = vsel %vm653_vm0, %v3822_v39, %v3825_v54  ;;  %v3779_v54 = vrot.slane %v10573_v3, 4 }
 0x321   : > { %v3936_v15 = vsel %vm653_vm0, %v3935_v26, %v10615_v62  ;;  %v3834_v19 = vperm.slane %v3826_v18, %v8725_v23  ;;  %v10643_v53 = vpop.permute.xlu1 %2240 }
 0x322   : > { %v10633_v45 = vperm.slane %v3936_v15, %v8725_v23  ;;  %v3824_v50 = vsel %vm653_vm0, %v3823_v11, %v3816_v55  ;;  %v3807_v55 = vrot.slane %v10624_v0, 4  ;;  %v10652_v15 = vsel %vm653_vm0, 0, %v3751_v56 }
 0x323   : > { %v10636_v6 = vpop.permute.xlu0 %2235  ;;  %v10641_v41 = vperm.slane %v3824_v50, %v8725_v23  ;;  %v4013_v36 = vpack.i.b16 %v3834_v19, %v3806_v16  ;;  %v4015_v35 = vshrl.u32 %v3834_v19, 16  ;;  %v3837_v27 = vrot.slane %v3834_v19, 4 }
 0x324   : > { %v3947_v13 = vrot.slane %v10633_v45, 4  ;;  %v10655_v19 = vsel %vm653_vm0, 0, %v3779_v54  ;;  %v10666_v56 = vsel %vm653_vm0, 0, %v3753_v63  ;;  %v10671_v54 = vsel %vm653_vm0, 0, %v3781_v38  ;;  %v13462_v63 = vld [vmem:[#allocation39_spill] sm:$0xff] }
 0x325   : > { %v4066_v59 = vunpack.c.l.b16 %v4013_v36  ;;  %v4016_v39 = vpack.i.b16 %v4015_v35, %v4014_v1  ;;  %v4003_v26 = vshrl.u32 %v10641_v41, 16  ;;  %v3835_v11 = vrot.slane %v10641_v41, 4 }
 0x326   : > { %v3948_v18 = vsel %vm653_vm0, 0, %v3947_v13  ;;  %v10658_v50 = vsel %vm653_vm0, 0, %v3837_v27  ;;  %v3808_v36 = vsel %vm653_vm0, 0, %v3807_v55  ;;  %v3910_v55 = vsel %vm653_vm0, %v10520_v28, %v3909_v8  ;;  %v13463_v28 = vld [vmem:[#allocation72_spill] sm:$0xff] }
 0x327   : > { %v4067_v33 = vpack.c.b16 %v4066_v59, %v4065_v52  ;;  %v4071_v32 = vunpack.c.l.b16 %v4016_v39  ;;  %v4031_v16 = vpack.i.b16 %v3948_v18, %v10619_v51  ;;  %v4004_v1 = vpack.i.b16 %v4003_v26, %v4002_v24  ;;  %v10677_v59 = vpop.permute.xlu2 %1652 }
 0x328   : > { %v3836_v35 = vsel %vm653_vm0, 0, %v3835_v11  ;;  %v3810_v24 = vsel %vm653_vm0, 0, %v3809_v49  ;;  %v2106_v39 = vpack.i.b16 %v13462_v63, %v13461_v10  ;;  %v3959_v40 = vpack.i.b16 %v10655_v19, %v10652_v15 }
 0x329   : > { %4068 = vrot.lane.b32.xlu2 %v4067_v33, %s8095_s18  ;;  %v4072_v52 = vpack.c.b16 %v4071_v32, %v4070_v46  ;;  %v4094_v27 = vunpack.c.l.b16 %v4031_v16  ;;  %v4007_v13 = vpack.i.b16 %v3836_v35, %v3808_v36  ;;  %v4019_v38 = vpack.i.b16 %v10658_v50, %v3810_v24 }
 0x32a   : > { %v3937_v33 = vrot.slane %v10615_v62, 4  ;;  %v4051_v49 = vunpack.c.l.b16 %v4004_v1  ;;  %v4033_v26 = vshrl.u32 %v3948_v18, 16  ;;  %v2154_v8 = vpack.i.b16 %v9816_v30, %v13463_v28  ;;  %v10695_v62 = vpop.permute.xlu1 %1647 }
 0x32b   : > { %4073 = vrot.lane.b32.xlu0 %v4072_v52, %s8096_s19  ;;  %v4095_v46 = vpack.c.b16 %v4094_v27, %v4093_v34  ;;  %v4056_v11 = vunpack.c.l.b16 %v4007_v13  ;;  %v3971_v16 = vpack.i.b16 %v10671_v54, %v10666_v56  ;;  %v3985_v10 = vshrl.u32 %v10586_v61, 16 }
 0x32c   : > { %v10685_v32 = vpop.permute.xlu0 %1642  ;;  %v3938_v63 = vsel %vm653_vm0, %v10606_v29, %v3937_v33  ;;  %v4050_v34 = vunpack.c.l.b16 %v10627_v5  ;;  %v4032_v18 = vshrl.u32 %v10619_v51, 16  ;;  %v4027_v1 = vshrl.u32 %v10633_v45, 16 }
 0x32d   : > { %4096 = vrot.lane.b32.xlu1 %v4095_v46, %s8099_s24  ;;  %v4055_v30 = vunpack.c.l.b16 %v3959_v40  ;;  %v4076_v52 = vunpack.c.l.b16 %v4019_v38  ;;  %v3984_v27 = vshrl.u32 %v10592_v4, 16  ;;  %v3979_v13 = vshrl.u32 %v10533_v44, 16 }
 0x32e   : > { %v4052_v61 = vpack.c.b16 %v4051_v49, %v4050_v34  ;;  %v4034_v28 = vpack.i.b16 %v4033_v26, %v4032_v18  ;;  %v4026_v29 = vshrl.u32 %v10576_v48, 16  ;;  %v4009_v33 = vshrl.u32 %v3836_v35, 16 }
 0x32f   : > { %v4057_v22 = vpack.c.b16 %v4056_v11, %v4055_v30  ;;  %v4075_v3 = vunpack.c.l.b16 %v3971_v16  ;;  %v3986_v46 = vpack.i.b16 %v3985_v10, %v3984_v27  ;;  %v3978_v5 = vshrl.u32 %v10525_v37, 16  ;;  %v10715_v18 = vpop.permute.xlu2 %2230 }
 0x330   : > { %v4028_v51 = vpack.i.b16 %v4027_v1, %v4026_v29  ;;  %v3960_v40 = vshrl.u32 %v10652_v15, 16  ;;  %v3961_v38 = vshrl.u32 %v10655_v19, 16  ;;  %v4008_v4 = vshrl.u32 %v3808_v36, 16 }
 0x331   : > { %4053 = vrot.lane.b32.xlu2 %v4052_v61, %s8098_s22  ;;  %v3946_v44 = vperm.slane %v3938_v63, %v8725_v23  ;;  %v4077_v49 = vpack.c.b16 %v4076_v52, %v4075_v3  ;;  %v3980_v26 = vpack.i.b16 %v3979_v13, %v3978_v5  ;;  %v4021_v34 = vshrl.u32 %v10658_v50, 16 }
 0x332   : > { %v4099_v35 = vunpack.c.l.b16 %v4034_v28  ;;  %v4010_v11 = vpack.i.b16 %v4009_v33, %v4008_v4  ;;  %v3972_v16 = vshrl.u32 %v10666_v56, 16  ;;  %v3973_v10 = vshrl.u32 %v10671_v54, 16 }
 0x333   : > { %4058 = vrot.lane.b32.xlu0 %v4057_v22, %s8099_s24  ;;  %v1618_v15 = vpack.c.b16 %v10610_v31, %v10583_v12  ;;  %v2214_v19 = vunpack.c.l.b16 %v2106_v39  ;;  %v4020_v36 = vshrl.u32 %v3810_v24, 16  ;;  %v3918_v3 = vperm.slane %v3910_v55, %v8725_v23 }
 0x334   : > { %v2082_v50 = vpack.i.b16 %v10270_v25, %v10220_v42  ;;  %v4098_v22 = vunpack.c.l.b16 %v3986_v46  ;;  %v4089_v1 = vunpack.c.l.b16 %v4028_v51  ;;  %v3962_v56 = vpack.i.b16 %v3961_v38, %v3960_v40 }
 0x335   : > { %4078 = vrot.lane.b32.xlu1 %v4077_v49, %s8097_s21  ;;  %v2215_v30 = vunpack.c.l.b16 %v2154_v8  ;;  %v4088_v54 = vunpack.c.l.b16 %v3980_v26  ;;  %v4022_v52 = vpack.i.b16 %v4021_v34, %v4020_v36  ;;  %v4039_v27 = vshrl.u32 %v3946_v44, 16  ;;  %v2226_v13 = vpop.permute.xlu1 %2225  ;;  %v4165_v34 = vld [vmem:[#allocation2] sm:$0xf] }
 0x336   : > { %v4100_v61 = vpack.c.b16 %v4099_v35, %v4098_v22  ;;  %v4061_v28 = vunpack.c.l.b16 %v4010_v11  ;;  %v3974_v39 = vpack.i.b16 %v3973_v10, %v3972_v16  ;;  %v3989_v24 = vpack.i.b16 %v10540_v9, %v10558_v14 }
 0x337   : > { %v2221_v63 = vpop.permute.xlu0 %2220  ;;  %v4037_v55 = vpack.i.b16 %v3946_v44, %v3918_v3  ;;  %v3991_v29 = vshrl.u32 %v10540_v9, 16  ;;  %v4038_v33 = vshrl.u32 %v3918_v3, 16  ;;  %v3921_v5 = vrot.slane %v3918_v3, 4 }
 0x338   : > { %v2216_v4 = vpack.c.b16 %v2215_v30, %v2214_v19  ;;  %v4090_v46 = vpack.c.b16 %v4089_v1, %v4088_v54  ;;  %v4060_v8 = vunpack.c.l.b16 %v3962_v56  ;;  %v3949_v51 = vrot.slane %v3946_v44, 4  ;;  %v10735_v54 = vpop.permute.xlu2 %2197 }
 0x339   : > { %4101 = vrot.lane.b32.xlu2 %v4100_v61, %s8101_s26  ;;  %v4081_v40 = vunpack.c.l.b16 %v4022_v52  ;;  %v3990_v38 = vshrl.u32 %v10558_v14, 16  ;;  %v4040_v49 = vpack.i.b16 %v4039_v27, %v4038_v33  ;;  %v3865_v26 = vrot.slane %v10558_v14, 4 }
 0x33a   : > { %v4062_v35 = vpack.c.b16 %v4061_v28, %v4060_v8  ;;  %v4080_v11 = vunpack.c.l.b16 %v3974_v39  ;;  %v13464_v16 = vrot.slane %v10540_v9, 4  ;;  %v3950_v19 = vsel %vm653_vm0, 0, %v3949_v51  ;;  %v4166_v28 = vld [vmem:[#allocation2 + $0x4] sm:$0xf] }
 0x33b   : > { %4091 = vrot.lane.b32.xlu0 %v4090_v46, %s8098_s22  ;;  %v4103_v36 = vunpack.c.l.b16 %v3989_v24  ;;  %v4104_v3 = vunpack.c.l.b16 %v4037_v55  ;;  %v3992_v44 = vpack.i.b16 %v3991_v29, %v3990_v38  ;;  %v3922_v22 = vsel %vm653_vm0, 0, %v3921_v5  ;;  %v4168_v5 = vld [vmem:[#allocation2 + $0xc] sm:$0xf] }
 0x33c   : > { %v3894_v10 = vsel %vm653_vm0, 0, %v13464_v16  ;;  %v2269_v1 = vsel %vm1049_vm3, %v2216_v4, %v2221_v63  ;;  %v4045_v14 = vshrl.u32 %v3950_v19, 16  ;;  %v4214_v56 = vshrl.u32 %v4165_v34, 16 }
 0x33d   : > { %4063 = vrot.lane.b32.xlu1 %v4062_v35, %s8101_s26  ;;  %v4217_v30 = vshll.u32 %v4165_v34, 16  ;;  %v4082_v52 = vpack.c.b16 %v4081_v40, %v4080_v11  ;;  %v4109_v9 = vunpack.c.l.b16 %v4040_v49  ;;  %v3866_v27 = vsel %vm653_vm0, 0, %v3865_v26  ;;  %v4167_v34 = vld [vmem:[#allocation2 + $0x8] sm:$0x1] }
 0x33e   : > { %v3997_v61 = vshrl.u32 %v3894_v10, 16  ;;  %v4043_v24 = vpack.i.b16 %v3950_v19, %v3922_v22  ;;  %v4044_v55 = vshrl.u32 %v3922_v22, 16  ;;  %v4216_v29 = vrot.slane %v4214_v56, 4 }
 0x33f   : > { %v4219_v33 = vrot.slane %v4217_v30, 5  ;;  %v2271_v63 = vsel %vm1053_vm4, %v2269_v1, %v2226_v13  ;;  %v4105_v4 = vpack.c.b16 %v4104_v3, %v4103_v36  ;;  %v4108_v46 = vunpack.c.l.b16 %v3992_v44  ;;  %v4169_v44 = vld [vmem:[#allocation2 + $0x10] sm:$0xf] }
 0x340   : > { %v1628_v39 = vpop.permute.xlu0 %1627  ;;  %v3995_v8 = vpack.i.b16 %v3894_v10, %v3866_v27  ;;  %v3996_v40 = vshrl.u32 %v3866_v27, 16  ;;  %v4046_v38 = vpack.i.b16 %v4045_v14, %v4044_v55  ;;  %v4223_v49 = vshll.u32 %v4166_v28, 16  ;;  %v4171_v14 = vld [vmem:[#allocation2 + $0x18] sm:$0xf] }
 0x341   : > { %4083 = vrot.lane.b32.xlu2 %v4082_v52, %s8100_s25  ;;  %v4227_v26 = vshrl.u32 %v4166_v28, 16  ;;  %v1671_v35 = vsel %vm1049_vm3, %v1618_v15, %v10570_v20  ;;  %v2130_v13 = vpack.i.b16 %v13425_v57, %v13424_v60  ;;  %v4238_v11 = vshrl.u32 %v4168_v5, 16 }
 0x342   : > { %v1633_v51 = vpop.permute.xlu1 %1632  ;;  %v4241_v16 = vshll.u32 %v4168_v5, 16  ;;  %v4110_v10 = vpack.c.b16 %v4109_v9, %v4108_v46  ;;  %v4114_v19 = vunpack.c.l.b16 %v4043_v24  ;;  %v3998_v36 = vpack.i.b16 %v3997_v61, %v3996_v40  ;;  %v10759_v61 = vpop.permute.xlu2 %1604  ;;  %v4172_v24 = vld [vmem:[#allocation2 + $0x1c] sm:$0xf] }
 0x343   : > { %4106 = vrot.lane.b32.xlu0 %v4105_v4, %s8095_s18  ;;  %v4220_v3 = vor.u32 %v4219_v33, %v4216_v29  ;;  %v2273_v22 = vsel %vm1056_vm5, %v2271_v63, %v10715_v18  ;;  %v10753_v12 = vunpack.c.l.b16 %v2082_v50  ;;  %v4113_v20 = vunpack.c.l.b16 %v3995_v8  ;;  %v4174_v50 = vld [vmem:[#allocation2 + $0x24] sm:$0xf]  ;;  %v4170_v8 = vld [vmem:[#allocation2 + $0x14] sm:$0x1] }
 0x344   : > { %v4233_v31 = vshll.u32 %v4167_v34, 16  ;;  %v1673_v60 = vsel %vm1053_vm4, %v1671_v35, %v1628_v39  ;;  %v4119_v57 = vunpack.c.l.b16 %v4046_v38  ;;  %v4225_v15 = vrot.slane %v4223_v49, 5 }
 0x345   : > { %4111 = vrot.lane.b32.xlu1 %v4110_v10, %s8096_s19  ;;  %v4229_v1 = vrot.slane %v4227_v26, 4  ;;  %v4240_v56 = vrot.slane %v4238_v11, 4  ;;  %v4243_v30 = vrot.slane %v4241_v16, 5  ;;  %v4247_v52 = vshll.u32 %v4169_v44, 16 }
 0x346   : > { %v4251_v9 = vshrl.u32 %v4169_v44, 16  ;;  %v10757_v18 = vunpack.c.l.b16 %v2130_v13  ;;  %v4115_v27 = vpack.c.b16 %v4114_v19, %v4113_v20  ;;  %v4118_v42 = vunpack.c.l.b16 %v3998_v36 }
 0x347   : > { %v4221_v25 = vrot.slane %v4220_v3, 4  ;;  %v1675_v28 = vsel %vm1056_vm5, %v1673_v60, %v1633_v51  ;;  %v2275_v39 = vsel %vm1059_vm6, %v2273_v22, %v10636_v6  ;;  %v4262_v55 = vshrl.u32 %v4171_v14, 16  ;;  %v4175_v6 = vld [vmem:[#allocation2 + $0x28] sm:$0xf]  ;;  %v4173_v60 = vld [vmem:[#allocation2 + $0x20] sm:$0x1] }
 0x348   : > { %v4265_v29 = vshll.u32 %v4171_v14, 16  ;;  %v1484_v63 = vpack.i.b16 %v10114_v2, %v10230_v17  ;;  %v4120_v4 = vpack.c.b16 %v4119_v57, %v4118_v42  ;;  %v4230_v46 = vor.u32 %v4229_v1, %v4225_v15 }
 0x349   : > { %4116 = vrot.lane.b32.xlu2 %v4115_v27, %s8097_s21  ;;  %v4286_v40 = vshrl.u32 %v4174_v50, 16  ;;  %v4235_v38 = vrot.slane %v4233_v31, 5  ;;  %v4244_v51 = vor.u32 %v4243_v30, %v4240_v56  ;;  %v4249_v49 = vrot.slane %v4247_v52, 5  ;;  %v4176_v27 = vld [vmem:[#allocation2 + $0x2c] sm:$0x1] }
 0x34a   : > { %v10764_v33 = vpop.permute.xlu1 %1599  ;;  %v2251_v5 = vpop.permute.xlu0 %2250  ;;  %v4253_v26 = vrot.slane %v4251_v9, 4  ;;  %v1677_v34 = vsel %vm1059_vm6, %v1675_v28, %v10513_v7  ;;  %v4226_v13 = vsel %vm8496_vm13, %v4221_v25, %v4225_v15  ;;  %v4271_v11 = vshll.u32 %v4172_v24, 16 }
 0x34b   : > { %4121 = vrot.lane.b32.xlu0 %v4120_v4, %s8100_s25  ;;  %v4275_v16 = vshrl.u32 %v4172_v24, 16  ;;  %v4257_v2 = vshll.u32 %v4170_v8, 16  ;;  %v4264_v17 = vrot.slane %v4262_v55, 4  ;;  %v4267_v10 = vrot.slane %v4265_v29, 5  ;;  %v2183_v29 = vpop.permute.xlu2 %2182 }
 0x34c   : > { %v4289_v19 = vshll.u32 %v4174_v50, 16  ;;  %v4231_v36 = vrot.slane %v4230_v46, 4  ;;  %v4288_v3 = vrot.slane %v4286_v40, 4  ;;  %v4295_v44 = vshll.u32 %v4175_v6, 16 }
 0x34d   : > { %4597 = vrot.lane.b32.xlu1 %v4226_v13, %s8091_s8  ;;  %v4299_v22 = vshrl.u32 %v4175_v6, 16  ;;  %v1679_v7 = vsel %vm1062_vm7, %v1677_v34, %v10685_v32  ;;  %v4245_v20 = vrot.slane %v4244_v51, 4  ;;  %v4254_v31 = vor.u32 %v4253_v26, %v4249_v49 }
 0x34e   : > { %v4291_v57 = vrot.slane %v4289_v19, 5  ;;  %v2277_v15 = vsel %vm1062_vm7, %v2275_v39, %v10643_v53  ;;  %v4236_v1 = vsel %vm8496_vm13, %v4231_v36, %v4235_v38  ;;  %v4273_v14 = vrot.slane %v4271_v11, 5 }
 0x34f   : > { %v4277_v56 = vrot.slane %v4275_v16, 4  ;;  %v4259_v30 = vrot.slane %v4257_v2, 5  ;;  %v4268_v52 = vor.u32 %v4267_v10, %v4264_v17  ;;  %v4297_v9 = vrot.slane %v4295_v44, 5  ;;  %v4178_v44 = vld [vmem:[#allocation2 + $0x34] sm:$0xf] }
 0x350   : > { %v4301_v42 = vrot.slane %v4299_v22, 4  ;;  %v1681_v32 = vsel %vm1065_vm8, %v1679_v7, %v10695_v62  ;;  %v4281_v50 = vshll.u32 %v4173_v60, 16  ;;  %v4292_v28 = vor.u32 %v4291_v57, %v4288_v3  ;;  %v4177_v3 = vld [vmem:[#allocation2 + $0x30] sm:$0xf]  ;;  %v4179_v22 = vld [vmem:[#allocation2 + $0x38] sm:$0x1] }
 0x351   : > { %4599 = vrot.lane.b32.xlu2 %v4236_v1, %s8091_s8  ;;  %v2178_v53 = vpack.c.b16 %v10757_v18, %v10753_v12  ;;  %v4250_v24 = vsel %vm8496_vm13, %v4245_v20, %v4249_v49  ;;  %v4255_v55 = vrot.slane %v4254_v31, 4  ;;  %v2279_v4 = vsel %vm1065_vm8, %v2277_v15, %v10621_v21  ;;  %v4180_v57 = vld [vmem:[#allocation2 + $0x3c] sm:$0xf] }
 0x352   : > { %v1585_v25 = vpop.permute.xlu1 %1584  ;;  %v10786_v39 = vpop.permute.xlu0 %2202  ;;  %v1578_v46 = vunpack.c.l.b16 %v1484_v63  ;;  %v4278_v62 = vor.u32 %v4277_v56, %v4273_v14  ;;  %v4305_v8 = vshll.u32 %v4176_v27, 16  ;;  %v10795_v40 = vsel %vm1068_vm9, %v1681_v32, %v10677_v59 }
 0x353   : > { %4601 = vrot.lane.b32.xlu0 %v4250_v24, %s8091_s8  ;;  %v4260_v12 = vsel %vm8496_vm13, %v4255_v55, %v4259_v30  ;;  %v4269_v18 = vrot.slane %v4268_v52, 4  ;;  %v4302_v38 = vor.u32 %v4301_v42, %v4297_v9  ;;  %v10800_v51 = vsel %vm1068_vm9, %v2279_v4, %v2251_v5  ;;  %v4183_v55 = vld [vmem:[#allocation2 + $0x48] sm:$0xf] }
 0x354   : > { %v13466_v21 = vpack.i.b16 %v13423_v58, %v13422_v47  ;;  %v4283_v49 = vrot.slane %v4281_v50, 5  ;;  %v4293_v26 = vrot.slane %v4292_v28, 4  ;;  %v10807_v6 = vsel %vm1049_vm3, %v2178_v53, %v2183_v29 }
 0x355   : > { %4603 = vrot.lane.b32.xlu1 %v4260_v12, %s8091_s8  ;;  %v1687_v59 = vunpack.c.l.b16 %v10795_v40  ;;  %v4279_v13 = vrot.slane %v4278_v62, 4  ;;  %v4307_v11 = vrot.slane %v4305_v8, 5  ;;  %v1689_v16 = vunpack.c.h.b16 %v10795_v40  ;;  %v4184_v8 = vld [vmem:[#allocation2 + $0x4c] sm:$0xf]  ;;  %v1590_v12 = vpop.permute.xlu2 %1589 }
 0x356   : > { %v1579_v63 = vunpack.c.l.b16 %v13466_v21  ;;  %v2285_v5 = vunpack.c.l.b16 %v10800_v51  ;;  %v4274_v47 = vsel %vm8496_vm13, %v4269_v18, %v4273_v14  ;;  %v4303_v58 = vrot.slane %v4302_v38, 4  ;;  %v4181_v14 = vld [vmem:[#allocation2 + $0x40] sm:$0xf] }
 0x357   : > { %v2287_v2 = vunpack.c.h.b16 %v10800_v51  ;;  %v4284_v19 = vsel %vm8496_vm13, %v4279_v13, %v4283_v49  ;;  %v4298_v36 = vsel %vm8496_vm13, %v4293_v26, %v4297_v9  ;;  %v4310_v7 = vshrl.u32 %v4177_v3, 16 }
 0x358   : > { %v1580_v34 = vpack.c.b16 %v1579_v63, %v1578_v46  ;;  %v4313_v20 = vshll.u32 %v4177_v3, 16  ;;  %v4319_v31 = vshll.u32 %v4178_v44, 16  ;;  %v4323_v60 = vshrl.u32 %v4178_v44, 16  ;;  %v4186_v3 = vld [vmem:[#allocation2 + $0x54] sm:$0xf] }
 0x359   : > { %4605 = vrot.lane.b32.xlu2 %v4274_v47, %s8091_s8  ;;  %v4308_v15 = vsel %vm8496_vm13, %v4303_v58, %v4307_v11  ;;  %v4329_v1 = vshll.u32 %v4179_v22, 16  ;;  %v4334_v56 = vshrl.u32 %v4180_v57, 16  ;;  %v4337_v30 = vshll.u32 %v4180_v57, 16  ;;  %v4185_v11 = vld [vmem:[#allocation2 + $0x50] sm:$0x1] }
 0x35a   : > { %v1656_v17 = vsel %vm1049_vm3, %v1580_v34, %v1585_v25  ;;  %v10816_v10 = vpop.permute.xlu1 %2207  ;;  %v4312_v9 = vrot.slane %v4310_v7, 4  ;;  %v4315_v27 = vrot.slane %v4313_v20, 5  ;;  %v4321_v42 = vrot.slane %v4319_v31, 5  ;;  %v4182_v25 = vld [vmem:[#allocation2 + $0x44] sm:$0x1] }
 0x35b   : > { %4607 = vrot.lane.b32.xlu0 %v4284_v19, %s8091_s8  ;;  %v4325_v32 = vrot.slane %v4323_v60, 4  ;;  %v4331_v50 = vrot.slane %v4329_v1, 5  ;;  %v4336_v28 = vrot.slane %v4334_v56, 4  ;;  %v4339_v53 = vrot.slane %v4337_v30, 5  ;;  %v4187_v31 = vld [vmem:[#allocation2 + $0x58] sm:$0xf] }
 0x35c   : > { %v10826_v52 = vpop.permute.xlu0 %1609  ;;  %v4343_v24 = vshll.u32 %v4181_v14, 16  ;;  %v4316_v29 = vor.u32 %v4315_v27, %v4312_v9  ;;  %v4347_v46 = vshrl.u32 %v4181_v14, 16  ;;  %v4353_v62 = vshll.u32 %v4182_v25, 16  ;;  %v4188_v27 = vld [vmem:[#allocation2 + $0x5c] sm:$0x1] }
 0x35d   : > { %4609 = vrot.lane.b32.xlu1 %v4298_v36, %s8091_s8  ;;  %v4326_v4 = vor.u32 %v4325_v32, %v4321_v42  ;;  %v4340_v18 = vor.u32 %v4339_v53, %v4336_v28  ;;  %v4358_v21 = vshrl.u32 %v4183_v55, 16  ;;  %v4361_v63 = vshll.u32 %v4183_v55, 16  ;;  %v4189_v28 = vld [vmem:[#allocation2 + $0x60] sm:$0xf] }
 0x35e   : > { %v4345_v38 = vrot.slane %v4343_v24, 5  ;;  %v10830_v49 = vsel %vm1053_vm4, %v1656_v17, %v1590_v12  ;;  %v4317_v26 = vrot.slane %v4316_v29, 4  ;;  %v4349_v13 = vrot.slane %v4347_v46, 4  ;;  %v4190_v46 = vld [vmem:[#allocation2 + $0x64] sm:$0xf] }
 0x35f   : > { %v4327_v34 = vrot.slane %v4326_v4, 4  ;;  %v4341_v47 = vrot.slane %v4340_v18, 4  ;;  %v4360_v58 = vrot.slane %v4358_v21, 4  ;;  %v4363_v19 = vrot.slane %v4361_v63, 5 }
 0x360   : > { %v4367_v36 = vshll.u32 %v4184_v8, 16  ;;  %v4322_v22 = vsel %vm8496_vm13, %v4317_v26, %v4321_v42  ;;  %v4350_v7 = vor.u32 %v4349_v13, %v4345_v38  ;;  %v4371_v20 = vshrl.u32 %v4184_v8, 16 }
 0x361   : > { %4611 = vrot.lane.b32.xlu2 %v4308_v15, %s8091_s8  ;;  %v4332_v17 = vsel %vm8496_vm13, %v4327_v34, %v4331_v50  ;;  %v4355_v60 = vrot.slane %v4353_v62, 5  ;;  %v4364_v57 = vor.u32 %v4363_v19, %v4360_v58  ;;  %v4377_v1 = vshll.u32 %v4185_v11, 16  ;;  %v4191_v58 = vld [vmem:[#allocation2 + $0x68] sm:$0x1] }
 0x362   : > { %v4369_v15 = vrot.slane %v4367_v36, 5  ;;  %v4351_v14 = vrot.slane %v4350_v7, 4  ;;  %v4373_v56 = vrot.slane %v4371_v20, 4  ;;  %v4382_v30 = vshrl.u32 %v4186_v3, 16 }
 0x363   : > { %v10833_v44 = vpop.permute.xlu1 %1614  ;;  %4613 = vrot.lane.b32.xlu0 %v4322_v22, %s8091_s8  ;;  %v4385_v9 = vshll.u32 %v4186_v3, 16  ;;  %v4346_v42 = vsel %vm8496_vm13, %v4341_v47, %v4345_v38  ;;  %v4365_v32 = vrot.slane %v4364_v57, 4  ;;  %v4391_v25 = vshll.u32 %v4187_v31, 16 }
 0x364   : > { %v4395_v50 = vshrl.u32 %v4187_v31, 16  ;;  %v4374_v24 = vor.u32 %v4373_v56, %v4369_v15  ;;  %v4379_v55 = vrot.slane %v4377_v1, 5  ;;  %v4384_v29 = vrot.slane %v4382_v30, 4 }
 0x365   : > { %4615 = vrot.lane.b32.xlu1 %v4332_v17, %s8091_s8  ;;  %v4387_v4 = vrot.slane %v4385_v9, 5  ;;  %v4356_v8 = vsel %vm8496_vm13, %v4351_v14, %v4355_v60  ;;  %v4393_v12 = vrot.slane %v4391_v25, 5  ;;  %v4401_v63 = vshll.u32 %v4188_v27, 16  ;;  %v4192_v17 = vld [vmem:[#allocation2 + $0x6c] sm:$0xf] }
 0x366   : > { %v4397_v18 = vrot.slane %v4395_v50, 4  ;;  %v4375_v21 = vrot.slane %v4374_v24, 4  ;;  %v4406_v26 = vshrl.u32 %v4189_v28, 16  ;;  %v4409_v13 = vshll.u32 %v4189_v28, 16  ;;  %v4193_v28 = vld [vmem:[#allocation2 + $0x70] sm:$0xf] }
 0x367   : > { %v2188_v53 = vpop.permute.xlu0 %2187  ;;  %v4388_v38 = vor.u32 %v4387_v4, %v4384_v29  ;;  %v4415_v11 = vshll.u32 %v4190_v46, 16  ;;  %v4419_v47 = vshrl.u32 %v4190_v46, 16  ;;  %v4403_v3 = vrot.slane %v4401_v63, 5  ;;  %v4195_v63 = vld [vmem:[#allocation2 + $0x78] sm:$0xf] }
 0x368   : > { %v2256_v62 = vsel %vm1053_vm4, %v10807_v6, %v2188_v53  ;;  %v4398_v34 = vor.u32 %v4397_v18, %v4393_v12  ;;  %v4370_v6 = vsel %vm8496_vm13, %v4365_v32, %v4369_v15  ;;  %v4408_v22 = vrot.slane %v4406_v26, 4 }
 0x369   : > { %4617 = vrot.lane.b32.xlu2 %v4346_v42, %s8091_s8  ;;  %v4389_v36 = vrot.slane %v4388_v38, 4  ;;  %v4411_v31 = vrot.slane %v4409_v13, 5  ;;  %v10852_v60 = vrot.slane %v4415_v11, 5  ;;  %v4380_v1 = vsel %vm8496_vm13, %v4375_v21, %v4379_v55  ;;  %v2213_v42 = vpop.permute.xlu2 %2212 }
 0x36a   : > { %v4399_v20 = vrot.slane %v4398_v34, 4  ;;  %v4421_v14 = vrot.slane %v4419_v47, 4  ;;  %v4425_v15 = vshll.u32 %v4191_v58, 16  ;;  %v4430_v27 = vshrl.u32 %v4192_v17, 16 }
 0x36b   : > { %v2193_v19 = vpop.permute.xlu1 %2192  ;;  %4619 = vrot.lane.b32.xlu0 %v4356_v8, %s8091_s8  ;;  %v4394_v30 = vsel %vm8496_vm13, %v4389_v36, %v4393_v12  ;;  %v4412_v9 = vor.u32 %v4411_v31, %v4408_v22  ;;  %v4433_v53 = vshll.u32 %v4192_v17, 16  ;;  %v4194_v8 = vld [vmem:[#allocation2 + $0x74] sm:$0x1]  ;;  %v4439_v38 = vshll.u32 %v4193_v28, 16  ;;  %v4197_v31 = vld [vmem:[#allocation2 + $0x80] sm:$0x1] }
 0x36c   : > { %v2258_v7 = vsel %vm1056_vm5, %v2256_v62, %v2193_v19  ;;  %v4404_v25 = vsel %vm8496_vm13, %v4399_v20, %v4403_v3  ;;  %v4422_v50 = vor.u32 %v4421_v14, %v10852_v60  ;;  %v4432_v29 = vrot.slane %v4430_v27, 4 }
 0x36d   : > { %v2260_v57 = vsel %vm1059_vm6, %v2258_v7, %v10735_v54  ;;  %4621 = vrot.lane.b32.xlu1 %v4370_v6, %s8091_s8  ;;  %v4413_v55 = vrot.slane %v4412_v9, 4  ;;  %v4427_v62 = vrot.slane %v4425_v15, 5  ;;  %v4435_v21 = vrot.slane %v4433_v53, 5  ;;  %v4198_v6 = vld [vmem:[#allocation2 + $0x84] sm:$0xf] }
 0x36e   : > { %v2262_v56 = vsel %vm1062_vm7, %v2260_v57, %v10786_v39  ;;  %v4423_v18 = vrot.slane %v4422_v50, 4  ;;  %v4441_v47 = vrot.slane %v4439_v38, 5  ;;  %v4443_v58 = vshrl.u32 %v4193_v28, 16  ;;  %v4201_v53 = vld [vmem:[#allocation2 + $0x90] sm:$0xf] }
 0x36f   : > { %v2264_v32 = vsel %vm1065_vm8, %v2262_v56, %v10816_v10  ;;  %v1595_v54 = vpop.permute.xlu0 %1594  ;;  %v4418_v34 = vsel %vm8496_vm13, %v4413_v55, %v10852_v60  ;;  %v4436_v11 = vor.u32 %v4435_v21, %v4432_v29  ;;  %v4454_v19 = vshrl.u32 %v4195_v63, 16  ;;  %v4199_v60 = vld [vmem:[#allocation2 + $0x88] sm:$0xf]  ;;  %v4204_v38 = vld [vmem:[#allocation2 + $0x9c] sm:$0xf] }
 0x370   : > { %v2266_v39 = vsel %vm1068_vm9, %v2264_v32, %v2213_v42  ;;  %v1660_v24 = vsel %vm1056_vm5, %v10830_v49, %v1595_v54  ;;  %v4445_v36 = vrot.slane %v4443_v58, 4  ;;  %v4457_v3 = vshll.u32 %v4195_v63, 16  ;;  %v4200_v32 = vld [vmem:[#allocation2 + $0x8c] sm:$0x1] }
 0x371   : > { %v2284_v4 = vunpack.c.l.b16 %v2266_v39  ;;  %v2286_v46 = vunpack.c.h.b16 %v2266_v39  ;;  %v1662_v10 = vsel %vm1059_vm6, %v1660_v24, %v10764_v33  ;;  %4623 = vrot.lane.b32.xlu2 %v4380_v1, %s8091_s8  ;;  %v4428_v7 = vsel %vm8496_vm13, %v4423_v18, %v4427_v62 }
 0x372   : > { %v1664_v12 = vsel %vm1062_vm7, %v1662_v10, %v10759_v61  ;;  %v4196_v61 = vld [vmem:[#allocation2 + $0x7c] sm:$0xf]  ;;  %v4456_v20 = vrot.slane %v4454_v19, 4  ;;  %v4446_v1 = vor.u32 %v4445_v36, %v4441_v47  ;;  %v4459_v15 = vrot.slane %v4457_v3, 5  ;;  %v4207_v36 = vld [vmem:[#allocation2 + $0xa8] sm:$0xf] }
 0x373   : > { %v2288_v49 = vpack.c.b16 %v2285_v5, %v2284_v4  ;;  %v2289_v26 = vpack.c.b16 %v2287_v2, %v2286_v46  ;;  %v1666_v33 = vsel %vm1065_vm8, %v1664_v12, %v10826_v52  ;;  %4625 = vrot.lane.b32.xlu0 %v4394_v30, %s8091_s8  ;;  %v4449_v2 = vshll.u32 %v4194_v8, 16  ;;  %v4202_v46 = vld [vmem:[#allocation2 + $0x94] sm:$0xf] }
 0x374   : > { %v1668_v13 = vsel %vm1068_vm9, %v1666_v33, %v10833_v44  ;;  %v4437_v52 = vrot.slane %v4436_v11, 4  ;;  %v4463_v22 = vshll.u32 %v4196_v61, 16  ;;  %v4467_v30 = vshrl.u32 %v4196_v61, 16  ;;  %v4205_v33 = vld [vmem:[#allocation2 + $0xa0] sm:$0xf] }
 0x375   : > { %2292 = vst [vmem:[#allocation3 + $0x20] sm:$0xff] %v2288_v49  ;;  %v1686_v5 = vunpack.c.l.b16 %v1668_v13  ;;  %v1688_v51 = vunpack.c.h.b16 %v1668_v13  ;;  %4627 = vrot.lane.b32.xlu1 %v4404_v25, %s8091_s8  ;;  %v4451_v14 = vrot.slane %v4449_v2, 5  ;;  %v4478_v9 = vshrl.u32 %v4198_v6, 16  ;;  %v4203_v11 = vld [vmem:[#allocation2 + $0x98] sm:$0x1] }
 0x376   : > { %2293 = vst [vmem:[#allocation3 + $0x28] sm:$0xff] %v2289_v26  ;;  %v4442_v57 = vsel %vm8496_vm13, %v4437_v52, %v4441_v47  ;;  %v4465_v56 = vrot.slane %v4463_v22, 5  ;;  %v4460_v40 = vor.u32 %v4459_v15, %v4456_v20  ;;  %v4487_v27 = vshll.u32 %v4199_v60, 16  ;;  %v4208_v15 = vld [vmem:[#allocation2 + $0xac] sm:$0xf] }
 0x377   : > { %v1690_v44 = vpack.c.b16 %v1687_v59, %v1686_v5  ;;  %v1691_v17 = vpack.c.b16 %v1689_v16, %v1688_v51  ;;  %v4481_v59 = vshll.u32 %v4198_v6, 16  ;;  %v4473_v16 = vshll.u32 %v4197_v31, 16 }
 0x378   : > { %v4491_v42 = vshrl.u32 %v4199_v60, 16  ;;  %v4447_v54 = vrot.slane %v4446_v1, 4  ;;  %v4469_v25 = vrot.slane %v4467_v30, 4  ;;  %v4480_v50 = vrot.slane %v4478_v9, 4  ;;  %v4206_v60 = vld [vmem:[#allocation2 + $0xa4] sm:$0x1] }
 0x379   : > { %1694 = vst [vmem:[#allocation3 + $0x10] sm:$0xff] %v1690_v44  ;;  %4629 = vrot.lane.b32.xlu2 %v4418_v34, %s8091_s8  ;;  %v4483_v28 = vrot.slane %v4481_v59, 5  ;;  %v4489_v39 = vrot.slane %v4487_v27, 5  ;;  %v4461_v24 = vrot.slane %v4460_v40, 4  ;;  %v4475_v10 = vrot.slane %v4473_v16, 5 }
 0x37a   : > { %1695 = vst [vmem:[#allocation3 + $0x18] sm:$0xff] %v1691_v17  ;;  %v4470_v55 = vor.u32 %v4469_v25, %v4465_v56  ;;  %v4493_v4 = vrot.slane %v4491_v42, 4  ;;  %v4497_v62 = vshll.u32 %v4200_v32, 16  ;;  %v4502_v8 = vshrl.u32 %v4201_v53, 16  ;;  %v4210_v27 = vld [vmem:[#allocation2 + $0xb4] sm:$0xf] }
 0x37b   : > { %4631 = vrot.lane.b32.xlu0 %v4428_v7, %s8091_s8  ;;  %v4484_v29 = vor.u32 %v4483_v28, %v4480_v50  ;;  %v4452_v12 = vsel %vm8496_vm13, %v4447_v54, %v4451_v14  ;;  %v4505_v49 = vshll.u32 %v4201_v53, 16  ;;  %v4511_v26 = vshll.u32 %v4202_v46, 16 }
 0x37c   : > { %v4471_v18 = vrot.slane %v4470_v55, 4  ;;  %v4494_v21 = vor.u32 %v4493_v4, %v4489_v39  ;;  %v4504_v63 = vrot.slane %v4502_v8, 4  ;;  %v4466_v34 = vsel %vm8496_vm13, %v4461_v24, %v4465_v56 }
 0x37d   : > { %4633 = vrot.lane.b32.xlu1 %v4442_v57, %s8091_s8  ;;  %v4485_v61 = vrot.slane %v4484_v29, 4  ;;  %v4499_v13 = vrot.slane %v4497_v62, 5  ;;  %v4507_v58 = vrot.slane %v4505_v49, 5  ;;  %v4513_v5 = vrot.slane %v4511_v26, 5 }
 0x37e   : > { %v4476_v47 = vsel %vm8496_vm13, %v4471_v18, %v4475_v10  ;;  %v4515_v51 = vshrl.u32 %v4202_v46, 16  ;;  %v4495_v2 = vrot.slane %v4494_v21, 4  ;;  %v4526_v19 = vshrl.u32 %v4204_v38, 16  ;;  %v4211_v46 = vld [vmem:[#allocation2 + $0xb8] sm:$0xf] }
 0x37f   : > { %v4529_v6 = vshll.u32 %v4204_v38, 16  ;;  %v4535_v52 = vshll.u32 %v4205_v33, 16  ;;  %v4508_v22 = vor.u32 %v4507_v58, %v4504_v63  ;;  %v4521_v17 = vshll.u32 %v4203_v11, 16  ;;  %v4209_v63 = vld [vmem:[#allocation2 + $0xb0] sm:$0x1] }
 0x380   : > { %v4517_v44 = vrot.slane %v4515_v51, 4  ;;  %v4539_v7 = vshrl.u32 %v4205_v33, 16  ;;  %v4528_v20 = vrot.slane %v4526_v19, 4  ;;  %v4550_v56 = vshrl.u32 %v4207_v36, 16 }
 0x381   : > { %4635 = vrot.lane.b32.xlu2 %v4452_v12, %s8091_s8  ;;  %v4531_v31 = vrot.slane %v4529_v6, 5  ;;  %v4537_v1 = vrot.slane %v4535_v52, 5  ;;  %v4490_v30 = vsel %vm8496_vm13, %v4485_v61, %v4489_v39  ;;  %v4509_v9 = vrot.slane %v4508_v22, 4  ;;  %v4212_v6 = vld [vmem:[#allocation2 + $0xbc] sm:$0x1] }
 0x382   : > { %v4518_v57 = vor.u32 %v4517_v44, %v4513_v5  ;;  %v4541_v14 = vrot.slane %v4539_v7, 4  ;;  %v4553_v59 = vshll.u32 %v4207_v36, 16  ;;  %v4500_v40 = vsel %vm8496_vm13, %v4495_v2, %v4499_v13 }
 0x383   : > { %v10907_v3 = vpop.permute.xlu2 %4068  ;;  %4637 = vrot.lane.b32.xlu0 %v4466_v34, %s8091_s8  ;;  %v4523_v16 = vrot.slane %v4521_v17, 5  ;;  %v4532_v42 = vor.u32 %v4531_v31, %v4528_v20  ;;  %v4545_v32 = vshll.u32 %v4206_v60, 16  ;;  %v4559_v54 = vshll.u32 %v4208_v15, 16  ;;  %v5831_v20 = vld [vmem:[#allocation2 + $0x4c] sm:$0xf] }
 0x384   : > { %v4563_v25 = vshrl.u32 %v4208_v15, 16  ;;  %v4519_v50 = vrot.slane %v4518_v57, 4  ;;  %v4542_v28 = vor.u32 %v4541_v14, %v4537_v1  ;;  %v4552_v53 = vrot.slane %v4550_v56, 4  ;;  %v5830_v60 = vld [vmem:[#allocation2 + $0x48] sm:$0xe] }
 0x385   : > { %4639 = vrot.lane.b32.xlu1 %v4476_v47, %s8091_s8  ;;  %v4555_v24 = vrot.slane %v4553_v59, 5  ;;  %v4514_v39 = vsel %vm8496_vm13, %v4509_v9, %v4513_v5  ;;  %v4574_v55 = vshrl.u32 %v4210_v27, 16  ;;  %v4577_v29 = vshll.u32 %v4210_v27, 16 }
 0x386   : > { %v4533_v10 = vrot.slane %v4532_v42, 4  ;;  %v4561_v62 = vrot.slane %v4559_v54, 5  ;;  %v4565_v8 = vrot.slane %v4563_v25, 4  ;;  %v4524_v12 = vsel %vm8496_vm13, %v4519_v50, %v4523_v16  ;;  %v5833_v25 = vld [vmem:[#allocation2 + $0x54] sm:$0xe] }
 0x387   : > { %v4543_v18 = vrot.slane %v4542_v28, 4  ;;  %v4547_v21 = vrot.slane %v4545_v32, 5  ;;  %v4556_v38 = vor.u32 %v4555_v24, %v4552_v53  ;;  %v4576_v49 = vrot.slane %v4574_v55, 4  ;;  %v5835_v53 = vld [vmem:[#allocation2 + $0x5c] sm:$0x1] }
 0x388   : > { %v4579_v26 = vrot.slane %v4577_v29, 5  ;;  %v4583_v33 = vshll.u32 %v4211_v46, 16  ;;  %v4587_v34 = vshrl.u32 %v4211_v46, 16  ;;  %v4538_v61 = vsel %vm8496_vm13, %v4533_v10, %v4537_v1  ;;  %v5854_v29 = vld [vmem:[#allocation2 + $0xa8] sm:$0xe] }
 0x389   : > { %4641 = vrot.lane.b32.xlu2 %v4490_v30, %s8091_s8  ;;  %v4566_v13 = vor.u32 %v4565_v8, %v4561_v62  ;;  %v4569_v11 = vshll.u32 %v4209_v63, 16  ;;  %v4548_v47 = vsel %vm8496_vm13, %v4543_v18, %v4547_v21  ;;  %v4557_v58 = vrot.slane %v4556_v38, 4  ;;  %v5832_v30 = vld [vmem:[#allocation2 + $0x50] sm:$0x1]  ;;  %v5855_v46 = vld [vmem:[#allocation2 + $0xac] sm:$0xf] }
 0x38a   : > { %v4580_v5 = vor.u32 %v4579_v26, %v4576_v49  ;;  %v4585_v51 = vrot.slane %v4583_v33, 5  ;;  %v4589_v2 = vrot.slane %v4587_v34, 4  ;;  %v4593_v7 = vshll.u32 %v4212_v6, 16  ;;  %v13469_v8 = vld [vmem:[#allocation33_spill] sm:$0xff]  ;;  %v5858_v33 = vld [vmem:[#allocation2 + $0xb8] sm:$0xf] }
 0x38b   : > { %v10918_v4 = vpop.permute.xlu2 %4053  ;;  %4643 = vrot.lane.b32.xlu0 %v4500_v40, %s8091_s8  ;;  %v4567_v52 = vrot.slane %v4566_v13, 4  ;;  %v4571_v36 = vrot.slane %v4569_v11, 5  ;;  %v4562_v22 = vsel %vm8496_vm13, %v4557_v58, %v4561_v62  ;;  %v5952_v15 = vrot.slane %v5831_v20, 5  ;;  %v5834_v40 = vld [vmem:[#allocation2 + $0x58] sm:$0xf] }
 0x38c   : > { %v4581_v44 = vrot.slane %v4580_v5, 4  ;;  %v4590_v17 = vor.u32 %v4589_v2, %v4585_v51  ;;  %v4595_v14 = vrot.slane %v4593_v7, 5  ;;  %v7722_v9 = vrot.slane %v5830_v60, 9  ;;  %v5856_v26 = vld [vmem:[#allocation2 + $0xb0] sm:$0x1] }
 0x38d   : > { %4645 = vrot.lane.b32.xlu1 %v4514_v39, %s8091_s8  ;;  %v4572_v31 = vsel %vm8496_vm13, %v4567_v52, %v4571_v36  ;;  %v5954_v27 = vrot.slane %v5952_v15, 4  ;;  %v5955_v42 = vrot.slane %v5832_v30, 5  ;;  %v5959_v28 = vrot.slane %v5834_v40, 5  ;;  %v5859_v6 = vld [vmem:[#allocation2 + $0xbc] sm:$0x1] }
 0x38e   : > { %v4586_v57 = vsel %vm8496_vm13, %v4581_v44, %v4585_v51  ;;  %v4591_v1 = vrot.slane %v4590_v17, 4  ;;  %v5953_v50 = vsel %vm10948_vm12, %v7722_v9, %v5952_v15  ;;  %v7723_v35 = vrot.slane %v5833_v25, 9  ;;  %v5819_v15 = vld [vmem:[#allocation2 + $0x1c] sm:$0xf] }
 0x38f   : > { %v5956_v24 = vsel %vm10948_vm12, %v5954_v27, %v5955_v42  ;;  %v4001_v39 = vpack.i.b16 %v10641_v41, %v10624_v0  ;;  %v5961_v10 = vrot.slane %v5959_v28, 4  ;;  %v5962_v62 = vrot.slane %v5835_v53, 5  ;;  %v5820_v27 = vld [vmem:[#allocation2 + $0x20] sm:$0x1] }
 0x390   : > { %v4596_v16 = vsel %vm8496_vm13, %v4591_v1, %v4595_v14  ;;  %v4025_v21 = vpack.i.b16 %v10633_v45, %v10576_v48  ;;  %v5960_v0 = vsel %vm10948_vm12, %v7723_v35, %v5959_v28  ;;  %v7730_v41 = vrot.slane %v5854_v29, 9  ;;  %v5857_v48 = vld [vmem:[#allocation2 + $0xb4] sm:$0xe]  ;;  %v5821_v28 = vld [vmem:[#allocation2 + $0x24] sm:$0xe] }
 0x391   : > { %4647 = vrot.lane.b32.xlu2 %v4524_v12, %s8091_s8  ;;  %v3953_v12 = vpack.i.b16 %v13469_v8, %v10567_v43  ;;  %v6008_v38 = vrot.slane %v5855_v46, 5  ;;  %v4048_v63 = vunpack.c.l.b16 %v4001_v39  ;;  %v5963_v34 = vsel %vm10948_vm12, %v5961_v10, %v5962_v62  ;;  %v13470_v43 = vld [vmem:[#allocation59_spill] sm:$0xff]  ;;  %v5822_v39 = vld [vmem:[#allocation2 + $0x28] sm:$0xf]  ;;  %v5825_v29 = vld [vmem:[#allocation2 + $0x34] sm:$0xf] }
 0x392   : > { %v4086_v11 = vunpack.c.l.b16 %v4025_v21  ;;  %v6011_v58 = vrot.slane %v5856_v26, 5  ;;  %v6015_v5 = vrot.slane %v5858_v33, 5  ;;  %v7731_v36 = vrot.slane %v5857_v48, 9 }
 0x393   : > { %4649 = vrot.lane.b32.xlu0 %v4538_v61, %s8091_s8  ;;  %v10930_v19 = vpop.permute.xlu2 %4101  ;;  %v3977_v61 = vpack.i.b16 %v13470_v43, %v10525_v37  ;;  %v4047_v13 = vunpack.c.l.b16 %v3953_v12  ;;  %v6009_v45 = vsel %vm10948_vm12, %v7730_v41, %v6008_v38  ;;  %v6018_v20 = vrot.slane %v5859_v6, 5  ;;  %v5823_v12 = vld [vmem:[#allocation2 + $0x2c] sm:$0x1]  ;;  %v5827_v6 = vld [vmem:[#allocation2 + $0x3c] sm:$0xe] }
 0x394   : > { %v6017_v7 = vrot.slane %v6015_v5, 4  ;;  %v6016_v14 = vsel %vm10948_vm12, %v7731_v36, %v6015_v5  ;;  %v5924_v25 = vrot.slane %v5819_v15, 5  ;;  %v7719_v62 = vrot.slane %v5821_v28, 9 }
 0x395   : > { %4651 = vrot.lane.b32.xlu1 %v4548_v47, %s8091_s8  ;;  %v6010_v47 = vrot.slane %v6008_v38, 4  ;;  %v4049_v51 = vpack.c.b16 %v4048_v63, %v4047_v13  ;;  %v4085_v52 = vunpack.c.l.b16 %v3977_v61  ;;  %v5931_v21 = vrot.slane %v5822_v39, 5  ;;  %v5826_v38 = vld [vmem:[#allocation2 + $0x38] sm:$0x1]  ;;  %v5828_v61 = vld [vmem:[#allocation2 + $0x40] sm:$0xf] }
 0x396   : > { %v6019_v30 = vsel %vm10948_vm12, %v6017_v7, %v6018_v20  ;;  %v5926_v10 = vrot.slane %v5924_v25, 4  ;;  %v5934_v26 = vrot.slane %v5823_v12, 5  ;;  %v5945_v36 = vrot.slane %v5828_v61, 5  ;;  %v5848_v12 = vld [vmem:[#allocation2 + $0x90] sm:$0xe] }
 0x397   : > { %v4125_v37 = vsel %vm1049_vm3, %v4049_v51, %v10918_v4  ;;  %v4087_v44 = vpack.c.b16 %v4086_v11, %v4085_v52  ;;  %v6012_v17 = vsel %vm10948_vm12, %v6010_v47, %v6011_v58  ;;  %v5818_v4 = vld [vmem:[#allocation2 + $0x18] sm:$0xe]  ;;  %v5933_v11 = vrot.slane %v5931_v21, 4  ;;  %v5851_v61 = vld [vmem:[#allocation2 + $0x9c] sm:$0xe] }
 0x398   : > { %v7718_v42 = vrot.slane %v5818_v4, 9  ;;  %v7721_v7 = vrot.slane %v5827_v6, 9  ;;  %v11070_v6 = vld [vmem:[#allocation2 + $0x4] sm:$0xf]  ;;  %vm615_vm13 = vcmask 7168  }
 0x399   : > { %4653 = vrot.lane.b32.xlu2 %v4562_v22, %s8091_s8  ;;  %v5935_v52 = vsel %vm10948_vm12, %v5933_v11, %v5934_v26  ;;  %v7728_v26 = vrot.slane %v5848_v12, 9  ;;  %v11115_v12 = vld [vmem:[#allocation2] sm:$0xe] }
 0x39a   : > { %v5925_v46 = vsel %vm10948_vm12, %v7718_v42, %v5924_v25  ;;  %v5946_v4 = vsel %vm10948_vm12, %v7721_v7, %v5945_v36  ;;  %v5845_v25 = vld [vmem:[#allocation2 + $0x84] sm:$0xe] }
 0x39b   : > { %4655 = vrot.lane.b32.xlu0 %v4572_v31, %s8091_s8  ;;  %v10941_v56 = vpop.permute.xlu2 %4083 }
 0x39d   : > { %v10943_v59 = vpop.permute.xlu0 %4073  ;;  %4657 = vrot.lane.b32.xlu1 %v4586_v57, %s8091_s8 }
 0x39f   : > { %v4097_v32 = vpop.permute.xlu1 %4096 }
 0x3a1   : > { %4659 = vrot.lane.b32.xlu2 %v4596_v16, %s8091_s8 }
 0x3a3   : > { %6044 = vrot.lane.b32.xlu0 %v5953_v50, %s8090_s20  ;;  %v10960_v55 = vpop.permute.xlu2 %4116 }
 0x3a5   : > { %v4059_v18 = vpop.permute.xlu0 %4058  ;;  %6046 = vrot.lane.b32.xlu1 %v5956_v24, %s8090_s20  ;;  %v5927_v24 = vrot.slane %v5820_v27, 5  ;;  %v5846_v27 = vld [vmem:[#allocation2 + $0x88] sm:$0xf] }
 0x3a6   : > { %v4127_v31 = vsel %vm1053_vm4, %v4125_v37, %v4059_v18 }
 0x3a7   : > { %v4079_v49 = vpop.permute.xlu1 %4078 }
 0x3a9   : > { %6048 = vrot.lane.b32.xlu2 %v5960_v0, %s8090_s20  ;;  %v5938_v0 = vrot.slane %v5825_v29, 5  ;;  %v5849_v29 = vld [vmem:[#allocation2 + $0x94] sm:$0xf] }
 0x3ab   : > { %6050 = vrot.lane.b32.xlu0 %v5963_v34, %s8090_s20  ;;  %v10977_v2 = vpop.permute.xlu2 %4599  ;;  %v5940_v48 = vrot.slane %v5938_v0, 4 }
 0x3ac   : > { %13471 = vst [vmem:[#allocation52_spill] sm:$0xff] %v10977_v2 }
 0x3ad   : > { %v4092_v22 = vpop.permute.xlu0 %4091  ;;  %6076 = vrot.lane.b32.xlu1 %v6009_v45, %s8090_s20  ;;  %v5941_v45 = vrot.slane %v5826_v38, 5  ;;  %v5815_v38 = vld [vmem:[#allocation2 + $0xc] sm:$0xe] }
 0x3ae   : > { %v4140_v57 = vsel %vm1049_vm3, %v4087_v44, %v4092_v22  ;;  %v5829_v44 = vld [vmem:[#allocation2 + $0x44] sm:$0x1] }
 0x3af   : > { %v4064_v60 = vpop.permute.xlu1 %4063  ;;  %v4142_v9 = vsel %vm1053_vm4, %v4140_v57, %v4097_v32  ;;  %v5947_v57 = vrot.slane %v5945_v36, 4  ;;  %v11075_v36 = vld [vmem:[#allocation2 + $0x20] sm:$0x1] }
 0x3b0   : > { %v4129_v1 = vsel %vm1056_vm5, %v4127_v31, %v4064_v60  ;;  %v4144_v32 = vsel %vm1056_vm5, %v4142_v9, %v10930_v19  ;;  %v5928_v19 = vsel %vm10948_vm12, %v5926_v10, %v5927_v24  ;;  %v5842_v31 = vld [vmem:[#allocation2 + $0x78] sm:$0xe]  ;;  %v5843_v60 = vld [vmem:[#allocation2 + $0x7c] sm:$0xf] }
 0x3b1   : > { %6078 = vrot.lane.b32.xlu2 %v6012_v17, %s8090_s20  ;;  %v4131_v40 = vsel %vm1059_vm6, %v4129_v1, %v10907_v3  ;;  %v5942_v17 = vsel %vm10948_vm12, %v5940_v48, %v5941_v45  ;;  %v5948_v1 = vrot.slane %v5829_v44, 5  ;;  %v7726_v15 = vrot.slane %v5842_v31, 9  ;;  %v11082_v31 = vld [vmem:[#allocation2 + $0x2c] sm:$0x1] }
 0x3b2   : > { %v4133_v53 = vsel %vm1062_vm7, %v4131_v40, %v10943_v59  ;;  %v5824_v59 = vld [vmem:[#allocation2 + $0x30] sm:$0xe]  ;;  %v5844_v40 = vld [vmem:[#allocation2 + $0x80] sm:$0x1]  ;;  %v7729_v44 = vrot.slane %v5851_v61, 9 }
 0x3b3   : > { %6080 = vrot.lane.b32.xlu0 %v6016_v14, %s8090_s20  ;;  %v10996_v16 = vpop.permute.xlu2 %4605  ;;  %v4135_v8 = vsel %vm1065_vm8, %v4133_v53, %v4079_v49  ;;  %v5932_v49 = vsel %vm10948_vm12, %v7719_v62, %v5931_v21  ;;  %v7720_v33 = vrot.slane %v5824_v59, 9  ;;  %v5949_v42 = vsel %vm10948_vm12, %v5947_v57, %v5948_v1  ;;  %v5813_v21 = vld [vmem:[#allocation2 + $0x4] sm:$0xf]  ;;  %v11086_v57 = vld [vmem:[#allocation2 + $0x10] sm:$0xf] }
 0x3b4   : > { %13472 = vst [vmem:[#allocation53_spill] sm:$0xff] %v10996_v16  ;;  %v4137_v63 = vsel %vm1068_vm9, %v4135_v8, %v10941_v56  ;;  %v5983_v53 = vrot.slane %v5844_v40, 5  ;;  %v5910_v48 = vrot.slane %v5813_v21, 5  ;;  %v11168_v61 = vld [vmem:[#allocation2 + $0x70] sm:$0xf] }
 0x3b5   : > { %v4107_v50 = vpop.permute.xlu0 %4106  ;;  %6082 = vrot.lane.b32.xlu1 %v6019_v30, %s8090_s20  ;;  %v4155_v47 = vunpack.c.l.b16 %v4137_v63  ;;  %v4157_v56 = vunpack.c.h.b16 %v4137_v63  ;;  %v5980_v30 = vrot.slane %v5843_v60, 5  ;;  %v5816_v63 = vld [vmem:[#allocation2 + $0x10] sm:$0xf]  ;;  %v11084_v60 = vld [vmem:[#allocation2 + $0x8] sm:$0x1] }
 0x3b6   : > { %v4146_v3 = vsel %vm1059_vm6, %v4144_v32, %v4107_v50  ;;  %v5987_v32 = vrot.slane %v5846_v27, 5  ;;  %v11209_v16 = vld [vmem:[#allocation2 + $0x6c] sm:$0xe] }
 0x3b7   : > { %v4112_v35 = vpop.permute.xlu1 %4111  ;;  %v5981_v50 = vsel %vm10948_vm12, %v7726_v15, %v5980_v30  ;;  %v5982_v28 = vrot.slane %v5980_v30, 4  ;;  %v5912_v30 = vrot.slane %v5910_v48, 4 }
 0x3b8   : > { %v4148_v18 = vsel %vm1062_vm7, %v4146_v3, %v4112_v35  ;;  %v5847_v3 = vld [vmem:[#allocation2 + $0x8c] sm:$0x1]  ;;  %v7727_v35 = vrot.slane %v5845_v25, 9  ;;  %v5989_v10 = vrot.slane %v5987_v32, 4 }
 0x3b9   : > { %6028 = vrot.lane.b32.xlu2 %v5925_v46, %s8090_s20  ;;  %v4150_v43 = vsel %vm1065_vm8, %v4148_v18, %v10960_v55  ;;  %v5939_v55 = vsel %vm10948_vm12, %v7720_v33, %v5938_v0  ;;  %v5984_v46 = vsel %vm10948_vm12, %v5982_v28, %v5983_v53  ;;  %v5990_v62 = vrot.slane %v5847_v3, 5  ;;  %v5850_v0 = vld [vmem:[#allocation2 + $0x98] sm:$0x1]  ;;  %v11061_v33 = vld [vmem:[#allocation2 + $0x8] sm:$0x1] }
 0x3ba   : > { %v5988_v59 = vsel %vm10948_vm12, %v7727_v35, %v5987_v32  ;;  %v5994_v18 = vrot.slane %v5849_v29, 5  ;;  %v5913_v40 = vrot.slane %v11061_v33, 5  ;;  %v11104_v32 = vld [vmem:[#allocation2 + $0xc] sm:$0xe]  ;;  %v11106_v3 = vld [vmem:[#allocation2 + $0x4] sm:$0xf] }
 0x3bb   : > { %6030 = vrot.lane.b32.xlu0 %v5928_v19, %s8090_s20  ;;  %v11012_v41 = vpop.permute.xlu2 %4611  ;;  %v5812_v19 = vld [vmem:[#allocation2] sm:$0xe]  ;;  %v11108_v35 = vld [vmem:[#allocation2 + $0x10] sm:$0xf]  ;;  %v6669_v29 = vrot.slane %v11075_v36, 5 }
 0x3bc   : > { %v7716_v11 = vrot.slane %v5812_v19, 9  ;;  %v5996_v45 = vrot.slane %v5994_v18, 4  ;;  %v5137_v36 = vld [vmem:[#allocation2 + $0x18] sm:$0xe] }
 0x3bd   : > { %v4122_v34 = vpop.permute.xlu0 %4121  ;;  %6032 = vrot.lane.b32.xlu1 %v5932_v49, %s8090_s20  ;;  %v5991_v49 = vsel %vm10948_vm12, %v5989_v10, %v5990_v62  ;;  %v6652_v62 = vrot.slane %v11070_v6, 5 }
 0x3be   : > { %v4152_v13 = vsel %vm1068_vm9, %v4150_v43, %v4122_v34  ;;  %v11063_v34 = vld [vmem:[#allocation2 + $0x1c] sm:$0xf]  ;;  %v11092_v15 = vsel %vm10948_vm12, %v7716_v11, %v5910_v48  ;;  %v11135_v48 = vld [vmem:[#allocation2 + $0x34] sm:$0xf] }
 0x3bf   : > { %v4156_v58 = vunpack.c.l.b16 %v4152_v13  ;;  %v4158_v5 = vunpack.c.h.b16 %v4152_v13  ;;  %v11022_v51 = vpop.permute.xlu1 %4597  ;;  %v5852_v13 = vld [vmem:[#allocation2 + $0xa0] sm:$0xf]  ;;  %v13151_v7 = vrot.slane %v11063_v34, 5 }
 0x3c0   : > { %13473 = vst [vmem:[#allocation16_spill] sm:$0xff] %v11022_v51 }
 0x3c1   : > { %v4159_v37 = vpack.c.b16 %v4156_v58, %v4155_v47  ;;  %v4160_v22 = vpack.c.b16 %v4158_v5, %v4157_v56  ;;  %6034 = vrot.lane.b32.xlu2 %v5935_v52, %s8090_s20  ;;  %v5997_v47 = vrot.slane %v5850_v0, 5  ;;  %v7717_v58 = vrot.slane %v5815_v38, 9  ;;  %v11068_v5 = vld [vmem:[#allocation2 + $0x28] sm:$0xf] }
 0x3c2   : > { %v5917_v56 = vrot.slane %v5816_v63, 5  ;;  %v13150_v27 = vrot.slane %v11068_v5, 5  ;;  %v6668_v38 = vrot.slane %v13151_v7, 4  ;;  %v5134_v63 = vld [vmem:[#allocation2 + $0xc] sm:$0xe] }
 0x3c3   : > { %4163 = vst [vmem:[#allocation3 + $0x40] sm:$0xff] %v4159_v37  ;;  %6036 = vrot.lane.b32.xlu0 %v5939_v55, %s8090_s20  ;;  %v11032_v20 = vpop.permute.xlu2 %4617  ;;  %v5817_v55 = vld [vmem:[#allocation2 + $0x14] sm:$0x1]  ;;  %v11077_v37 = vld [vmem:[#allocation2] sm:$0xe]  ;;  %v5998_v25 = vsel %vm10948_vm12, %v5996_v45, %v5997_v47 }
 0x3c4   : > { %4164 = vst [vmem:[#allocation3 + $0x48] sm:$0xff] %v4160_v22  ;;  %v5995_v22 = vsel %vm10948_vm12, %v7728_v26, %v5994_v18  ;;  %v5919_v28 = vrot.slane %v5917_v56, 4  ;;  %v5920_v53 = vrot.slane %v5817_v55, 5  ;;  %v7732_v10 = vrot.slane %v11077_v37, 9  ;;  %v11119_v18 = vld [vmem:[#allocation2 + $0x28] sm:$0xf] }
 0x3c5   : > { %v11034_v14 = vpop.permute.xlu0 %4601  ;;  %6038 = vrot.lane.b32.xlu1 %v5942_v17, %s8090_s20  ;;  %v6001_v17 = vrot.slane %v5852_v13, 5  ;;  %v6675_v33 = vrot.slane %v13150_v27, 4  ;;  %v5146_v45 = vld [vmem:[#allocation2 + $0x3c] sm:$0xe]  ;;  %v11137_v47 = vld [vmem:[#allocation2 + $0x40] sm:$0xf] }
 0x3c6   : > { %v11145_v6 = vsel %vm10948_vm12, %v5919_v28, %v5920_v53  ;;  %v5149_v37 = vld [vmem:[#allocation2 + $0x48] sm:$0xe]  ;;  %v11162_v53 = vsel %vm10948_vm12, %v6668_v38, %v6669_v29  ;;  %v7705_v11 = vrot.slane %v5146_v45, 9  ;;  %v5161_v45 = vld [vmem:[#allocation2 + $0x78] sm:$0xe] }
 0x3c7   : > { %v11039_v9 = vpop.permute.xlu1 %4603  ;;  %v6002_v19 = vsel %vm10948_vm12, %v7729_v44, %v6001_v17  ;;  %v6003_v21 = vrot.slane %v6001_v17, 4  ;;  %v11150_v17 = vrot.slane %v6652_v62, 4  ;;  %13478 = vst [vmem:[#allocation21_spill] sm:$0xff] %v11162_v53  ;;  %v11187_v29 = vld [vmem:[#allocation2 + $0x94] sm:$0xf] }
 0x3c8   : > { %13483 = vst [vmem:[#allocation19_spill] sm:$0xff] %v11187_v29  ;;  %v5173_v38 = vld [vmem:[#allocation2 + $0xa8] sm:$0xe]  ;;  %v11189_v27 = vld [vmem:[#allocation2 + $0xac] sm:$0xf] }
 0x3c9   : > { %6040 = vrot.lane.b32.xlu2 %v5946_v4, %s8090_s20  ;;  %v5853_v4 = vld [vmem:[#allocation2 + $0xa4] sm:$0x1]  ;;  %13484 = vst [vmem:[#allocation18_spill] sm:$0xff] %v11189_v27  ;;  %v5840_v53 = vld [vmem:[#allocation2 + $0x70] sm:$0xf] }
 0x3ca   : > { %v6004_v0 = vrot.slane %v5853_v4, 5  ;;  %v11154_v4 = vld [vmem:[#allocation2 + $0x64] sm:$0xf] }
 0x3cb   : > { %6042 = vrot.lane.b32.xlu0 %v5949_v42, %s8090_s20  ;;  %v11047_v24 = vpop.permute.xlu2 %4623  ;;  %v11096_v42 = vld [vmem:[#allocation2 + $0x14] sm:$0x1] }
 0x3cc   : > { %v6005_v28 = vsel %vm10948_vm12, %v6003_v21, %v6004_v0  ;;  %v11171_v0 = vld [vmem:[#allocation2 + $0x7c] sm:$0xf] }
 0x3cd   : > { %v11049_v39 = vpop.permute.xlu0 %4607  ;;  %6060 = vrot.lane.b32.xlu1 %v5981_v50, %s8090_s20  ;;  %v11102_v50 = vsel %vm10948_vm12, %v7717_v58, %v5917_v56  ;;  %v11139_v58 = vld [vmem:[#allocation2 + $0x4c] sm:$0xf]  ;;  %v5914_v56 = vsel %vm10948_vm12, %v5912_v30, %v5913_v40  ;;  %v7701_v40 = vrot.slane %v5134_v63, 9  ;;  %v7702_v63 = vrot.slane %v5137_v36, 9  ;;  %13480 = vst [vmem:[#allocation20_spill] sm:$0xff] %v11171_v0 }
 0x3ce   : > { %v5167_v36 = vld [vmem:[#allocation2 + $0x90] sm:$0xe]  ;;  %v11185_v30 = vld [vmem:[#allocation2 + $0x60] sm:$0xe] }
 0x3cf   : > { %v11054_v8 = vpop.permute.xlu1 %4609 }
 0x3d0   : > { %13474 = vst [vmem:[#allocation22_spill] sm:$0xff] %v11054_v8  ;;  %v5837_v8 = vld [vmem:[#allocation2 + $0x64] sm:$0xf] }
 0x3d1   : > { %6062 = vrot.lane.b32.xlu2 %v5984_v46, %s8090_s20  ;;  %v6676_v46 = vrot.slane %v11082_v31, 5  ;;  %v11152_v31 = vld [vmem:[#allocation2 + $0x58] sm:$0xf] }
 0x3d2   : > { %13477 = vst [vmem:[#allocation15_spill] sm:$0xff] %v11152_v31 }
 0x3d3   : > { %6064 = vrot.lane.b32.xlu0 %v5988_v59, %s8090_s20  ;;  %v11066_v43 = vpop.permute.xlu2 %4629  ;;  %v11117_v59 = vld [vmem:[#allocation2 + $0x1c] sm:$0xf]  ;;  %v11179_v7 = vsel %vm10948_vm12, %v6675_v33, %v6676_v46  ;;  %v13491_v33 = vrot.slane %v11139_v58, 5 }
 0x3d4   : > { %13481 = vst [vmem:[#allocation28_spill] sm:$0xff] %v11179_v7 }
 0x3d5   : > { %v11072_v52 = vpop.permute.xlu0 %4613  ;;  %6066 = vrot.lane.b32.xlu1 %v5991_v49, %s8090_s20  ;;  %v11125_v49 = vld [vmem:[#allocation2 + $0x30] sm:$0xe] }
 0x3d6   : > { %13475 = vst [vmem:[#allocation17_spill] sm:$0xff] %v11072_v52  ;;  %v7704_v13 = vrot.slane %v11125_v49, 9  ;;  %v11183_v49 = vsel %vm10948_vm12, %v7732_v10, %v6652_v62  ;;  %v13486_v10 = vrot.slane %v11108_v35, 5  ;;  %v13495_v52 = vld [vmem:[#allocation41_spill] sm:$0xff] }
 0x3d7   : > { %v11088_v1 = vpop.permute.xlu1 %4615  ;;  %13482 = vst [vmem:[#allocation26_spill] sm:$0xff] %v11183_v49  ;;  %v5836_v49 = vld [vmem:[#allocation2 + $0x60] sm:$0xe] }
 0x3d8   : > { %13476 = vst [vmem:[#allocation27_spill] sm:$0xff] %v11088_v1  ;;  %v11201_v62 = vsel %vm10948_vm12, %v7701_v40, %v13486_v10  ;;  %v13489_v40 = vrot.slane %v11135_v48, 5  ;;  %v7724_v51 = vrot.slane %v5836_v49, 9  ;;  %v5838_v1 = vld [vmem:[#allocation2 + $0x68] sm:$0x1] }
 0x3d9   : > { %6068 = vrot.lane.b32.xlu2 %v5995_v22, %s8090_s20  ;;  %v7700_v22 = vrot.slane %v11115_v12, 9  ;;  %v5140_v12 = vld [vmem:[#allocation2 + $0x24] sm:$0xe] }
 0x3da   : > { %v11219_v10 = vsel %vm10948_vm12, %v7704_v13, %v13489_v40  ;;  %v7710_v13 = vrot.slane %v5161_v45, 9  ;;  %v7714_v45 = vrot.slane %v5173_v38, 9  ;;  %v5966_v40 = vrot.slane %v5837_v8, 5 }
 0x3db   : > { %6070 = vrot.lane.b32.xlu0 %v5998_v25, %s8090_s20  ;;  %v11128_v26 = vpop.permute.xlu2 %4635  ;;  %v7706_v25 = vrot.slane %v5149_v37, 9  ;;  %v7703_v37 = vrot.slane %v5140_v12, 9  ;;  %v13490_v12 = vrot.slane %v11137_v47, 5  ;;  %v13496_v38 = vrot.slane %v11171_v0, 5 }
 0x3dd   : > { %v4620_v44 = vpop.permute.xlu0 %4619  ;;  %6072 = vrot.lane.b32.xlu1 %v6002_v19, %s8090_s20  ;;  %v5152_v19 = vld [vmem:[#allocation2 + $0x54] sm:$0xe]  ;;  %v5275_v2 = vsel %vm10948_vm12, %v7706_v25, %v13491_v33  ;;  %v7712_v33 = vrot.slane %v5167_v36, 9  ;;  %v5303_v8 = vsel %vm10948_vm12, %v7710_v13, %v13496_v38  ;;  %v5973_v38 = vrot.slane %v5840_v53, 5 }
 0x3de   : > { %v4833_v21 = vrot.slane %v4620_v44, 4  ;;  %v7707_v44 = vrot.slane %v5152_v19, 9  ;;  %v5176_v36 = vld [vmem:[#allocation2 + $0xb4] sm:$0xe]  ;;  %v5380_v49 = vrot.slane %v5275_v2, 4 }
 0x3df   : > { %v11166_v55 = vpop.permute.xlu1 %4621 }
 0x3e0   : > { %13479 = vst [vmem:[#allocation25_spill] sm:$0xff] %v11166_v55 }
 0x3e1   : > { %6074 = vrot.lane.b32.xlu2 %v6005_v28, %s8090_s20  ;;  %v13485_v28 = vrot.slane %v11106_v3, 5 }
 0x3e3   : > { %v11195_v46 = vsel %vm10948_vm12, %v7700_v22, %v13485_v28  ;;  %6020 = vrot.lane.b32.xlu0 %v11092_v15, %s8090_s20  ;;  %v11207_v19 = vpop.permute.xlu2 %4641  ;;  %v13488_v22 = vrot.slane %v11117_v59, 5  ;;  %v11225_v15 = vsel %vm10948_vm12, %v7705_v11, %v13490_v12  ;;  %v11240_v11 = vld [vmem:[#allocation2 + $0x88] sm:$0xf]  ;;  %v13493_v12 = vrot.slane %v11119_v18, 5 }
 0x3e4   : > { %13487 = vst [vmem:[#allocation31_spill] sm:$0xff] %v11207_v19  ;;  %v5402_v53 = vrot.slane %v11225_v15, 4  ;;  %v11295_v15 = vld [vmem:[#allocation2 + $0xa0] sm:$0xf] }
 0x3e5   : > { %v5247_v28 = vsel %vm10948_vm12, %v7702_v63, %v13488_v22  ;;  %v4834_v63 = vsel %vm653_vm0, %v4833_v21, %v11039_v9  ;;  %v11233_v22 = vld [vmem:[#allocation2 + $0x84] sm:$0xe]  ;;  %v11237_v55 = vpop.permute.xlu0 %4625  ;;  %6022 = vrot.lane.b32.xlu1 %v5914_v56, %s8090_s20  ;;  %v5254_v25 = vsel %vm10948_vm12, %v7703_v37, %v13493_v12  ;;  %v13494_v9 = vrot.slane %v11152_v31, 5  ;;  %v11277_v56 = vld [vmem:[#allocation2 + $0xb8] sm:$0xf] }
 0x3e6   : > { %13492 = vst [vmem:[#allocation24_spill] sm:$0xff] %v11237_v55  ;;  %v7708_v55 = vrot.slane %v11185_v30, 9  ;;  %v4838_v7 = vperm.slane %v4834_v63, %v13495_v52  ;;  %v7711_v37 = vrot.slane %v11233_v22, 9  ;;  %v13153_v12 = vrot.slane %v11187_v29, 5  ;;  %v5841_v29 = vld [vmem:[#allocation2 + $0x74] sm:$0x1] }
 0x3e7   : > { %v5282_v21 = vsel %vm10948_vm12, %v7707_v44, %v13494_v9  ;;  %v4628_v19 = vpop.permute.xlu1 %4627  ;;  %v13155_v31 = vrot.slane %v11189_v27, 5  ;;  %v5969_v63 = vrot.slane %v5838_v1, 5  ;;  %v5839_v9 = vld [vmem:[#allocation2 + $0x6c] sm:$0xe]  ;;  %v5968_v1 = vrot.slane %v5966_v40, 4 }
 0x3e8   : > { %v4839_v44 = vrot.slane %v4628_v19, 4  ;;  %v11267_v22 = vsel %vm10948_vm12, %v7712_v33, %v13153_v12  ;;  %v5408_v13 = vrot.slane %v5282_v21, 4  ;;  %v4847_v30 = vrot.slane %v4838_v7, 4 }
 0x3e9   : > { %6024 = vrot.lane.b32.xlu2 %v11102_v50, %s8090_s20  ;;  %v5331_v19 = vsel %vm10948_vm12, %v7714_v45, %v13155_v31  ;;  %v5967_v50 = vsel %vm10948_vm12, %v7724_v51, %v5966_v40  ;;  %v7715_v45 = vrot.slane %v5176_v36, 9  ;;  %v5374_v21 = vrot.slane %v11219_v10, 4 }
 0x3ea   : > { %v4840_v2 = vsel %vm653_vm0, %v4839_v44, %v11012_v41  ;;  %v7725_v41 = vrot.slane %v5839_v9, 9  ;;  %v5170_v44 = vld [vmem:[#allocation2 + $0x9c] sm:$0xe]  ;;  %v5381_v51 = vsel %vm653_vm0, %v5380_v49, %v5247_v28  ;;  %v5409_v0 = vsel %vm653_vm0, %v5408_v13, %v5254_v25 }
 0x3eb   : > { %v4844_v33 = vperm.slane %v4840_v2, %v13495_v52  ;;  %6026 = vrot.lane.b32.xlu0 %v11145_v6, %s8090_s20  ;;  %v4648_v12 = vpop.permute.xlu2 %4647  ;;  %v6573_v6 = vld [vmem:[#allocation2 + $0x4c] sm:$0xf]  ;;  %v5436_v36 = vrot.slane %v5331_v19, 4  ;;  %v5975_v28 = vrot.slane %v5973_v38, 4  ;;  %v5976_v49 = vrot.slane %v5841_v29, 5 }
 0x3ec   : > { %v4861_v31 = vrot.slane %v4648_v12, 4  ;;  %v5970_v12 = vsel %vm10948_vm12, %v5968_v1, %v5969_v63  ;;  %v13159_v25 = vrot.slane %v11277_v56, 5  ;;  %v11304_v19 = vperm.slane %v5381_v51, %v13495_v52 }
 0x3ed   : > { %v4845_v40 = vrot.slane %v4844_v33, 4  ;;  %v11286_v27 = vsel %vm653_vm0, %v4844_v33, %v4847_v30  ;;  %v4632_v2 = vpop.permute.xlu0 %4631  ;;  %6052 = vrot.lane.b32.xlu1 %v5967_v50, %s8090_s20  ;;  %v6572_v50 = vld [vmem:[#allocation2 + $0x48] sm:$0xe]  ;;  %v7713_v33 = vrot.slane %v5170_v44, 9  ;;  %v6694_v63 = vrot.slane %v6573_v6, 5 }
 0x3ee   : > { %v11291_v10 = vsel %vm653_vm0, %v4861_v31, %v4632_v2  ;;  %13497 = vst [vmem:[#allocation29_spill] sm:$0xff] %v11304_v19  ;;  %v5974_v31 = vsel %vm10948_vm12, %v7725_v41, %v5973_v38  ;;  %v5375_v29 = vsel %vm653_vm0, %v5374_v21, %v11195_v46  ;;  %v11311_v13 = vperm.slane %v5409_v0, %v13495_v52  ;;  %v6576_v6 = vld [vmem:[#allocation2 + $0x58] sm:$0xf] }
 0x3ef   : > { %v11298_v30 = vsel %vm653_vm0, %v4845_v40, %v4838_v7  ;;  %v11300_v9 = vpop.permute.xlu1 %4633  ;;  %v6574_v7 = vld [vmem:[#allocation2 + $0x50] sm:$0x1]  ;;  %v13499_v1 = vrot.slane %v11154_v4, 5  ;;  %v13500_v51 = vrot.slane %v11240_v11, 5  ;;  %v13158_v41 = vrot.slane %v11295_v15, 5 }
 0x3f0   : > { %13498 = vst [vmem:[#allocation61_spill] sm:$0xff] %v11311_v13  ;;  %v5338_v0 = vsel %vm10948_vm12, %v7715_v45, %v13159_v25  ;;  %v5977_v46 = vsel %vm10948_vm12, %v5975_v28, %v5976_v49  ;;  %v7738_v21 = vrot.slane %v6572_v50, 9  ;;  %v5403_v40 = vsel %vm653_vm0, %v5402_v53, %v11201_v62 }
 0x3f1   : > { %6054 = vrot.lane.b32.xlu2 %v5970_v12, %s8090_s20  ;;  %v5289_v44 = vsel %vm10948_vm12, %v7708_v55, %v13499_v1  ;;  %v5310_v38 = vsel %vm10948_vm12, %v7711_v37, %v13500_v51  ;;  %v5437_v55 = vsel %vm653_vm0, %v5436_v36, %v5303_v8  ;;  %v6575_v37 = vld [vmem:[#allocation2 + $0x54] sm:$0xe]  ;;  %v5324_v12 = vsel %vm10948_vm12, %v7713_v33, %v13158_v41  ;;  %v6560_v36 = vld [vmem:[#allocation2 + $0x18] sm:$0xe] }
 0x3f2   : > { %v11338_v45 = vperm.slane %v5375_v29, %v13495_v52  ;;  %v5386_v28 = vrot.slane %v11304_v19, 4  ;;  %v5430_v49 = vrot.slane %v11267_v22, 4  ;;  %v6696_v53 = vrot.slane %v6694_v63, 4  ;;  %v6597_v19 = vld [vmem:[#allocation2 + $0xac] sm:$0xf] }
 0x3f3   : > { %6056 = vrot.lane.b32.xlu0 %v5974_v31, %s8090_s20  ;;  %v4654_v2 = vpop.permute.xlu2 %4653  ;;  %v6697_v8 = vrot.slane %v6574_v7, 5  ;;  %v5414_v50 = vrot.slane %v11311_v13, 4  ;;  %v4721_v31 = vrot.slane %v11032_v20, 4  ;;  %v11346_v33 = vperm.slane %v5403_v40, %v13495_v52  ;;  %v6577_v20 = vld [vmem:[#allocation2 + $0x5c] sm:$0x1] }
 0x3f4   : > { %13501 = vst [vmem:[#allocation63_spill] sm:$0xff] %v11338_v45  ;;  %v4755_v62 = vrot.slane %v4654_v2, 4  ;;  %v11349_v29 = vperm.slane %v5437_v55, %v13495_v52  ;;  %v5464_v51 = vrot.slane %v5338_v0, 4  ;;  %v6695_v7 = vsel %vm10948_vm12, %v7738_v21, %v6694_v63 }
 0x3f5   : > { %v4638_v1 = vpop.permute.xlu0 %4637  ;;  %6058 = vrot.lane.b32.xlu1 %v5977_v46, %s8090_s20  ;;  %13502 = vst [vmem:[#allocation56_spill] sm:$0xff] %v11346_v33  ;;  %v7739_v2 = vrot.slane %v6575_v37, 9  ;;  %v6701_v41 = vrot.slane %v6576_v6, 5  ;;  %v7734_v13 = vrot.slane %v6560_v36, 9  ;;  %v13504_v46 = vrot.slane %v11086_v57, 5  ;;  %s8027_s20 = scalar_lea.hbm %s8026_s6, 32 }
 0x3f6   : > { %13503 = vst [vmem:[#allocation57_spill] sm:$0xff] %v11349_v29  ;;  %v4756_v22 = vsel %vm653_vm0, %v4755_v62, %v4638_v1  ;;  %v13505_v40 = vrot.slane %v11104_v32, 9  ;;  %v13507_v63 = vrot.slane %v11168_v61, 5  ;;  %v13508_v21 = vrot.slane %v11209_v16, 9  ;;  %v6563_v36 = vld [vmem:[#allocation2 + $0x24] sm:$0xe]  ;;  %p8028_p1 = scmp.ne.s32.totalorder %s8026_s6, %s8027_s20 }
 0x3f7   : > { %v11354_v25 = vpop.permute.xlu1 %4639  ;;  %v13506_v0 = vmov %v13504_v46  ;;  %v6698_v6 = vsel %vm10948_vm12, %v6696_v53, %v6697_v8  ;;  %v5387_v32 = vsel %vm653_vm0, %v5386_v28, %v11338_v45  ;;  %v5415_v1 = vsel %vm653_vm0, %v5414_v50, %v11346_v33  ;;  %v6596_v16 = vld [vmem:[#allocation2 + $0xa8] sm:$0xe]  ;;  %v6568_v45 = vld [vmem:[#allocation2 + $0x38] sm:$0x1] }
 0x3f8   : > { %v11362_v55 = vsel %vm10948_vm12, %v13505_v40, %v13504_v46  ;;  %v6661_v62 = vrot.slane %v13506_v0, 4  ;;  %v5296_v37 = vsel %vm10948_vm12, %v13508_v21, %v13507_v63  ;;  %v5431_v57 = vsel %vm653_vm0, %v5430_v49, %v5289_v44  ;;  %v6598_v49 = vld [vmem:[#allocation2 + $0xb0] sm:$0x1]  ;;  %v13533_v33 = vld [vmem:[#allocation18_spill] sm:$0xff]  ;;  %p8029_p4 = pnand %p8028_p1, %p8186_p7 }
 0x3f9   : > { %v4722_v46 = vsel %vm653_vm0, %v4721_v31, %v11034_v14  ;;  %6786 = vrot.lane.b32.xlu2 %v6695_v7, %s8091_s8  ;;  %v5442_v40 = vrot.slane %v11349_v29, 4  ;;  %v5458_v0 = vrot.slane %v5324_v12, 4  ;;  %v5465_v53 = vsel %vm653_vm0, %v5464_v51, %v5310_v38 }
 0x3fa   : > { %v6702_v8 = vsel %vm10948_vm12, %v7739_v2, %v6701_v41  ;;  %v6703_v28 = vrot.slane %v6701_v41, 4  ;;  %v6704_v63 = vrot.slane %v6577_v20, 5  ;;  %v6750_v21 = vrot.slane %v6597_v19, 5  ;;  %v6600_v20 = vld [vmem:[#allocation2 + $0xb8] sm:$0xf]  ;;  %p8030_p8 = pneg %p8029_p4 }
 0x3fb   : > { %6788 = vrot.lane.b32.xlu0 %v6698_v6, %s8091_s8  ;;  %v4660_v44 = vpop.permute.xlu2 %4659  ;;  %v7735_v50 = vrot.slane %v6563_v36, 9  ;;  %v13509_v14 = vrot.slane %v11084_v60, 5  ;;  %v11395_v38 = vperm.slane %v5415_v1, %v8725_v23  ;;  %v11398_v12 = vperm.slane %v5431_v57, %v13495_v52 }
 0x3fc   : > { %v4895_v41 = vrot.slane %v4660_v44, 4  ;;  %v7746_v19 = vrot.slane %v6596_v16, 9  ;;  %v13511_v51 = vrot.slane %v11096_v42, 5  ;;  %v11407_v60 = vperm.slane %v5465_v53, %v13495_v52 }
 0x3fd   : > { %v11392_v31 = vsel %vm10948_vm12, %v11150_v17, %v13509_v14  ;;  %13510 = vst [vmem:[#allocation49_spill] sm:$0xff] %v11395_v38  ;;  %v11410_v17 = vperm.slane %v4722_v46, %v13495_v52  ;;  %v4644_v2 = vpop.permute.xlu0 %4643  ;;  %6790 = vrot.lane.b32.xlu1 %v6702_v8, %s8091_s8  ;;  %v11414_v6 = vperm.slane %v5387_v32, %v8725_v23  ;;  %v6752_v57 = vrot.slane %v6750_v21, 4  ;;  %v6599_v8 = vld [vmem:[#allocation2 + $0xb4] sm:$0xe] }
 0x3fe   : > { %v11404_v7 = vsel %vm10948_vm12, %v6661_v62, %v13511_v51  ;;  %13513 = vst [vmem:[#allocation50_spill] sm:$0xff] %v11407_v60  ;;  %v5443_v42 = vsel %vm653_vm0, %v5442_v40, %v11398_v12  ;;  %v5459_v36 = vsel %vm653_vm0, %v5458_v0, %v5296_v37  ;;  %v4896_v62 = vsel %vm653_vm0, %v4895_v41, %v4644_v2 }
 0x3ff   : > { %13512 = vst [vmem:[#allocation47_spill] sm:$0xff] %v11404_v7  ;;  %v6705_v1 = vsel %vm10948_vm12, %v6703_v28, %v6704_v63  ;;  %v6753_v46 = vrot.slane %v6598_v49, 5  ;;  %v4760_v16 = vperm.slane %v4756_v22, %v13495_v52  ;;  %v4646_v53 = vpop.permute.xlu1 %4645  ;;  %v13515_v44 = vrot.slane %v11063_v34, 5  ;;  %v5133_v34 = vld [vmem:[#allocation2 + $0x8] sm:$0x1] }
 0x400   : > { %13514 = vst [vmem:[#allocation48_spill] sm:$0xff] %v11414_v6  ;;  %v13516_v40 = vrot.slane %v11068_v5, 5  ;;  %v5602_v0 = vshrl.u32 %v11395_v38, 16  ;;  %v4749_v28 = vrot.slane %v4646_v53, 4  ;;  %v6751_v22 = vsel %vm10948_vm12, %v7746_v19, %v6750_v21 }
 0x401   : > { %v11427_v32 = vsel %vm10948_vm12, %v7734_v13, %v13515_v44  ;;  %v6757_v63 = vrot.slane %v6600_v20, 5  ;;  %v5470_v49 = vrot.slane %v11407_v60, 4  ;;  %6792 = vrot.lane.b32.xlu2 %v6705_v1, %s8091_s8  ;;  %v6601_v13 = vld [vmem:[#allocation2 + $0xbc] sm:$0x1]  ;;  %v11442_v5 = vperm.slane %v5443_v42, %v8725_v23  ;;  %v5136_v20 = vld [vmem:[#allocation2 + $0x14] sm:$0x1] }
 0x402   : > { %v11433_v37 = vsel %vm10948_vm12, %v7735_v50, %v13516_v40  ;;  %v11445_v50 = vperm.slane %v5459_v36, %v13495_v52  ;;  %v5601_v41 = vshrl.u32 %v11414_v6, 16  ;;  %v4811_v51 = vrot.slane %v11047_v24, 4 }
 0x403   : > { %13517 = vst [vmem:[#allocation71_spill] sm:$0xff] %v11442_v5  ;;  %v4750_v21 = vsel %vm653_vm0, %v4749_v28, %v11066_v43  ;;  %v6754_v19 = vsel %vm10948_vm12, %v6752_v57, %v6753_v46  ;;  %v7747_v2 = vrot.slane %v6599_v8, 9  ;;  %v4761_v1 = vrot.slane %v4760_v16, 4  ;;  %6818 = vrot.lane.b32.xlu0 %v6751_v22, %s8091_s8  ;;  %v11455_v42 = vpop.permute.xlu2 %6048  ;;  %v5139_v57 = vld [vmem:[#allocation2 + $0x20] sm:$0x1] }
 0x404   : > { %v4754_v53 = vperm.slane %v4750_v21, %v13495_v52  ;;  %v13518_v36 = vrot.slane %v11106_v3, 5  ;;  %v5235_v40 = vrot.slane %v5133_v34, 5  ;;  %v6759_v24 = vrot.slane %v6757_v63, 4  ;;  %v5142_v22 = vld [vmem:[#allocation2 + $0x2c] sm:$0x1] }
 0x405   : > { %v6760_v14 = vrot.slane %v6601_v13, 5  ;;  %v5471_v43 = vsel %vm653_vm0, %v5470_v49, %v11445_v50  ;;  %v11461_v28 = vpack.i.b16 %v5602_v0, %v5601_v41  ;;  %v4650_v21 = vpop.permute.xlu0 %4649  ;;  %6820 = vrot.lane.b32.xlu1 %v6754_v19, %s8091_s8  ;;  %v13519_v3 = vrot.slane %v11108_v35, 5  ;;  %v5151_v35 = vld [vmem:[#allocation2 + $0x50] sm:$0x1]  ;;  %v5178_v49 = vld [vmem:[#allocation2 + $0xbc] sm:$0x1] }
 0x406   : > { %v5234_v44 = vrot.slane %v13518_v36, 4  ;;  %v11464_v46 = vsel %vm653_vm0, %v4761_v1, %v4754_v53  ;;  %v4763_v8 = vrot.slane %v4754_v53, 4  ;;  %v5242_v34 = vrot.slane %v5136_v20, 5 }
 0x407   : > { %v5241_v36 = vrot.slane %v13519_v3, 4  ;;  %v4812_v13 = vsel %vm653_vm0, %v4811_v51, %v11049_v39  ;;  %v4777_v60 = vrot.slane %v4650_v21, 4  ;;  %v6758_v0 = vsel %vm10948_vm12, %v7747_v2, %v6757_v63  ;;  %v4652_v19 = vpop.permute.xlu1 %4651 }
 0x408   : > { %v4900_v41 = vperm.slane %v4896_v62, %v13495_v52  ;;  %v11476_v1 = vsel %vm653_vm0, %v4760_v16, %v4763_v8  ;;  %v11479_v53 = vperm.slane %v5471_v43, %v8725_v23  ;;  %v5249_v20 = vrot.slane %v5139_v57, 5  ;;  %v11489_v62 = vld [vmem:[#allocation2 + $0x38] sm:$0x1] }
 0x409   : > { %v4778_v39 = vsel %vm653_vm0, %v4777_v60, %v11300_v9  ;;  %v4889_v51 = vrot.slane %v4652_v19, 4  ;;  %v6761_v63 = vsel %vm10948_vm12, %v6759_v24, %v6760_v14  ;;  %v5256_v2 = vrot.slane %v5142_v22, 5  ;;  %6822 = vrot.lane.b32.xlu2 %v6758_v0, %s8091_s8  ;;  %v11503_v24 = vld [vmem:[#allocation2 + $0x44] sm:$0x1]  ;;  %v13530_v19 = vld [vmem:[#allocation20_spill] sm:$0xff] }
 0x40a   : > { %13520 = vst [vmem:[#allocation78_spill] sm:$0xff] %v11479_v53  ;;  %v11486_v21 = vperm.slane %v4812_v13, %v13495_v52  ;;  %v11493_v16 = vsel %vm10948_vm12, %v5234_v44, %v5235_v40  ;;  %v11497_v43 = vsel %vm10948_vm12, %v5241_v36, %v5242_v34  ;;  %v13521_v9 = vrot.slane %v11117_v59, 5  ;;  %v5154_v59 = vld [vmem:[#allocation2 + $0x5c] sm:$0x1] }
 0x40b   : > { %v4890_v14 = vsel %vm653_vm0, %v4889_v51, %v11128_v26  ;;  %v13522_v57 = vrot.slane %v11119_v18, 5  ;;  %v13523_v22 = vrot.slane %v11139_v58, 5  ;;  %v5277_v44 = vrot.slane %v5151_v35, 5  ;;  %6824 = vrot.lane.b32.xlu0 %v6761_v63, %s8091_s8  ;;  %v11511_v36 = vpop.permute.xlu2 %6078  ;;  %v6566_v58 = vld [vmem:[#allocation2 + $0x30] sm:$0xe] }
 0x40c   : > { %v5248_v60 = vrot.slane %v13521_v9, 4  ;;  %v4901_v40 = vrot.slane %v4900_v41, 4  ;;  %v4894_v13 = vperm.slane %v4890_v14, %v13495_v52  ;;  %v13524_v34 = vrot.slane %v11135_v48, 5 }
 0x40d   : > { %v5255_v8 = vrot.slane %v13522_v57, 4  ;;  %v5276_v3 = vrot.slane %v13523_v22, 4  ;;  %v13525_v35 = vrot.slane %v11137_v47, 5  ;;  %v4656_v9 = vpop.permute.xlu0 %4655  ;;  %6770 = vrot.lane.b32.xlu1 %v11427_v32, %s8091_s8  ;;  %v13526_v22 = vld [vmem:[#allocation15_spill] sm:$0xff]  ;;  %v13529_v14 = vrot.slane %v11154_v4, 5 }
 0x40e   : > { %v11515_v26 = vsel %vm10948_vm12, %v5248_v60, %v5249_v20  ;;  %v11519_v18 = vrot.slane %v13524_v34, 4  ;;  %v4866_v20 = vperm.slane %v11291_v10, %v13495_v52  ;;  %v11534_v63 = vsel %vm653_vm0, %v4901_v40, %v4894_v13  ;;  %v6567_v60 = vld [vmem:[#allocation2 + $0x34] sm:$0xf] }
 0x40f   : > { %v11524_v0 = vsel %vm10948_vm12, %v5255_v8, %v5256_v2  ;;  %v11529_v51 = vrot.slane %v13525_v35, 4  ;;  %v4903_v48 = vrot.slane %v4894_v13, 4  ;;  %v5163_v2 = vld [vmem:[#allocation2 + $0x80] sm:$0x1]  ;;  %v4867_v57 = vrot.slane %v4656_v9, 4  ;;  %v4658_v32 = vpop.permute.xlu1 %4657 }
 0x410   : > { %v5175_v8 = vld [vmem:[#allocation2 + $0xb0] sm:$0x1]  ;;  %v11541_v47 = vsel %vm10948_vm12, %v5276_v3, %v5277_v44  ;;  %v13527_v10 = vrot.slane %v13526_v22, 5  ;;  %v5284_v40 = vrot.slane %v5154_v59, 5  ;;  %v4782_v13 = vperm.slane %v4778_v39, %v13495_v52 }
 0x411   : > { %v11547_v35 = vsel %vm653_vm0, %v4900_v41, %v4903_v48  ;;  %v11551_v9 = vrot.slane %v13529_v14, 4  ;;  %v13531_v29 = vrot.slane %v13530_v19, 5  ;;  %v4868_v44 = vsel %vm653_vm0, %v4867_v57, %v11354_v25  ;;  %v13532_v48 = vld [vmem:[#allocation21_spill] sm:$0xff] }
 0x412   : > { %v5283_v34 = vrot.slane %v13527_v10, 4  ;;  %13528 = vst [vmem:[#allocation66_spill] sm:$0xff] %v11547_v35  ;;  %v4783_v22 = vrot.slane %v4658_v32, 4  ;;  %v6680_v59 = vrot.slane %v6567_v60, 5  ;;  %v5305_v10 = vrot.slane %v5163_v2, 5  ;;  %6772 = vrot.lane.b32.xlu2 %v13532_v48, %s8091_s8  ;;  %v13535_v35 = vld [vmem:[#allocation31_spill] sm:$0xff] }
 0x413   : > { %v5304_v3 = vrot.slane %v13531_v29, 4  ;;  %v4875_v39 = vrot.slane %v4866_v20, 4  ;;  %v4872_v41 = vperm.slane %v4868_v44, %v13495_v52  ;;  %v13534_v4 = vrot.slane %v13533_v33, 5  ;;  %6774 = vrot.lane.b32.xlu0 %v11433_v37, %s8091_s8  ;;  %v11572_v33 = vpop.permute.xlu2 %6028 }
 0x414   : > { %v5333_v7 = vrot.slane %v5175_v8, 5  ;;  %v4784_v29 = vsel %vm653_vm0, %v4783_v22, %v13535_v35  ;;  %v7736_v19 = vrot.slane %v6566_v58, 9  ;;  %v13536_v25 = vrot.slane %v11277_v56, 5  ;;  %13538 = vst [vmem:[#allocation64_spill] sm:$0xff] %v11572_v33  ;;  %v6569_v8 = vld [vmem:[#allocation2 + $0x3c] sm:$0xe] }
 0x415   : > { %v5332_v14 = vrot.slane %v13534_v4, 4  ;;  %v5340_v60 = vrot.slane %v5178_v49, 5  ;;  %v4791_v2 = vrot.slane %v4782_v13, 4  ;;  %v4873_v32 = vrot.slane %v4872_v41, 4  ;;  %v6570_v4 = vld [vmem:[#allocation2 + $0x40] sm:$0xf]  ;;  %v11584_v37 = vpop.permute.xlu0 %6044 }
 0x416   : > { %v5339_v57 = vrot.slane %v13536_v25, 4  ;;  %v11567_v44 = vsel %vm653_vm0, %v4872_v41, %v4875_v39  ;;  %v4788_v48 = vperm.slane %v4784_v29, %v13495_v52  ;;  %v6682_v35 = vrot.slane %v6680_v59, 4  ;;  %v5166_v22 = vld [vmem:[#allocation2 + $0x8c] sm:$0x1]  ;;  %13542 = vst [vmem:[#allocation74_spill] sm:$0xff] %v11584_v37 }
 0x417   : > { %13537 = vst [vmem:[#allocation67_spill] sm:$0xff] %v11567_v44  ;;  %v6683_v58 = vrot.slane %v6568_v45, 5  ;;  %v5285_v56 = vsel %vm10948_vm12, %v5283_v34, %v5284_v40  ;;  %v13539_v49 = vrot.slane %v11240_v11, 5  ;;  %v11579_v39 = vsel %vm653_vm0, %v4873_v32, %v4866_v20  ;;  %v13543_v44 = vld [vmem:[#allocation28_spill] sm:$0xff]  ;;  %v5169_v45 = vld [vmem:[#allocation2 + $0x98] sm:$0x1] }
 0x418   : > { %13540 = vst [vmem:[#allocation65_spill] sm:$0xff] %v11579_v39  ;;  %v4789_v41 = vrot.slane %v4788_v48, 4  ;;  %v11582_v29 = vsel %vm653_vm0, %v4788_v48, %v4791_v2  ;;  %6776 = vrot.lane.b32.xlu1 %v13543_v44, %s8091_s8  ;;  %v5172_v33 = vld [vmem:[#allocation2 + $0xa4] sm:$0x1]  ;;  %v5334_v34 = vsel %vm10948_vm12, %v5332_v14, %v5333_v7  ;;  %v6681_v11 = vsel %vm10948_vm12, %v7736_v19, %v6680_v59  ;;  %v5157_v32 = vld [vmem:[#allocation2 + $0x68] sm:$0x1] }
 0x419   : > { %v5311_v25 = vrot.slane %v13539_v49, 4  ;;  %13541 = vst [vmem:[#allocation73_spill] sm:$0xff] %v11582_v29  ;;  %v7737_v40 = vrot.slane %v6569_v8, 9  ;;  %v6687_v20 = vrot.slane %v6570_v4, 5  ;;  %v5341_v2 = vsel %vm10948_vm12, %v5339_v57, %v5340_v60  ;;  %v11597_v49 = vpop.permute.xlu1 %6046  ;;  %v6571_v44 = vld [vmem:[#allocation2 + $0x44] sm:$0x1] }
 0x41a   : > { %v11595_v48 = vsel %vm653_vm0, %v4789_v41, %v4782_v13  ;;  %13545 = vst [vmem:[#allocation76_spill] sm:$0xff] %v11597_v49  ;;  %v6585_v29 = vld [vmem:[#allocation2 + $0x7c] sm:$0xf]  ;;  %v5306_v39 = vsel %vm10948_vm12, %v5304_v3, %v5305_v10  ;;  %v5312_v7 = vrot.slane %v5166_v22, 5  ;;  %v13546_v14 = vld [vmem:[#allocation19_spill] sm:$0xff]  ;;  %v6684_v19 = vsel %vm10948_vm12, %v6682_v35, %v6683_v58  ;;  %6778 = vrot.lane.b32.xlu2 %v6681_v11, %s8091_s8 }
 0x41b   : > { %13544 = vst [vmem:[#allocation75_spill] sm:$0xff] %v11595_v48  ;;  %v13547_v37 = vrot.slane %v13546_v14, 5  ;;  %v5160_v8 = vld [vmem:[#allocation2 + $0x74] sm:$0x1]  ;;  %v5319_v4 = vrot.slane %v5169_v45, 5  ;;  %v13548_v57 = vrot.slane %v11295_v15, 5  ;;  %v6688_v22 = vsel %vm10948_vm12, %v7737_v40, %v6687_v20  ;;  %6780 = vrot.lane.b32.xlu0 %v6684_v19, %s8091_s8  ;;  %v11612_v58 = vpop.permute.xlu2 %6034 }
 0x41c   : > { %v5326_v60 = vrot.slane %v5172_v33, 5  ;;  %v6584_v41 = vld [vmem:[#allocation2 + $0x78] sm:$0xe]  ;;  %v5492_v49 = vrot.slane %v11541_v47, 4  ;;  %v5520_v48 = vrot.slane %v5285_v56, 4  ;;  %v5548_v3 = vrot.slane %v5334_v34, 4 }
 0x41d   : > { %v5318_v59 = vrot.slane %v13547_v37, 4  ;;  %v5325_v13 = vrot.slane %v13548_v57, 4  ;;  %v5576_v10 = vrot.slane %v5341_v2, 4  ;;  %v6689_v37 = vrot.slane %v6687_v20, 4  ;;  %v6586_v15 = vld [vmem:[#allocation2 + $0x80] sm:$0x1] }
 0x41e   : > { %v6690_v14 = vrot.slane %v6571_v44, 5  ;;  %v6722_v35 = vrot.slane %v6585_v29, 5  ;;  %v5291_v33 = vrot.slane %v5157_v32, 5  ;;  %v13549_v45 = vrot.slane %v11168_v61, 5  ;;  %v11630_v32 = vpop.permute.xlu0 %6050  ;;  %v13600_v54 = vld [vmem:[#allocation67_spill] sm:$0xff] }
 0x41f   : > { %v5298_v57 = vrot.slane %v5160_v8, 5  ;;  %v5313_v47 = vsel %vm10948_vm12, %v5311_v25, %v5312_v7  ;;  %v7742_v56 = vrot.slane %v6584_v41, 9  ;;  %v13550_v34 = vrot.slane %v11489_v62, 5  ;;  %v6588_v25 = vld [vmem:[#allocation2 + $0x88] sm:$0xf] }
 0x420   : > { %v5297_v11 = vrot.slane %v13549_v45, 4  ;;  %v13551_v40 = vrot.slane %v11503_v24, 5  ;;  %v5320_v61 = vsel %vm10948_vm12, %v5318_v59, %v5319_v4  ;;  %6782 = vrot.lane.b32.xlu1 %v6688_v22, %s8091_s8  ;;  %v5327_v62 = vsel %vm10948_vm12, %v5325_v13, %v5326_v60  ;;  %v6587_v8 = vld [vmem:[#allocation2 + $0x84] sm:$0xe]  ;;  %v6589_v41 = vld [vmem:[#allocation2 + $0x8c] sm:$0x1] }
 0x421   : > { %v5264_v29 = vsel %vm10948_vm12, %v11519_v18, %v13550_v34  ;;  %v5493_v18 = vsel %vm653_vm0, %v5492_v49, %v11515_v26  ;;  %v5521_v24 = vsel %vm653_vm0, %v5520_v48, %v11524_v0  ;;  %v5549_v2 = vsel %vm653_vm0, %v5548_v3, %v5306_v39  ;;  %v11643_v19 = vpop.permute.xlu1 %6076 }
 0x422   : > { %v5271_v20 = vsel %vm10948_vm12, %v11529_v51, %v13551_v40  ;;  %v6691_v51 = vsel %vm10948_vm12, %v6689_v37, %v6690_v14  ;;  %v6724_v44 = vrot.slane %v6722_v35, 4  ;;  %v6725_v7 = vrot.slane %v6586_v15, 5  ;;  %v13553_v37 = vld [vmem:[#allocation17_spill] sm:$0xff] }
 0x423   : > { %v5577_v59 = vsel %vm653_vm0, %v5576_v10, %v5313_v47  ;;  %v5292_v4 = vsel %vm10948_vm12, %v11551_v9, %v5291_v33  ;;  %v5299_v26 = vsel %vm10948_vm12, %v5297_v11, %v5298_v57  ;;  %v5486_v0 = vrot.slane %v5264_v29, 4  ;;  %6784 = vrot.lane.b32.xlu2 %v6691_v51, %s8091_s8  ;;  %v13556_v57 = vld [vmem:[#allocation27_spill] sm:$0xff]  ;;  %v11677_v29 = vpop.permute.xlu2 %6040  ;;  %v6590_v40 = vld [vmem:[#allocation2 + $0x90] sm:$0xe] }
 0x424   : > { %v5514_v48 = vrot.slane %v5271_v20, 4  ;;  %v6723_v39 = vsel %vm10948_vm12, %v7742_v56, %v6722_v35  ;;  %v6729_v49 = vrot.slane %v6588_v25, 5  ;;  %v5542_v13 = vrot.slane %v5320_v61, 4  ;;  %v13557_v56 = vld [vmem:[#allocation25_spill] sm:$0xff] }
 0x425   : > { %v5570_v60 = vrot.slane %v5327_v62, 4  ;;  %v11654_v3 = vperm.slane %v5493_v18, %v13495_v52  ;;  %v11657_v10 = vperm.slane %v5521_v24, %v13495_v52  ;;  %v11660_v9 = vperm.slane %v5549_v2, %v13495_v52  ;;  %6802 = vrot.lane.b32.xlu0 %v6723_v39, %s8091_s8  ;;  %v6591_v20 = vld [vmem:[#allocation2 + $0x94] sm:$0xf]  ;;  %v6592_v39 = vld [vmem:[#allocation2 + $0x98] sm:$0x1] }
 0x426   : > { %v11663_v22 = vperm.slane %v5577_v59, %v13495_v52  ;;  %v4693_v14 = vrot.slane %v13553_v37, 4  ;;  %v6726_v35 = vsel %vm10948_vm12, %v6724_v44, %v6725_v7  ;;  %v7743_v15 = vrot.slane %v6587_v8, 9  ;;  %v11685_v51 = vpop.permute.xlu0 %6080  ;;  %v13559_v8 = vld [vmem:[#allocation24_spill] sm:$0xff] }
 0x427   : > { %v13554_v33 = vshrl.u32 %v11442_v5, 16  ;;  %v13555_v45 = vshrl.u32 %v11479_v53, 16  ;;  %v4805_v47 = vrot.slane %v13556_v57, 4  ;;  %v4699_v34 = vrot.slane %v13557_v56, 4  ;;  %13558 = vst [vmem:[#allocation38_spill] sm:$0xff] %v11685_v51 }
 0x428   : > { %13552 = vst [vmem:[#allocation35_spill] sm:$0xff] %v11663_v22  ;;  %v5487_v61 = vsel %vm653_vm0, %v5486_v0, %v11493_v16  ;;  %v5515_v25 = vsel %vm653_vm0, %v5514_v48, %v11497_v43  ;;  %v6731_v62 = vrot.slane %v6729_v49, 4  ;;  %v6732_v18 = vrot.slane %v6589_v41, 5  ;;  %6804 = vrot.lane.b32.xlu1 %v6726_v35, %s8091_s8  ;;  %v6593_v57 = vld [vmem:[#allocation2 + $0x9c] sm:$0xe] }
 0x429   : > { %v11672_v11 = vpack.i.b16 %v13555_v45, %v13554_v33  ;;  %v5543_v24 = vsel %vm653_vm0, %v5542_v13, %v5292_v4  ;;  %v5571_v2 = vsel %vm653_vm0, %v5570_v60, %v5299_v26  ;;  %v5498_v44 = vrot.slane %v11654_v3, 4  ;;  %v11695_v26 = vpop.permute.xlu1 %6082  ;;  %v6594_v13 = vld [vmem:[#allocation2 + $0xa0] sm:$0xf]  ;;  %v13563_v45 = vld [vmem:[#allocation53_spill] sm:$0xff]  ;;  %v13564_v33 = vld [vmem:[#allocation22_spill] sm:$0xff] }
 0x42a   : > { %v5526_v7 = vrot.slane %v11657_v10, 4  ;;  %v5554_v59 = vrot.slane %v11660_v9, 4  ;;  %v5582_v16 = vrot.slane %v11663_v22, 4  ;;  %v4727_v43 = vrot.slane %v13559_v8, 4  ;;  %13560 = vst [vmem:[#allocation51_spill] sm:$0xff] %v11695_v26 }
 0x42b   : > { %v6730_v0 = vsel %vm10948_vm12, %v7743_v15, %v6729_v49  ;;  %v7744_v4 = vrot.slane %v6590_v40, 9  ;;  %v6736_v48 = vrot.slane %v6591_v20, 5  ;;  %v11698_v60 = vperm.slane %v5487_v61, %v13495_v52 }
 0x42c   : > { %v11701_v41 = vperm.slane %v5515_v25, %v13495_v52  ;;  %v11704_v37 = vperm.slane %v5543_v24, %v13495_v52  ;;  %v11707_v35 = vperm.slane %v5571_v2, %v13495_v52  ;;  %v4817_v49 = vrot.slane %v11486_v21, 4  ;;  %6806 = vrot.lane.b32.xlu2 %v6730_v0, %s8091_s8  ;;  %v13561_v2 = vld [vmem:[#allocation16_spill] sm:$0xff] }
 0x42d   : > { %v6733_v15 = vsel %vm10948_vm12, %v6731_v62, %v6732_v18  ;;  %v5499_v56 = vsel %vm653_vm0, %v5498_v44, %v11698_v60  ;;  %v6737_v25 = vsel %vm10948_vm12, %v7744_v4, %v6736_v48  ;;  %v6738_v62 = vrot.slane %v6736_v48, 4  ;;  %v13562_v0 = vld [vmem:[#allocation52_spill] sm:$0xff]  ;;  %v6595_v4 = vld [vmem:[#allocation2 + $0xa4] sm:$0x1] }
 0x42e   : > { %v5527_v40 = vsel %vm653_vm0, %v5526_v7, %v11701_v41  ;;  %v5555_v20 = vsel %vm653_vm0, %v5554_v59, %v11704_v37  ;;  %v5583_v61 = vsel %vm653_vm0, %v5582_v16, %v11707_v35  ;;  %v6739_v18 = vrot.slane %v6592_v39, 5  ;;  %6808 = vrot.lane.b32.xlu0 %v6733_v15, %s8091_s8  ;;  %v11734_v16 = vpop.permute.xlu2 %6062 }
 0x42f   : > { %v6743_v24 = vrot.slane %v6594_v13, 5  ;;  %v4694_v8 = vsel %vm653_vm0, %v4693_v14, %v13561_v2  ;;  %v4806_v44 = vsel %vm653_vm0, %v4805_v47, %v13562_v0  ;;  %v4700_v7 = vsel %vm653_vm0, %v4699_v34, %v13563_v45  ;;  %v11745_v13 = vpop.permute.xlu0 %6030 }
 0x430   : > { %v4728_v59 = vsel %vm653_vm0, %v4727_v43, %v13564_v33  ;;  %v7745_v48 = vrot.slane %v6593_v57, 9  ;;  %v11737_v39 = vperm.slane %v5527_v40, %v8725_v23  ;;  %v11740_v14 = vperm.slane %v5555_v20, %v8725_v23  ;;  %13568 = vst [vmem:[#allocation77_spill] sm:$0xff] %v11745_v13  ;;  %6810 = vrot.lane.b32.xlu1 %v6737_v25, %s8091_s8 }
 0x431   : > { %v11743_v47 = vperm.slane %v5583_v61, %v8725_v23  ;;  %v11749_v34 = vperm.slane %v5499_v56, %v8725_v23  ;;  %v5426_v43 = vrot.slane %v11395_v38, 4  ;;  %v5454_v15 = vrot.slane %v11442_v5, 4  ;;  %v11760_v2 = vpop.permute.xlu1 %6032 }
 0x432   : > { %13565 = vst [vmem:[#allocation40_spill] sm:$0xff] %v11737_v39  ;;  %v5482_v33 = vrot.slane %v11479_v53, 4  ;;  %v4698_v45 = vperm.slane %v4694_v8, %v13495_v52  ;;  %v6740_v57 = vsel %vm10948_vm12, %v6738_v62, %v6739_v18  ;;  %v6745_v40 = vrot.slane %v6743_v24, 4 }
 0x433   : > { %13566 = vst [vmem:[#allocation43_spill] sm:$0xff] %v11740_v14  ;;  %v6746_v20 = vrot.slane %v6595_v4, 5  ;;  %v4810_v61 = vperm.slane %v4806_v44, %v13495_v52  ;;  %v4704_v25 = vperm.slane %v4700_v7, %v13495_v52  ;;  %v4732_v56 = vperm.slane %v4728_v59, %v13495_v52 }
 0x434   : > { %13567 = vst [vmem:[#allocation37_spill] sm:$0xff] %v11743_v47  ;;  %v5398_v0 = vrot.slane %v11414_v6, 4  ;;  %v6744_v53 = vsel %vm10948_vm12, %v7745_v48, %v6743_v24  ;;  %v5626_v8 = vshrl.u32 %v11737_v39, 16  ;;  %v5673_v5 = vshrl.u32 %v11740_v14, 16  ;;  %6812 = vrot.lane.b32.xlu2 %v6740_v57, %s8091_s8 }
 0x435   : > { %13569 = vst [vmem:[#allocation44_spill] sm:$0xff] %v11749_v34  ;;  %v5674_v62 = vshrl.u32 %v11743_v47, 16  ;;  %v5625_v18 = vshrl.u32 %v11749_v34, 16  ;;  %v11771_v44 = vsel %vm653_vm0, 0, %v5426_v43  ;;  %v11774_v7 = vsel %vm653_vm0, 0, %v5454_v15 }
 0x436   : > { %v11777_v59 = vsel %vm653_vm0, 0, %v5482_v33  ;;  %v6747_v24 = vsel %vm10948_vm12, %v6745_v40, %v6746_v20  ;;  %v5538_v4 = vrot.slane %v11737_v39, 4  ;;  %v5566_v48 = vrot.slane %v11740_v14, 4  ;;  %6814 = vrot.lane.b32.xlu0 %v6744_v53, %s8091_s8  ;;  %v11786_v15 = vpop.permute.xlu2 %6068 }
 0x437   : > { %v5594_v57 = vrot.slane %v11743_v47, 4  ;;  %v4818_v38 = vsel %vm653_vm0, %v4817_v49, %v4810_v61  ;;  %v4819_v6 = vrot.slane %v4810_v61, 4  ;;  %v4705_v43 = vrot.slane %v4704_v25, 4  ;;  %v11792_v39 = vpop.permute.xlu0 %6036 }
 0x438   : > { %v4733_v26 = vrot.slane %v4732_v56, 4  ;;  %v5627_v33 = vpack.i.b16 %v5626_v8, %v5625_v18  ;;  %v5675_v51 = vpack.i.b16 %v5674_v62, %v5673_v5  ;;  %v11789_v22 = vsel %vm653_vm0, 0, %v5398_v0  ;;  %6816 = vrot.lane.b32.xlu1 %v6747_v24, %s8091_s8 }
 0x439   : > { %v5510_v40 = vrot.slane %v11749_v34, 4  ;;  %v4707_v20 = vrot.slane %v4698_v45, 4  ;;  %v13570_v49 = vunpack.c.l.b16 %v11461_v28  ;;  %v13571_v61 = vunpack.c.l.b16 %v11672_v11 }
 0x43a   : > { %v5606_v53 = vpack.i.b16 %v11771_v44, %v11789_v22  ;;  %v5654_v5 = vpack.i.b16 %v11777_v59, %v11774_v7  ;;  %v11806_v0 = vperm.slane %v4818_v38, %v8725_v23  ;;  %v5539_v8 = vsel %vm653_vm0, 0, %v5538_v4  ;;  %v6579_v4 = vld [vmem:[#allocation2 + $0x64] sm:$0xf] }
 0x43b   : > { %v11799_v13 = vpack.c.b16 %v13571_v61, %v13570_v49  ;;  %v11810_v62 = vsel %vm653_vm0, 0, %v5566_v48  ;;  %v11813_v28 = vsel %vm653_vm0, 0, %v5594_v57  ;;  %v11817_v11 = vsel %vm653_vm0, %v11486_v21, %v4819_v6  ;;  %v11824_v61 = vpop.permute.xlu1 %6038  ;;  %v13575_v6 = vld [vmem:[#allocation26_spill] sm:$0xff]  ;;  %v6578_v21 = vld [vmem:[#allocation2 + $0x60] sm:$0xe] }
 0x43c   : > { %13572 = vst [vmem:[#allocation36_spill] sm:$0xff] %v11806_v0  ;;  %v4706_v18 = vsel %vm653_vm0, %v4705_v43, %v4698_v45  ;;  %v4708_v24 = vsel %vm653_vm0, %v4704_v25, %v4707_v20  ;;  %v13574_v49 = vrot.slane %v11410_v17, 4  ;;  %v4734_v48 = vsel %vm653_vm0, %v4733_v26, %v11410_v17  ;;  %6762 = vrot.lane.b32.xlu2 %v13575_v6, %s8091_s8 }
 0x43d   : > { %13573 = vst [vmem:[#allocation55_spill] sm:$0xff] %v11817_v11  ;;  %v5735_v57 = vunpack.c.l.b16 %v5627_v33  ;;  %v5736_v34 = vunpack.c.l.b16 %v5675_v51  ;;  %v5511_v0 = vsel %vm653_vm0, 0, %v5510_v40  ;;  %v11831_v45 = vunpack.c.l.b16 %v5606_v53  ;;  %v13592_v11 = vld [vmem:[#allocation63_spill] sm:$0xff] }
 0x43e   : > { %v4736_v38 = vsel %vm653_vm0, %v4732_v56, %v13574_v49  ;;  %v11833_v25 = vunpack.c.l.b16 %v5654_v5  ;;  %v5630_v43 = vpack.i.b16 %v5539_v8, %v5511_v0  ;;  %v5678_v56 = vpack.i.b16 %v11813_v28, %v11810_v62  ;;  %6764 = vrot.lane.b32.xlu0 %v11392_v31, %s8091_s8  ;;  %v11859_v5 = vpop.permute.xlu2 %6074  ;;  %v6582_v31 = vld [vmem:[#allocation2 + $0x70] sm:$0xf] }
 0x43f   : > { %v11838_v20 = vperm.slane %v4706_v18, %v8725_v23  ;;  %v11841_v17 = vperm.slane %v4708_v24, %v8725_v23  ;;  %v11844_v51 = vperm.slane %v4736_v38, %v8725_v23  ;;  %v6708_v26 = vrot.slane %v6579_v4, 5  ;;  %v6580_v18 = vld [vmem:[#allocation2 + $0x68] sm:$0x1] }
 0x440   : > { %v11847_v33 = vperm.slane %v4734_v48, %v8725_v23  ;;  %v11851_v40 = vperm.slane %v11298_v30, %v8725_v23  ;;  %v11855_v53 = vperm.slane %v11286_v27, %v8725_v23  ;;  %v11865_v49 = vperm.slane %v11464_v46, %v8725_v23  ;;  %v11870_v27 = vpop.permute.xlu0 %6042  ;;  %6766 = vrot.lane.b32.xlu1 %v11362_v55, %s8091_s8  ;;  %v6581_v48 = vld [vmem:[#allocation2 + $0x6c] sm:$0xe] }
 0x441   : > { %13576 = vst [vmem:[#allocation45_spill] sm:$0xff] %v11838_v20  ;;  %v7740_v38 = vrot.slane %v6578_v21, 9  ;;  %v11868_v4 = vpack.c.b16 %v5736_v34, %v5735_v57  ;;  %v11876_v6 = vunpack.c.l.b16 %v5630_v43  ;;  %v11878_v24 = vunpack.c.l.b16 %v5678_v56  ;;  %v13594_v20 = vld [vmem:[#allocation57_spill] sm:$0xff] }
 0x442   : > { %13577 = vst [vmem:[#allocation54_spill] sm:$0xff] %v11841_v17  ;;  %v5632_v46 = vshrl.u32 %v5539_v8, 16  ;;  %v11882_v30 = vperm.slane %v11476_v1, %v8725_v23  ;;  %v6710_v57 = vrot.slane %v6708_v26, 4  ;;  %v6711_v21 = vrot.slane %v6580_v18, 5  ;;  %v13590_v17 = vld [vmem:[#allocation56_spill] sm:$0xff] }
 0x443   : > { %13578 = vst [vmem:[#allocation32_spill] sm:$0xff] %v11844_v51  ;;  %v11887_v55 = vperm.slane %v11534_v63, %v8725_v23  ;;  %v11889_v14 = vpop.permute.xlu1 %6060  ;;  %v5631_v43 = vshrl.u32 %v5511_v0, 16  ;;  %v5679_v56 = vshrl.u32 %v11810_v62, 16  ;;  %v5680_v8 = vshrl.u32 %v11813_v28, 16  ;;  %v13589_v51 = vld [vmem:[#allocation47_spill] sm:$0xff] }
 0x444   : > { %13579 = vst [vmem:[#allocation60_spill] sm:$0xff] %v11847_v33  ;;  %v6709_v1 = vsel %vm10948_vm12, %v7740_v38, %v6708_v26  ;;  %v6715_v47 = vrot.slane %v6582_v31, 5  ;;  %v5444_v34 = vrot.slane %v11398_v12, 4  ;;  %v5472_v18 = vrot.slane %v11445_v50, 4  ;;  %6768 = vrot.lane.b32.xlu2 %v13589_v51, %s8091_s8  ;;  %v6583_v0 = vld [vmem:[#allocation2 + $0x74] sm:$0x1] }
 0x445   : > { %13580 = vst [vmem:[#allocation69_spill] sm:$0xff] %v11851_v40  ;;  %v5633_v28 = vpack.i.b16 %v5632_v46, %v5631_v43  ;;  %v13591_v26 = vld [vmem:[#allocation74_spill] sm:$0xff]  ;;  %v6712_v12 = vsel %vm10948_vm12, %v6710_v57, %v6711_v21  ;;  %v7741_v50 = vrot.slane %v6581_v48, 9  ;;  %v5608_v31 = vshrl.u32 %v11771_v44, 16  ;;  %v13593_v46 = vld [vmem:[#allocation61_spill] sm:$0xff] }
 0x446   : > { %13581 = vst [vmem:[#allocation46_spill] sm:$0xff] %v11855_v53  ;;  %v5416_v53 = vrot.slane %v13590_v17, 4  ;;  %v6122_v38 = vrot.slane %v13591_v26, 4  ;;  %6794 = vrot.lane.b32.xlu0 %v6709_v1, %s8091_s8  ;;  %v5655_v51 = vshrl.u32 %v11774_v7, 16  ;;  %v5388_v62 = vrot.slane %v13592_v11, 4  ;;  %v13595_v48 = vld [vmem:[#allocation50_spill] sm:$0xff] }
 0x447   : > { %13582 = vst [vmem:[#allocation58_spill] sm:$0xff] %v11865_v49  ;;  %v6717_v43 = vrot.slane %v6715_v47, 4  ;;  %v6718_v26 = vrot.slane %v6583_v0, 5  ;;  %v5445_v57 = vsel %vm653_vm0, %v13594_v20, %v5444_v34  ;;  %v5473_v44 = vsel %vm653_vm0, %v13595_v48, %v5472_v18 }
 0x448   : > { %13583 = vst [vmem:[#allocation42_spill] sm:$0xff] %v11876_v6  ;;  %v5417_v17 = vsel %vm653_vm0, %v13593_v46, %v5416_v53  ;;  %v11920_v21 = vpop.permute.xlu0 %6064  ;;  %6796 = vrot.lane.b32.xlu1 %v6712_v12, %s8091_s8  ;;  %v5681_v7 = vpack.i.b16 %v5680_v8, %v5679_v56  ;;  %v5745_v1 = vunpack.c.l.b16 %v5633_v28  ;;  %v5528_v11 = vrot.slane %v11701_v41, 4  ;;  %v13596_v46 = vld [vmem:[#allocation29_spill] sm:$0xff]  ;;  %v13597_v41 = vld [vmem:[#allocation64_spill] sm:$0xff] }
 0x449   : > { %13584 = vst [vmem:[#allocation62_spill] sm:$0xff] %v11878_v24  ;;  %v6262_v53 = vrot.slane %v11630_v32, 4  ;;  %v6716_v0 = vsel %vm10948_vm12, %v7741_v50, %v6715_v47  ;;  %v5389_v20 = vsel %vm653_vm0, %v13596_v46, %v5388_v62  ;;  %v5500_v34 = vrot.slane %v11698_v60, 4  ;;  %v13604_v46 = vld [vmem:[#allocation75_spill] sm:$0xff] }
 0x44a   : > { %13585 = vst [vmem:[#allocation34_spill] sm:$0xff] %v11882_v30  ;;  %v13587_v30 = vld [vmem:[#allocation66_spill] sm:$0xff]  ;;  %v11934_v12 = vperm.slane %v5417_v17, %v8725_v23  ;;  %v11937_v56 = vperm.slane %v5445_v57, %v8725_v23  ;;  %v5529_v32 = vsel %vm653_vm0, %v11657_v10, %v5528_v11  ;;  %v6123_v47 = vsel %vm653_vm0, %v6122_v38, %v13597_v41  ;;  %v13598_v10 = vld [vmem:[#allocation65_spill] sm:$0xff] }
 0x44b   : > { %13586 = vst [vmem:[#allocation70_spill] sm:$0xff] %v11887_v55  ;;  %v11899_v63 = vperm.slane %v13587_v30, %v8725_v23  ;;  %v6025_v30 = vpop.permute.xlu2 %6024  ;;  %v11931_v18 = vpop.permute.xlu1 %6066  ;;  %v6719_v60 = vsel %vm10948_vm12, %v6717_v43, %v6718_v26  ;;  %v5746_v28 = vunpack.c.l.b16 %v5681_v7  ;;  %v11950_v50 = vperm.slane %v5389_v20, %v8725_v23 }
 0x44c   : > { %6798 = vrot.lane.b32.xlu2 %v6716_v0, %s8091_s8  ;;  %v5501_v17 = vsel %vm653_vm0, %v11654_v3, %v5500_v34  ;;  %v5556_v57 = vrot.slane %v11704_v37, 4  ;;  %v11957_v48 = vperm.slane %v13598_v10, %v8725_v23  ;;  %v11961_v38 = vperm.slane %v13600_v54, %v8725_v23 }
 0x44d   : > { %13588 = vst [vmem:[#allocation68_spill] sm:$0xff] %v11899_v63  ;;  %v5656_v63 = vshrl.u32 %v11777_v59, 16  ;;  %v5607_v59 = vshrl.u32 %v11789_v22, 16  ;;  %v11940_v22 = vperm.slane %v5473_v44, %v8725_v23  ;;  %v11971_v43 = vperm.slane %v6123_v47, %v13495_v52 }
 0x44e   : > { %13599 = vst [vmem:[#allocation30_spill] sm:$0xff] %v11957_v48  ;;  %v6263_v3 = vsel %vm653_vm0, %v6262_v53, %v11612_v58  ;;  %6800 = vrot.lane.b32.xlu0 %v6719_v60, %s8091_s8  ;;  %v5612_v26 = vpack.i.b16 %v11934_v12, %v11950_v50  ;;  %v6144_v7 = vrot.slane %v11677_v29, 4  ;;  %v11982_v0 = vperm.slane %v5501_v17, %v8725_v23  ;;  %v13606_v58 = vld [vmem:[#allocation76_spill] sm:$0xff] }
 0x44f   : > { %v5609_v8 = vpack.i.b16 %v5608_v31, %v5607_v59  ;;  %v5657_v62 = vpack.i.b16 %v5656_v63, %v5655_v51  ;;  %13601 = vst [vmem:[#allocation39_spill] sm:$0xff] %v11961_v38  ;;  %v13602_v63 = vld [vmem:[#allocation73_spill] sm:$0xff]  ;;  %v11968_v51 = vperm.slane %v5529_v32, %v8725_v23  ;;  %v5660_v44 = vpack.i.b16 %v11940_v22, %v11937_v56 }
 0x450   : > { %v11965_v31 = vperm.slane %v13602_v63, %v8725_v23  ;;  %v11986_v20 = vperm.slane %v13604_v46, %v8725_v23  ;;  %v6234_v53 = vrot.slane %v13606_v58, 4  ;;  %v6071_v34 = vpop.permute.xlu0 %6070  ;;  %v11989_v32 = vpack.c.b16 %v5746_v28, %v5745_v1  ;;  %v13615_v58 = vld [vmem:[#allocation38_spill] sm:$0xff] }
 0x451   : > { %v5707_v59 = vunpack.c.l.b16 %v5609_v8  ;;  %v5708_v11 = vunpack.c.l.b16 %v5657_v62  ;;  %v5557_v41 = vsel %vm653_vm0, %v11660_v9, %v5556_v57  ;;  %v11994_v47 = vperm.slane %v6263_v3, %v13495_v52 }
 0x452   : > { %13603 = vst [vmem:[#allocation72_spill] sm:$0xff] %v11965_v31  ;;  %v13608_v29 = vrot.slane %v11455_v42, 4  ;;  %v5584_v8 = vrot.slane %v11707_v35, 4  ;;  %v5636_v62 = vpack.i.b16 %v11968_v51, %v11982_v0  ;;  %v6128_v17 = vrot.slane %v11971_v43, 4 }
 0x453   : > { %v6055_v37 = vpop.permute.xlu2 %6054  ;;  %13605 = vst [vmem:[#allocation23_spill] sm:$0xff] %v11986_v20  ;;  %v6178_v1 = vrot.slane %v11643_v19, 4  ;;  %v12005_v28 = vpop.permute.xlu1 %6072  ;;  %v12007_v9 = vunpack.c.l.b16 %v5612_v26  ;;  %v12009_v57 = vunpack.c.l.b16 %v5660_v44  ;;  %v6145_v10 = vsel %vm653_vm0, %v6144_v7, %v6025_v30  ;;  %v13613_v19 = vld [vmem:[#allocation77_spill] sm:$0xff]  ;;  %v13614_v7 = vld [vmem:[#allocation35_spill] sm:$0xff] }
 0x454   : > { %13607 = vst [vmem:[#allocation33_spill] sm:$0xff] %v11989_v32  ;;  %v6151_v60 = vsel %vm653_vm0, %v13608_v29, %v11760_v2  ;;  %v6284_v42 = vrot.slane %v6071_v34, 4  ;;  %v12012_v54 = vpack.c.b16 %v5708_v11, %v5707_v59  ;;  %v12015_v35 = vperm.slane %v5557_v41, %v8725_v23 }
 0x455   : > { %13609 = vst [vmem:[#allocation59_spill] sm:$0xff] %v12007_v9  ;;  %v13612_v2 = vrot.slane %v11511_v36, 4  ;;  %v6235_v3 = vsel %vm653_vm0, %v6234_v53, %v13613_v19  ;;  %v6155_v26 = vperm.slane %v6151_v60, %v13495_v52  ;;  %v5638_v44 = vshrl.u32 %v11968_v51, 16 }
 0x456   : > { %13610 = vst [vmem:[#allocation15_spill] sm:$0xff] %v12009_v57  ;;  %v5585_v59 = vsel %vm653_vm0, %v13614_v7, %v5584_v8  ;;  %v12028_v11 = vunpack.c.l.b16 %v5636_v62  ;;  %v6206_v36 = vrot.slane %v13615_v58, 4  ;;  %v5637_v41 = vshrl.u32 %v11982_v0, 16 }
 0x457   : > { %13611 = vst [vmem:[#allocation20_spill] sm:$0xff] %v12012_v54  ;;  %v6291_v63 = vsel %vm653_vm0, %v13612_v2, %v11734_v16  ;;  %v6149_v16 = vperm.slane %v6145_v10, %v13495_v52  ;;  %v12042_v60 = vperm.slane %v6235_v3, %v13495_v52  ;;  %v6116_v8 = vrot.slane %v11792_v39, 4 }
 0x458   : > { %v12039_v29 = vperm.slane %v6291_v63, %v13495_v52  ;;  %v6285_v62 = vsel %vm653_vm0, %v6284_v42, %v6055_v37  ;;  %v6156_v2 = vrot.slane %v6155_v26, 4  ;;  %v6021_v19 = vpop.permute.xlu0 %6020  ;;  %v12047_v10 = vperm.slane %v5585_v59, %v8725_v23  ;;  %v13616_v37 = vld [vmem:[#allocation51_spill] sm:$0xff] }
 0x459   : > { %v12049_v7 = vpack.i.b16 %v5638_v44, %v5637_v41  ;;  %v6228_v53 = vrot.slane %v11824_v61, 4  ;;  %v6179_v63 = vsel %vm653_vm0, %v6178_v1, %v11889_v14  ;;  %v6207_v3 = vsel %vm653_vm0, %v6206_v36, %v11920_v21 }
 0x45a   : > { %v6117_v39 = vsel %vm653_vm0, %v6116_v8, %v6021_v19  ;;  %v6318_v42 = vrot.slane %v13616_v37, 4  ;;  %v6158_v46 = vrot.slane %v6149_v16, 4  ;;  %v6289_v59 = vperm.slane %v6285_v62, %v13495_v52 }
 0x45b   : > { %v12033_v34 = vpop.permute.xlu2 %6786  ;;  %v6121_v44 = vperm.slane %v6117_v39, %v13495_v52  ;;  %v6023_v41 = vpop.permute.xlu1 %6022  ;;  %v6296_v58 = vrot.slane %v12039_v29, 4  ;;  %v6240_v61 = vrot.slane %v12042_v60, 4  ;;  %v6157_v30 = vsel %vm653_vm0, %v6156_v2, %v6149_v16 }
 0x45c   : > { %v6229_v14 = vsel %vm653_vm0, %v6228_v53, %v6023_v41  ;;  %v12066_v21 = vperm.slane %v6179_v63, %v13495_v52  ;;  %v12069_v1 = vperm.slane %v6207_v3, %v13495_v52  ;;  %v6172_v62 = vrot.slane %v11786_v15, 4 }
 0x45d   : > { %v6129_v36 = vsel %vm653_vm0, %v6128_v17, %v6121_v44  ;;  %v6233_v8 = vperm.slane %v6229_v14, %v13495_v52  ;;  %v6319_v19 = vsel %vm653_vm0, %v6318_v42, %v11931_v18  ;;  %v6159_v53 = vsel %vm653_vm0, %v6155_v26, %v6158_v46 }
 0x45e   : > { %v12077_v39 = vperm.slane %v6129_v36, %v8725_v23  ;;  %v12082_v2 = vperm.slane %v6157_v30, %v8725_v23  ;;  %v6297_v63 = vsel %vm653_vm0, %v6296_v58, %v6289_v59  ;;  %v6312_v15 = vrot.slane %v11859_v5, 4 }
 0x45f   : > { %v6241_v17 = vsel %vm653_vm0, %v6240_v61, %v6233_v8  ;;  %v6256_v18 = vrot.slane %v11870_v27, 4  ;;  %v6130_v37 = vrot.slane %v6121_v44, 4  ;;  %v6184_v41 = vrot.slane %v12066_v21, 4 }
 0x460   : > { %13617 = vst [vmem:[#allocation21_spill] sm:$0xff] %v12077_v39  ;;  %v12091_v42 = vperm.slane %v6241_v17, %v8725_v23  ;;  %v6212_v26 = vrot.slane %v12069_v1, 4  ;;  %v12096_v30 = vperm.slane %v6319_v19, %v13495_v52  ;;  %v6140_v46 = vrot.slane %v12077_v39, 4  ;;  %v6027_v58 = vpop.permute.xlu0 %6026 }
 0x461   : > { %13618 = vst [vmem:[#allocation18_spill] sm:$0xff] %v12082_v2  ;;  %v12100_v61 = vperm.slane %v6159_v53, %v8725_v23  ;;  %v12103_v5 = vperm.slane %v6297_v63, %v8725_v23  ;;  %v6242_v27 = vrot.slane %v6233_v8, 4  ;;  %v6257_v44 = vsel %vm653_vm0, %v6256_v18, %v6027_v58 }
 0x462   : > { %13619 = vst [vmem:[#allocation31_spill] sm:$0xff] %v12091_v42  ;;  %v6168_v14 = vrot.slane %v12082_v2, 4  ;;  %v6298_v36 = vrot.slane %v6289_v59, 4  ;;  %v6261_v17 = vperm.slane %v6257_v44, %v13495_v52  ;;  %v6343_v19 = vshrl.u32 %v12077_v39, 16 }
 0x463   : > { %v12086_v3 = vpop.permute.xlu2 %6792  ;;  %13620 = vst [vmem:[#allocation28_spill] sm:$0xff] %v12103_v5  ;;  %v6053_v16 = vpop.permute.xlu1 %6052  ;;  %v6131_v31 = vsel %vm653_vm0, %v11971_v43, %v6130_v37  ;;  %v6252_v53 = vrot.slane %v12091_v42, 4  ;;  %v6344_v63 = vshrl.u32 %v12082_v2, 16  ;;  %v13621_v8 = vrot.slane %v11994_v47, 4 }
 0x464   : > { %v6173_v38 = vsel %vm653_vm0, %v6172_v62, %v6053_v16  ;;  %v6270_v58 = vrot.slane %v6261_v17, 4  ;;  %v12119_v44 = vsel %vm653_vm0, 0, %v6140_v46  ;;  %v6324_v39 = vrot.slane %v12096_v30, 4 }
 0x465   : > { %v6269_v18 = vsel %vm653_vm0, %v13621_v8, %v6261_v17  ;;  %v6177_v59 = vperm.slane %v6173_v38, %v13495_v52  ;;  %v6200_v43 = vrot.slane %v12005_v28, 4  ;;  %v6243_v37 = vsel %vm653_vm0, %v12042_v60, %v6242_v27 }
 0x466   : > { %v6308_v62 = vrot.slane %v12103_v5, 4  ;;  %v12127_v16 = vperm.slane %v6269_v18, %v8725_v23  ;;  %v12132_v38 = vpack.i.b16 %v6344_v63, %v6343_v19  ;;  %v12135_v46 = vsel %vm653_vm0, 0, %v6168_v14 }
 0x467   : > { %v6185_v8 = vsel %vm653_vm0, %v6184_v41, %v6177_v59  ;;  %v12139_v28 = vsel %vm653_vm0, %v12039_v29, %v6298_v36  ;;  %v12142_v60 = vperm.slane %v6131_v31, %v8725_v23  ;;  %v6348_v27 = vpack.i.b16 %v12135_v46, %v12119_v44 }
 0x468   : > { %13622 = vst [vmem:[#allocation19_spill] sm:$0xff] %v12127_v16  ;;  %v6415_v18 = vshrl.u32 %v12103_v5, 16  ;;  %v12148_v41 = vperm.slane %v6243_v37, %v8725_v23  ;;  %v6271_v19 = vsel %vm653_vm0, %v11994_v47, %v6270_v58  ;;  %v6057_v14 = vpop.permute.xlu0 %6056  ;;  %v6367_v63 = vshrl.u32 %v12091_v42, 16 }
 0x469   : > { %v12154_v29 = vsel %vm653_vm0, 0, %v6252_v53  ;;  %v6186_v36 = vrot.slane %v6177_v59, 4  ;;  %v12157_v31 = vperm.slane %v6185_v8, %v8725_v23  ;;  %v6201_v2 = vsel %vm653_vm0, %v6200_v43, %v6057_v14 }
 0x46a   : > { %v12161_v5 = vsel %vm653_vm0, 0, %v6308_v62  ;;  %v6280_v37 = vrot.slane %v12127_v16, 4  ;;  %v6205_v9 = vperm.slane %v6201_v2, %v13495_v52  ;;  %v6439_v58 = vunpack.c.l.b16 %v12132_v38 }
 0x46b   : > { %v12130_v17 = vpop.permute.xlu2 %6822  ;;  %13623 = vst [vmem:[#allocation17_spill] sm:$0xff] %v12157_v31  ;;  %v6059_v47 = vpop.permute.xlu1 %6058  ;;  %v12168_v53 = vperm.slane %v6271_v19, %v8725_v23  ;;  %v6444_v8 = vunpack.c.l.b16 %v6348_v27  ;;  %v6373_v43 = vshrl.u32 %v12154_v29, 16  ;;  %v6368_v2 = vshrl.u32 %v12127_v16, 16 }
 0x46c   : > { %v6313_v59 = vsel %vm653_vm0, %v6312_v15, %v6059_v47  ;;  %v6213_v62 = vsel %vm653_vm0, %v6212_v26, %v6205_v9  ;;  %v6214_v14 = vrot.slane %v6205_v9, 4  ;;  %v6187_v38 = vsel %vm653_vm0, %v12066_v21, %v6186_v36 }
 0x46d   : > { %v6317_v57 = vperm.slane %v6313_v59, %v13495_v52  ;;  %v6196_v42 = vrot.slane %v12157_v31, 4  ;;  %v12179_v19 = vperm.slane %v6213_v62, %v8725_v23  ;;  %v6391_v15 = vshrl.u32 %v12157_v31, 16 }
 0x46e   : > { %v6215_v27 = vsel %vm653_vm0, %v12069_v1, %v6214_v14  ;;  %v6281_v47 = vsel %vm653_vm0, 0, %v6280_v37  ;;  %v6354_v59 = vpack.i.b16 %v12100_v61, %v12142_v60  ;;  %v12199_v1 = vperm.slane %v6187_v38, %v8725_v23 }
 0x46f   : > { %13624 = vst [vmem:[#allocation27_spill] sm:$0xff] %v12179_v19  ;;  %v6325_v26 = vsel %vm653_vm0, %v6324_v39, %v6317_v57  ;;  %v12191_v21 = vperm.slane %v6215_v27, %v8725_v23  ;;  %v6224_v36 = vrot.slane %v12179_v19, 4  ;;  %v6392_v31 = vshrl.u32 %v12179_v19, 16 }
 0x470   : > { %v12195_v62 = vperm.slane %v6325_v26, %v8725_v23  ;;  %v12201_v39 = vpop.permute.xlu0 %6788  ;;  %v6369_v14 = vpack.i.b16 %v6368_v2, %v6367_v63  ;;  %v6421_v37 = vshrl.u32 %v12161_v5, 16  ;;  %v6197_v55 = vsel %vm653_vm0, 0, %v6196_v42 }
 0x471   : > { %v6393_v49 = vpack.i.b16 %v6392_v31, %v6391_v15  ;;  %v6350_v26 = vshrl.u32 %v12135_v46, 16  ;;  %v6225_v38 = vsel %vm653_vm0, 0, %v6224_v36  ;;  %v6372_v63 = vpack.i.b16 %v6281_v47, %v12154_v29 }
 0x472   : > { %13625 = vst [vmem:[#allocation25_spill] sm:$0xff] %v12195_v62  ;;  %v6336_v27 = vrot.slane %v12195_v62, 4  ;;  %v6416_v19 = vshrl.u32 %v12195_v62, 16  ;;  %v6402_v2 = vpack.i.b16 %v12191_v21, %v12199_v1  ;;  %v6326_v20 = vrot.slane %v6317_v57, 4 }
 0x473   : > { %v12185_v9 = vpop.permute.xlu2 %6772  ;;  %v12209_v33 = vpop.permute.xlu1 %6790  ;;  %v6440_v16 = vunpack.c.l.b16 %v6393_v49  ;;  %v6396_v48 = vpack.i.b16 %v6225_v38, %v6197_v55  ;;  %v6374_v54 = vshrl.u32 %v6281_v47, 16  ;;  %v6477_v15 = vunpack.c.l.b16 %v6369_v14 }
 0x474   : > { %v6417_v31 = vpack.i.b16 %v6416_v19, %v6415_v18  ;;  %v6337_v42 = vsel %vm653_vm0, 0, %v6336_v27  ;;  %v6398_v46 = vshrl.u32 %v6225_v38, 16  ;;  %v6397_v24 = vshrl.u32 %v6197_v55, 16 }
 0x475   : > { %v6441_v32 = vpack.c.b16 %v6440_v16, %v6439_v58  ;;  %v6445_v40 = vunpack.c.l.b16 %v6396_v48  ;;  %v6420_v36 = vpack.i.b16 %v6337_v42, %v12161_v5  ;;  %v6422_v6 = vshrl.u32 %v6337_v42, 16 }
 0x476   : > { %v6478_v29 = vunpack.c.l.b16 %v6417_v31  ;;  %v12220_v52 = vunpack.c.l.b16 %v6354_v59  ;;  %v12222_v57 = vunpack.c.l.b16 %v6402_v2  ;;  %v6327_v49 = vsel %vm653_vm0, %v12096_v30, %v6326_v20 }
 0x477   : > { %6442 = vrot.lane.b32.xlu1 %v6441_v32, %s8098_s22  ;;  %v6446_v18 = vpack.c.b16 %v6445_v40, %v6444_v8  ;;  %v6375_v19 = vpack.i.b16 %v6374_v54, %v6373_v43  ;;  %v6423_v16 = vpack.i.b16 %v6422_v6, %v6421_v37  ;;  %v6483_v58 = vunpack.c.l.b16 %v6420_v36 }
 0x478   : > { %v12227_v48 = vpop.permute.xlu0 %6818  ;;  %v6479_v5 = vpack.c.b16 %v6478_v29, %v6477_v15  ;;  %v6399_v47 = vpack.i.b16 %v6398_v46, %v6397_v24  ;;  %v6456_v55 = vpack.c.b16 %v12222_v57, %v12220_v52  ;;  %v12233_v59 = vperm.slane %v12139_v28, %v8725_v23 }
 0x479   : > { %6447 = vrot.lane.b32.xlu0 %v6446_v18, %s8099_s24  ;;  %v5684_v20 = vpack.i.b16 %v12047_v10, %v12015_v35  ;;  %v5614_v40 = vshrl.u32 %v11934_v12, 16  ;;  %v5661_v6 = vshrl.u32 %v11937_v56, 16  ;;  %v6482_v24 = vunpack.c.l.b16 %v6372_v63 }
 0x47a   : > { %6480 = vrot.lane.b32.xlu2 %v6479_v5, %s8098_s22  ;;  %v13626_v54 = vshrl.u32 %v12119_v44, 16  ;;  %v6379_v28 = vshrl.u32 %v12148_v41, 16  ;;  %v6380_v8 = vshrl.u32 %v12168_v53, 16  ;;  %v12248_v43 = vperm.slane %v6327_v49, %v8725_v23 }
 0x47b   : > { %v12218_v62 = vpop.permute.xlu2 %6778  ;;  %v12241_v32 = vpop.permute.xlu1 %6820  ;;  %v6487_v14 = vunpack.c.l.b16 %v6375_v19  ;;  %v6488_v37 = vunpack.c.l.b16 %v6423_v16  ;;  %v6355_v27 = vshrl.u32 %v12142_v60, 16  ;;  %v6484_v38 = vpack.c.b16 %v6483_v58, %v6482_v24 }
 0x47c   : > { %v6351_v30 = vpack.i.b16 %v6350_v26, %v13626_v54  ;;  %v6450_v2 = vunpack.c.l.b16 %v6399_v47  ;;  %v12251_v31 = vpack.i.b16 %v6380_v8, %v6379_v28  ;;  %v6356_v63 = vshrl.u32 %v12100_v61, 16 }
 0x47d   : > { %v6403_v44 = vshrl.u32 %v12199_v1, 16  ;;  %v6404_v26 = vshrl.u32 %v12191_v21, 16  ;;  %v6142_v15 = vrot.slane %v12142_v60, 4  ;;  %v6170_v42 = vrot.slane %v12100_v61, 4 }
 0x47e   : > { %v6449_v36 = vunpack.c.l.b16 %v6351_v30  ;;  %v6357_v29 = vpack.i.b16 %v6356_v63, %v6355_v27  ;;  %v6198_v49 = vrot.slane %v12199_v1, 4  ;;  %v6226_v18 = vrot.slane %v12191_v21, 4 }
 0x47f   : > { %6485 = vrot.lane.b32.xlu1 %v6484_v38, %s8099_s24  ;;  %v6489_v19 = vpack.c.b16 %v6488_v37, %v6487_v14  ;;  %v6405_v16 = vpack.i.b16 %v6404_v26, %v6403_v44  ;;  %v6143_v5 = vsel %vm653_vm0, 0, %v6142_v15  ;;  %v5662_v58 = vshrl.u32 %v11940_v22, 16 }
 0x480   : > { %v12265_v47 = vpop.permute.xlu0 %6824  ;;  %v6451_v60 = vpack.c.b16 %v6450_v2, %v6449_v36  ;;  %v6426_v61 = vpack.i.b16 %v12248_v43, %v12233_v59  ;;  %v6171_v24 = vsel %vm653_vm0, 0, %v6170_v42  ;;  %v6227_v1 = vsel %vm653_vm0, 0, %v6226_v18 }
 0x481   : > { %6490 = vrot.lane.b32.xlu0 %v6489_v19, %s8101_s26  ;;  %v6459_v21 = vunpack.c.l.b16 %v6357_v29  ;;  %v6460_v54 = vunpack.c.l.b16 %v6405_v16  ;;  %v6199_v30 = vsel %vm653_vm0, 0, %v6198_v49  ;;  %v6360_v28 = vpack.i.b16 %v6171_v24, %v6143_v5 }
 0x482   : > { %6452 = vrot.lane.b32.xlu2 %v6451_v60, %s8101_s26  ;;  %v6408_v14 = vpack.i.b16 %v6227_v1, %v6199_v30  ;;  %v5686_v37 = vshrl.u32 %v12047_v10, 16  ;;  %v5755_v27 = vunpack.c.l.b16 %v12049_v7  ;;  %v5540_v38 = vrot.slane %v11968_v51, 4  ;;  %v13632_v7 = vld [vmem:[#allocation41_spill] sm:$0xff] }
 0x483   : > { %v12258_v46 = vpop.permute.xlu2 %6784  ;;  %v12274_v8 = vpop.permute.xlu1 %6770  ;;  %v6428_v2 = vshrl.u32 %v12248_v43, 16  ;;  %v12280_v63 = vpack.c.b16 %v6460_v54, %v6459_v21  ;;  %v12282_v44 = vunpack.c.l.b16 %v5684_v20  ;;  %v13627_v26 = vrot.slane %v11982_v0, 4 }
 0x484   : > { %v6493_v42 = vunpack.c.l.b16 %v6426_v61  ;;  %v12289_v36 = vunpack.c.l.b16 %v6360_v28  ;;  %v12291_v29 = vunpack.c.l.b16 %v6408_v14  ;;  %v13628_v49 = vshrl.u32 %v11950_v50, 16 }
 0x485   : > { %v12287_v15 = vsel %vm653_vm0, 0, %v13627_v26  ;;  %v6427_v51 = vshrl.u32 %v12233_v59, 16  ;;  %v6254_v19 = vrot.slane %v12148_v41, 4  ;;  %v6282_v20 = vrot.slane %v12168_v53, 4 }
 0x486   : > { %v5615_v18 = vpack.i.b16 %v5614_v40, %v13628_v49  ;;  %v5663_v16 = vpack.i.b16 %v5662_v58, %v5661_v6  ;;  %v13629_v0 = vpack.i.b16 %v12168_v53, %v12148_v41  ;;  %v6466_v21 = vpack.c.b16 %v12291_v29, %v12289_v36 }
 0x487   : > { %v6361_v54 = vshrl.u32 %v6143_v5, 16  ;;  %v6362_v28 = vshrl.u32 %v6171_v24, 16  ;;  %6457 = vrot.lane.b32.xlu1 %v6456_v55, %s8095_s18  ;;  %v6429_v40 = vpack.i.b16 %v6428_v2, %v6427_v51  ;;  %v12310_v14 = vsel %vm653_vm0, 0, %v6254_v19 }
 0x488   : > { %v6492_v61 = vunpack.c.l.b16 %v13629_v0  ;;  %v12313_v6 = vsel %vm653_vm0, 0, %v6282_v20  ;;  %v5428_v41 = vrot.slane %v11934_v12, 4  ;;  %v12316_v53 = vpop.permute.xlu0 %6774  ;;  %v5456_v26 = vrot.slane %v11937_v56, 4 }
 0x489   : > { %v6363_v24 = vpack.i.b16 %v6362_v28, %v6361_v54  ;;  %5700 = vrot.lane.b32.xlu0 %v11799_v13, %s8098_s22  ;;  %v6409_v52 = vshrl.u32 %v6199_v30, 16  ;;  %v6410_v57 = vshrl.u32 %v6227_v1, 16  ;;  %v5541_v55 = vsel %vm653_vm0, 0, %v5540_v38 }
 0x48a   : > { %v6494_v58 = vpack.c.b16 %v6493_v42, %v6492_v61  ;;  %v5484_v2 = vrot.slane %v11940_v22, 4  ;;  %v5717_v42 = vunpack.c.l.b16 %v5615_v18  ;;  %v13630_v49 = vshrl.u32 %v12015_v35, 16 }
 0x48b   : > { %v12298_v60 = vpop.permute.xlu2 %6806  ;;  %v12326_v12 = vpop.permute.xlu1 %6776  ;;  %v5568_v56 = vrot.slane %v12015_v35, 4  ;;  %v5400_v19 = vrot.slane %v11950_v50, 4  ;;  %v6498_v13 = vunpack.c.l.b16 %v6429_v40  ;;  %v6411_v30 = vpack.i.b16 %v6410_v57, %v6409_v52 }
 0x48c   : > { %6495 = vrot.lane.b32.xlu2 %v6494_v58, %s8095_s18  ;;  %v12330_v51 = vpack.i.b16 %v5686_v37, %v13630_v49  ;;  %v5718_v1 = vunpack.c.l.b16 %v5663_v16  ;;  %v5596_v38 = vrot.slane %v12047_v10, 4  ;;  %v6385_v22 = vshrl.u32 %v12310_v14, 16 }
 0x48d   : > { %v6386_v20 = vshrl.u32 %v12313_v6, 16  ;;  %v5429_v0 = vsel %vm653_vm0, 0, %v5428_v41  ;;  %v5457_v18 = vsel %vm653_vm0, 0, %v5456_v26  ;;  %v6497_v37 = vunpack.c.l.b16 %v12251_v31 }
 0x48e   : > { %v6469_v61 = vunpack.c.l.b16 %v6363_v24  ;;  %v6470_v54 = vunpack.c.l.b16 %v6411_v30  ;;  %v5485_v35 = vsel %vm653_vm0, 0, %v5484_v2  ;;  %v6338_v16 = vrot.slane %v12248_v43, 4 }
 0x48f   : > { %v12344_v28 = vpack.i.b16 %v6386_v20, %v6385_v22  ;;  %v5401_v40 = vsel %vm653_vm0, 0, %v5400_v19  ;;  %5738 = vrot.lane.b32.xlu1 %v11868_v4, %s8098_s22  ;;  %v6499_v41 = vpack.c.b16 %v6498_v13, %v6497_v37  ;;  %v5569_v58 = vsel %vm653_vm0, 0, %v5568_v56 }
 0x490   : > { %v12351_v31 = vpack.c.b16 %v6470_v54, %v6469_v61  ;;  %v5597_v24 = vsel %vm653_vm0, 0, %v5596_v38  ;;  %v12355_v26 = vpop.permute.xlu0 %6780  ;;  %v6310_v43 = vrot.slane %v12233_v59, 4  ;;  %v5620_v52 = vshrl.u32 %v5429_v0, 16 }
 0x491   : > { %v5667_v57 = vshrl.u32 %v5457_v18, 16  ;;  %v5668_v2 = vshrl.u32 %v5485_v35, 16  ;;  %6500 = vrot.lane.b32.xlu0 %v6499_v41, %s8096_s19  ;;  %v12359_v49 = vpack.c.b16 %v5718_v1, %v5717_v42  ;;  %v5756_v4 = vunpack.c.l.b16 %v12330_v51 }
 0x492   : > { %v5642_v19 = vpack.i.b16 %v5541_v55, %v12287_v15  ;;  %v5619_v13 = vshrl.u32 %v5401_v40, 16  ;;  %v12368_v30 = vsel %vm653_vm0, 0, %v6338_v16  ;;  %v5644_v59 = vshrl.u32 %v5541_v55, 16 }
 0x493   : > { %v12341_v50 = vpop.permute.xlu2 %6812  ;;  %v12365_v56 = vpop.permute.xlu1 %6782  ;;  %v5691_v38 = vshrl.u32 %v5569_v58, 16  ;;  %v5692_v22 = vshrl.u32 %v5597_v24, 16  ;;  %v6976_v20 = vrot.slane %v12201_v39, 4  ;;  %v5690_v42 = vpack.i.b16 %v5597_v24, %v5569_v58 }
 0x494   : > { %6462 = vrot.lane.b32.xlu2 %v12280_v63, %s8096_s19  ;;  %v5618_v1 = vpack.i.b16 %v5429_v0, %v5401_v40  ;;  %v5666_v37 = vpack.i.b16 %v5485_v35, %v5457_v18  ;;  %v6311_v51 = vsel %vm653_vm0, 0, %v6310_v43  ;;  %v5621_v61 = vpack.i.b16 %v5620_v52, %v5619_v13 }
 0x495   : > { %v5669_v54 = vpack.i.b16 %v5668_v2, %v5667_v57  ;;  %v5643_v41 = vshrl.u32 %v12287_v15, 16  ;;  %v6864_v63 = vrot.slane %v12033_v34, 4  ;;  %v6948_v10 = vrot.slane %v12130_v17, 4  ;;  %v13634_v2 = vld [vmem:[#allocation42_spill] sm:$0xff] }
 0x496   : > { %v6892_v16 = vrot.slane %v12209_v33, 4  ;;  %v6432_v55 = vpack.i.b16 %v12368_v30, %v6311_v51  ;;  %v7004_v5 = vrot.slane %v12086_v3, 4  ;;  %v12378_v39 = vunpack.c.l.b16 %v5642_v19 }
 0x497   : > { %v5645_v0 = vpack.i.b16 %v5644_v59, %v5643_v41  ;;  %v5693_v18 = vpack.i.b16 %v5692_v22, %v5691_v38  ;;  %v6977_v35 = vsel %vm653_vm0, %v6976_v20, %v12185_v9  ;;  %v13631_v34 = vpack.c.b16 %v11833_v25, %v11831_v45 }
 0x498   : > { %v12386_v17 = vunpack.c.l.b16 %v5690_v42  ;;  %v12388_v33 = vunpack.c.l.b16 %v5618_v1  ;;  %v12390_v15 = vunpack.c.l.b16 %v5666_v37  ;;  %v6858_v3 = vrot.slane %v12218_v62, 4  ;;  %v6803_v58 = vpop.permute.xlu0 %6802 }
 0x499   : > { %5705 = vrot.lane.b32.xlu1 %v13631_v34, %s8099_s24  ;;  %v12395_v24 = vpack.c.b16 %v5756_v4, %v5755_v27  ;;  %v5727_v9 = vunpack.c.l.b16 %v5621_v61  ;;  %v5728_v43 = vunpack.c.l.b16 %v5669_v54  ;;  %v6865_v52 = vsel %vm653_vm0, %v6864_v63, %v12274_v8  ;;  %6467 = vrot.lane.b32.xlu0 %v6466_v21, %s8097_s21  ;;  %v13633_v8 = vld [vmem:[#allocation62_spill] sm:$0xff] }
 0x49a   : > { %v6949_v45 = vsel %vm653_vm0, %v6948_v10, %v12298_v60  ;;  %v6893_v25 = vsel %vm653_vm0, %v6892_v16, %v12316_v53  ;;  %v6503_v62 = vunpack.c.l.b16 %v6432_v55  ;;  %v12408_v27 = vperm.slane %v6977_v35, %v13632_v7  ;;  %v13658_v16 = vld [vmem:[#allocation72_spill] sm:$0xff] }
 0x49b   : > { %v6763_v40 = vpop.permute.xlu2 %6762  ;;  %v7005_v57 = vsel %vm653_vm0, %v7004_v5, %v12326_v12  ;;  %v13635_v4 = vpack.c.b16 %v13633_v8, %v13634_v2  ;;  %v5765_v60 = vunpack.c.l.b16 %v5645_v0  ;;  %v5766_v10 = vunpack.c.l.b16 %v5693_v18  ;;  %v6805_v53 = vpop.permute.xlu1 %6804 }
 0x49c   : > { %v13636_v19 = vpack.i.b16 %v12313_v6, %v12310_v14  ;;  %v6434_v29 = vshrl.u32 %v12368_v30, 16  ;;  %v6869_v12 = vperm.slane %v6865_v52, %v13632_v7  ;;  %v12426_v13 = vperm.slane %v6949_v45, %v13632_v7  ;;  %v13641_v45 = vld [vmem:[#allocation30_spill] sm:$0xff] }
 0x49d   : > { %5743 = vrot.lane.b32.xlu2 %v13635_v4, %s8099_s24  ;;  %v12429_v59 = vperm.slane %v6893_v25, %v13632_v7  ;;  %v6859_v38 = vsel %vm653_vm0, %v6858_v3, %v6763_v40  ;;  %v12433_v14 = vperm.slane %v7005_v57, %v13632_v7  ;;  %v6433_v30 = vshrl.u32 %v6311_v51, 16  ;;  %v13638_v40 = vld [vmem:[#allocation33_spill] sm:$0xff] }
 0x49e   : > { %v6502_v36 = vunpack.c.l.b16 %v13636_v19  ;;  %v12435_v22 = vpack.c.b16 %v5728_v43, %v5727_v9  ;;  %v6920_v42 = vrot.slane %v12227_v48, 4  ;;  %v7032_v1 = vrot.slane %v12241_v32, 4  ;;  %v13637_v48 = vld [vmem:[#allocation69_spill] sm:$0xff]  ;;  %v13639_v9 = vld [vmem:[#allocation20_spill] sm:$0xff] }
 0x49f   : > { %v12440_v37 = vpack.c.b16 %v5766_v10, %v5765_v60  ;;  %v6998_v61 = vrot.slane %v12258_v46, 4  ;;  %v7060_v54 = vrot.slane %v12265_v47, 4  ;;  %v6863_v41 = vperm.slane %v6859_v38, %v13632_v7  ;;  %v13640_v43 = vld [vmem:[#allocation36_spill] sm:$0xff] }
 0x4a0   : > { %v6504_v6 = vpack.c.b16 %v6503_v62, %v6502_v36  ;;  %v6435_v63 = vpack.i.b16 %v6434_v29, %v6433_v30  ;;  %v6870_v51 = vrot.slane %v6869_v12, 4  ;;  %v6809_v0 = vpop.permute.xlu0 %6808  ;;  %v4945_v18 = vshrl.u32 %v13637_v48, 16  ;;  %v13642_v62 = vld [vmem:[#allocation23_spill] sm:$0xff]  ;;  %v13643_v60 = vld [vmem:[#allocation60_spill] sm:$0xff]  ;;  %v13644_v36 = vld [vmem:[#allocation70_spill] sm:$0xff] }
 0x4a1   : > { %v7010_v32 = vrot.slane %v12433_v14, 4  ;;  %5748 = vrot.lane.b32.xlu0 %v13638_v40, %s8101_s26  ;;  %v6507_v34 = vunpack.c.l.b16 %v12344_v28  ;;  %v6921_v3 = vsel %vm653_vm0, %v6920_v42, %v6803_v58  ;;  %v4944_v52 = vshrl.u32 %v13640_v43, 16  ;;  %v13645_v29 = vld [vmem:[#allocation58_spill] sm:$0xff]  ;;  %v13646_v40 = vld [vmem:[#allocation45_spill] sm:$0xff]  ;;  %v13656_v46 = vld [vmem:[#allocation32_spill] sm:$0xff] }
 0x4a2   : > { %6505 = vrot.lane.b32.xlu1 %v6504_v6, %s8097_s21  ;;  %v4992_v25 = vshrl.u32 %v13641_v45, 16  ;;  %v4969_v57 = vshrl.u32 %v13642_v62, 16  ;;  %v6872_v2 = vrot.slane %v6863_v41, 4  ;;  %v6508_v4 = vunpack.c.l.b16 %v6435_v63 }
 0x4a3   : > { %v6769_v47 = vpop.permute.xlu2 %6768  ;;  %v4921_v10 = vshrl.u32 %v13643_v60, 16  ;;  %v4946_v28 = vpack.i.b16 %v4945_v18, %v4944_v52  ;;  %v4993_v58 = vshrl.u32 %v13644_v36, 16  ;;  %v4968_v38 = vshrl.u32 %v13645_v29, 16  ;;  %v12470_v42 = vpop.permute.xlu1 %6810 }
 0x4a4   : > { %v6999_v19 = vsel %vm653_vm0, %v6998_v61, %v6769_v47  ;;  %v6871_v6 = vsel %vm653_vm0, %v6870_v51, %v6863_v41  ;;  %v12468_v30 = vperm.slane %v6921_v3, %v13632_v7  ;;  %v4745_v63 = vrot.slane %v13643_v60, 4 }
 0x4a5   : > { %5710 = vrot.lane.b32.xlu2 %v13639_v9, %s8101_s26  ;;  %v4920_v9 = vshrl.u32 %v13646_v40, 16  ;;  %v7033_v35 = vsel %vm653_vm0, %v7032_v1, %v6805_v53  ;;  %v4994_v55 = vpack.i.b16 %v4993_v58, %v4992_v25  ;;  %v4970_v61 = vpack.i.b16 %v4969_v57, %v4968_v38 }
 0x4a6   : > { %v4801_v18 = vrot.slane %v13642_v62, 4  ;;  %v6873_v47 = vsel %vm653_vm0, %v6869_v12, %v6872_v2  ;;  %v7003_v52 = vperm.slane %v6999_v19, %v13632_v7  ;;  %v4717_v51 = vrot.slane %v13646_v40, 4  ;;  %v13648_v2 = vld [vmem:[#allocation59_spill] sm:$0xff] }
 0x4a7   : > { %v4922_v41 = vpack.i.b16 %v4921_v10, %v4920_v9  ;;  %v12482_v3 = vperm.slane %v6871_v6, %v8725_v23  ;;  %v6509_v5 = vpack.c.b16 %v6508_v4, %v6507_v34  ;;  %v5054_v53 = vunpack.c.l.b16 %v4946_v28 }
 0x4a8   : > { %v6815_v20 = vpop.permute.xlu0 %6814  ;;  %v4773_v1 = vrot.slane %v13645_v29, 4  ;;  %v12487_v12 = vperm.slane %v7033_v35, %v13632_v7  ;;  %v7061_v57 = vsel %vm653_vm0, %v7060_v54, %v6809_v0  ;;  %v4746_v19 = vsel %vm653_vm0, 0, %v4745_v63 }
 0x4a9   : > { %v12496_v58 = vperm.slane %v6873_v47, %v8725_v23  ;;  %v5055_v34 = vunpack.c.l.b16 %v4994_v55  ;;  %v5017_v4 = vunpack.c.l.b16 %v4970_v61  ;;  %v12500_v28 = vsel %vm653_vm0, 0, %v4801_v18 }
 0x4aa   : > { %6472 = vrot.lane.b32.xlu1 %v12351_v31, %s8100_s25  ;;  %v13647_v31 = vld [vmem:[#allocation15_spill] sm:$0xff]  ;;  %v7011_v35 = vsel %vm653_vm0, %v7010_v32, %v7003_v52  ;;  %v7012_v54 = vrot.slane %v7003_v52, 4  ;;  %v5016_v0 = vunpack.c.l.b16 %v4922_v41  ;;  %v4718_v38 = vsel %vm653_vm0, 0, %v4717_v51 }
 0x4ab   : > { %v13649_v10 = vpack.c.b16 %v13647_v31, %v13648_v2  ;;  %v12505_v6 = vperm.slane %v7061_v57, %v13632_v7  ;;  %v4774_v9 = vsel %vm653_vm0, 0, %v4773_v1  ;;  %v4925_v63 = vpack.i.b16 %v4746_v19, %v4718_v38  ;;  %v12518_v57 = vpop.permute.xlu1 %6816  ;;  %v6799_v8 = vpop.permute.xlu2 %6798 }
 0x4ac   : > { %v4885_v47 = vrot.slane %v13641_v45, 4  ;;  %v4973_v61 = vpack.i.b16 %v12500_v28, %v4774_v9  ;;  %v4857_v32 = vrot.slane %v13637_v48, 4  ;;  %v12514_v18 = vperm.slane %v7011_v35, %v8725_v23  ;;  %v13652_v35 = vld [vmem:[#allocation39_spill] sm:$0xff] }
 0x4ad   : > { %5715 = vrot.lane.b32.xlu0 %v13649_v10, %s8095_s18  ;;  %6510 = vrot.lane.b32.xlu2 %v6509_v5, %s8100_s25  ;;  %v5056_v52 = vpack.c.b16 %v5055_v34, %v5054_v53  ;;  %v5018_v41 = vpack.c.b16 %v5017_v4, %v5016_v0  ;;  %v4913_v51 = vrot.slane %v13644_v36, 4  ;;  %v13650_v31 = vpack.c.b16 %v12282_v44, %v12028_v11  ;;  %v13651_v10 = vld [vmem:[#allocation55_spill] sm:$0xff]  ;;  %v13653_v53 = vld [vmem:[#allocation68_spill] sm:$0xff] }
 0x4ae   : > { %v4829_v2 = vrot.slane %v13640_v43, 4  ;;  %v12527_v5 = vperm.slane %v13651_v10, %v8725_v23  ;;  %v5003_v34 = vpack.i.b16 %v13653_v53, %v13652_v35  ;;  %v7013_v4 = vsel %vm653_vm0, %v12433_v14, %v7012_v54  ;;  %v13654_v10 = vld [vmem:[#allocation46_spill] sm:$0xff] }
 0x4af   : > { %v5021_v25 = vunpack.c.l.b16 %v4925_v63  ;;  %v4886_v21 = vsel %vm653_vm0, 0, %v4885_v47  ;;  %v6942_v11 = vrot.slane %v6815_v20, 4  ;;  %v5022_v44 = vunpack.c.l.b16 %v4973_v61  ;;  %v13655_v63 = vld [vmem:[#allocation54_spill] sm:$0xff] }
 0x4b0   : > { %v6765_v55 = vpop.permute.xlu0 %6764  ;;  %v4955_v1 = vpack.i.b16 %v13654_v10, %v12527_v5  ;;  %v4914_v14 = vsel %vm653_vm0, 0, %v4913_v51  ;;  %v4927_v54 = vshrl.u32 %v4746_v19, 16  ;;  %v12541_v0 = vunpack.c.l.b16 %v5003_v34 }
 0x4b1   : > { %v4931_v47 = vpack.i.b16 %v13656_v46, %v13655_v63  ;;  %v4830_v20 = vsel %vm653_vm0, 0, %v4829_v2  ;;  %v4926_v36 = vshrl.u32 %v4718_v38, 16  ;;  %v4998_v45 = vshrl.u32 %v4886_v21, 16 }
 0x4b2   : > { %5753 = vrot.lane.b32.xlu1 %v13650_v31, %s8095_s18  ;;  %v4858_v31 = vsel %vm653_vm0, 0, %v4857_v32  ;;  %v12546_v61 = vunpack.c.l.b16 %v4955_v1  ;;  %v13657_v32 = vld [vmem:[#allocation34_spill] sm:$0xff]  ;;  %v6943_v19 = vsel %vm653_vm0, %v6942_v11, %v6799_v8  ;;  %v12559_v1 = vperm.slane %v7013_v4, %v8725_v23 }
 0x4b3   : > { %v4979_v48 = vpack.i.b16 %v13658_v16, %v13657_v32  ;;  %v4949_v43 = vpack.i.b16 %v4858_v31, %v4830_v20  ;;  %v12554_v34 = vunpack.c.l.b16 %v4931_v47  ;;  %v5023_v2 = vpack.c.b16 %v5022_v44, %v5021_v25 }
 0x4b4   : > { %v4928_v40 = vpack.i.b16 %v4927_v54, %v4926_v36  ;;  %v4974_v62 = vshrl.u32 %v4774_v9, 16  ;;  %v4999_v38 = vshrl.u32 %v4914_v14, 16  ;;  %v4932_v4 = vshrl.u32 %v13655_v63, 16  ;;  %v6767_v36 = vpop.permute.xlu1 %6766 }
 0x4b5   : > { %5057 = vrot.lane.b32.xlu0 %v5056_v52, %s8098_s22  ;;  %5019 = vrot.lane.b32.xlu2 %v5018_v41, %s8098_s22  ;;  %v4997_v52 = vpack.i.b16 %v4914_v14, %v4886_v21  ;;  %v4975_v41 = vshrl.u32 %v12500_v28, 16  ;;  %v12556_v60 = vunpack.c.l.b16 %v4979_v48  ;;  %v4951_v21 = vshrl.u32 %v4858_v31, 16 }
 0x4b6   : > { %v12567_v48 = vperm.slane %v6943_v19, %v13632_v7  ;;  %v4933_v25 = vshrl.u32 %v13656_v46, 16  ;;  %v5059_v9 = vunpack.c.l.b16 %v4949_v43  ;;  %v4950_v44 = vshrl.u32 %v4830_v20, 16 }
 0x4b7   : > { %v5060_v28 = vunpack.c.l.b16 %v4997_v52  ;;  %v5000_v31 = vpack.i.b16 %v4999_v38, %v4998_v45  ;;  %v7054_v14 = vrot.slane %v12518_v57, 4  ;;  %v4980_v52 = vshrl.u32 %v13657_v32, 16 }
 0x4b8   : > { %v6795_v54 = vpop.permute.xlu0 %6794  ;;  %v4934_v47 = vpack.i.b16 %v4933_v25, %v4932_v4  ;;  %v4981_v19 = vshrl.u32 %v13658_v16, 16  ;;  %v5026_v8 = vunpack.c.l.b16 %v4928_v40  ;;  %v4952_v51 = vpack.i.b16 %v4951_v21, %v4950_v44 }
 0x4b9   : > { %v5061_v11 = vpack.c.b16 %v5060_v28, %v5059_v9  ;;  %v13659_v43 = vrot.slane %v12426_v13, 4  ;;  %v13661_v38 = vrot.slane %v12365_v56, 4  ;;  %v13662_v40 = vrot.slane %v12470_v42, 4 }
 0x4ba   : > { %5720 = vrot.lane.b32.xlu1 %v12359_v49, %s8096_s19  ;;  %v4976_v49 = vpack.i.b16 %v4975_v41, %v4974_v62  ;;  %v13660_v62 = vrot.slane %v12355_v26, 4  ;;  %v4719_v41 = vrot.slane %v13655_v63, 4  ;;  %v5065_v4 = vunpack.c.l.b16 %v5000_v31 }
 0x4bb   : > { %v6955_v45 = vsel %vm653_vm0, %v13659_v43, %v12567_v48  ;;  %v6887_v28 = vsel %vm653_vm0, %v13661_v38, %v6767_v36  ;;  %v5036_v25 = vunpack.c.l.b16 %v4934_v47  ;;  %v4775_v26 = vrot.slane %v13657_v32, 4 }
 0x4bc   : > { %v6971_v20 = vsel %vm653_vm0, %v13660_v62, %v6765_v55  ;;  %v5027_v21 = vunpack.c.l.b16 %v4976_v49  ;;  %v6956_v55 = vrot.slane %v12567_v48, 4  ;;  %v12598_v63 = vperm.slane %v6955_v45, %v8725_v23  ;;  %v6797_v62 = vpop.permute.xlu1 %6796 }
 0x4bd   : > { %5024 = vrot.lane.b32.xlu0 %v5023_v2, %s8099_s24  ;;  %5758 = vrot.lane.b32.xlu2 %v12395_v24, %s8096_s19  ;;  %v4747_v2 = vrot.slane %v13656_v46, 4  ;;  %v4982_v24 = vpack.i.b16 %v4981_v19, %v4980_v52  ;;  %v6915_v46 = vsel %vm653_vm0, %v13662_v40, %v6795_v54  ;;  %v12601_v56 = vperm.slane %v6971_v20, %v13632_v7 }
 0x4be   : > { %v5064_v42 = vunpack.c.l.b16 %v4952_v51  ;;  %v12605_v36 = vperm.slane %v6915_v46, %v13632_v7  ;;  %v4720_v31 = vsel %vm653_vm0, 0, %v4719_v41  ;;  %v4803_v32 = vrot.slane %v13658_v16, 4 }
 0x4bf   : > { %v5037_v9 = vunpack.c.l.b16 %v4982_v24  ;;  %v12593_v44 = vsel %vm653_vm0, 0, %v4747_v2  ;;  %v12612_v54 = vperm.slane %v6887_v28, %v13632_v7  ;;  %v13663_v47 = vpack.c.b16 %v12386_v17, %v12378_v39 }
 0x4c0   : > { %v5028_v52 = vpack.c.b16 %v5027_v21, %v5026_v8  ;;  %v4937_v51 = vpack.i.b16 %v12593_v44, %v4720_v31  ;;  %v13664_v19 = vpack.c.b16 %v12390_v15, %v12388_v33  ;;  %v4776_v2 = vsel %vm653_vm0, 0, %v4775_v26  ;;  %v6801_v21 = vpop.permute.xlu0 %6800 }
 0x4c1   : > { %v12607_v49 = vpack.c.b16 %v5037_v9, %v5036_v25  ;;  %v4804_v16 = vsel %vm653_vm0, 0, %v4803_v32  ;;  %v4956_v43 = vshrl.u32 %v12527_v5, 16  ;;  %v4957_v45 = vshrl.u32 %v13654_v10, 16 }
 0x4c2   : > { %5062 = vrot.lane.b32.xlu1 %v5061_v11, %s8099_s24  ;;  %v5066_v11 = vpack.c.b16 %v5065_v4, %v5064_v42  ;;  %v4985_v39 = vpack.i.b16 %v4804_v16, %v4776_v2  ;;  %v5004_v17 = vshrl.u32 %v13652_v35, 16  ;;  %v5005_v8 = vshrl.u32 %v13653_v53, 16 }
 0x4c3   : > { %v4831_v20 = vrot.slane %v12527_v5, 4  ;;  %v13665_v33 = vrot.slane %v12408_v27, 4  ;;  %v13666_v24 = vrot.slane %v12468_v30, 4  ;;  %v4958_v38 = vpack.i.b16 %v4957_v45, %v4956_v43 }
 0x4c4   : > { %v4859_v28 = vrot.slane %v13654_v10, 4  ;;  %v13667_v40 = vrot.slane %v12429_v59, 4  ;;  %v12643_v5 = vunpack.c.l.b16 %v4937_v51  ;;  %v12645_v4 = vunpack.c.l.b16 %v4985_v39 }
 0x4c5   : > { %5763 = vrot.lane.b32.xlu0 %v13663_v47, %s8097_s21  ;;  %5725 = vrot.lane.b32.xlu2 %v13664_v19, %s8097_s21  ;;  %v6983_v15 = vsel %vm653_vm0, %v13665_v33, %v12601_v56  ;;  %v6927_v41 = vsel %vm653_vm0, %v13666_v24, %v12605_v36  ;;  %v5006_v25 = vpack.i.b16 %v5005_v8, %v5004_v17  ;;  %v13668_v9 = vrot.slane %v12341_v50, 4 }
 0x4c6   : > { %v6899_v46 = vsel %vm653_vm0, %v13667_v40, %v12612_v54  ;;  %v4832_v42 = vsel %vm653_vm0, 0, %v4831_v20  ;;  %v4860_v32 = vsel %vm653_vm0, 0, %v4859_v28  ;;  %v4887_v10 = vrot.slane %v13652_v35, 4 }
 0x4c7   : > { %v7027_v26 = vsel %vm653_vm0, %v13668_v9, %v6797_v62  ;;  %v12654_v47 = vperm.slane %v6927_v41, %v8725_v23  ;;  %v5043_v51 = vpack.c.b16 %v12645_v4, %v12643_v5  ;;  %v5074_v19 = vunpack.c.l.b16 %v4958_v38 }
 0x4c8   : > { %v5075_v43 = vunpack.c.l.b16 %v5006_v25  ;;  %v7055_v50 = vsel %vm653_vm0, %v7054_v14, %v6801_v21  ;;  %v4888_v45 = vsel %vm653_vm0, 0, %v4887_v10  ;;  %v4915_v62 = vrot.slane %v13653_v53, 4 }
 0x4c9   : > { %v4961_v39 = vpack.i.b16 %v4860_v32, %v4832_v42  ;;  %v4963_v17 = vshrl.u32 %v4860_v32, 16  ;;  %v5010_v8 = vshrl.u32 %v4888_v45, 16  ;;  %v4938_v57 = vshrl.u32 %v4720_v31, 16 }
 0x4ca   : > { %5029 = vrot.lane.b32.xlu1 %v5028_v52, %s8101_s26  ;;  %v12666_v35 = vpack.c.b16 %v5075_v43, %v5074_v19  ;;  %v4962_v52 = vshrl.u32 %v4832_v42, 16  ;;  %v4916_v20 = vsel %vm653_vm0, 0, %v4915_v62  ;;  %v4939_v14 = vshrl.u32 %v12593_v44, 16 }
 0x4cb   : > { %v4986_v33 = vshrl.u32 %v4776_v2, 16  ;;  %v5009_v24 = vpack.i.b16 %v4916_v20, %v4888_v45  ;;  %v5011_v53 = vshrl.u32 %v4916_v20, 16  ;;  %v4987_v38 = vshrl.u32 %v4804_v16, 16 }
 0x4cc   : > { %v4964_v41 = vpack.i.b16 %v4963_v17, %v4962_v52  ;;  %v6900_v28 = vrot.slane %v12612_v54, 4  ;;  %v7059_v40 = vperm.slane %v7055_v50, %v13632_v7  ;;  %v4940_v21 = vpack.i.b16 %v4939_v14, %v4938_v57 }
 0x4cd   : > { %5730 = vrot.lane.b32.xlu0 %v12435_v22, %s8100_s25  ;;  %5067 = vrot.lane.b32.xlu2 %v5066_v11, %s8101_s26  ;;  %v12673_v22 = vperm.slane %v6899_v46, %v8725_v23  ;;  %v12676_v25 = vunpack.c.l.b16 %v4961_v39  ;;  %v12678_v11 = vunpack.c.l.b16 %v5009_v24  ;;  %v5012_v31 = vpack.i.b16 %v5011_v53, %v5010_v8 }
 0x4ce   : > { %v4988_v9 = vpack.i.b16 %v4987_v38, %v4986_v33  ;;  %v6928_v44 = vrot.slane %v12605_v36, 4  ;;  %v6938_v2 = vrot.slane %v12654_v47, 4  ;;  %v7031_v16 = vperm.slane %v7027_v26, %v13632_v7 }
 0x4cf   : > { %v5084_v42 = vunpack.c.l.b16 %v4964_v41  ;;  %v5081_v54 = vpack.c.b16 %v12678_v11, %v12676_v25  ;;  %v5085_v46 = vunpack.c.l.b16 %v5012_v31  ;;  %v5046_v32 = vunpack.c.l.b16 %v4940_v21 }
 0x4d0   : > { %v5047_v10 = vunpack.c.l.b16 %v4988_v9  ;;  %v6966_v19 = vrot.slane %v12598_v63, 4  ;;  %v6910_v43 = vrot.slane %v12673_v22, 4  ;;  %v13669_v36 = vrot.slane %v12505_v6, 4 }
 0x4d1   : > { %v7133_v7 = vshrl.u32 %v12654_v47, 16  ;;  %v6984_v26 = vrot.slane %v12601_v56, 4  ;;  %v13670_v45 = vpack.c.b16 %v12541_v0, %v12546_v61  ;;  %v12701_v62 = vpack.c.b16 %v5085_v46, %v5084_v42 }
 0x4d2   : > { %5768 = vrot.lane.b32.xlu1 %v12440_v37, %s8100_s25  ;;  %v7067_v50 = vsel %vm653_vm0, %v13669_v36, %v7059_v40  ;;  %v12695_v37 = vperm.slane %v6983_v15, %v8725_v23  ;;  %v12703_v39 = vpack.c.b16 %v5047_v10, %v5046_v32  ;;  %v6957_v52 = vsel %vm653_vm0, %v12426_v13, %v6956_v55 }
 0x4d3   : > { %v13671_v56 = vpack.c.b16 %v12556_v60, %v12554_v34  ;;  %v7086_v15 = vshrl.u32 %v12673_v22, 16  ;;  %v7134_v17 = vshrl.u32 %v12598_v63, 16  ;;  %v12716_v0 = vsel %vm653_vm0, 0, %v6938_v2 }
 0x4d4   : > { %v6901_v61 = vsel %vm653_vm0, %v12429_v59, %v6900_v28  ;;  %v6929_v48 = vsel %vm653_vm0, %v12468_v30, %v6928_v44  ;;  %v13672_v13 = vrot.slane %v12487_v12, 4  ;;  %v12726_v60 = vperm.slane %v7067_v50, %v8725_v23  ;;  %v12728_v34 = vpop.permute.xlu2 %6480 }
 0x4d5   : > { %5072 = vrot.lane.b32.xlu0 %v13670_v45, %s8095_s18  ;;  %5034 = vrot.lane.b32.xlu2 %v13671_v56, %s8095_s18  ;;  %v7085_v8 = vshrl.u32 %v12482_v3, 16  ;;  %v7135_v20 = vpack.i.b16 %v7134_v17, %v7133_v7  ;;  %v12732_v57 = vsel %vm653_vm0, 0, %v6910_v43  ;;  %v12735_v59 = vsel %vm653_vm0, 0, %v6966_v19 }
 0x4d6   : > { %v7039_v55 = vsel %vm653_vm0, %v13672_v13, %v7031_v16  ;;  %v6985_v30 = vsel %vm653_vm0, %v12408_v27, %v6984_v26  ;;  %v7068_v14 = vrot.slane %v7059_v40, 4  ;;  %v7138_v33 = vpack.i.b16 %v12735_v59, %v12716_v0 }
 0x4d7   : > { %v7109_v24 = vshrl.u32 %v12695_v37, 16  ;;  %v7040_v41 = vrot.slane %v7031_v16, 4  ;;  %v12743_v53 = vperm.slane %v7039_v55, %v8725_v23  ;;  %v7087_v38 = vpack.i.b16 %v7086_v15, %v7085_v8 }
 0x4d8   : > { %v13673_v28 = vrot.slane %v12482_v3, 4  ;;  %v12751_v31 = vperm.slane %v6901_v61, %v8725_v23  ;;  %v12754_v27 = vperm.slane %v6929_v48, %v8725_v23  ;;  %v7110_v9 = vshrl.u32 %v12514_v18, 16 }
 0x4d9   : > { %v12762_v44 = vperm.slane %v6957_v52, %v8725_v23  ;;  %v6994_v2 = vrot.slane %v12695_v37, 4  ;;  %v7182_v16 = vunpack.c.l.b16 %v7135_v20  ;;  %v7158_v42 = vshrl.u32 %v12726_v60, 16 }
 0x4da   : > { %v12748_v21 = vsel %vm653_vm0, 0, %v13673_v28  ;;  %5039 = vrot.lane.b32.xlu1 %v12607_v49, %s8096_s19  ;;  %v12767_v46 = vperm.slane %v6985_v30, %v8725_v23  ;;  %v7069_v32 = vsel %vm653_vm0, %v12505_v6, %v7068_v14  ;;  %v12775_v49 = vunpack.c.l.b16 %v7138_v33 }
 0x4db   : > { %v7090_v40 = vpack.i.b16 %v12732_v57, %v12748_v21  ;;  %v7111_v10 = vpack.i.b16 %v7110_v9, %v7109_v24  ;;  %v12779_v19 = vsel %vm653_vm0, %v12487_v12, %v7040_v41  ;;  %v7050_v43 = vrot.slane %v12743_v53, 4 }
 0x4dc   : > { %v7181_v36 = vunpack.c.l.b16 %v7087_v38  ;;  %v7157_v6 = vshrl.u32 %v12743_v53, 16  ;;  %v7078_v50 = vrot.slane %v12726_v60, 4  ;;  %v7096_v5 = vpack.i.b16 %v12751_v31, %v12496_v58 }
 0x4dd   : > { %5044 = vrot.lane.b32.xlu0 %v5043_v51, %s8097_s21  ;;  %5077 = vrot.lane.b32.xlu2 %v12666_v35, %s8096_s19  ;;  %v7186_v7 = vunpack.c.l.b16 %v7090_v40  ;;  %v7144_v4 = vpack.i.b16 %v12762_v44, %v12754_v27  ;;  %v12791_v12 = vperm.slane %v7069_v32, %v8725_v23  ;;  %v12793_v51 = vpop.permute.xlu2 %6452  ;;  %v6995_v35 = vsel %vm653_vm0, 0, %v6994_v2 }
 0x4de   : > { %v7183_v26 = vpack.c.b16 %v7182_v16, %v7181_v36  ;;  %v7159_v45 = vpack.i.b16 %v7158_v42, %v7157_v6  ;;  %v7219_v56 = vunpack.c.l.b16 %v7111_v10  ;;  %v12797_v15 = vunpack.c.l.b16 %v7096_v5 }
 0x4df   : > { %v7188_v52 = vpack.c.b16 %v12775_v49, %v7186_v7  ;;  %v12799_v17 = vunpack.c.l.b16 %v7144_v4  ;;  %v7097_v61 = vshrl.u32 %v12496_v58, 16  ;;  %v7098_v48 = vshrl.u32 %v12751_v31, 16 }
 0x4e0   : > { %v7145_v13 = vshrl.u32 %v12754_v27, 16  ;;  %v7146_v55 = vshrl.u32 %v12762_v44, 16  ;;  %v13674_v8 = vrot.slane %v12514_v18, 4  ;;  %v7079_v30 = vsel %vm653_vm0, 0, %v7078_v50 }
 0x4e1   : > { %v7198_v14 = vpack.c.b16 %v12799_v17, %v12797_v15  ;;  %v7120_v33 = vpack.i.b16 %v12559_v1, %v12767_v46  ;;  %v7220_v24 = vunpack.c.l.b16 %v7159_v45  ;;  %v7099_v41 = vpack.i.b16 %v7098_v48, %v7097_v61 }
 0x4e2   : > { %5082 = vrot.lane.b32.xlu1 %v5081_v54, %s8097_s21  ;;  %v7023_v20 = vsel %vm653_vm0, 0, %v13674_v8  ;;  %v7147_v38 = vpack.i.b16 %v7146_v55, %v7145_v13  ;;  %v7121_v28 = vshrl.u32 %v12767_v46, 16  ;;  %v7051_v25 = vsel %vm653_vm0, 0, %v7050_v43 }
 0x4e3   : > { %v7114_v11 = vpack.i.b16 %v7023_v20, %v6995_v35  ;;  %v7115_v54 = vshrl.u32 %v6995_v35, 16  ;;  %v7122_v40 = vshrl.u32 %v12559_v1, 16  ;;  %v7162_v9 = vpack.i.b16 %v7079_v30, %v7051_v25 }
 0x4e4   : > { %v7164_v2 = vshrl.u32 %v7079_v30, 16  ;;  %v7201_v16 = vunpack.c.l.b16 %v7099_v41  ;;  %v7202_v42 = vunpack.c.l.b16 %v7147_v38  ;;  %v7116_v32 = vshrl.u32 %v7023_v20, 16 }
 0x4e5   : > { %5087 = vrot.lane.b32.xlu0 %v12701_v62, %s8100_s25  ;;  %5049 = vrot.lane.b32.xlu2 %v12703_v39, %s8100_s25  ;;  %v12824_v49 = vpack.i.b16 %v7122_v40, %v7121_v28  ;;  %v6996_v10 = vrot.slane %v12767_v46, 4  ;;  %v7024_v62 = vrot.slane %v12559_v1, 4  ;;  %v7221_v43 = vpack.c.b16 %v7220_v24, %v7219_v56 }
 0x4e6   : > { %v12828_v36 = vpop.permute.xlu2 %6495  ;;  %v7163_v6 = vshrl.u32 %v7051_v25, 16  ;;  %v7139_v50 = vshrl.u32 %v12716_v0, 16  ;;  %v12831_v7 = vpack.c.b16 %v7202_v42, %v7201_v16  ;;  %v7224_v39 = vunpack.c.l.b16 %v7114_v11 }
 0x4e7   : > { %v7092_v5 = vshrl.u32 %v12732_v57, 16  ;;  %v12835_v4 = vsel %vm653_vm0, 0, %v6996_v10  ;;  %v12838_v45 = vsel %vm653_vm0, 0, %v7024_v62  ;;  %v7140_v61 = vshrl.u32 %v12735_v59, 16 }
 0x4e8   : > { %v7165_v35 = vpack.i.b16 %v7164_v2, %v7163_v6  ;;  %v7126_v56 = vpack.i.b16 %v12838_v45, %v12835_v4  ;;  %v6884_v48 = vrot.slane %v12496_v58, 4  ;;  %v7091_v0 = vshrl.u32 %v12748_v21, 16 }
 0x4e9   : > { %v6912_v57 = vrot.slane %v12751_v31, 4  ;;  %v6940_v13 = vrot.slane %v12754_v27, 4  ;;  %v6968_v55 = vrot.slane %v12762_v44, 4  ;;  %v7225_v8 = vunpack.c.l.b16 %v7162_v9  ;;  %v12851_v24 = vpop.permute.xlu1 %6442 }
 0x4ea   : > { %7184 = vrot.lane.b32.xlu1 %v7183_v26, %s8098_s22  ;;  %v7117_v20 = vpack.i.b16 %v7116_v32, %v7115_v54  ;;  %v7141_v30 = vpack.i.b16 %v7140_v61, %v7139_v50  ;;  %v6885_v59 = vsel %vm653_vm0, 0, %v6884_v48  ;;  %v7093_v58 = vpack.i.b16 %v7092_v5, %v7091_v0 }
 0x4eb   : > { %v6913_v26 = vsel %vm653_vm0, 0, %v6912_v57  ;;  %v6941_v21 = vsel %vm653_vm0, 0, %v6940_v13  ;;  %v6969_v31 = vsel %vm653_vm0, 0, %v6968_v55  ;;  %v7230_v27 = vunpack.c.l.b16 %v7165_v35  ;;  %v12858_v28 = vpop.permute.xlu0 %6447 }
 0x4ec   : > { %v7102_v44 = vpack.i.b16 %v6913_v26, %v6885_v59  ;;  %v7150_v41 = vpack.i.b16 %v6969_v31, %v6941_v21  ;;  %v7127_v38 = vshrl.u32 %v12835_v4, 16  ;;  %v7103_v25 = vshrl.u32 %v6885_v59, 16  ;;  %v13679_v4 = vld [vmem:[#allocation17_spill] sm:$0xff] }
 0x4ed   : > { %7189 = vrot.lane.b32.xlu0 %v7188_v52, %s8099_s24  ;;  %7222 = vrot.lane.b32.xlu2 %v7221_v43, %s8098_s22  ;;  %v7104_v52 = vshrl.u32 %v6913_v26, 16  ;;  %v7151_v11 = vshrl.u32 %v6941_v21, 16  ;;  %v7152_v54 = vshrl.u32 %v6969_v31, 16  ;;  %v7192_v9 = vunpack.c.l.b16 %v7141_v30 }
 0x4ee   : > { %v12860_v40 = vpop.permute.xlu2 %6462  ;;  %v7206_v2 = vunpack.c.l.b16 %v7102_v44  ;;  %v7207_v16 = vunpack.c.l.b16 %v7150_v41  ;;  %v7128_v42 = vshrl.u32 %v12838_v45, 16  ;;  %v7226_v32 = vpack.c.b16 %v7225_v8, %v7224_v39  ;;  %v13680_v45 = vld [vmem:[#allocation27_spill] sm:$0xff] }
 0x4ef   : > { %v7229_v10 = vunpack.c.l.b16 %v7117_v20  ;;  %v7105_v62 = vpack.i.b16 %v7104_v52, %v7103_v25  ;;  %v7153_v43 = vpack.i.b16 %v7152_v54, %v7151_v11  ;;  %v7049_v6 = vperm.slane %v12779_v19, %v8725_v23 }
 0x4f0   : > { %v7191_v50 = vunpack.c.l.b16 %v7093_v58  ;;  %v7208_v5 = vpack.c.b16 %v7207_v16, %v7206_v2  ;;  %v7129_v35 = vpack.i.b16 %v7128_v42, %v7127_v38  ;;  %v7080_v55 = vrot.slane %v12791_v12, 4  ;;  %v13677_v42 = vld [vmem:[#allocation31_spill] sm:$0xff] }
 0x4f1   : > { %v7231_v61 = vpack.c.b16 %v7230_v27, %v7229_v10  ;;  %v7211_v48 = vunpack.c.l.b16 %v7105_v62  ;;  %v7212_v0 = vunpack.c.l.b16 %v7153_v43  ;;  %v7168_v13 = vpack.i.b16 %v12791_v12, %v7049_v6  ;;  %v6486_v39 = vpop.permute.xlu1 %6485 }
 0x4f2   : > { %7227 = vrot.lane.b32.xlu1 %v7226_v32, %s8099_s24  ;;  %v7193_v57 = vpack.c.b16 %v7192_v9, %v7191_v50  ;;  %v7170_v8 = vshrl.u32 %v12791_v12, 16  ;;  %v7052_v23 = vrot.slane %v7049_v6, 4  ;;  %v7169_v30 = vshrl.u32 %v7049_v6, 16  ;;  %v13675_v9 = vld [vmem:[#allocation28_spill] sm:$0xff]  ;;  %v13678_v32 = vld [vmem:[#allocation19_spill] sm:$0xff]  ;;  %v13681_v50 = vld [vmem:[#allocation21_spill] sm:$0xff] }
 0x4f3   : > { %v7213_v20 = vpack.c.b16 %v7212_v0, %v7211_v48  ;;  %v6491_v19 = vpop.permute.xlu0 %6490  ;;  %v7235_v58 = vunpack.c.l.b16 %v7168_v13  ;;  %v7081_v26 = vsel %vm653_vm0, 0, %v7080_v55  ;;  %v7234_v31 = vunpack.c.l.b16 %v7120_v33 }
 0x4f4   : > { %v7171_v21 = vpack.i.b16 %v7170_v8, %v7169_v30  ;;  %v7053_v27 = vsel %vm653_vm0, 0, %v7052_v23  ;;  %v7239_v1 = vunpack.c.l.b16 %v12824_v49  ;;  %v7176_v52 = vshrl.u32 %v7081_v26, 16  ;;  %v13676_v49 = vld [vmem:[#allocation25_spill] sm:$0xff] }
 0x4f5   : > { %7232 = vrot.lane.b32.xlu0 %v7231_v61, %s8101_s26  ;;  %7194 = vrot.lane.b32.xlu2 %v7193_v57, %s8101_s26  ;;  %v7174_v12 = vpack.i.b16 %v7081_v26, %v7053_v27  ;;  %v7236_v44 = vpack.c.b16 %v7235_v58, %v7234_v31  ;;  %v7244_v15 = vunpack.c.l.b16 %v7126_v56  ;;  %v7175_v17 = vshrl.u32 %v7053_v27, 16  ;;  %v13682_v61 = vld [vmem:[#allocation18_spill] sm:$0xff] }
 0x4f6   : > { %v7240_v38 = vunpack.c.l.b16 %v7171_v21  ;;  %v6414_v2 = vpack.i.b16 %v13676_v49, %v13675_v9  ;;  %v6366_v10 = vpack.i.b16 %v13678_v32, %v13677_v42  ;;  %v6390_v56 = vpack.i.b16 %v13680_v45, %v13679_v4 }
 0x4f7   : > { %v12871_v59 = vpop.permute.xlu2 %5743  ;;  %v7245_v46 = vunpack.c.l.b16 %v7174_v12  ;;  %v6342_v48 = vpack.i.b16 %v13682_v61, %v13681_v50  ;;  %v7249_v0 = vunpack.c.l.b16 %v7129_v35  ;;  %v13684_v50 = vld [vmem:[#allocation49_spill] sm:$0xff] }
 0x4f8   : > { %v7241_v11 = vpack.c.b16 %v7240_v38, %v7239_v1  ;;  %v6475_v6 = vunpack.c.l.b16 %v6414_v2  ;;  %v6474_v57 = vunpack.c.l.b16 %v6366_v10  ;;  %v6437_v13 = vunpack.c.l.b16 %v6390_v56 }
 0x4f9   : > { %v6458_v41 = vpop.permute.xlu1 %6457  ;;  %v6436_v23 = vunpack.c.l.b16 %v6342_v48  ;;  %v13685_v48 = vld [vmem:[#allocation71_spill] sm:$0xff] }
 0x4fa   : > { %7199 = vrot.lane.b32.xlu1 %v7198_v14, %s8095_s18  ;;  %v7246_v14 = vpack.c.b16 %v7245_v46, %v7244_v15  ;;  %v6476_v8 = vpack.c.b16 %v6475_v6, %v6474_v57  ;;  %v13683_v6 = vld [vmem:[#allocation48_spill] sm:$0xff] }
 0x4fb   : > { %v12885_v25 = vpop.permute.xlu0 %5700  ;;  %v6438_v26 = vpack.c.b16 %v6437_v13, %v6436_v23  ;;  %v5600_v61 = vpack.i.b16 %v13684_v50, %v13683_v6  ;;  %v13687_v13 = vld [vmem:[#allocation44_spill] sm:$0xff] }
 0x4fc   : > { %v6529_v58 = vsel %vm1049_vm3, %v6476_v8, %v12728_v34 }
 0x4fd   : > { %7204 = vrot.lane.b32.xlu0 %v12831_v7, %s8096_s19  ;;  %7237 = vrot.lane.b32.xlu2 %v7236_v44, %s8095_s18  ;;  %v7177_v7 = vpack.i.b16 %v7176_v52, %v7175_v17  ;;  %v6531_v31 = vsel %vm1053_vm4, %v6529_v58, %v6486_v39  ;;  %v6514_v35 = vsel %vm1049_vm3, %v6438_v26, %v12851_v24  ;;  %v5694_v23 = vunpack.c.l.b16 %v5600_v61  ;;  %s8031_s18 = scalar_lea.hbm %s13083_s2, 64 }
 0x4fe   : > { %v6516_v27 = vsel %vm1053_vm4, %v6514_v35, %v12858_v28  ;;  %v13689_v35 = vld [vmem:[#allocation37_spill] sm:$0xff]  ;;  %p8033_p9 = scmp.lt.s32.totalorder %s8031_s18, %s8027_s20 }
 0x4ff   : > { %v12888_v33 = vpop.permute.xlu2 %5710  ;;  %v7250_v43 = vunpack.c.l.b16 %v7177_v7  ;;  %v6518_v34 = vsel %vm1056_vm5, %v6516_v27, %v12793_v51 }
 0x500   : > { %v6520_v39 = vsel %vm1059_vm6, %v6518_v34, %v6458_v41  ;;  %p8034_p2 = por %p8033_p9, %p8032_p11 }
 0x501   : > { %v12895_v54 = vpop.permute.xlu1 %5738  ;;  %v7251_v55 = vpack.c.b16 %v7250_v43, %v7249_v0  ;;  %v13686_v0 = vld [vmem:[#allocation78_spill] sm:$0xff] }
 0x502   : > { %7242 = vrot.lane.b32.xlu1 %v7241_v11, %s8096_s19  ;;  %v5648_v57 = vpack.i.b16 %v13686_v0, %v13685_v48  ;;  %p8035_p10 = pnand %p8034_p2, %p8030_p8 }
 0x503   : > { %v6501_v16 = vpop.permute.xlu0 %6500 }
 0x505   : > { %7247 = vrot.lane.b32.xlu0 %v7246_v14, %s8097_s21  ;;  %7209 = vrot.lane.b32.xlu2 %v7208_v5, %s8097_s21 }
 0x507   : > { %v6511_v62 = vpop.permute.xlu2 %6510 }
 0x50a   : > { %7214 = vrot.lane.b32.xlu1 %v7213_v20, %s8100_s25  ;;  %v6533_v20 = vsel %vm1056_vm5, %v6531_v31, %v6491_v19  ;;  %v6522_v19 = vsel %vm1062_vm7, %v6520_v39, %v12860_v40 }
 0x50b   : > { %v5706_v5 = vpop.permute.xlu1 %5705  ;;  %v6468_v30 = vpop.permute.xlu0 %6467  ;;  %v6535_v44 = vsel %vm1059_vm6, %v6533_v20, %v12828_v36  ;;  %v13690_v20 = vld [vmem:[#allocation43_spill] sm:$0xff] }
 0x50c   : > { %v6537_v1 = vsel %vm1062_vm7, %v6535_v44, %v6501_v16  ;;  %v6524_v52 = vsel %vm1065_vm8, %v6522_v19, %v6468_v30  ;;  %v5695_v30 = vunpack.c.l.b16 %v5648_v57  ;;  %v13691_v27 = vpack.i.b16 %v13689_v35, %v13690_v20 }
 0x50d   : > { %7252 = vrot.lane.b32.xlu2 %v7251_v55, %s8100_s25  ;;  %v13688_v55 = vld [vmem:[#allocation40_spill] sm:$0xff] }
 0x50e   : > { %v5624_v8 = vpack.i.b16 %v13688_v55, %v13687_v13  ;;  %v5696_v34 = vpack.c.b16 %v5695_v30, %v5694_v23 }
 0x50f   : > { %v12910_v21 = vpop.permute.xlu2 %5019 }
 0x510   : > { %v5732_v31 = vunpack.c.l.b16 %v5624_v8 }
 0x513   : > { %v5749_v38 = vpop.permute.xlu0 %5748 }
 0x514   : > { %v6506_v12 = vpop.permute.xlu1 %6505 }
 0x515   : > { %v6539_v24 = vsel %vm1065_vm8, %v6537_v1, %v6506_v12  ;;  %v5733_v12 = vunpack.c.l.b16 %v13691_v27  ;;  %v5772_v1 = vsel %vm1049_vm3, %v5696_v34, %v12885_v25 }
 0x516   : > { %v6541_v28 = vsel %vm1068_vm9, %v6539_v24, %v6511_v62  ;;  %v5774_v24 = vsel %vm1053_vm4, %v5772_v1, %v5706_v5 }
 0x517   : > { %v5759_v46 = vpop.permute.xlu2 %5758  ;;  %v6545_v15 = vunpack.c.l.b16 %v6541_v28  ;;  %v6547_v17 = vunpack.c.h.b16 %v6541_v28  ;;  %v5734_v39 = vpack.c.b16 %v5733_v12, %v5732_v31 }
 0x519   : > { %v5787_v19 = vsel %vm1049_vm3, %v5734_v39, %v12895_v54 }
 0x51c   : > { %v6473_v11 = vpop.permute.xlu1 %6472 }
 0x51d   : > { %v6526_v36 = vsel %vm1068_vm9, %v6524_v52, %v6473_v11  ;;  %v5776_v52 = vsel %vm1056_vm5, %v5774_v24, %v12888_v33  ;;  %v5789_v11 = vsel %vm1053_vm4, %v5787_v19, %v12871_v59  ;;  %v13695_v33 = vld [vmem:[#allocation30_spill] sm:$0xff] }
 0x51e   : > { %v6544_v51 = vunpack.c.l.b16 %v6526_v36  ;;  %v6546_v14 = vunpack.c.h.b16 %v6526_v36 }
 0x51f   : > { %v5716_v7 = vpop.permute.xlu0 %5715  ;;  %v5726_v41 = vpop.permute.xlu2 %5725 }
 0x520   : > { %v6548_v9 = vpack.c.b16 %v6545_v15, %v6544_v51  ;;  %v6549_v49 = vpack.c.b16 %v6547_v17, %v6546_v14  ;;  %v5778_v36 = vsel %vm1059_vm6, %v5776_v52, %v5716_v7  ;;  %v13692_v51 = vld [vmem:[#allocation23_spill] sm:$0xff]  ;;  %v5791_v14 = vsel %vm1056_vm5, %v5789_v11, %v5749_v38 }
 0x521   : > { %v4967_v25 = vpack.i.b16 %v13692_v51, %v13645_v29  ;;  %v13697_v29 = vld [vmem:[#allocation36_spill] sm:$0xff] }
 0x522   : > { %6552 = vst [vmem:[#allocation3 + $0x70] sm:$0xff] %v6548_v9  ;;  %v13693_v9 = vld [vmem:[#allocation45_spill] sm:$0xff] }
 0x523   : > { %6553 = vst [vmem:[#allocation3 + $0x78] sm:$0xff] %v6549_v49  ;;  %v13694_v49 = vld [vmem:[#allocation60_spill] sm:$0xff]  ;;  %v5014_v7 = vunpack.c.l.b16 %v4967_v25 }
 0x524   : > { %v5754_v2 = vpop.permute.xlu1 %5753 }
 0x525   : > { %v5793_v54 = vsel %vm1059_vm6, %v5791_v14, %v5754_v2 }
 0x527   : > { %v12930_v16 = vpop.permute.xlu0 %5057  ;;  %v12932_v32 = vpop.permute.xlu2 %5067 }
 0x529   : > { %v7814_v40 = vld [vmem:[#allocation3 + $0x70] sm:$0xf]  ;;  %v7852_v42 = vld [vmem:[#allocation3 + $0x74] sm:$0xf] }
 0x52a   : > { %v7853_v10 = vld [vmem:[#allocation3 + $0x74] sm:$0xf0]  ;;  %v7816_v4 = vld [vmem:[#allocation3 + $0x78] sm:$0xf0] }
 0x52b   : > { %v7815_v45 = vor.u32 %v7853_v10, %v7814_v40  ;;  %v7819_v56 = vor.u32 %v7852_v42, %v7816_v4  ;;  %v4919_v40 = vpack.i.b16 %v13694_v49, %v13693_v9  ;;  %v13696_v42 = vld [vmem:[#allocation70_spill] sm:$0xff]  ;;  %v5795_v4 = vsel %vm1062_vm7, %v5793_v54, %v5759_v46 }
 0x52c   : > { %v5721_v62 = vpop.permute.xlu1 %5720  ;;  %v4991_v10 = vpack.i.b16 %v13696_v42, %v13695_v33 }
 0x52d   : > { %7418 = vmatpush.bf16.msra.mxu0 %v7815_v45  ;;  %7446 = vmatpush.bf16.msra.mxu2 %v7819_v56  ;;  %v5780_v5 = vsel %vm1062_vm7, %v5778_v36, %v5721_v62  ;;  %v13698_v56 = vld [vmem:[#allocation69_spill] sm:$0xff]  ;;  %v5013_v2 = vunpack.c.l.b16 %v4919_v40 }
 0x52e   : > { %v5782_v59 = vsel %vm1065_vm8, %v5780_v5, %v5726_v41  ;;  %v4943_v38 = vpack.i.b16 %v13698_v56, %v13697_v29  ;;  %v5052_v50 = vunpack.c.l.b16 %v4991_v10 }
 0x52f   : > { %v5025_v43 = vpop.permute.xlu0 %5024  ;;  %v5035_v58 = vpop.permute.xlu2 %5034  ;;  %v5015_v55 = vpack.c.b16 %v5014_v7, %v5013_v2  ;;  %v7156_v7 = vpack.i.b16 %v12726_v60, %v12743_v53  ;;  %v7084_v53 = vpack.i.b16 %v12673_v22, %v12482_v3  ;;  %v7774_v22 = vld [vmem:[#allocation3 + $0x20] sm:$0xf] }
 0x530   : > { %v5051_v8 = vunpack.c.l.b16 %v4943_v38 }
 0x531   : > { %v5091_v31 = vsel %vm1049_vm3, %v5015_v55, %v12910_v21  ;;  %v7217_v60 = vunpack.c.l.b16 %v7156_v7 }
 0x532   : > { %v5053_v35 = vpack.c.b16 %v5052_v50, %v5051_v8  ;;  %v5093_v20 = vsel %vm1053_vm4, %v5091_v31, %v5025_v43  ;;  %v7178_v31 = vunpack.c.l.b16 %v7084_v53 }
 0x534   : > { %v5063_v26 = vpop.permute.xlu1 %5062  ;;  %v5106_v12 = vsel %vm1049_vm3, %v5053_v35, %v12930_v16 }
 0x535   : > { %v5108_v34 = vsel %vm1053_vm4, %v5106_v12, %v5063_v26 }
 0x536   : > { %v5110_v21 = vsel %vm1056_vm5, %v5108_v34, %v12932_v32 }
 0x537   : > { %v5764_v44 = vpop.permute.xlu0 %5763  ;;  %v5078_v15 = vpop.permute.xlu2 %5077 }
 0x538   : > { %v5797_v62 = vsel %vm1065_vm8, %v5795_v4, %v5764_v44 }
 0x53c   : > { %v5030_v28 = vpop.permute.xlu1 %5029 }
 0x53d   : > { %v5095_v27 = vsel %vm1056_vm5, %v5093_v20, %v5030_v28 }
 0x53e   : > { %v5097_v1 = vsel %vm1059_vm6, %v5095_v27, %v5035_v58 }
 0x53f   : > { %v5731_v17 = vpop.permute.xlu0 %5730  ;;  %v5050_v46 = vpop.permute.xlu2 %5049 }
 0x540   : > { %v5784_v45 = vsel %vm1068_vm9, %v5782_v59, %v5731_v17 }
 0x541   : > { %v5802_v48 = vunpack.c.l.b16 %v5784_v45  ;;  %v5804_v0 = vunpack.c.h.b16 %v5784_v45 }
 0x544   : > { %v5769_v6 = vpop.permute.xlu1 %5768 }
 0x545   : > { %v5799_v61 = vsel %vm1068_vm9, %v5797_v62, %v5769_v6  ;;  %v7108_v62 = vpack.i.b16 %v12514_v18, %v12695_v37  ;;  %v7132_v6 = vpack.i.b16 %v12598_v63, %v12654_v47  ;;  %v7845_v63 = vld [vmem:[#allocation3 + $0x34] sm:$0xf0]  ;;  %v7844_v47 = vld [vmem:[#allocation3 + $0x34] sm:$0xf] }
 0x546   : > { %v5803_v57 = vunpack.c.l.b16 %v5799_v61  ;;  %v5805_v13 = vunpack.c.h.b16 %v5799_v61  ;;  %v7790_v61 = vld [vmem:[#allocation3 + $0x40] sm:$0xf] }
 0x547   : > { %v5073_v41 = vpop.permute.xlu0 %5072  ;;  %v7223_v28 = vpop.permute.xlu2 %7222  ;;  %v7216_v55 = vunpack.c.l.b16 %v7108_v62  ;;  %v7179_v8 = vunpack.c.l.b16 %v7132_v6 }
 0x548   : > { %v5806_v23 = vpack.c.b16 %v5803_v57, %v5802_v48  ;;  %v5807_v30 = vpack.c.b16 %v5805_v13, %v5804_v0  ;;  %v5112_v43 = vsel %vm1059_vm6, %v5110_v21, %v5073_v41  ;;  %v7847_v57 = vld [vmem:[#allocation3 + $0x44] sm:$0xf0]  ;;  %v7846_v13 = vld [vmem:[#allocation3 + $0x44] sm:$0xf]  ;;  %v7792_v41 = vld [vmem:[#allocation3 + $0x48] sm:$0xf0] }
 0x549   : > { %v5114_v26 = vsel %vm1062_vm7, %v5112_v43, %v5078_v15  ;;  %v7791_v18 = vor.u32 %v7847_v57, %v7790_v61  ;;  %v7795_v37 = vor.u32 %v7846_v13, %v7792_v41  ;;  %v7180_v27 = vpack.c.b16 %v7179_v8, %v7178_v31  ;;  %v7836_v41 = vld [vmem:[#allocation9 + $0x4] sm:$0xf] }
 0x54a   : > { %5810 = vst [vmem:[#allocation3 + $0x60] sm:$0xff] %v5806_v23  ;;  %v7784_v23 = vld [vmem:[#allocation3 + $0x38] sm:$0xf0] }
 0x54b   : > { %5811 = vst [vmem:[#allocation3 + $0x68] sm:$0xff] %v5807_v30  ;;  %v7218_v30 = vpack.c.b16 %v7217_v60, %v7216_v55  ;;  %v7787_v3 = vor.u32 %v7844_v47, %v7784_v23  ;;  %v7752_v55 = vld [vmem:[#allocation9 + $0x8] sm:$0xf0]  ;;  %v8102_v47 = vmov 0.0  }
 0x54c   : > { %v5040_v44 = vpop.permute.xlu1 %5039  ;;  %616 = vst.msk [vmem:[#allocation4] sm:$0xff] %vm615_vm13, %v8102_v47 }
 0x54d   : > { %v5099_v24 = vsel %vm1062_vm7, %v5097_v1, %v5040_v44  ;;  %v7271_v20 = vsel %vm1049_vm3, %v7218_v30, %v7223_v28  ;;  %v7843_v1 = vld [vmem:[#allocation3 + $0x24] sm:$0xf0]  ;;  %v7766_v28 = vld [vmem:[#allocation3 + $0x10] sm:$0xf]  ;;  %617 = vst.msk [vmem:[#allocation4 + $0x8] sm:$0xff] %vm615_vm13, %v8102_v47 }
 0x54e   : > { %618 = vst.msk [vmem:[#allocation5] sm:$0xff] %vm615_vm13, %v8102_v47 }
 0x54f   : > { %v5045_v39 = vpop.permute.xlu0 %5044  ;;  %v12986_v10 = vpop.permute.xlu2 %7194  ;;  %619 = vst.msk [vmem:[#allocation5 + $0x8] sm:$0xff] %vm615_vm13, %v8102_v47 }
 0x550   : > { %v5101_v11 = vsel %vm1065_vm8, %v5099_v24, %v5045_v39  ;;  %v7842_v39 = vld [vmem:[#allocation3 + $0x24] sm:$0xf]  ;;  %v7776_v24 = vld [vmem:[#allocation3 + $0x28] sm:$0xf0] }
 0x551   : > { %v7806_v19 = vld [vmem:[#allocation3 + $0x60] sm:$0xf]  ;;  %v7850_v52 = vld [vmem:[#allocation3 + $0x64] sm:$0xf]  ;;  %v5103_v25 = vsel %vm1068_vm9, %v5101_v11, %v5050_v46  ;;  %v7782_v46 = vld [vmem:[#allocation3 + $0x30] sm:$0xf]  ;;  %v7779_v11 = vor.u32 %v7842_v39, %v7776_v24 }
 0x552   : > { %v7851_v36 = vld [vmem:[#allocation3 + $0x64] sm:$0xf0]  ;;  %v7808_v16 = vld [vmem:[#allocation3 + $0x68] sm:$0xf0]  ;;  %v5121_v54 = vunpack.c.l.b16 %v5103_v25  ;;  %v5123_v9 = vunpack.c.h.b16 %v5103_v25  ;;  %v7783_v12 = vor.u32 %v7845_v63, %v7782_v46  ;;  %v7755_v63 = vor.u32 %v7836_v41, %v7752_v55 }
 0x553   : > { %v7807_v17 = vor.u32 %v7851_v36, %v7806_v19  ;;  %v7811_v51 = vor.u32 %v7850_v52, %v7808_v16  ;;  %v7775_v52 = vor.u32 %v7843_v1, %v7774_v22  ;;  %v7841_v16 = vld [vmem:[#allocation3 + $0x14] sm:$0xf0] }
 0x554   : > { %v5083_v58 = vpop.permute.xlu1 %5082 }
 0x555   : > { %7419 = vmatpush.bf16.msra.mxu0 %v7807_v17  ;;  %7447 = vmatpush.bf16.msra.mxu2 %v7811_v51  ;;  %v5116_v32 = vsel %vm1065_vm8, %v5114_v26, %v5083_v58  ;;  %v7840_v17 = vld [vmem:[#allocation3 + $0x14] sm:$0xf]  ;;  %v7768_v51 = vld [vmem:[#allocation3 + $0x18] sm:$0xf0] }
 0x557   : > { %v5088_v14 = vpop.permute.xlu0 %5087  ;;  %v7238_v48 = vpop.permute.xlu2 %7237 }
 0x558   : > { %v5118_v5 = vsel %vm1068_vm9, %v5116_v32, %v5088_v14  ;;  %v7767_v14 = vor.u32 %v7841_v16, %v7766_v28 }
 0x559   : > { %v5122_v49 = vunpack.c.l.b16 %v5118_v5  ;;  %v5124_v40 = vunpack.c.h.b16 %v5118_v5  ;;  %v7771_v5 = vor.u32 %v7840_v17, %v7768_v51  ;;  %v7486_v17 = vld [vmem:[#allocation5] sm:$0xff] }
 0x55b   : > { %v5125_v33 = vpack.c.b16 %v5122_v49, %v5121_v54  ;;  %v5126_v42 = vpack.c.b16 %v5124_v40, %v5123_v9  ;;  %v7758_v54 = vld [vmem:[#allocation3] sm:$0xf]  ;;  %v7839_v40 = vld [vmem:[#allocation3 + $0x4] sm:$0xf0] }
 0x55c   : > { %v7185_v15 = vpop.permute.xlu1 %7184 }
 0x55d   : > { %5129 = vst [vmem:[#allocation3 + $0x50] sm:$0xff] %v5125_v33  ;;  %v7256_v21 = vsel %vm1049_vm3, %v7180_v27, %v7185_v15  ;;  %v7838_v33 = vld [vmem:[#allocation3 + $0x4] sm:$0xf]  ;;  %v7750_v15 = vld [vmem:[#allocation9] sm:$0xf] }
 0x55e   : > { %5130 = vst [vmem:[#allocation3 + $0x58] sm:$0xff] %v5126_v42  ;;  %v7760_v42 = vld [vmem:[#allocation3 + $0x8] sm:$0xf0] }
 0x55f   : > { %v7190_v59 = vpop.permute.xlu0 %7189  ;;  %v7210_v43 = vpop.permute.xlu2 %7209 }
 0x560   : > { %v7258_v36 = vsel %vm1053_vm4, %v7256_v21, %v7190_v59  ;;  %v7837_v59 = vld [vmem:[#allocation9 + $0x4] sm:$0xf0] }
 0x561   : > { %v7260_v25 = vsel %vm1056_vm5, %v7258_v36, %v12986_v10  ;;  %v7759_v10 = vor.u32 %v7839_v40, %v7758_v54  ;;  %v7474_v36 = vld [vmem:[#allocation4] sm:$0xff] }
 0x564   : > { %v7798_v4 = vld [vmem:[#allocation3 + $0x50] sm:$0xf]  ;;  %v7848_v45 = vld [vmem:[#allocation3 + $0x54] sm:$0xf]  ;;  %v7228_v29 = vpop.permute.xlu1 %7227 }
 0x565   : > { %v7849_v56 = vld [vmem:[#allocation3 + $0x54] sm:$0xf0]  ;;  %v7800_v38 = vld [vmem:[#allocation3 + $0x58] sm:$0xf0]  ;;  %v7273_v44 = vsel %vm1053_vm4, %v7271_v20, %v7228_v29 }
 0x566   : > { %v7799_v2 = vor.u32 %v7849_v56, %v7798_v4  ;;  %v7803_v50 = vor.u32 %v7848_v45, %v7800_v38  ;;  %v7763_v45 = vor.u32 %v7838_v33, %v7760_v42  ;;  %v7751_v56 = vor.u32 %v7837_v59, %v7750_v15 }
 0x567   : > { %v7233_v0 = vpop.permute.xlu0 %7232  ;;  %v7253_v29 = vpop.permute.xlu2 %7252 }
 0x568   : > { %7420 = vmatpush.bf16.msra.mxu0 %v7799_v2  ;;  %7448 = vmatpush.bf16.msra.mxu2 %v7803_v50  ;;  %v7275_v19 = vsel %vm1056_vm5, %v7273_v44, %v7233_v0 }
 0x569   : > { %v7277_v26 = vsel %vm1059_vm6, %v7275_v19, %v7238_v48 }
 0x56c   : > { %7421 = vmatpush.bf16.msra.mxu0 %v7791_v18  ;;  %7449 = vmatpush.bf16.msra.mxu2 %v7795_v37  ;;  %v7200_v35 = vpop.permute.xlu1 %7199 }
 0x56d   : > { %v7262_v9 = vsel %vm1059_vm6, %v7260_v25, %v7200_v35  ;;  %v7475_v25 = vld [vmem:[#allocation4 + $0x8] sm:$0xff] }
 0x56f   : > { %v7205_v34 = vpop.permute.xlu0 %7204 }
 0x570   : > { %7422 = vmatpush.bf16.msra.mxu0 %v7783_v12  ;;  %7450 = vmatpush.bf16.msra.mxu2 %v7787_v3  ;;  %v7264_v4 = vsel %vm1062_vm7, %v7262_v9, %v7205_v34 }
 0x571   : > { %v7266_v62 = vsel %vm1065_vm8, %v7264_v4, %v7210_v43 }
 0x574   : > { %7423 = vmatpush.bf16.msra.mxu0 %v7775_v52  ;;  %7451 = vmatpush.bf16.msra.mxu2 %v7779_v11  ;;  %v7243_v58 = vpop.permute.xlu1 %7242 }
 0x575   : > { %v7279_v32 = vsel %vm1062_vm7, %v7277_v26, %v7243_v58 }
 0x577   : > { %v7248_v49 = vpop.permute.xlu0 %7247 }
 0x578   : > { %7424 = vmatpush.bf16.msra.mxu0 %v7767_v14  ;;  %7452 = vmatpush.bf16.msra.mxu2 %v7771_v5  ;;  %v7281_v7 = vsel %vm1065_vm8, %v7279_v32, %v7248_v49  ;;  %v7487_v14 = vld [vmem:[#allocation5 + $0x8] sm:$0xff] }
 0x579   : > { %v7283_v38 = vsel %vm1068_vm9, %v7281_v7, %v7253_v29 }
 0x57a   : > { %v7287_v50 = vunpack.c.l.b16 %v7283_v38  ;;  %v7289_v61 = vunpack.c.h.b16 %v7283_v38 }
 0x57c   : > { %7425 = vmatpush.bf16.msra.mxu0 %v7759_v10  ;;  %7453 = vmatpush.bf16.msra.mxu2 %v7763_v45  ;;  %v7215_v6 = vpop.permute.xlu1 %7214 }
 0x57d   : > { %v7268_v2 = vsel %vm1068_vm9, %v7266_v62, %v7215_v6 }
 0x57e   : > { %v7286_v48 = vunpack.c.l.b16 %v7268_v2  ;;  %v7288_v0 = vunpack.c.h.b16 %v7268_v2 }
 0x57f   : > { %7454 = vmatmul.bf16.vlgmr.msra.gmra.mxu2 %v7751_v56  ;;  %7426 = vmatmul.bf16.vlgmr.msra.gmra.mxu0 %v7751_v56 }
 0x580   : > { %v7290_v57 = vpack.c.b16 %v7287_v50, %v7286_v48  ;;  %v7291_v13 = vpack.c.b16 %v7289_v61, %v7288_v0 }
 0x582   : > { %7294 = vst [vmem:[#allocation3 + $0x80] sm:$0xff] %v7290_v57 }
 0x583   : > { %7295 = vst [vmem:[#allocation3 + $0x88] sm:$0xff] %v7291_v13 }
 0x589   : > { %v7822_v60 = vld [vmem:[#allocation3 + $0x80] sm:$0xf]  ;;  %v7854_v53 = vld [vmem:[#allocation3 + $0x84] sm:$0xf] }
 0x58a   : > { %v7855_v8 = vld [vmem:[#allocation3 + $0x84] sm:$0xf0]  ;;  %v7824_v18 = vld [vmem:[#allocation3 + $0x88] sm:$0xf0] }
 0x58b   : > { %v7823_v37 = vor.u32 %v7855_v8, %v7822_v60  ;;  %v7827_v46 = vor.u32 %v7854_v53, %v7824_v18 }
 0x58d   : > { %7439 = vmatpush.bf16.msra.mxu1 %v7823_v37  ;;  %7467 = vmatpush.bf16.msra.mxu3 %v7827_v46 }
 0x590   : > { %7828 = vmatmul.msk.bf16.vlgmr.msra.gmra.mxu1 %vm1049_vm3, %v7755_v63  ;;  %7829 = vmatmul.msk.bf16.vlgmr.msra.gmra.mxu3 %vm1049_vm3, %v7755_v63 }
 0x5fc   : > { %v7427_v30 = vpop.f32.mrf.mxu0 }
 0x602   : > { %v7455_v35 = vpop.f32.mrf.mxu2 }
 0x604   : > { %v7429_v1 = vpop.f32.mrf.mxu0 }
 0x60a   : > { %v7457_v24 = vpop.f32.mrf.mxu2 }
 0x60d   : > { %v7441_v23 = vpop.f32.mrf.mxu1 }
 0x60e   : > { %v13017_v31 = vadd.f32 %v7441_v23, %v7427_v30 }
 0x610   : > { %v7488_v27 = vmul.f32 %v13017_v31, %v13017_v31 }
 0x613   : > { %v7469_v20 = vpop.f32.mrf.mxu3 }
 0x614   : > { %v13021_v12 = vadd.f32 %v7469_v20, %v7455_v35 }
 0x615   : > { %v7443_v44 = vpop.f32.mrf.mxu1 }
 0x616   : > { %v7489_v3 = vmul.f32 %v13021_v12, %v13021_v12  ;;  %v7476_v22 = vadd.f32 %v13021_v12, %v13017_v31  ;;  %v13027_v39 = vadd.f32 %v7443_v44, %v7429_v1 }
 0x618   : > { %7477 = vadd.xlane.f32.xlu0 %v7476_v22  ;;  %v7492_v34 = vadd.f32 %v7489_v3, %v7488_v27  ;;  %v7490_v19 = vmul.f32 %v13027_v39, %v13027_v39 }
 0x61a   : > { %7493 = vadd.xlane.f32.xlu2 %v7492_v34 }
 0x61b   : > { %v7471_v21 = vpop.f32.mrf.mxu3 }
 0x61c   : > { %v13029_v43 = vadd.f32 %v7471_v21, %v7457_v24 }
 0x61e   : > { %v7491_v52 = vmul.f32 %v13029_v43, %v13029_v43  ;;  %v7479_v11 = vadd.f32 %v13029_v43, %v13027_v39 }
 0x620   : > { %7480 = vadd.xlane.f32.xlu1 %v7479_v11  ;;  %v7495_v28 = vadd.f32 %v7491_v52, %v7490_v19 }
 0x622   : > { %7496 = vadd.xlane.f32.xlu2 %v7495_v28 }
 0x68b   : > { %v7478_v16 = vpop.xlane.xlu0 %7477 }
 0x68c   : > { %v7482_v51 = vadd.f32 %v7478_v16, %v7474_v36 }
 0x68d   : > { %v7494_v26 = vpop.xlane.xlu2 %7493 }
 0x68e   : > { %7484 = vst.msk [vmem:[#allocation4] sm:$0xff] %vm615_vm13, %v7482_v51  ;;  %v7498_v58 = vadd.f32 %v7494_v26, %v7486_v17 }
 0x690   : > { %7500 = vst.msk [vmem:[#allocation5] sm:$0xff] %vm615_vm13, %v7498_v58 }
 0x693   : > { %v7481_v32 = vpop.xlane.xlu1 %7480 }
 0x694   : > { %v7483_v5 = vadd.f32 %v7481_v32, %v7475_v25 }
 0x695   : > { %v7497_v54 = vpop.xlane.xlu2 %7496  ;;  %v7506_v9 = vld [vmem:[#allocation4] sm:$0xff] }
 0x696   : > { %7485 = vst.msk [vmem:[#allocation4 + $0x8] sm:$0xff] %vm615_vm13, %v7483_v5  ;;  %v7499_v49 = vadd.f32 %v7497_v54, %v7487_v14  ;;  %v7508_v40 = vmul.f32 0.00390625, %v7506_v9 }
 0x697   : > { %v7510_v33 = vld [vmem:[#allocation5] sm:$0xff] }
 0x698   : > { %7501 = vst.msk [vmem:[#allocation5 + $0x8] sm:$0xff] %vm615_vm13, %v7499_v49  ;;  %v7512_v42 = vmul.f32 0.00390625, %v7510_v33  ;;  %7548 = vperm.xlu0 %7944, %v7508_v40   ;;  %v7514_v15 = vmul.f32 %v7508_v40, %v7508_v40 }
 0x69a   : > { %v7516_v59 = vsub.f32 %v7512_v42, %v7514_v15 }
 0x69c   : > { %v7518_v7 = vmax.f32 %v7516_v59, 0.0 }
 0x69d   : > { %v7507_v4 = vld [vmem:[#allocation4 + $0x8] sm:$0xff] }
 0x69e   : > { %v7509_v10 = vmul.f32 0.00390625, %v7507_v4  ;;  %v7520_v45 = vadd.f32 1e-05, %v7518_v7 }
 0x69f   : > { %v7511_v29 = vld [vmem:[#allocation5 + $0x8] sm:$0xff] }
 0x6a0   : > { %7553 = vperm.xlu1 %7945, %v7509_v10   ;;  %v7513_v56 = vmul.f32 0.00390625, %v7511_v29  ;;  %v7515_v38 = vmul.f32 %v7509_v10, %v7509_v10  ;;  %7947 = vrsqrt.f32 %v7520_v45  ;;  %vm7528_vm15 = vweird.f32 %v7520_v45 }
 0x6a2   : > { %v7517_v62 = vsub.f32 %v7513_v56, %v7515_v38 }
 0x6a4   : > { %v7519_v6 = vmax.f32 %v7517_v62, 0.0 }
 0x6a6   : > { %v7948_v2 = vpop.eup %7947  ;;  %v7521_v50 = vadd.f32 1e-05, %v7519_v6 }
 0x6a7   : > { %v7523_v61 = vmul.f32 %v7948_v2, %v7520_v45  ;;  %vm7529_vm14 = vweird.f32 %v7948_v2 }
 0x6a8   : > { %7949 = vrsqrt.f32 %v7521_v50  ;;  %vm7530_vm0 = vmor %vm7528_vm15, %vm7529_vm14  ;;  %vm7538_vm2 = vweird.f32 %v7521_v50 }
 0x6a9   : > { %v7524_v48 = vmul.f32 %v7948_v2, %v7523_v61 }
 0x6ab   : > { %v7525_v0 = vmul.f32 0.5, %v7524_v48 }
 0x6ad   : > { %v7526_v57 = vsub.f32 1.5, %v7525_v0 }
 0x6ae   : > { %v7950_v13 = vpop.eup %7949 }
 0x6af   : > { %v7527_v41 = vmul.f32 %v7948_v2, %v7526_v57  ;;  %v7533_v60 = vmul.f32 %v7950_v13, %v7521_v50  ;;  %vm7539_vm1 = vweird.f32 %v7950_v13 }
 0x6b0   : > { %vm7540_vm3 = vmor %vm7538_vm2, %vm7539_vm1 }
 0x6b1   : > { %v7531_v53 = vsel %vm7530_vm0, %v7948_v2, %v7527_v41  ;;  %v7534_v55 = vmul.f32 %v7950_v13, %v7533_v60 }
 0x6b2   : > { %7562 = vperm.xlu2 %7946, %v7531_v53  }
 0x6b3   : > { %v7535_v8 = vmul.f32 0.5, %v7534_v55 }
 0x6b5   : > { %v7536_v18 = vsub.f32 1.5, %v7535_v8 }
 0x6b7   : > { %v7537_v37 = vmul.f32 %v7950_v13, %v7536_v18 }
 0x6b9   : > { %v7541_v46 = vsel %vm7540_vm3, %v7950_v13, %v7537_v37 }
 0x6ba   : > { %7567 = vperm.xlu1 %7945, %v7541_v46  }
 0x70a   : > { %v7549_v63 = vpop.permute.xlu0 %7548 }
 0x70b   : > { %v7556_v47 = vsub.f32 %v13017_v31, %v7549_v63  ;;  %v7557_v23 = vsub.f32 %v13021_v12, %v7549_v63 }
 0x70c   : > { %v7563_v30 = vpop.permute.xlu2 %7562 }
 0x70d   : > { %v7570_v35 = vmul.f32 %v7563_v30, %v7556_v47  ;;  %v7571_v20 = vmul.f32 %v7563_v30, %v7557_v23 }
 0x70f   : > { %v7574_v27 = vmax.f32 %v7570_v35, 0.0  ;;  %v7575_v3 = vmax.f32 %v7571_v20, 0.0 }
 0x711   : > { %7578 = vst [vmem:[%s180_s27] sm:$0xff] %v7574_v27 }
 0x712   : > { %7579 = vst [vmem:[%s180_s27 + $0x8] sm:$0xff] %v7575_v3  ;;  %v7554_v22 = vpop.permute.xlu1 %7553 }
 0x713   : > { %v7558_v31 = vsub.f32 %v13027_v39, %v7554_v22  ;;  %v7559_v12 = vsub.f32 %v13029_v43, %v7554_v22 }
 0x72c   : > { %v7568_v44 = vpop.permute.xlu1 %7567 }
 0x72d   : > { %v7572_v34 = vmul.f32 %v7568_v44, %v7558_v31  ;;  %v7573_v1 = vmul.f32 %v7568_v44, %v7559_v12 }
 0x72f   : > { %v7576_v24 = vmax.f32 %v7572_v34, 0.0  ;;  %v7577_v21 = vmax.f32 %v7573_v1, 0.0 }
 0x731   : > { %7580 = vst [vmem:[%s180_s27 + $0x10] sm:$0xff] %v7576_v24 }
 0x732   : > { %7581 = vst [vmem:[%s180_s27 + $0x18] sm:$0xff] %v7577_v21 }
 0x733   : > { %8038 = shalt.err (!%p8035_p10)
}
 0x734   : > { %s8103_s5 = smov 256  }
 0x735   : > { %7863 = dma.vmem_to_hbm [thread:$0]  (%p8186_p7), %s7596_s14, 512, %s7598_s15, %s7583_s13, %s8103_s5, %s8103_s5, %s8098_s22  }
 0x736 PF: > { %s7612_s24 = sand.u32 1, %s8069_s9   ;;  %p13699_p12 = scmp.ge.s32.totalorder %s8081_s12, 2 }
 0x737   : > { %s7613_s25 = scalar_lea.sflag [#allocation8], %s7612_s24 }
 0x738   : > { %p7874_p13 = pnand %p13699_p12, %p8154_p6 }
 0x73a   : > { %p7875_p0 = pneg %p7874_p13 }
 0x73c   : > { %8064 = dma.done.wait (%p7875_p0), %s7613_s25, 512  }
 0x73d   : > { %8066 = vsyncadd (%p7875_p0), %s7613_s25, 4294966784  ;;  %p16_p3 = scmp.ge.s32.totalorder %s8172_s23, 4   ;;  %s13700_s9 = smov %s8073_s10 }
 0x73e   : > { %s13701_s10 = smov %s8077_s11  ;;  %s13702_s11 = smov %s8182_s28 }
 0x73f   : > { %s13703_s12 = smov %s8172_s23  ;;  %18 = sbr.rel (!%p16_p3) target bundleno = 6 (0x6), region = 78 }
 0x744   :  { %7619 = vsyncpa [#allocation7], 1 }
 0x745   :  { %7621 = vsyncpa [#allocation7 + $0x1], 1 }
 0x746   :  { %7622 = vsyncpa [#allocation10], 1 }
 0x747   :  { %7623 = vsyncpa [#allocation8], 1 }
 0x748   :  { %7625 = vsyncpa [#allocation8 + $0x1], 1 }

</bundles_post_ra>
